<compile_context>
chip_gen: v5e
topology: v5e:2x2
jax: 0.10.0
libtpu: 0.0.40
codegen_flags: <defaults>
</compile_context>

<pallas_src>
import jax
import jax.numpy as jnp
from jax.experimental import pallas as pl
from jax.experimental.pallas import tpu as pltpu

LRELU_SLOPE = 0.2
BN_EPS = 1e-5
MXU_DTYPE = jnp.bfloat16
LANE = 128
NC_PAD = 8  # Cin padding for the 1x1 "begin" convs (16*NC_PAD = 128 = MXU depth)


def _cpad(c):
    return ((c + LANE - 1) // LANE) * LANE


# ----------------------------- parameters -----------------------------------
def init_params(key, nc, ndf):
    """Same parameterization as the PyTorch module (Conv2d OIHW, BN affine)."""
    keys = jax.random.split(key, 10)
    params = {"begin_w": [], "block_w": [], "block_gamma": [], "block_beta": []}
    for j in range(5):
        co = ndf * (2 ** j)
        params["begin_w"].append(
            0.02 * jax.random.normal(keys[j], (co, nc, 1, 1), jnp.float32))
    block_io = [(ndf * (2 ** j), ndf * (2 ** (j + 1))) for j in range(4)]
    block_io.append((ndf * 16, 1))
    for j, (ci, co) in enumerate(block_io):
        params["block_w"].append(
            0.02 * jax.random.normal(keys[5 + j], (co, ci, 4, 4), jnp.float32))
        if j < 4:  # BatchNorm2d default init: weight=1, bias=0
            params["block_gamma"].append(jnp.ones((1, co), jnp.float32))
            params["block_beta"].append(jnp.zeros((1, co), jnp.float32))
    return params


# ------------------------- weight pre-processing -----------------------------
def _begin_weight(w_oihw, cin_pad, cout_pad):
    """(Cout, nc, 1, 1) -> (cin_pad, cout_pad) bf16, zero-padded."""
    co = w_oihw.shape[0]
    m = w_oihw.reshape(co, -1).T                               # (nc, co)
    m = jnp.pad(m, ((0, cin_pad - m.shape[0]), (0, cout_pad - co)))
    return m.astype(MXU_DTYPE)


def _kconcat_weight(w_oihw, cin_pad, cout_pad):
    """(Cout, Cin, 4, 4) -> (16*cin_pad, cout_pad) bf16; row k*cin_pad + ci,
    tap index k = kh*4 + kw.  Matches the lane order of the im2col slabs."""
    co, ci, kh, kw = w_oihw.shape
    w = jnp.transpose(w_oihw, (2, 3, 1, 0))                    # (4, 4, ci, co)
    w = jnp.pad(w, ((0, 0), (0, 0), (0, cin_pad - ci), (0, cout_pad - co)))
    return w.reshape(kh * kw * cin_pad, cout_pad).astype(MXU_DTYPE)


def _final_weight_rep(w_oihw, c_pad, batch):
    """blocks[4] weight (1, Ci, 4, 4) -> (batch*16, c_pad) f32; row n*16 + p
    (p = kh*4+kw) holds W[0, :, kh, kw]."""
    ci = w_oihw.shape[1]
    w = jnp.transpose(w_oihw[0], (1, 2, 0)).reshape(16, ci)    # (16, ci)
    w = jnp.pad(w, ((0, 0), (0, c_pad - ci)))
    return jnp.tile(w, (batch, 1)).astype(jnp.float32)


# ------------------------- host-side (XLA) im2col ----------------------------
def _im2col_taps_m(x_nhwc, c_pad):
    """First 4x4/s2/p1 conv: taps stacked along M -> (16*R, c_pad) bf16."""
    nb, s, _, c = x_nhwc.shape
    xp = jnp.pad(x_nhwc, ((0, 0), (1, 1), (1, 1), (0, 0)))
    ho = s // 2
    taps = [xp[:, kh:kh + 2 * ho:2, kw:kw + 2 * ho:2, :].reshape(nb * ho * ho, c)
            for kh in range(4) for kw in range(4)]
    act = jnp.concatenate(taps, axis=0)
    return jnp.pad(act, ((0, 0), (0, c_pad - c)))


def _im2col_lanes(a2d, nb, s_in, c_pad):
    """Deeper 4x4/s2/p1 convs: taps along lanes -> (N*Ho*Wo, 16*c_pad) bf16."""
    a = a2d.reshape(nb, s_in, s_in, c_pad)
    a = jnp.pad(a, ((0, 0), (1, 1), (1, 1), (0, 0)))
    ho = s_in // 2
    cols = [a[:, kh:kh + 2 * ho:2, kw:kw + 2 * ho:2, :]
            for kh in range(4) for kw in range(4)]
    slab = jnp.concatenate(cols, axis=-1)                      # (N, Ho, Wo, 16*c_pad)
    return slab.reshape(nb * ho * ho, 16 * c_pad)


# ----------------------------- kernel helpers --------------------------------
def _lrelu(v):
    return jnp.where(v >= 0, v, LRELU_SLOPE * v)


def _bn_lrelu(acc, gamma, beta, rows):
    """Single-pass training-mode BatchNorm (biased stats) + LeakyReLU (f32)."""
    inv_rows = 1.0 / float(rows)
    mean = jnp.sum(acc, axis=0, keepdims=True) * inv_rows
    mean_sq = jnp.sum(acc * acc, axis=0, keepdims=True) * inv_rows
    var = jnp.maximum(mean_sq - mean * mean, 0.0)
    y = (acc - mean) * jax.lax.rsqrt(var + BN_EPS) * gamma + beta
    return _lrelu(y)


def _final_conv_sigmoid(cur, wf_rep, batch):
    """Final 4x4/s1 conv (1x1 output) + sigmoid.

    cur    : (batch*16, c_pad) f32 activation, rows ordered (n, h, w)
    wf_rep : (batch*16, c_pad) f32, row n*16+p = final-conv weights of tap p
    Returns a lane-dense (batch, 128) f32 block (logit broadcast over lanes).
    """
    s = jnp.sum(cur * wf_rep, axis=1, keepdims=True)           # (batch*16, 1)
    logits = jnp.concatenate(
        [jnp.sum(s[i * 16:(i + 1) * 16, :], axis=0, keepdims=True)
         for i in range(batch)], axis=0)                        # (batch, 1)
    prob = pl.reciprocal(1.0 + jnp.exp(-logits), approx=True)
    return prob * jnp.ones((1, LANE), jnp.float32)


# ------------------------------- kernels -------------------------------------
def _make_blend_kernel(rows, batch, fuse_final):
    """begin[4-n] + blocks[4-n] + begin[5-n](downsampled) + lerp (+ final)."""

    def kernel(alpha_ref, act_ref, wb_ref, wblk_ref, ws_ref, g_ref, b_ref, *rest):
        act = act_ref[...]                                      # (16*rows, NC_PAD)
        # Big path: one begin GEMM with taps along M, LeakyReLU once.
        h = jnp.dot(act, wb_ref[...], preferred_element_type=jnp.float32)
        h = _lrelu(h).astype(MXU_DTYPE)                         # (16*rows, cb_pad)
        # Assemble the K-concatenated block slab: 16 aligned slices + lane concat.
        slab = jnp.concatenate(
            [h[k * rows:(k + 1) * rows, :] for k in range(16)], axis=1)
        acc = jnp.dot(slab, wblk_ref[...], preferred_element_type=jnp.float32)
        big = _bn_lrelu(acc, g_ref[...], b_ref[...], rows)
        # Small path: tap k=5 is pixel (2*ho, 2*wo) == nearest-downsampled input.
        small = _lrelu(jnp.dot(act[5 * rows:6 * rows, :], ws_ref[...],
                               preferred_element_type=jnp.float32))
        alpha = alpha_ref[0, 0]
        cur = small * (1.0 - alpha) + big * alpha
        if fuse_final:
            wf_ref, o_ref = rest
            o_ref[...] = _final_conv_sigmoid(cur, wf_ref[...], batch)
        else:
            (o_ref,) = rest
            o_ref[...] = cur.astype(o_ref.dtype)

    return kernel


def _make_block_kernel(rows, batch, fuse_final):
    """One 4x4/s2 conv block = single K-concat GEMM + BN + LeakyReLU (+ final)."""

    def kernel(slab_ref, w_ref, g_ref, b_ref, *rest):
        acc = jnp.dot(slab_ref[...], w_ref[...], preferred_element_type=jnp.float32)
        cur = _bn_lrelu(acc, g_ref[...], b_ref[...], rows)
        if fuse_final:
            wf_ref, o_ref = rest
            o_ref[...] = _final_conv_sigmoid(cur, wf_ref[...], batch)
        else:
            (o_ref,) = rest
            o_ref[...] = cur.astype(o_ref.dtype)

    return kernel


def _make_begin_final_kernel(batch):
    """n == 0 path: begin[4] 1x1 conv + LeakyReLU + final conv + sigmoid."""

    def kernel(act_ref, wb_ref, wf_ref, o_ref):
        h = _lrelu(jnp.dot(act_ref[...], wb_ref[...],
                           preferred_element_type=jnp.float32))
        o_ref[...] = _final_conv_sigmoid(h, wf_ref[...], batch)

    return kernel


# --------------------------- pallas_call builders ----------------------------
def _vmem():
    return pl.BlockSpec(memory_space=pltpu.MemorySpace.VMEM)


def _smem():
    return pl.BlockSpec(memory_space=pltpu.MemorySpace.SMEM)


def _cparams(est_bytes):
    # Explicit VMEM budget; 64 MiB cap keeps the single-shot design v7x-safe.
    limit = int(min(max(2 * est_bytes + (2 << 20), 16 << 20), 64 << 20))
    return pltpu.CompilerParams(vmem_limit_bytes=limit)


def _static_bytes(arrs):
    return int(sum(int(a.size) * a.dtype.itemsize for a in arrs))


def _build_blend_call(params, nc, ndf, n, batch, spatial, fuse_final):
    jb, js = 4 - n, 5 - n
    cb, cs = ndf * 2 ** jb, ndf * 2 ** js
    cb_pad, cs_pad = _cpad(cb), _cpad(cs)
    s_out = spatial // 2
    rows = batch * s_out * s_out

    statics = [
        _begin_weight(params["begin_w"][jb], NC_PAD, cb_pad),
        _kconcat_weight(params["block_w"][jb], cb_pad, cs_pad),
        _begin_weight(params["begin_w"][js], NC_PAD, cs_pad),
        jnp.pad(params["block_gamma"][jb], ((0, 0), (0, cs_pad - cs))),
        jnp.pad(params["block_beta"][jb], ((0, 0), (0, cs_pad - cs))),
    ]
    if fuse_final:
        statics.append(_final_weight_rep(params["block_w"][4], cs_pad, batch))
        out_shape = jax.ShapeDtypeStruct((batch, LANE), jnp.float32)
    else:
        out_shape = jax.ShapeDtypeStruct((rows, cs_pad), MXU_DTYPE)

    flops = (2 * 16 * rows * NC_PAD * cb_pad            # begin GEMM (taps along M)
             + 2 * rows * 16 * cb_pad * cs_pad          # block GEMM (taps along K)
             + 2 * rows * NC_PAD * cs_pad)              # small path
    est_bytes = (16 * rows * NC_PAD * 2                 # act slab
                 + rows * 16 * cb_pad * 6               # h (f32) + slab (bf16)
                 + rows * cs_pad * 12                   # acc / big / small
                 + _static_bytes(statics))

    call = pl.pallas_call(
        _make_blend_kernel(rows, batch, fuse_final),
        out_shape=out_shape,
        in_specs=[_smem()] + [_vmem()] * (1 + len(statics)),
        out_specs=_vmem(),
        compiler_params=_cparams(est_bytes),
        cost_estimate=pl.CostEstimate(flops=int(flops), transcendentals=int(rows),
                                      bytes_accessed=int(est_bytes)),
    )
    return call, statics, rows, cs_pad, s_out


def _build_block_call(params, ndf, bi, batch, cin_pad, s_in, fuse_final):
    cout = ndf * 2 ** (bi + 1)
    cout_pad = _cpad(cout)
    s_out = s_in // 2
    rows = batch * s_out * s_out

    statics = [
        _kconcat_weight(params["block_w"][bi], cin_pad, cout_pad),
        jnp.pad(params["block_gamma"][bi], ((0, 0), (0, cout_pad - cout))),
        jnp.pad(params["block_beta"][bi], ((0, 0), (0, cout_pad - cout))),
    ]
    if fuse_final:
        statics.append(_final_weight_rep(params["block_w"][4], cout_pad, batch))
        out_shape = jax.ShapeDtypeStruct((batch, LANE), jnp.float32)
    else:
        out_shape = jax.ShapeDtypeStruct((rows, cout_pad), MXU_DTYPE)

    flops = 2 * rows * 16 * cin_pad * cout_pad
    est_bytes = (rows * 16 * cin_pad * 2 + rows * cout_pad * 8
                 + _static_bytes(statics))

    call = pl.pallas_call(
        _make_block_kernel(rows, batch, fuse_final),
        out_shape=out_shape,
        in_specs=[_vmem()] * (1 + len(statics)),
        out_specs=_vmem(),
        compiler_params=_cparams(est_bytes),
        cost_estimate=pl.CostEstimate(flops=int(flops), transcendentals=int(rows),
                                      bytes_accessed=int(est_bytes)),
    )
    return call, statics, rows, cout_pad, s_out


def _build_begin_final_call(params, ndf, batch):
    c = ndf * 16
    c_pad = _cpad(c)
    rows = batch * 16
    statics = [
        _begin_weight(params["begin_w"][4], NC_PAD, c_pad),
        _final_weight_rep(params["block_w"][4], c_pad, batch),
    ]
    est_bytes = rows * NC_PAD * 2 + rows * c_pad * 8 + _static_bytes(statics)
    call = pl.pallas_call(
        _make_begin_final_kernel(batch),
        out_shape=jax.ShapeDtypeStruct((batch, LANE), jnp.float32),
        in_specs=[_vmem()] * (1 + len(statics)),
        out_specs=_vmem(),
        compiler_params=_cparams(est_bytes),
        cost_estimate=pl.CostEstimate(flops=int(2 * rows * NC_PAD * c_pad),
                                      transcendentals=int(rows),
                                      bytes_accessed=int(est_bytes)),
    )
    return call, statics


# ----------------------------- forward factory --------------------------------
def make_forward(params, nc, ndf, n, batch, spatial):
    """Builds a jitted forward(x_nchw, alpha) for a fixed progressive stage n."""
    assert spatial == 4 * (2 ** n), "stage n implies spatial = 4 * 2**n"

    if n == 0:
        call0, statics0 = _build_begin_final_call(params, ndf, batch)

        def forward(x_nchw, alpha):
            del alpha
            x = jnp.transpose(x_nchw, (0, 2, 3, 1)).astype(MXU_DTYPE)
            act = jnp.pad(x.reshape(batch * spatial * spatial, nc),
                          ((0, 0), (0, NC_PAD - nc)))
            out = call0(act, *statics0)
            return out[:, :1].reshape(batch, 1, 1, 1)

        return jax.jit(forward)

    blend_call, blend_statics, _, c_pad0, s0 = _build_blend_call(
        params, nc, ndf, n, batch, spatial, fuse_final=(n == 1))

    blocks = []
    cin_pad, s_in = c_pad0, s0
    for i in range(1, n):
        bi = 4 - n + i
        call_i, statics_i, _, cout_pad, s_out = _build_block_call(
            params, ndf, bi, batch, cin_pad, s_in, fuse_final=(i == n - 1))
        blocks.append((call_i, statics_i, s_in, cin_pad))
        cin_pad, s_in = cout_pad, s_out

    def forward(x_nchw, alpha):
        x = jnp.transpose(x_nchw, (0, 2, 3, 1)).astype(MXU_DTYPE)   # NCHW -> NHWC
        act = _im2col_taps_m(x, NC_PAD)                 # (16*R0, NC_PAD) bf16
        alpha_arr = jnp.asarray(alpha, jnp.float32).reshape(1, 1)
        cur = blend_call(alpha_arr, act, *blend_statics)
        for call_i, statics_i, s_i, cp_i in blocks:
            slab = _im2col_lanes(cur, batch, s_i, cp_i)  # XLA strided im2col
            cur = call_i(slab, *statics_i)
        return cur[:, :1].reshape(batch, 1, 1, 1)        # (N, 1, 1, 1)

    return jax.jit(forward)


# ----------------------------- pure-JAX reference ----------------------------
def reference_forward(params, x_nchw, n, alpha):
    """f32 XLA-conv reference mirroring the PyTorch module (for self-check)."""
    x = jnp.transpose(x_nchw, (0, 2, 3, 1))

    def conv(v, w_oihw, stride, pad):
        w = jnp.transpose(w_oihw, (2, 3, 1, 0))          # HWIO
        return jax.lax.conv_general_dilated(
            v, w, (stride, stride), [(pad, pad), (pad, pad)],
            dimension_numbers=("NHWC", "HWIO", "NHWC"))

    def begin(j, v):
        return _lrelu(conv(v, params["begin_w"][j], 1, 0))

    def block(j, v):
        y = conv(v, params["block_w"][j], 2, 1)
        mean = jnp.mean(y, axis=(0, 1, 2), keepdims=True)
        var = jnp.mean((y - mean) ** 2, axis=(0, 1, 2), keepdims=True)
        y = (y - mean) * jax.lax.rsqrt(var + BN_EPS)
        y = y * params["block_gamma"][j].reshape(1, 1, 1, -1) \
            + params["block_beta"][j].reshape(1, 1, 1, -1)
        return _lrelu(y)

    if n > 0:
        small = begin(5 - n, x)[:, ::2, ::2, :]          # nearest: src = 2*dst
        big = block(4 - n, begin(4 - n, x))
        x = small * (1 - alpha) + big * alpha
    else:
        x = begin(4, x)
    for i in range(1, n):
        x = block(4 - n + i, x)
    y = conv(x, params["block_w"][4], 1, 0)
    y = 1.0 / (1.0 + jnp.exp(-y))
    return jnp.transpose(y, (0, 3, 1, 2))


# --------------------------------- demo --------------------------------------
if __name__ == "__main__":
    nc, ndf = 3, 8
    n, alpha = 2, 0.5
    batch = 2
    spatial = 4 * (2 ** n)                 # 16: resolution for stage n

    key = jax.random.PRNGKey(0)
    kx, kp = jax.random.split(key)
    x = jax.random.normal(kx, (batch, nc, spatial, spatial), jnp.float32)
    params = init_params(kp, nc, ndf)

    fwd = make_forward(params, nc, ndf, n, batch, spatial)
    out = fwd(x, alpha)
    jax.block_until_ready(out)

    assert out.shape == (batch, 1, 1, 1), out.shape
    assert bool(jnp.all((out >= 0.0) & (out <= 1.0)))   # sigmoid range

    # correctness: bf16-MXU fused kernels vs f32 XLA-conv reference
    ref = reference_forward(params, x, n, alpha)
    err = float(jnp.max(jnp.abs(out - ref.astype(jnp.float32))))
    assert err < 3e-2, f"max abs err {err}"
    print("KERNEL_OK")
</pallas_src>

<mosaic_0001>
module attributes {stable_mosaic.version = 11 : i64} {
  func.func @kernel(%arg0: memref<1x1xf32, #tpu.memory_space<smem>>, %arg1: memref<2048x8xbf16, #tpu.memory_space<vmem>>, %arg2: memref<8x128xbf16, #tpu.memory_space<vmem>>, %arg3: memref<2048x128xbf16, #tpu.memory_space<vmem>>, %arg4: memref<8x128xbf16, #tpu.memory_space<vmem>>, %arg5: memref<1x128xf32, #tpu.memory_space<vmem>>, %arg6: memref<1x128xf32, #tpu.memory_space<vmem>>, %arg7: memref<128x128xbf16, #tpu.memory_space<vmem>>) attributes {dimension_semantics = [], scalar_prefetch = 0 : i64, scratch_operands = 0 : i64, tpu.core_type = #tpu.core_type<tc>} {
    %c0 = arith.constant 0 : index
    %c0_0 = arith.constant 0 : index
    %0 = vector.load %arg1[%c0, %c0_0] : memref<2048x8xbf16, #tpu.memory_space<vmem>>, vector<2048x8xbf16>
    %c0_1 = arith.constant 0 : index
    %c0_2 = arith.constant 0 : index
    %1 = vector.load %arg2[%c0_1, %c0_2] : memref<8x128xbf16, #tpu.memory_space<vmem>>, vector<8x128xbf16>
    %cst = arith.constant dense<0.000000e+00> : vector<2048x128xf32>
    %2 = tpu.matmul %0, %1, %cst {dimension_numbers = #tpu.dot_dimension_numbers<[1], [0], [0], [1], [0, 0, 1, 1], [], []>} : vector<2048x8xbf16>, vector<8x128xbf16>, vector<2048x128xf32> -> vector<2048x128xf32>
    %cst_3 = arith.constant 0.000000e+00 : f32
    %3 = vector.broadcast %cst_3 : f32 to vector<2048x128xf32>
    %4 = arith.cmpf oge, %2, %3 : vector<2048x128xf32>
    %cst_4 = arith.constant 2.000000e-01 : f32
    %5 = vector.broadcast %cst_4 : f32 to vector<2048x128xf32>
    %6 = arith.mulf %5, %2 : vector<2048x128xf32>
    %7 = arith.select %4, %2, %6 : vector<2048x128xi1>, vector<2048x128xf32>
    %8 = arith.truncf %7 : vector<2048x128xf32> to vector<2048x128xbf16>
    %9 = vector.extract_strided_slice %8 {offsets = [0, 0], sizes = [128, 128], strides = [1, 1]} : vector<2048x128xbf16> to vector<128x128xbf16>
    %10 = vector.extract_strided_slice %8 {offsets = [128, 0], sizes = [128, 128], strides = [1, 1]} : vector<2048x128xbf16> to vector<128x128xbf16>
    %11 = vector.extract_strided_slice %8 {offsets = [256, 0], sizes = [128, 128], strides = [1, 1]} : vector<2048x128xbf16> to vector<128x128xbf16>
    %12 = vector.extract_strided_slice %8 {offsets = [384, 0], sizes = [128, 128], strides = [1, 1]} : vector<2048x128xbf16> to vector<128x128xbf16>
    %13 = vector.extract_strided_slice %8 {offsets = [512, 0], sizes = [128, 128], strides = [1, 1]} : vector<2048x128xbf16> to vector<128x128xbf16>
    %14 = vector.extract_strided_slice %8 {offsets = [640, 0], sizes = [128, 128], strides = [1, 1]} : vector<2048x128xbf16> to vector<128x128xbf16>
    %15 = vector.extract_strided_slice %8 {offsets = [768, 0], sizes = [128, 128], strides = [1, 1]} : vector<2048x128xbf16> to vector<128x128xbf16>
    %16 = vector.extract_strided_slice %8 {offsets = [896, 0], sizes = [128, 128], strides = [1, 1]} : vector<2048x128xbf16> to vector<128x128xbf16>
    %17 = vector.extract_strided_slice %8 {offsets = [1024, 0], sizes = [128, 128], strides = [1, 1]} : vector<2048x128xbf16> to vector<128x128xbf16>
    %18 = vector.extract_strided_slice %8 {offsets = [1152, 0], sizes = [128, 128], strides = [1, 1]} : vector<2048x128xbf16> to vector<128x128xbf16>
    %19 = vector.extract_strided_slice %8 {offsets = [1280, 0], sizes = [128, 128], strides = [1, 1]} : vector<2048x128xbf16> to vector<128x128xbf16>
    %20 = vector.extract_strided_slice %8 {offsets = [1408, 0], sizes = [128, 128], strides = [1, 1]} : vector<2048x128xbf16> to vector<128x128xbf16>
    %21 = vector.extract_strided_slice %8 {offsets = [1536, 0], sizes = [128, 128], strides = [1, 1]} : vector<2048x128xbf16> to vector<128x128xbf16>
    %22 = vector.extract_strided_slice %8 {offsets = [1664, 0], sizes = [128, 128], strides = [1, 1]} : vector<2048x128xbf16> to vector<128x128xbf16>
    %23 = vector.extract_strided_slice %8 {offsets = [1792, 0], sizes = [128, 128], strides = [1, 1]} : vector<2048x128xbf16> to vector<128x128xbf16>
    %24 = vector.extract_strided_slice %8 {offsets = [1920, 0], sizes = [128, 128], strides = [1, 1]} : vector<2048x128xbf16> to vector<128x128xbf16>
    %25 = tpu.concatenate %9, %10, %11, %12, %13, %14, %15, %16, %17, %18, %19, %20, %21, %22, %23, %24 in 1 : vector<128x128xbf16>, vector<128x128xbf16>, vector<128x128xbf16>, vector<128x128xbf16>, vector<128x128xbf16>, vector<128x128xbf16>, vector<128x128xbf16>, vector<128x128xbf16>, vector<128x128xbf16>, vector<128x128xbf16>, vector<128x128xbf16>, vector<128x128xbf16>, vector<128x128xbf16>, vector<128x128xbf16>, vector<128x128xbf16>, vector<128x128xbf16> -> vector<128x2048xbf16>
    %c0_5 = arith.constant 0 : index
    %c0_6 = arith.constant 0 : index
    %26 = vector.load %arg3[%c0_5, %c0_6] : memref<2048x128xbf16, #tpu.memory_space<vmem>>, vector<2048x128xbf16>
    %cst_7 = arith.constant dense<0.000000e+00> : vector<128x128xf32>
    %27 = tpu.matmul %25, %26, %cst_7 {dimension_numbers = #tpu.dot_dimension_numbers<[1], [0], [0], [1], [0, 0, 1, 1], [], []>} : vector<128x2048xbf16>, vector<2048x128xbf16>, vector<128x128xf32> -> vector<128x128xf32>
    %c0_8 = arith.constant 0 : index
    %c0_9 = arith.constant 0 : index
    %28 = vector.load %arg5[%c0_8, %c0_9] : memref<1x128xf32, #tpu.memory_space<vmem>>, vector<1x128xf32>
    %c0_10 = arith.constant 0 : index
    %c0_11 = arith.constant 0 : index
    %29 = vector.load %arg6[%c0_10, %c0_11] : memref<1x128xf32, #tpu.memory_space<vmem>>, vector<1x128xf32>
    %cst_12 = arith.constant dense<0.000000e+00> : vector<128xf32>
    %30 = vector.multi_reduction <add>, %27, %cst_12 [0] : vector<128x128xf32> to vector<128xf32>
    %31 = vector.shape_cast %30 : vector<128xf32> to vector<1x128xf32>
    %cst_13 = arith.constant 7.812500e-03 : f32
    %32 = vector.broadcast %cst_13 : f32 to vector<1x128xf32>
    %33 = arith.mulf %31, %32 : vector<1x128xf32>
    %34 = arith.mulf %27, %27 : vector<128x128xf32>
    %cst_14 = arith.constant dense<0.000000e+00> : vector<128xf32>
    %35 = vector.multi_reduction <add>, %34, %cst_14 [0] : vector<128x128xf32> to vector<128xf32>
    %36 = vector.shape_cast %35 : vector<128xf32> to vector<1x128xf32>
    %cst_15 = arith.constant 7.812500e-03 : f32
    %37 = vector.broadcast %cst_15 : f32 to vector<1x128xf32>
    %38 = arith.mulf %36, %37 : vector<1x128xf32>
    %39 = arith.mulf %33, %33 : vector<1x128xf32>
    %40 = arith.subf %38, %39 : vector<1x128xf32>
    %cst_16 = arith.constant 0.000000e+00 : f32
    %41 = vector.broadcast %cst_16 : f32 to vector<1x128xf32>
    %42 = arith.maximumf %40, %41 : vector<1x128xf32>
    %43 = vector.broadcast %33 : vector<1x128xf32> to vector<128x128xf32>
    %44 = arith.subf %27, %43 : vector<128x128xf32>
    %cst_17 = arith.constant 9.99999974E-6 : f32
    %45 = vector.broadcast %cst_17 : f32 to vector<1x128xf32>
    %46 = arith.addf %42, %45 : vector<1x128xf32>
    %47 = math.rsqrt %46 : vector<1x128xf32>
    %48 = vector.broadcast %47 : vector<1x128xf32> to vector<128x128xf32>
    %49 = arith.mulf %44, %48 : vector<128x128xf32>
    %50 = vector.broadcast %28 : vector<1x128xf32> to vector<128x128xf32>
    %51 = arith.mulf %49, %50 : vector<128x128xf32>
    %52 = vector.broadcast %29 : vector<1x128xf32> to vector<128x128xf32>
    %53 = arith.addf %51, %52 : vector<128x128xf32>
    %cst_18 = arith.constant 0.000000e+00 : f32
    %54 = vector.broadcast %cst_18 : f32 to vector<128x128xf32>
    %55 = arith.cmpf oge, %53, %54 : vector<128x128xf32>
    %cst_19 = arith.constant 2.000000e-01 : f32
    %56 = vector.broadcast %cst_19 : f32 to vector<128x128xf32>
    %57 = arith.mulf %56, %53 : vector<128x128xf32>
    %58 = arith.select %55, %53, %57 : vector<128x128xi1>, vector<128x128xf32>
    %59 = vector.extract_strided_slice %0 {offsets = [640, 0], sizes = [128, 8], strides = [1, 1]} : vector<2048x8xbf16> to vector<128x8xbf16>
    %c0_20 = arith.constant 0 : index
    %c0_21 = arith.constant 0 : index
    %60 = vector.load %arg4[%c0_20, %c0_21] : memref<8x128xbf16, #tpu.memory_space<vmem>>, vector<8x128xbf16>
    %cst_22 = arith.constant dense<0.000000e+00> : vector<128x128xf32>
    %61 = tpu.matmul %59, %60, %cst_22 {dimension_numbers = #tpu.dot_dimension_numbers<[1], [0], [0], [1], [0, 0, 1, 1], [], []>} : vector<128x8xbf16>, vector<8x128xbf16>, vector<128x128xf32> -> vector<128x128xf32>
    %cst_23 = arith.constant 0.000000e+00 : f32
    %62 = vector.broadcast %cst_23 : f32 to vector<128x128xf32>
    %63 = arith.cmpf oge, %61, %62 : vector<128x128xf32>
    %cst_24 = arith.constant 2.000000e-01 : f32
    %64 = vector.broadcast %cst_24 : f32 to vector<128x128xf32>
    %65 = arith.mulf %64, %61 : vector<128x128xf32>
    %66 = arith.select %63, %61, %65 : vector<128x128xi1>, vector<128x128xf32>
    %c0_25 = arith.constant 0 : index
    %c0_26 = arith.constant 0 : index
    %67 = memref.load %arg0[%c0_25, %c0_26] : memref<1x1xf32, #tpu.memory_space<smem>>
    %cst_27 = arith.constant 1.000000e+00 : f32
    %68 = arith.subf %cst_27, %67 : f32
    %69 = vector.broadcast %68 : f32 to vector<128x128xf32>
    %70 = arith.mulf %66, %69 : vector<128x128xf32>
    %71 = vector.broadcast %67 : f32 to vector<128x128xf32>
    %72 = arith.mulf %58, %71 : vector<128x128xf32>
    %73 = arith.addf %70, %72 : vector<128x128xf32>
    %74 = arith.truncf %73 : vector<128x128xf32> to vector<128x128xbf16>
    %c0_28 = arith.constant 0 : index
    %c0_29 = arith.constant 0 : index
    %75 = vector.load %arg7[%c0_28, %c0_29] : memref<128x128xbf16, #tpu.memory_space<vmem>>, vector<128x128xbf16>
    tpu.vector_store %arg7[%c0_28, %c0_29], %74 {strides = array<i32>} : memref<128x128xbf16, #tpu.memory_space<vmem>>, vector<128x128xbf16>,
    return
  }
}

module attributes {stable_mosaic.version = 11 : i64} {
  func.func @kernel(%arg0: memref<32x2048xbf16, #tpu.memory_space<vmem>>, %arg1: memref<2048x128xbf16, #tpu.memory_space<vmem>>, %arg2: memref<1x128xf32, #tpu.memory_space<vmem>>, %arg3: memref<1x128xf32, #tpu.memory_space<vmem>>, %arg4: memref<32x128xf32, #tpu.memory_space<vmem>>, %arg5: memref<2x128xf32, #tpu.memory_space<vmem>>) attributes {dimension_semantics = [], scalar_prefetch = 0 : i64, scratch_operands = 0 : i64, tpu.core_type = #tpu.core_type<tc>} {
    %c0 = arith.constant 0 : index
    %c0_0 = arith.constant 0 : index
    %0 = vector.load %arg0[%c0, %c0_0] : memref<32x2048xbf16, #tpu.memory_space<vmem>>, vector<32x2048xbf16>
    %c0_1 = arith.constant 0 : index
    %c0_2 = arith.constant 0 : index
    %1 = vector.load %arg1[%c0_1, %c0_2] : memref<2048x128xbf16, #tpu.memory_space<vmem>>, vector<2048x128xbf16>
    %cst = arith.constant dense<0.000000e+00> : vector<32x128xf32>
    %2 = tpu.matmul %0, %1, %cst {dimension_numbers = #tpu.dot_dimension_numbers<[1], [0], [0], [1], [0, 0, 1, 1], [], []>} : vector<32x2048xbf16>, vector<2048x128xbf16>, vector<32x128xf32> -> vector<32x128xf32>
    %c0_3 = arith.constant 0 : index
    %c0_4 = arith.constant 0 : index
    %3 = vector.load %arg2[%c0_3, %c0_4] : memref<1x128xf32, #tpu.memory_space<vmem>>, vector<1x128xf32>
    %c0_5 = arith.constant 0 : index
    %c0_6 = arith.constant 0 : index
    %4 = vector.load %arg3[%c0_5, %c0_6] : memref<1x128xf32, #tpu.memory_space<vmem>>, vector<1x128xf32>
    %cst_7 = arith.constant dense<0.000000e+00> : vector<128xf32>
    %5 = vector.multi_reduction <add>, %2, %cst_7 [0] : vector<32x128xf32> to vector<128xf32>
    %6 = vector.shape_cast %5 : vector<128xf32> to vector<1x128xf32>
    %cst_8 = arith.constant 3.125000e-02 : f32
    %7 = vector.broadcast %cst_8 : f32 to vector<1x128xf32>
    %8 = arith.mulf %6, %7 : vector<1x128xf32>
    %9 = arith.mulf %2, %2 : vector<32x128xf32>
    %cst_9 = arith.constant dense<0.000000e+00> : vector<128xf32>
    %10 = vector.multi_reduction <add>, %9, %cst_9 [0] : vector<32x128xf32> to vector<128xf32>
    %11 = vector.shape_cast %10 : vector<128xf32> to vector<1x128xf32>
    %cst_10 = arith.constant 3.125000e-02 : f32
    %12 = vector.broadcast %cst_10 : f32 to vector<1x128xf32>
    %13 = arith.mulf %11, %12 : vector<1x128xf32>
    %14 = arith.mulf %8, %8 : vector<1x128xf32>
    %15 = arith.subf %13, %14 : vector<1x128xf32>
    %cst_11 = arith.constant 0.000000e+00 : f32
    %16 = vector.broadcast %cst_11 : f32 to vector<1x128xf32>
    %17 = arith.maximumf %15, %16 : vector<1x128xf32>
    %18 = vector.broadcast %8 : vector<1x128xf32> to vector<32x128xf32>
    %19 = arith.subf %2, %18 : vector<32x128xf32>
    %cst_12 = arith.constant 9.99999974E-6 : f32
    %20 = vector.broadcast %cst_12 : f32 to vector<1x128xf32>
    %21 = arith.addf %17, %20 : vector<1x128xf32>
    %22 = math.rsqrt %21 : vector<1x128xf32>
    %23 = vector.broadcast %22 : vector<1x128xf32> to vector<32x128xf32>
    %24 = arith.mulf %19, %23 : vector<32x128xf32>
    %25 = vector.broadcast %3 : vector<1x128xf32> to vector<32x128xf32>
    %26 = arith.mulf %24, %25 : vector<32x128xf32>
    %27 = vector.broadcast %4 : vector<1x128xf32> to vector<32x128xf32>
    %28 = arith.addf %26, %27 : vector<32x128xf32>
    %cst_13 = arith.constant 0.000000e+00 : f32
    %29 = vector.broadcast %cst_13 : f32 to vector<32x128xf32>
    %30 = arith.cmpf oge, %28, %29 : vector<32x128xf32>
    %cst_14 = arith.constant 2.000000e-01 : f32
    %31 = vector.broadcast %cst_14 : f32 to vector<32x128xf32>
    %32 = arith.mulf %31, %28 : vector<32x128xf32>
    %33 = arith.select %30, %28, %32 : vector<32x128xi1>, vector<32x128xf32>
    %c0_15 = arith.constant 0 : index
    %c0_16 = arith.constant 0 : index
    %34 = vector.load %arg4[%c0_15, %c0_16] : memref<32x128xf32, #tpu.memory_space<vmem>>, vector<32x128xf32>
    %35 = arith.mulf %33, %34 : vector<32x128xf32>
    %cst_17 = arith.constant dense<0.000000e+00> : vector<32xf32>
    %36 = vector.multi_reduction <add>, %35, %cst_17 [1] : vector<32x128xf32> to vector<32xf32>
    %37 = vector.shape_cast %36 : vector<32xf32> to vector<32x1xf32>
    %38 = vector.extract_strided_slice %37 {offsets = [0, 0], sizes = [16, 1], strides = [1, 1]} : vector<32x1xf32> to vector<16x1xf32>
    %cst_18 = arith.constant dense<0.000000e+00> : vector<1xf32>
    %39 = vector.multi_reduction <add>, %38, %cst_18 [0] : vector<16x1xf32> to vector<1xf32>
    %40 = vector.shape_cast %39 : vector<1xf32> to vector<1x1xf32>
    %41 = vector.extract_strided_slice %37 {offsets = [16, 0], sizes = [16, 1], strides = [1, 1]} : vector<32x1xf32> to vector<16x1xf32>
    %cst_19 = arith.constant dense<0.000000e+00> : vector<1xf32>
    %42 = vector.multi_reduction <add>, %41, %cst_19 [0] : vector<16x1xf32> to vector<1xf32>
    %43 = vector.shape_cast %42 : vector<1xf32> to vector<1x1xf32>
    %44 = tpu.concatenate %40, %43 in 0 : vector<1x1xf32>, vector<1x1xf32> -> vector<2x1xf32>
    %cst_20 = arith.constant 0.000000e+00 : f32
    %45 = vector.broadcast %cst_20 : f32 to vector<2x1xf32>
    %46 = arith.subf %45, %44 : vector<2x1xf32>
    %47 = math.exp %46 : vector<2x1xf32>
    %cst_21 = arith.constant 1.000000e+00 : f32
    %48 = vector.broadcast %cst_21 : f32 to vector<2x1xf32>
    %49 = arith.addf %48, %47 : vector<2x1xf32>
    %50 = tpu.reciprocal %49 {approx = true} : vector<2x1xf32> -> vector<2x1xf32>
    %cst_22 = arith.constant 1.000000e+00 : f32
    %51 = vector.broadcast %cst_22 : f32 to vector<1x128xf32>
    %52 = vector.broadcast %50 : vector<2x1xf32> to vector<2x128xf32>
    %53 = vector.broadcast %51 : vector<1x128xf32> to vector<2x128xf32>
    %54 = arith.mulf %52, %53 : vector<2x128xf32>
    %c0_23 = arith.constant 0 : index
    %c0_24 = arith.constant 0 : index
    %55 = vector.load %arg5[%c0_23, %c0_24] : memref<2x128xf32, #tpu.memory_space<vmem>>, vector<2x128xf32>
    tpu.vector_store %arg5[%c0_23, %c0_24], %54 {strides = array<i32>} : memref<2x128xf32, #tpu.memory_space<vmem>>, vector<2x128xf32>,
    return
  }
}

</mosaic_0001>

<bundles_post_ra>
// kernel: forward.3
= control target key start
LH: loop header
LB: loop body
LE: loop exit
PB: predicated region body
PF: predicated region fallthrough
CT: control target
= control target key end

     0   :  { %vm1644_vm7 = vcmask 1040384   ;;  %s3112_s1 = inlined_call_operand.vmem [shape: bf16[2048,128], index: 1, kind: input, shape index: {}]   ;;  %s3113_s0 = inlined_call_operand.vmem [shape: bf16[32,2048], index: 0, kind: input, shape index: {}]   ;;  %s3114_s2 = inlined_call_operand.vmem [shape: f32[1,128], index: 2, kind: input, shape index: {}]   ;;  %s3115_s3 = inlined_call_operand.vmem [shape: f32[1,128], index: 3, kind: input, shape index: {}]   ;;  %s3116_s4 = inlined_call_operand.vmem [shape: f32[32,128], index: 4, kind: input, shape index: {}]   ;;  %s3117_s5 = inlined_call_operand.vmem [shape: f32[2,128], index: 5, kind: output, shape index: {}]  }
   0x1   :  { %v2340_v0 = vld [vmem:[%s3112_s1 + $0x38] sm:$0xff]  ;;  %v2339_v4 = vld [vmem:[%s3112_s1 + $0x30] sm:$0xff]  ;;  %v2338_v8 = vld [vmem:[%s3112_s1 + $0x28] sm:$0xff] }
   0x2   :  { %v2348_v1 = vld [vmem:[%s3112_s1 + $0x78] sm:$0xff]  ;;  %1236 = vmatpush.bf16.msra.mxu0 %v2340_v0  ;;  %v2347_v5 = vld [vmem:[%s3112_s1 + $0x70] sm:$0xff]  ;;  %v2346_v9 = vld [vmem:[%s3112_s1 + $0x68] sm:$0xff] }
   0x3   :  { %v2356_v2 = vld [vmem:[%s3112_s1 + $0xb8] sm:$0xff]  ;;  %1255 = vmatpush.bf16.msra.mxu1 %v2348_v1  ;;  %v2355_v6 = vld [vmem:[%s3112_s1 + $0xb0] sm:$0xff]  ;;  %v2354_v10 = vld [vmem:[%s3112_s1 + $0xa8] sm:$0xff] }
   0x4   :  { %v2364_v3 = vld [vmem:[%s3112_s1 + $0xf8] sm:$0xff]  ;;  %1274 = vmatpush.bf16.msra.mxu2 %v2356_v2  ;;  %v2363_v7 = vld [vmem:[%s3112_s1 + $0xf0] sm:$0xff]  ;;  %v2362_v11 = vld [vmem:[%s3112_s1 + $0xe8] sm:$0xff] }
   0x5   :  { %1293 = vmatpush.bf16.msra.mxu3 %v2364_v3  ;;  %v2337_v12 = vld [vmem:[%s3112_s1 + $0x20] sm:$0xff]  ;;  %v2336_v16 = vld [vmem:[%s3112_s1 + $0x18] sm:$0xff]  ;;  %v2335_v20 = vld [vmem:[%s3112_s1 + $0x10] sm:$0xff] }
   0x6   :  { %1237 = vmatpush.bf16.msra.mxu0 %v2339_v4  ;;  %v2345_v13 = vld [vmem:[%s3112_s1 + $0x60] sm:$0xff]  ;;  %v2344_v17 = vld [vmem:[%s3112_s1 + $0x58] sm:$0xff]  ;;  %v2343_v21 = vld [vmem:[%s3112_s1 + $0x50] sm:$0xff] }
   0x7   :  { %1256 = vmatpush.bf16.msra.mxu1 %v2347_v5  ;;  %v2353_v14 = vld [vmem:[%s3112_s1 + $0xa0] sm:$0xff]  ;;  %v2352_v18 = vld [vmem:[%s3112_s1 + $0x98] sm:$0xff]  ;;  %v2351_v22 = vld [vmem:[%s3112_s1 + $0x90] sm:$0xff] }
   0x8   :  { %1275 = vmatpush.bf16.msra.mxu2 %v2355_v6  ;;  %v2361_v15 = vld [vmem:[%s3112_s1 + $0xe0] sm:$0xff]  ;;  %v2360_v19 = vld [vmem:[%s3112_s1 + $0xd8] sm:$0xff]  ;;  %v2359_v23 = vld [vmem:[%s3112_s1 + $0xd0] sm:$0xff] }
   0x9   :  { %1294 = vmatpush.bf16.msra.mxu3 %v2363_v7  ;;  %v2334_v24 = vld [vmem:[%s3112_s1 + $0x8] sm:$0xff]  ;;  %v2333_v28 = vld [vmem:[%s3112_s1] sm:$0xff]  ;;  %v2388_v40 = vld [vmem:[%s3112_s1 + $0x1b8] sm:$0xff] }
   0xa   :  { %1238 = vmatpush.bf16.msra.mxu0 %v2338_v8  ;;  %v2342_v25 = vld [vmem:[%s3112_s1 + $0x48] sm:$0xff]  ;;  %v2341_v29 = vld [vmem:[%s3112_s1 + $0x40] sm:$0xff]  ;;  %v2372_v41 = vld [vmem:[%s3112_s1 + $0x138] sm:$0xff] }
   0xb   :  { %1257 = vmatpush.bf16.msra.mxu1 %v2346_v9  ;;  %v2350_v26 = vld [vmem:[%s3112_s1 + $0x88] sm:$0xff]  ;;  %v2349_v30 = vld [vmem:[%s3112_s1 + $0x80] sm:$0xff]  ;;  %v2380_v46 = vld [vmem:[%s3112_s1 + $0x178] sm:$0xff] }
   0xc   :  { %1276 = vmatpush.bf16.msra.mxu2 %v2354_v10  ;;  %v2358_v27 = vld [vmem:[%s3112_s1 + $0xc8] sm:$0xff]  ;;  %v2357_v31 = vld [vmem:[%s3112_s1 + $0xc0] sm:$0xff]  ;;  %v2396_v47 = vld [vmem:[%s3112_s1 + $0x1f8] sm:$0xff] }
   0xd   :  { %1295 = vmatpush.bf16.msra.mxu3 %v2362_v11  ;;  %v1663_v32 = vld [vmem:[%s3113_s0] sm:$0xf]  ;;  %v2301_v34 = vld [vmem:[%s3113_s0 + $0x4] sm:$0xf]  ;;  %v1671_v36 = vld [vmem:[%s3113_s0 + $0x8] sm:$0xf] }
   0xe   :  { %1239 = vmatpush.bf16.msra.mxu0 %v2337_v12  ;;  %v2309_v33 = vld [vmem:[%s3113_s0 + $0x3c] sm:$0xf0]  ;;  %v1665_v35 = vld [vmem:[%s3113_s0 + $0x40] sm:$0xf0]  ;;  %v2310_v37 = vld [vmem:[%s3113_s0 + $0x44] sm:$0xf0] }
   0xf   :  { %1258 = vmatpush.bf16.msra.mxu1 %v2345_v13  ;;  %v2302_v38 = vld [vmem:[%s3113_s0 + $0xc] sm:$0xf]  ;;  %v1664_v42 = vor.u32 %v2309_v33, %v1663_v32  ;;  %v1668_v43 = vor.u32 %v2301_v34, %v1665_v35  ;;  %v1672_v44 = vor.u32 %v2310_v37, %v1671_v36  ;;  %v2387_v48 = vld [vmem:[%s3112_s1 + $0x1b0] sm:$0xff]  ;;  %v2385_v56 = vld [vmem:[%s3112_s1 + $0x1a0] sm:$0xff] }
  0x10   :  { %1277 = vmatpush.bf16.msra.mxu2 %v2353_v14  ;;  %v1673_v39 = vld [vmem:[%s3113_s0 + $0x48] sm:$0xf0]  ;;  %v2371_v49 = vld [vmem:[%s3112_s1 + $0x130] sm:$0xff]  ;;  %v2369_v57 = vld [vmem:[%s3112_s1 + $0x120] sm:$0xff] }
  0x11   :  { %1296 = vmatpush.bf16.msra.mxu3 %v2361_v15  ;;  %v1676_v45 = vor.u32 %v2302_v38, %v1673_v39  ;;  %v2379_v50 = vld [vmem:[%s3112_s1 + $0x170] sm:$0xff]  ;;  %v2386_v52 = vld [vmem:[%s3112_s1 + $0x1a8] sm:$0xff]  ;;  %v2377_v58 = vld [vmem:[%s3112_s1 + $0x160] sm:$0xff] }
  0x12   :  { %1240 = vmatpush.bf16.msra.mxu0 %v2336_v16  ;;  %v2395_v51 = vld [vmem:[%s3112_s1 + $0x1f0] sm:$0xff]  ;;  %v2370_v53 = vld [vmem:[%s3112_s1 + $0x128] sm:$0xff]  ;;  %v2393_v59 = vld [vmem:[%s3112_s1 + $0x1e0] sm:$0xff] }
  0x13   :  { %1259 = vmatpush.bf16.msra.mxu1 %v2344_v17  ;;  %v2378_v54 = vld [vmem:[%s3112_s1 + $0x168] sm:$0xff]  ;;  %v1727_v60 = vld [vmem:[%s3113_s0 + $0x80] sm:$0xf]  ;;  %v2317_v62 = vld [vmem:[%s3113_s0 + $0x84] sm:$0xf] }
  0x14   :  { %1278 = vmatpush.bf16.msra.mxu2 %v2352_v18  ;;  %v2394_v55 = vld [vmem:[%s3112_s1 + $0x1e8] sm:$0xff]  ;;  %v2325_v61 = vld [vmem:[%s3113_s0 + $0xbc] sm:$0xf0]  ;;  %v1729_v63 = vld [vmem:[%s3113_s0 + $0xc0] sm:$0xf0] }
  0x15   :  { %1297 = vmatpush.bf16.msra.mxu3 %v2360_v19  ;;  %v1735_v0 = vld [vmem:[%s3113_s0 + $0x88] sm:$0xf]  ;;  %v2318_v2 = vld [vmem:[%s3113_s0 + $0x8c] sm:$0xf]  ;;  %v2384_v4 = vld [vmem:[%s3112_s1 + $0x198] sm:$0xff]  ;;  %v1728_v6 = vor.u32 %v2325_v61, %v1727_v60  ;;  %v1732_v7 = vor.u32 %v2317_v62, %v1729_v63 }
  0x16   :  { %1241 = vmatpush.bf16.msra.mxu0 %v2335_v20  ;;  %v2326_v1 = vld [vmem:[%s3113_s0 + $0xc4] sm:$0xf0]  ;;  %v1737_v3 = vld [vmem:[%s3113_s0 + $0xc8] sm:$0xf0]  ;;  %v2368_v5 = vld [vmem:[%s3112_s1 + $0x118] sm:$0xff] }
  0x17   :  { %1260 = vmatpush.bf16.msra.mxu1 %v2343_v21  ;;  %v1736_v8 = vor.u32 %v2326_v1, %v1735_v0  ;;  %v1740_v9 = vor.u32 %v2318_v2, %v1737_v3  ;;  %v2376_v10 = vld [vmem:[%s3112_s1 + $0x158] sm:$0xff]  ;;  %v2383_v12 = vld [vmem:[%s3112_s1 + $0x190] sm:$0xff]  ;;  %v2382_v16 = vld [vmem:[%s3112_s1 + $0x188] sm:$0xff] }
  0x18   :  { %1279 = vmatpush.bf16.msra.mxu2 %v2351_v22  ;;  %v2392_v11 = vld [vmem:[%s3112_s1 + $0x1d8] sm:$0xff]  ;;  %v2367_v13 = vld [vmem:[%s3112_s1 + $0x110] sm:$0xff]  ;;  %v2366_v17 = vld [vmem:[%s3112_s1 + $0x108] sm:$0xff] }
  0x19   :  { %1298 = vmatpush.bf16.msra.mxu3 %v2359_v23  ;;  %v2375_v14 = vld [vmem:[%s3112_s1 + $0x150] sm:$0xff]  ;;  %v2374_v18 = vld [vmem:[%s3112_s1 + $0x148] sm:$0xff]  ;;  %v2381_v20 = vld [vmem:[%s3112_s1 + $0x180] sm:$0xff] }
  0x1a   :  { %1242 = vmatpush.bf16.msra.mxu0 %v2334_v24  ;;  %v2391_v15 = vld [vmem:[%s3112_s1 + $0x1d0] sm:$0xff]  ;;  %v2390_v19 = vld [vmem:[%s3112_s1 + $0x1c8] sm:$0xff]  ;;  %v2365_v21 = vld [vmem:[%s3112_s1 + $0x100] sm:$0xff] }
  0x1b   :  { %1261 = vmatpush.bf16.msra.mxu1 %v2342_v25  ;;  %v2373_v22 = vld [vmem:[%s3112_s1 + $0x140] sm:$0xff]  ;;  %v1679_v24 = vld [vmem:[%s3113_s0 + $0x10] sm:$0xf]  ;;  %v2420_v25 = vld [vmem:[%s3112_s1 + $0x2b8] sm:$0xff] }
  0x1c   :  { %1280 = vmatpush.bf16.msra.mxu2 %v2350_v26  ;;  %v2389_v23 = vld [vmem:[%s3112_s1 + $0x1c0] sm:$0xff]  ;;  %v2404_v26 = vld [vmem:[%s3112_s1 + $0x238] sm:$0xff]  ;;  %v2419_v37 = vld [vmem:[%s3112_s1 + $0x2b0] sm:$0xff] }
  0x1d   :  { %1299 = vmatpush.bf16.msra.mxu3 %v2358_v27  ;;  %v2311_v27 = vld [vmem:[%s3113_s0 + $0x4c] sm:$0xf0]  ;;  %v2304_v32 = vld [vmem:[%s3113_s0 + $0x1c] sm:$0xf] }
  0x1e   :  { %1243 = vmatpush.bf16.msra.mxu0 %v2333_v28  ;;  %v2303_v28 = vld [vmem:[%s3113_s0 + $0x14] sm:$0xf]  ;;  %v1689_v33 = vld [vmem:[%s3113_s0 + $0x58] sm:$0xf0]  ;;  %v1680_v36 = vor.u32 %v2311_v27, %v1679_v24  ;;  %v1697_v24 = vld [vmem:[%s3113_s0 + $0x60] sm:$0xf0] }
  0x1f   :  { %1262 = vmatpush.bf16.msra.mxu1 %v2341_v29  ;;  %v1681_v29 = vld [vmem:[%s3113_s0 + $0x50] sm:$0xf0]  ;;  %v2412_v34 = vld [vmem:[%s3112_s1 + $0x278] sm:$0xff]  ;;  %v2306_v27 = vld [vmem:[%s3113_s0 + $0x2c] sm:$0xf] }
  0x20   :  { %1281 = vmatpush.bf16.msra.mxu2 %v2349_v30  ;;  %v1687_v30 = vld [vmem:[%s3113_s0 + $0x18] sm:$0xf]  ;;  %v1684_v38 = vor.u32 %v2303_v28, %v1681_v29  ;;  %v1753_v61 = vld [vmem:[%s3113_s0 + $0xd8] sm:$0xf0]  ;;  %v2415_v1 = vld [vmem:[%s3112_s1 + $0x290] sm:$0xff] }
  0x21   :  { %1300 = vmatpush.bf16.msra.mxu3 %v2357_v31  ;;  %1244 = vmatmul.bf16.vlgmr.msra.gmra.mxu0 %v1664_v42  ;;  %v2312_v31 = vld [vmem:[%s3113_s0 + $0x54] sm:$0xf0]  ;;  %v2411_v42 = vld [vmem:[%s3112_s1 + $0x270] sm:$0xff]  ;;  %v1705_v28 = vld [vmem:[%s3113_s0 + $0x68] sm:$0xf0] }
  0x22   :  { %1312 = vmatpush.bf16.msrb.mxu0 %v2372_v41  ;;  %1263 = vmatmul.bf16.vlgmr.msra.gmra.mxu1 %v1668_v43  ;;  %v2428_v35 = vld [vmem:[%s3112_s1 + $0x2f8] sm:$0xff]  ;;  %v1688_v39 = vor.u32 %v2312_v31, %v1687_v30  ;;  %v2403_v41 = vld [vmem:[%s3112_s1 + $0x230] sm:$0xff] }
  0x23   :  { %1282 = vmatmul.bf16.vlgmr.msra.gmra.mxu2 %v1672_v44  ;;  %1331 = vmatpush.bf16.msrb.mxu1 %v2380_v46  ;;  %v2427_v43 = vld [vmem:[%s3112_s1 + $0x2f0] sm:$0xff]  ;;  %v2418_v44 = vld [vmem:[%s3112_s1 + $0x2a8] sm:$0xff]  ;;  %v2400_v60 = vld [vmem:[%s3112_s1 + $0x218] sm:$0xff] }
  0x24   :  { %1350 = vmatpush.bf16.msrb.mxu2 %v2388_v40  ;;  %1301 = vmatmul.bf16.vlgmr.msra.gmra.mxu3 %v1676_v45  ;;  %v1692_v40 = vor.u32 %v2304_v32, %v1689_v33  ;;  %v2402_v45 = vld [vmem:[%s3112_s1 + $0x228] sm:$0xff]  ;;  %v2408_v62 = vld [vmem:[%s3112_s1 + $0x258] sm:$0xff]  ;;  %v2443_v30 = vld [vmem:[%s3112_s1 + $0x370] sm:$0xff]  ;;  %v1708_v33 = vor.u32 %v2306_v27, %v1705_v28 }
  0x25   :  { %1369 = vmatpush.bf16.msrb.mxu3 %v2396_v47  ;;  %v2410_v46 = vld [vmem:[%s3112_s1 + $0x268] sm:$0xff]  ;;  %v2424_v63 = vld [vmem:[%s3112_s1 + $0x2d8] sm:$0xff] }
  0x26   :  { %1313 = vmatpush.bf16.msrb.mxu0 %v2371_v49  ;;  %v2426_v47 = vld [vmem:[%s3112_s1 + $0x2e8] sm:$0xff]  ;;  %v2401_v49 = vld [vmem:[%s3112_s1 + $0x220] sm:$0xff]  ;;  %v1785_v27 = vld [vmem:[%s3113_s0 + $0xf8] sm:$0xf0] }
  0x27   :  { %1332 = vmatpush.bf16.msrb.mxu1 %v2379_v50  ;;  %v2409_v50 = vld [vmem:[%s3112_s1 + $0x260] sm:$0xff] }
  0x28   :  { %1351 = vmatpush.bf16.msrb.mxu2 %v2387_v48  ;;  %v2417_v48 = vld [vmem:[%s3112_s1 + $0x2a0] sm:$0xff] }
  0x29   :  { %1370 = vmatpush.bf16.msrb.mxu3 %v2395_v51  ;;  %v2425_v51 = vld [vmem:[%s3112_s1 + $0x2e0] sm:$0xff] }
  0x2a   :  { %1314 = vmatpush.bf16.msrb.mxu0 %v2370_v53  ;;  %v2327_v53 = vld [vmem:[%s3113_s0 + $0xcc] sm:$0xf0] }
  0x2b   :  { %1333 = vmatpush.bf16.msrb.mxu1 %v2378_v54  ;;  %v2416_v54 = vld [vmem:[%s3112_s1 + $0x298] sm:$0xff] }
  0x2c   :  { %1352 = vmatpush.bf16.msrb.mxu2 %v2386_v52  ;;  %v1743_v52 = vld [vmem:[%s3113_s0 + $0x90] sm:$0xf] }
  0x2d   :  { %1371 = vmatpush.bf16.msrb.mxu3 %v2394_v55  ;;  %v2319_v55 = vld [vmem:[%s3113_s0 + $0x94] sm:$0xf]  ;;  %v1744_v0 = vor.u32 %v2327_v53, %v1743_v52  ;;  %v2322_v52 = vld [vmem:[%s3113_s0 + $0xac] sm:$0xf]  ;;  %v2432_v53 = vld [vmem:[%s3112_s1 + $0x318] sm:$0xff] }
  0x2e   :  { %1315 = vmatpush.bf16.msrb.mxu0 %v2369_v57  ;;  %v1751_v57 = vld [vmem:[%s3113_s0 + $0x98] sm:$0xf] }
  0x2f   :  { %1334 = vmatpush.bf16.msrb.mxu1 %v2377_v58  ;;  %v2328_v58 = vld [vmem:[%s3113_s0 + $0xd4] sm:$0xf0] }
  0x30   :  { %1353 = vmatpush.bf16.msrb.mxu2 %v2385_v56  ;;  %v1745_v56 = vld [vmem:[%s3113_s0 + $0xd0] sm:$0xf0]  ;;  %v1752_v3 = vor.u32 %v2328_v58, %v1751_v57 }
  0x31   :  { %1372 = vmatpush.bf16.msrb.mxu3 %v2393_v59  ;;  %1249 = vmatmul.bf16.gmra.mxu0 %v1728_v6  ;;  %v2320_v59 = vld [vmem:[%s3113_s0 + $0x9c] sm:$0xf]  ;;  %v1748_v2 = vor.u32 %v2319_v55, %v1745_v56  ;;  %v2407_v6 = vld [vmem:[%s3112_s1 + $0x250] sm:$0xff] }
  0x32   :  { %1316 = vmatpush.bf16.msrb.mxu0 %v2368_v5  ;;  %1268 = vmatmul.bf16.gmra.mxu1 %v1732_v7  ;;  %v2399_v5 = vld [vmem:[%s3112_s1 + $0x210] sm:$0xff]  ;;  %v2456_v55 = vld [vmem:[%s3112_s1 + $0x3d8] sm:$0xff] }
  0x33   :  { %1287 = vmatmul.bf16.gmra.mxu2 %v1736_v8  ;;  %1335 = vmatpush.bf16.msrb.mxu1 %v2376_v10  ;;  %v2423_v7 = vld [vmem:[%s3112_s1 + $0x2d0] sm:$0xff]  ;;  %v2414_v8 = vld [vmem:[%s3112_s1 + $0x288] sm:$0xff] }
  0x34   :  { %1354 = vmatpush.bf16.msrb.mxu2 %v2384_v4  ;;  %1306 = vmatmul.bf16.gmra.mxu3 %v1740_v9  ;;  %v1756_v4 = vor.u32 %v2320_v59, %v1753_v61  ;;  %v2398_v9 = vld [vmem:[%s3112_s1 + $0x208] sm:$0xff]  ;;  %v2447_v56 = vld [vmem:[%s3112_s1 + $0x390] sm:$0xff] }
  0x35   :  { %1373 = vmatpush.bf16.msrb.mxu3 %v2392_v11  ;;  %v2406_v10 = vld [vmem:[%s3112_s1 + $0x248] sm:$0xff]  ;;  %v2439_v58 = vld [vmem:[%s3112_s1 + $0x350] sm:$0xff] }
  0x36   :  { %1317 = vmatpush.bf16.msrb.mxu0 %v2367_v13  ;;  %v2422_v11 = vld [vmem:[%s3112_s1 + $0x2c8] sm:$0xff]  ;;  %v2452_v13 = vld [vmem:[%s3112_s1 + $0x3b8] sm:$0xff] }
  0x37   :  { %1336 = vmatpush.bf16.msrb.mxu1 %v2375_v14  ;;  %v2397_v14 = vld [vmem:[%s3112_s1 + $0x200] sm:$0xff] }
  0x38   :  { %1355 = vmatpush.bf16.msrb.mxu2 %v2383_v12  ;;  %v2413_v12 = vld [vmem:[%s3112_s1 + $0x280] sm:$0xff] }
  0x39   :  { %1374 = vmatpush.bf16.msrb.mxu3 %v2391_v15  ;;  %v2405_v15 = vld [vmem:[%s3112_s1 + $0x240] sm:$0xff] }
  0x3a   :  { %1318 = vmatpush.bf16.msrb.mxu0 %v2366_v17  ;;  %v1695_v17 = vld [vmem:[%s3113_s0 + $0x20] sm:$0xf] }
  0x3b   :  { %1337 = vmatpush.bf16.msrb.mxu1 %v2374_v18  ;;  %v2313_v18 = vld [vmem:[%s3113_s0 + $0x5c] sm:$0xf0] }
  0x3c   :  { %1356 = vmatpush.bf16.msrb.mxu2 %v2382_v16  ;;  %v2421_v16 = vld [vmem:[%s3112_s1 + $0x2c0] sm:$0xff]  ;;  %v1696_v29 = vor.u32 %v2313_v18, %v1695_v17 }
  0x3d   :  { %1375 = vmatpush.bf16.msrb.mxu3 %v2390_v19  ;;  %v2436_v19 = vld [vmem:[%s3112_s1 + $0x338] sm:$0xff] }
  0x3e   :  { %1319 = vmatpush.bf16.msrb.mxu0 %v2365_v21  ;;  %v2305_v21 = vld [vmem:[%s3113_s0 + $0x24] sm:$0xf] }
  0x3f   :  { %1338 = vmatpush.bf16.msrb.mxu1 %v2373_v22  ;;  %v2460_v22 = vld [vmem:[%s3112_s1 + $0x3f8] sm:$0xff]  ;;  %v1700_v31 = vor.u32 %v2305_v21, %v1697_v24  ;;  %v2331_v21 = vld [vmem:[%s3113_s0 + $0xec] sm:$0xf0] }
  0x40   :  { %1357 = vmatpush.bf16.msrb.mxu2 %v2381_v20  ;;  %v2444_v20 = vld [vmem:[%s3112_s1 + $0x378] sm:$0xff] }
  0x41   :  { %1376 = vmatpush.bf16.msrb.mxu3 %v2389_v23  ;;  %1320 = vmatmul.bf16.vlgmr.msrb.gmra.mxu0 %v1680_v36  ;;  %v2451_v23 = vld [vmem:[%s3112_s1 + $0x3b0] sm:$0xff]  ;;  %v2450_v36 = vld [vmem:[%s3112_s1 + $0x3a8] sm:$0xff]  ;;  %v1783_v24 = vld [vmem:[%s3113_s0 + $0xb8] sm:$0xf] }
  0x42   :  { %1388 = vmatpush.bf16.msra.mxu0 %v2404_v26  ;;  %1339 = vmatmul.bf16.vlgmr.msrb.gmra.mxu1 %v1684_v38  ;;  %v2314_v26 = vld [vmem:[%s3113_s0 + $0x64] sm:$0xf0] }
  0x43   :  { %1407 = vmatpush.bf16.msra.mxu1 %v2412_v34  ;;  %1358 = vmatmul.bf16.vlgmr.msrb.gmra.mxu2 %v1688_v39  ;;  %v2435_v34 = vld [vmem:[%s3112_s1 + $0x330] sm:$0xff]  ;;  %v2434_v38 = vld [vmem:[%s3112_s1 + $0x328] sm:$0xff] }
  0x44   :  { %1426 = vmatpush.bf16.msra.mxu2 %v2420_v25  ;;  %1377 = vmatmul.bf16.vlgmr.msrb.gmra.mxu3 %v1692_v40  ;;  %v1703_v25 = vld [vmem:[%s3113_s0 + $0x28] sm:$0xf]  ;;  %v2449_v40 = vld [vmem:[%s3112_s1 + $0x3a0] sm:$0xff] }
  0x45   :  { %1445 = vmatpush.bf16.msra.mxu3 %v2428_v35  ;;  %v1704_v32 = vor.u32 %v2314_v26, %v1703_v25  ;;  %v2459_v35 = vld [vmem:[%s3112_s1 + $0x3f0] sm:$0xff]  ;;  %v2458_v39 = vld [vmem:[%s3112_s1 + $0x3e8] sm:$0xff]  ;;  %v2332_v25 = vld [vmem:[%s3113_s0 + $0xf4] sm:$0xf0] }
  0x46   :  { %1389 = vmatpush.bf16.msra.mxu0 %v2403_v41  ;;  %v2441_v41 = vld [vmem:[%s3112_s1 + $0x360] sm:$0xff]  ;;  %v2324_v26 = vld [vmem:[%s3113_s0 + $0xbc] sm:$0xf] }
  0x47   :  { %1408 = vmatpush.bf16.msra.mxu1 %v2411_v42  ;;  %v2433_v42 = vld [vmem:[%s3112_s1 + $0x320] sm:$0xff] }
  0x48   :  { %1427 = vmatpush.bf16.msra.mxu2 %v2419_v37  ;;  %v2442_v37 = vld [vmem:[%s3112_s1 + $0x368] sm:$0xff] }
  0x49   :  { %1446 = vmatpush.bf16.msra.mxu3 %v2427_v43  ;;  %v2457_v43 = vld [vmem:[%s3112_s1 + $0x3e0] sm:$0xff] }
  0x4a   :  { %1390 = vmatpush.bf16.msra.mxu0 %v2402_v45  ;;  %v1759_v45 = vld [vmem:[%s3113_s0 + $0xa0] sm:$0xf] }
  0x4b   :  { %1409 = vmatpush.bf16.msra.mxu1 %v2410_v46  ;;  %v2329_v46 = vld [vmem:[%s3113_s0 + $0xdc] sm:$0xf0] }
  0x4c   :  { %1428 = vmatpush.bf16.msra.mxu2 %v2418_v44  ;;  %v2448_v44 = vld [vmem:[%s3112_s1 + $0x398] sm:$0xff]  ;;  %v1760_v57 = vor.u32 %v2329_v46, %v1759_v45 }
  0x4d   :  { %1447 = vmatpush.bf16.msra.mxu3 %v2426_v47  ;;  %v2440_v47 = vld [vmem:[%s3112_s1 + $0x358] sm:$0xff] }
  0x4e   :  { %1391 = vmatpush.bf16.msra.mxu0 %v2401_v49  ;;  %v1761_v49 = vld [vmem:[%s3113_s0 + $0xe0] sm:$0xf0] }
  0x4f   :  { %1410 = vmatpush.bf16.msra.mxu1 %v2409_v50  ;;  %v1767_v50 = vld [vmem:[%s3113_s0 + $0xa8] sm:$0xf] }
  0x50   :  { %1429 = vmatpush.bf16.msra.mxu2 %v2417_v48  ;;  %v2321_v48 = vld [vmem:[%s3113_s0 + $0xa4] sm:$0xf] }
  0x51   :  { %1448 = vmatpush.bf16.msra.mxu3 %v2425_v51  ;;  %1325 = vmatmul.bf16.gmra.mxu0 %v1744_v0  ;;  %v2330_v51 = vld [vmem:[%s3113_s0 + $0xe4] sm:$0xf0]  ;;  %v1764_v59 = vor.u32 %v2321_v48, %v1761_v49 }
  0x52   :  { %1392 = vmatpush.bf16.msra.mxu0 %v2400_v60  ;;  %1344 = vmatmul.bf16.gmra.mxu1 %v1748_v2  ;;  %v1768_v60 = vor.u32 %v2330_v51, %v1767_v50  ;;  %v2446_v0 = vld [vmem:[%s3112_s1 + $0x388] sm:$0xff] }
  0x53   :  { %1411 = vmatpush.bf16.msra.mxu1 %v2408_v62  ;;  %1363 = vmatmul.bf16.gmra.mxu2 %v1752_v3  ;;  %v2431_v62 = vld [vmem:[%s3112_s1 + $0x310] sm:$0xff]  ;;  %v2430_v2 = vld [vmem:[%s3112_s1 + $0x308] sm:$0xff] }
  0x54   :  { %1430 = vmatpush.bf16.msra.mxu2 %v2416_v54  ;;  %1382 = vmatmul.bf16.gmra.mxu3 %v1756_v4  ;;  %v1769_v54 = vld [vmem:[%s3113_s0 + $0xe8] sm:$0xf0]  ;;  %v2445_v4 = vld [vmem:[%s3112_s1 + $0x380] sm:$0xff] }
  0x55   :  { %1449 = vmatpush.bf16.msra.mxu3 %v2424_v63  ;;  %v1772_v61 = vor.u32 %v2322_v52, %v1769_v54  ;;  %v2455_v63 = vld [vmem:[%s3112_s1 + $0x3d0] sm:$0xff]  ;;  %v2454_v3 = vld [vmem:[%s3112_s1 + $0x3c8] sm:$0xff] }
  0x56   :  { %1393 = vmatpush.bf16.msra.mxu0 %v2399_v5  ;;  %v2437_v5 = vld [vmem:[%s3112_s1 + $0x340] sm:$0xff] }
  0x57   :  { %1412 = vmatpush.bf16.msra.mxu1 %v2407_v6  ;;  %v2429_v6 = vld [vmem:[%s3112_s1 + $0x300] sm:$0xff] }
  0x58   :  { %1431 = vmatpush.bf16.msra.mxu2 %v2415_v1  ;;  %v2438_v1 = vld [vmem:[%s3112_s1 + $0x348] sm:$0xff] }
  0x59   :  { %1450 = vmatpush.bf16.msra.mxu3 %v2423_v7  ;;  %v2453_v7 = vld [vmem:[%s3112_s1 + $0x3c0] sm:$0xff] }
  0x5a   :  { %1394 = vmatpush.bf16.msra.mxu0 %v2398_v9  ;;  %v2315_v9 = vld [vmem:[%s3113_s0 + $0x6c] sm:$0xf0] }
  0x5b   :  { %1413 = vmatpush.bf16.msra.mxu1 %v2406_v10  ;;  %v2307_v10 = vld [vmem:[%s3113_s0 + $0x34] sm:$0xf] }
  0x5c   :  { %1432 = vmatpush.bf16.msra.mxu2 %v2414_v8  ;;  %v1711_v8 = vld [vmem:[%s3113_s0 + $0x30] sm:$0xf] }
  0x5d   :  { %1451 = vmatpush.bf16.msra.mxu3 %v2422_v11  ;;  %v1713_v11 = vld [vmem:[%s3113_s0 + $0x70] sm:$0xf0] }
  0x5e   :  { %1395 = vmatpush.bf16.msra.mxu0 %v2397_v14  ;;  %v2308_v14 = vld [vmem:[%s3113_s0 + $0x3c] sm:$0xf]  ;;  %v1716_v17 = vor.u32 %v2307_v10, %v1713_v11 }
  0x5f   :  { %1414 = vmatpush.bf16.msra.mxu1 %v2405_v15  ;;  %v1721_v15 = vld [vmem:[%s3113_s0 + $0x78] sm:$0xf0] }
  0x60   :  { %1433 = vmatpush.bf16.msra.mxu2 %v2413_v12  ;;  %v1719_v12 = vld [vmem:[%s3113_s0 + $0x38] sm:$0xf] }
  0x61   :  { %1452 = vmatpush.bf16.msra.mxu3 %v2421_v16  ;;  %1396 = vmatmul.bf16.vlgmr.msra.gmra.mxu0 %v1696_v29  ;;  %v1712_v16 = vor.u32 %v2315_v9, %v1711_v8 }
  0x62   :  { %1464 = vmatpush.bf16.msrb.mxu0 %v2436_v19  ;;  %1415 = vmatmul.bf16.vlgmr.msra.gmra.mxu1 %v1700_v31  ;;  %v1724_v19 = vor.u32 %v2308_v14, %v1721_v15  ;;  %v1788_v31 = vor.u32 %v2324_v26, %v1785_v27 }
  0x63   :  { %1483 = vmatpush.bf16.msrb.mxu1 %v2444_v20  ;;  %1434 = vmatmul.bf16.vlgmr.msra.gmra.mxu2 %v1704_v32  ;;  %v1775_v20 = vld [vmem:[%s3113_s0 + $0xb0] sm:$0xf] }
  0x64   :  { %1502 = vmatpush.bf16.msrb.mxu2 %v2452_v13  ;;  %1453 = vmatmul.bf16.vlgmr.msra.gmra.mxu3 %v1708_v33  ;;  %v2316_v13 = vld [vmem:[%s3113_s0 + $0x74] sm:$0xf0]  ;;  %v1776_v28 = vor.u32 %v2331_v21, %v1775_v20 }
  0x65   :  { %1521 = vmatpush.bf16.msrb.mxu3 %v2460_v22  ;;  %v1720_v18 = vor.u32 %v2316_v13, %v1719_v12  ;;  %v2323_v22 = vld [vmem:[%s3113_s0 + $0xb4] sm:$0xf] }
  0x66   :  { %1465 = vmatpush.bf16.msrb.mxu0 %v2435_v34 }
  0x67   :  { %1484 = vmatpush.bf16.msrb.mxu1 %v2443_v30  ;;  %v1784_v30 = vor.u32 %v2332_v25, %v1783_v24 }
  0x68   :  { %1503 = vmatpush.bf16.msrb.mxu2 %v2451_v23  ;;  %v1777_v23 = vld [vmem:[%s3113_s0 + $0xf0] sm:$0xf0] }
  0x69   :  { %1522 = vmatpush.bf16.msrb.mxu3 %v2459_v35  ;;  %v1780_v29 = vor.u32 %v2323_v22, %v1777_v23 }
  0x6a   :  { %1466 = vmatpush.bf16.msrb.mxu0 %v2434_v38 }
  0x6b   :  { %1485 = vmatpush.bf16.msrb.mxu1 %v2442_v37 }
  0x6c   :  { %1504 = vmatpush.bf16.msrb.mxu2 %v2450_v36 }
  0x6d   :  { %1523 = vmatpush.bf16.msrb.mxu3 %v2458_v39 }
  0x6e   :  { %1467 = vmatpush.bf16.msrb.mxu0 %v2433_v42 }
  0x6f   :  { %1486 = vmatpush.bf16.msrb.mxu1 %v2441_v41 }
  0x70   :  { %1505 = vmatpush.bf16.msrb.mxu2 %v2449_v40 }
  0x71   :  { %1524 = vmatpush.bf16.msrb.mxu3 %v2457_v43  ;;  %1401 = vmatmul.bf16.gmra.mxu0 %v1760_v57 }
  0x72   :  { %1468 = vmatpush.bf16.msrb.mxu0 %v2432_v53  ;;  %1420 = vmatmul.bf16.gmra.mxu1 %v1764_v59 }
  0x73   :  { %1487 = vmatpush.bf16.msrb.mxu1 %v2440_v47  ;;  %1439 = vmatmul.bf16.gmra.mxu2 %v1768_v60 }
  0x74   :  { %1506 = vmatpush.bf16.msrb.mxu2 %v2448_v44  ;;  %1458 = vmatmul.bf16.gmra.mxu3 %v1772_v61 }
  0x75   :  { %1525 = vmatpush.bf16.msrb.mxu3 %v2456_v55 }
  0x76   :  { %1469 = vmatpush.bf16.msrb.mxu0 %v2431_v62 }
  0x77   :  { %1488 = vmatpush.bf16.msrb.mxu1 %v2439_v58 }
  0x78   :  { %1507 = vmatpush.bf16.msrb.mxu2 %v2447_v56 }
  0x79   :  { %1526 = vmatpush.bf16.msrb.mxu3 %v2455_v63 }
  0x7a   :  { %1470 = vmatpush.bf16.msrb.mxu0 %v2430_v2 }
  0x7b   :  { %1489 = vmatpush.bf16.msrb.mxu1 %v2438_v1 }
  0x7c   :  { %1508 = vmatpush.bf16.msrb.mxu2 %v2446_v0 }
  0x7d   :  { %1527 = vmatpush.bf16.msrb.mxu3 %v2454_v3 }
  0x7e   :  { %1471 = vmatpush.bf16.msrb.mxu0 %v2429_v6 }
  0x7f   :  { %1490 = vmatpush.bf16.msrb.mxu1 %v2437_v5 }
  0x80   :  { %1509 = vmatpush.bf16.msrb.mxu2 %v2445_v4 }
  0x81   :  { %1528 = vmatpush.bf16.msrb.mxu3 %v2453_v7  ;;  %1472 = vmatmul.bf16.vlgmr.msrb.gmra.mxu0 %v1712_v16 }
  0x82   :  { %1491 = vmatmul.bf16.vlgmr.msrb.gmra.mxu1 %v1716_v17 }
  0x83   :  { %1510 = vmatmul.bf16.vlgmr.msrb.gmra.mxu2 %v1720_v18 }
  0x84   :  { %1529 = vmatmul.bf16.vlgmr.msrb.gmra.mxu3 %v1724_v19 }
  0x91   :  { %1477 = vmatmul.bf16.gmra.mxu0 %v1776_v28 }
  0x92   :  { %1496 = vmatmul.bf16.gmra.mxu1 %v1780_v29 }
  0x93   :  { %1515 = vmatmul.bf16.gmra.mxu2 %v1784_v30 }
  0x94   :  { %1534 = vmatmul.bf16.gmra.mxu3 %v1788_v31 }
  0x9e   :  { %v1245_v32 = vpop.f32.mrf.mxu0 }
  0x9f   :  { %v1264_v33 = vpop.f32.mrf.mxu1 }
  0xa0   :  { %v1265_v34 = vadd.f32 %v1264_v33, %v1245_v32 }
  0xa6   :  { %v1283_v35 = vpop.f32.mrf.mxu2  ;;  %v1247_v38 = vpop.f32.mrf.mxu0 }
  0xa7   :  { %v1302_v36 = vpop.f32.mrf.mxu3  ;;  %v1284_v37 = vadd.f32 %v1283_v35, %v1265_v34  ;;  %v1266_v39 = vpop.f32.mrf.mxu1 }
  0xa8   :  { %v1267_v40 = vadd.f32 %v1266_v39, %v1247_v38 }
  0xa9   :  { %v1303_v41 = vadd.f32 %v1302_v36, %v1284_v37 }
  0xae   :  { %v1285_v42 = vpop.f32.mrf.mxu2  ;;  %v1250_v45 = vpop.f32.mrf.mxu0 }
  0xaf   :  { %v1304_v43 = vpop.f32.mrf.mxu3  ;;  %v1286_v44 = vadd.f32 %v1285_v42, %v1267_v40  ;;  %v1269_v46 = vpop.f32.mrf.mxu1 }
  0xb0   :  { %v1270_v47 = vadd.f32 %v1269_v46, %v1250_v45 }
  0xb1   :  { %v1305_v48 = vadd.f32 %v1304_v43, %v1286_v44 }
  0xb6   :  { %v1288_v49 = vpop.f32.mrf.mxu2  ;;  %v1252_v52 = vpop.f32.mrf.mxu0 }
  0xb7   :  { %v1307_v50 = vpop.f32.mrf.mxu3  ;;  %v1289_v51 = vadd.f32 %v1288_v49, %v1270_v47  ;;  %v1271_v53 = vpop.f32.mrf.mxu1 }
  0xb8   :  { %v1272_v54 = vadd.f32 %v1271_v53, %v1252_v52 }
  0xb9   :  { %v1308_v55 = vadd.f32 %v1307_v50, %v1289_v51 }
  0xbe   :  { %v1290_v56 = vpop.f32.mrf.mxu2  ;;  %v1321_v59 = vpop.f32.mrf.mxu0 }
  0xbf   :  { %v1309_v57 = vpop.f32.mrf.mxu3  ;;  %v1291_v58 = vadd.f32 %v1290_v56, %v1272_v54  ;;  %v1322_v60 = vadd.f32 %v1321_v59, %v1303_v41  ;;  %v1340_v61 = vpop.f32.mrf.mxu1 }
  0xc1   :  { %v1310_v62 = vadd.f32 %v1309_v57, %v1291_v58  ;;  %v1341_v63 = vadd.f32 %v1340_v61, %v1322_v60 }
  0xc6   :  { %v1359_v0 = vpop.f32.mrf.mxu2  ;;  %v1323_v3 = vpop.f32.mrf.mxu0 }
  0xc7   :  { %v1360_v1 = vadd.f32 %v1359_v0, %v1341_v63  ;;  %v1378_v2 = vpop.f32.mrf.mxu3  ;;  %v1342_v4 = vpop.f32.mrf.mxu1  ;;  %v1324_v26 = vadd.f32 %v1323_v3, %v1305_v48 }
  0xc9   :  { %v1379_v5 = vadd.f32 %v1378_v2, %v1360_v1  ;;  %v1343_v27 = vadd.f32 %v1342_v4, %v1324_v26 }
  0xce   :  { %v1361_v6 = vpop.f32.mrf.mxu2  ;;  %v1326_v8 = vpop.f32.mrf.mxu0 }
  0xcf   :  { %v1380_v7 = vpop.f32.mrf.mxu3  ;;  %v1345_v9 = vpop.f32.mrf.mxu1  ;;  %v1362_v29 = vadd.f32 %v1361_v6, %v1343_v27  ;;  %v1327_v33 = vadd.f32 %v1326_v8, %v1308_v55 }
  0xd1   :  { %v1381_v35 = vadd.f32 %v1380_v7, %v1362_v29  ;;  %v1346_v36 = vadd.f32 %v1345_v9, %v1327_v33 }
  0xd6   :  { %v1364_v10 = vpop.f32.mrf.mxu2  ;;  %v1328_v12 = vpop.f32.mrf.mxu0 }
  0xd7   :  { %v1383_v11 = vpop.f32.mrf.mxu3  ;;  %v1347_v13 = vpop.f32.mrf.mxu1  ;;  %v1365_v40 = vadd.f32 %v1364_v10, %v1346_v36  ;;  %v1329_v45 = vadd.f32 %v1328_v12, %v1310_v62 }
  0xd9   :  { %v1384_v47 = vadd.f32 %v1383_v11, %v1365_v40  ;;  %v1348_v50 = vadd.f32 %v1347_v13, %v1329_v45 }
  0xde   :  { %v1366_v14 = vpop.f32.mrf.mxu2  ;;  %v1397_v16 = vpop.f32.mrf.mxu0 }
  0xdf   :  { %v1385_v15 = vpop.f32.mrf.mxu3  ;;  %v1416_v17 = vpop.f32.mrf.mxu1  ;;  %v1398_v34 = vadd.f32 %v1397_v16, %v1379_v5  ;;  %v1367_v54 = vadd.f32 %v1366_v14, %v1348_v50 }
  0xe1   :  { %v1417_v37 = vadd.f32 %v1416_v17, %v1398_v34  ;;  %v1386_v63 = vadd.f32 %v1385_v15, %v1367_v54 }
  0xe6   :  { %v1435_v18 = vpop.f32.mrf.mxu2  ;;  %v1399_v20 = vpop.f32.mrf.mxu0 }
  0xe7   :  { %v1454_v19 = vpop.f32.mrf.mxu3  ;;  %v1418_v21 = vpop.f32.mrf.mxu1  ;;  %v1400_v38 = vadd.f32 %v1399_v20, %v1381_v35  ;;  %v1436_v41 = vadd.f32 %v1435_v18, %v1417_v37 }
  0xe9   :  { %v1419_v46 = vadd.f32 %v1418_v21, %v1400_v38  ;;  %v1455_v48 = vadd.f32 %v1454_v19, %v1436_v41 }
  0xee   :  { %v1437_v22 = vpop.f32.mrf.mxu2  ;;  %v1402_v24 = vpop.f32.mrf.mxu0 }
  0xef   :  { %v1456_v23 = vpop.f32.mrf.mxu3  ;;  %v1421_v25 = vpop.f32.mrf.mxu1  ;;  %v1438_v49 = vadd.f32 %v1437_v22, %v1419_v46  ;;  %v1403_v51 = vadd.f32 %v1402_v24, %v1384_v47 }
  0xf1   :  { %v1457_v55 = vadd.f32 %v1456_v23, %v1438_v49  ;;  %v1422_v59 = vadd.f32 %v1421_v25, %v1403_v51 }
  0xf6   :  { %v1440_v28 = vpop.f32.mrf.mxu2  ;;  %v1404_v31 = vpop.f32.mrf.mxu0 }
  0xf7   :  { %v1459_v30 = vpop.f32.mrf.mxu3  ;;  %v1423_v32 = vpop.f32.mrf.mxu1  ;;  %v1441_v0 = vadd.f32 %v1440_v28, %v1422_v59  ;;  %v1405_v62 = vadd.f32 %v1404_v31, %v1386_v63 }
  0xf9   :  { %v1460_v4 = vadd.f32 %v1459_v30, %v1441_v0  ;;  %v1424_v9 = vadd.f32 %v1423_v32, %v1405_v62 }
  0xfe   :  { %v1442_v39 = vpop.f32.mrf.mxu2  ;;  %v1473_v43 = vpop.f32.mrf.mxu0 }
  0xff   :  { %v1461_v42 = vpop.f32.mrf.mxu3  ;;  %v1492_v44 = vpop.f32.mrf.mxu1  ;;  %v1474_v52 = vadd.f32 %v1473_v43, %v1455_v48  ;;  %v1443_v13 = vadd.f32 %v1442_v39, %v1424_v9 }
 0x101   :  { %v1493_v60 = vadd.f32 %v1492_v44, %v1474_v52  ;;  %v1462_v20 = vadd.f32 %v1461_v42, %v1443_v13 }
 0x106   :  { %v1511_v53 = vpop.f32.mrf.mxu2  ;;  %v1475_v57 = vpop.f32.mrf.mxu0 }
 0x107   :  { %v1530_v56 = vpop.f32.mrf.mxu3  ;;  %v1494_v58 = vpop.f32.mrf.mxu1  ;;  %v1476_v61 = vadd.f32 %v1475_v57, %v1457_v55  ;;  %v1512_v1 = vadd.f32 %v1511_v53, %v1493_v60 }
 0x109   :  { %v1495_v2 = vadd.f32 %v1494_v58, %v1476_v61  ;;  %v3079_v5 = vadd.f32 %v1530_v56, %v1512_v1 }
 0x10b   :  { %v1552_v14 = vmul.f32 %v3079_v5, %v3079_v5 }
 0x10e   :  { %v1513_v3 = vpop.f32.mrf.mxu2  ;;  %v1478_v8 = vpop.f32.mrf.mxu0 }
 0x10f   :  { %v1514_v6 = vadd.f32 %v1513_v3, %v1495_v2  ;;  %v1532_v7 = vpop.f32.mrf.mxu3  ;;  %v1479_v11 = vadd.f32 %v1478_v8, %v1460_v4  ;;  %v1497_v12 = vpop.f32.mrf.mxu1  ;;  %v2464_v2 = vld [vmem:[%s3114_s2] ss:$0 sm:$0xff] }
 0x111   :  { %v3081_v10 = vadd.f32 %v1532_v7, %v1514_v6  ;;  %v1498_v18 = vadd.f32 %v1497_v12, %v1479_v11  ;;  %v2465_v6 = vld [vmem:[%s3115_s3] ss:$0 sm:$0xff] }
 0x113   :  { %v1542_v15 = vadd.f32 %v3081_v10, %v3079_v5  ;;  %v1553_v16 = vmul.f32 %v3081_v10, %v3081_v10 }
 0x115   :  { %v1556_v17 = vadd.f32 %v1553_v16, %v1552_v14  ;;  %v1614_v16 = vld [vmem:[%s3116_s4] sm:$0xff] }
 0x116   :  { %v1516_v19 = vpop.f32.mrf.mxu2  ;;  %v1480_v23 = vpop.f32.mrf.mxu0 }
 0x117   :  { %v1517_v21 = vadd.f32 %v1516_v19, %v1498_v18  ;;  %v1535_v22 = vpop.f32.mrf.mxu3  ;;  %v1481_v25 = vadd.f32 %v1480_v23, %v1462_v20  ;;  %v1499_v28 = vpop.f32.mrf.mxu1 }
 0x119   :  { %v1536_v24 = vadd.f32 %v1535_v22, %v1517_v21  ;;  %v1500_v30 = vadd.f32 %v1499_v28, %v1481_v25  ;;  %v1617_v28 = vld [vmem:[%s3116_s4 + $0x18] sm:$0xff] }
 0x11b   :  { %v1543_v26 = vadd.f32 %v1542_v15, %v1536_v24  ;;  %v1554_v27 = vmul.f32 %v1536_v24, %v1536_v24  ;;  %v1616_v15 = vld [vmem:[%s3116_s4 + $0x10] sm:$0xff] }
 0x11d   :  { %v1557_v29 = vadd.f32 %v1556_v17, %v1554_v27 }
 0x11e   :  { %v1518_v31 = vpop.f32.mrf.mxu2 }
 0x11f   :  { %v1519_v32 = vadd.f32 %v1518_v31, %v1500_v30  ;;  %v1537_v33 = vpop.f32.mrf.mxu3  ;;  %v1615_v30 = vld [vmem:[%s3116_s4 + $0x8] sm:$0xff] }
 0x121   :  { %v1538_v34 = vadd.f32 %v1537_v33, %v1519_v32  ;;  %v2472_v33 = vmov 0  }
 0x122   :  { %2462 = vset.pattern.permute.xlu2 %v2472_v33  ;;  %2463 = vset.pattern.permute.xlu0 %v2472_v33 }
 0x123   :  { %v1544_v35 = vadd.f32 %v1543_v26, %v1538_v34  ;;  %v1555_v36 = vmul.f32 %v1538_v34, %v1538_v34 }
 0x125   :  { %v1545_v37 = vrot.slane %v1544_v35, 4  ;;  %v1558_v38 = vadd.f32 %v1557_v29, %v1555_v36 }
 0x127   :  { %v1546_v39 = vadd.f32 %v1545_v37, %v1544_v35  ;;  %v1559_v40 = vrot.slane %v1558_v38, 4 }
 0x129   :  { %v1547_v41 = vrot.slane %v1546_v39, 2  ;;  %v1560_v42 = vadd.f32 %v1559_v40, %v1558_v38 }
 0x12b   :  { %v1548_v43 = vadd.f32 %v1547_v41, %v1546_v39  ;;  %v1561_v44 = vrot.slane %v1560_v42, 2 }
 0x12d   :  { %v1549_v45 = vrot.slane %v1548_v43, 1  ;;  %v1562_v46 = vadd.f32 %v1561_v44, %v1560_v42 }
 0x12f   :  { %v1550_v47 = vadd.f32 %v1549_v45, %v1548_v43  ;;  %v1563_v48 = vrot.slane %v1562_v46, 1 }
 0x131   :  { %v1551_v49 = vmul.f32 0.03125, %v1550_v47  ;;  %v1564_v50 = vadd.f32 %v1563_v48, %v1562_v46 }
 0x133   :  { %v1565_v51 = vmul.f32 0.03125, %v1564_v50  ;;  %v1566_v52 = vmul.f32 %v1551_v49, %v1551_v49  ;;  %v1572_v53 = vsub.f32 %v1538_v34, %v1551_v49  ;;  %v1571_v54 = vsub.f32 %v1536_v24, %v1551_v49 }
 0x134   :  { %v1569_v55 = vsub.f32 %v3079_v5, %v1551_v49  ;;  %v1570_v56 = vsub.f32 %v3081_v10, %v1551_v49 }
 0x135   :  { %v1567_v57 = vsub.f32 %v1565_v51, %v1566_v52 }
 0x137   :  { %v1568_v58 = vmax.f32 %v1567_v57, 0.0 }
 0x139   :  { %v1573_v59 = vadd.f32 1e-05, %v1568_v58 }
 0x13b   :  { %2466 = vrsqrt.f32 %v1573_v59  ;;  %vm1580_vm1 = vweird.f32 %v1573_v59 }
 0x141   :  { %v2467_v60 = vpop.eup %2466 }
 0x142   :  { %v1575_v61 = vmul.f32 %v2467_v60, %v1573_v59  ;;  %vm1581_vm0 = vweird.f32 %v2467_v60 }
 0x143   :  { %vm1582_vm2 = vmor %vm1580_vm1, %vm1581_vm0 }
 0x144   :  { %v1576_v63 = vmul.f32 %v2467_v60, %v1575_v61 }
 0x146   :  { %v1577_v0 = vmul.f32 0.5, %v1576_v63 }
 0x148   :  { %v1578_v1 = vsub.f32 1.5, %v1577_v0 }
 0x14a   :  { %v1579_v62 = vmul.f32 %v2467_v60, %v1578_v1 }
 0x14c   :  { %v1583_v3 = vsel %vm1582_vm2, %v2467_v60, %v1579_v62 }
 0x14d   :  { %v1587_v4 = vmul.f32 %v1583_v3, %v1572_v53  ;;  %v1586_v5 = vmul.f32 %v1583_v3, %v1571_v54  ;;  %v1584_v7 = vmul.f32 %v1583_v3, %v1569_v55  ;;  %v1585_v8 = vmul.f32 %v1583_v3, %v1570_v56 }
 0x14f   :  { %v1593_v9 = vmul.f32 %v2464_v2, %v1586_v5  ;;  %v1591_v10 = vmul.f32 %v2464_v2, %v1584_v7  ;;  %v1594_v11 = vmul.f32 %v2464_v2, %v1587_v4  ;;  %v1592_v12 = vmul.f32 %v2464_v2, %v1585_v8 }
 0x151   :  { %v1600_v13 = vadd.f32 %v2465_v6, %v1593_v9  ;;  %v1598_v14 = vadd.f32 %v2465_v6, %v1591_v10  ;;  %v1601_v17 = vadd.f32 %v2465_v6, %v1594_v11  ;;  %v1599_v18 = vadd.f32 %v2465_v6, %v1592_v12 }
 0x153   :  { %vm1604_vm3 = vcmp.ge.f32.partialorder %v1600_v13, 0.0  ;;  %v1608_v19 = vmul.f32 0.2, %v1600_v13  ;;  %vm1602_vm4 = vcmp.ge.f32.partialorder %v1598_v14, 0.0  ;;  %v1606_v20 = vmul.f32 0.2, %v1598_v14 }
 0x154   :  { %v1609_v25 = vmul.f32 0.2, %v1601_v17  ;;  %v1607_v26 = vmul.f32 0.2, %v1599_v18  ;;  %vm1605_vm5 = vcmp.ge.f32.partialorder %v1601_v17, 0.0  ;;  %vm1603_vm6 = vcmp.ge.f32.partialorder %v1599_v18, 0.0 }
 0x155   :  { %v1612_v21 = vsel %vm1604_vm3, %v1600_v13, %v1608_v19  ;;  %v1610_v22 = vsel %vm1602_vm4, %v1598_v14, %v1606_v20 }
 0x156   :  { %v1620_v23 = vmul.f32 %v1616_v15, %v1612_v21  ;;  %v1618_v24 = vmul.f32 %v1614_v16, %v1610_v22  ;;  %v1613_v27 = vsel %vm1605_vm5, %v1601_v17, %v1609_v25  ;;  %v1611_v29 = vsel %vm1603_vm6, %v1599_v18, %v1607_v26 }
 0x157   :  { %v1621_v31 = vmul.f32 %v1617_v28, %v1613_v27  ;;  %v1619_v32 = vmul.f32 %v1615_v30, %v1611_v29 }
 0x158   :  { %1626 = vadd.xlane.f32.xlu1 %v1620_v23  ;;  %1622 = vadd.xlane.f32.xlu0 %v1618_v24 }
 0x160   :  { %1628 = vadd.xlane.f32.xlu1 %v1621_v31  ;;  %1624 = vadd.xlane.f32.xlu0 %v1619_v32 }
 0x1cb   :  { %v1627_v34 = vpop.xlane.xlu1 %1626  ;;  %v1623_v35 = vpop.xlane.xlu0 %1622 }
 0x1d3   :  { %v1629_v36 = vpop.xlane.xlu1 %1628  ;;  %v1625_v37 = vpop.xlane.xlu0 %1624 }
 0x1d4   :  { %v1637_v38 = vadd.f32 %v1629_v36, %v1627_v34  ;;  %v1630_v39 = vadd.f32 %v1625_v37, %v1623_v35 }
 0x1d6   :  { %v1638_v40 = vrot.slane %v1637_v38, 4  ;;  %v1631_v41 = vrot.slane %v1630_v39, 4 }
 0x1d8   :  { %v1639_v42 = vadd.f32 %v1638_v40, %v1637_v38  ;;  %v1632_v43 = vadd.f32 %v1631_v41, %v1630_v39 }
 0x1da   :  { %v1640_v44 = vrot.slane %v1639_v42, 2  ;;  %v1633_v45 = vrot.slane %v1632_v43, 2 }
 0x1dc   :  { %v1641_v46 = vadd.f32 %v1640_v44, %v1639_v42  ;;  %v1634_v47 = vadd.f32 %v1633_v45, %v1632_v43 }
 0x1de   :  { %v1642_v48 = vrot.slane %v1641_v46, 1  ;;  %v1635_v49 = vrot.slane %v1634_v47, 1 }
 0x1e0   :  { %v1643_v50 = vadd.f32 %v1642_v48, %v1641_v46  ;;  %v1636_v51 = vadd.f32 %v1635_v49, %v1634_v47 }
 0x1e2   :  { %v1645_v52 = vsel %vm1644_vm7, %v1636_v51, %v1643_v50 }
 0x1e3   :  { %v1646_v53 = vsub.f32 0.0, %v1645_v52 }
 0x1e5   :  { %v1647_v54 = vmul.f32 1.442695, %v1646_v53 }
 0x1e7   :  { %2468 = vpow2.f32 %v1647_v54 }
 0x1ed   :  { %v2469_v55 = vpop.eup %2468 }
 0x1ee   :  { %v1649_v56 = vadd.f32 1.0, %v2469_v55 }
 0x1f0   :  { %2470 = vrcp.f32 %v1649_v56 }
 0x1f6   :  { %v2471_v57 = vpop.eup %2470 }
 0x1f7   :  { %1653 = vperm.xlu2 %2462, %v2471_v57  }
 0x251   :  { %v1654_v58 = vpop.permute.xlu2 %1653 }
 0x252   :  { %1656 = vst [vmem:[%s3117_s5] sm:$0x3] %v1654_v58 }

// kernel: forward.2
= control target key start
LH: loop header
LB: loop body
LE: loop exit
PB: predicated region body
PF: predicated region fallthrough
CT: control target
= control target key end

     0   :  { %vm1310_vm0 = vcmask 1043456   ;;  %vm925_vm1 = vcmask 64512   ;;  %s10371_s2 = inlined_call_operand.vmem [shape: bf16[8,128], index: 2, kind: input, shape index: {}]   ;;  %s10372_s1 = inlined_call_operand.vmem [shape: bf16[2048,8], index: 1, kind: input, shape index: {}]   ;;  %s10373_s3 = inlined_call_operand.vmem [shape: bf16[2048,128], index: 3, kind: input, shape index: {}]   ;;  %s10374_s4 = inlined_call_operand.vmem [shape: bf16[8,128], index: 4, kind: input, shape index: {}]   ;;  %s10375_s5 = inlined_call_operand.vmem [shape: f32[1,128], index: 5, kind: input, shape index: {}]   ;;  %s10376_s6 = inlined_call_operand.vmem [shape: f32[1,128], index: 6, kind: input, shape index: {}]   ;;  %s10377_s0 = inlined_call_operand.<no memory space> [shape: f32[1,1], index: 0, kind: input, shape index: {}]   ;;  %s10378_s7 = inlined_call_operand.vmem [shape: bf16[128,128], index: 7, kind: output, shape index: {}]  }
   0x1   :  { %v284_v0 = vld [vmem:[%s10371_s2] sm:$0xf]  ;;  %v7173_v3 = vld [vmem:[%s10372_s1 + $0x218] sm:$0xff]  ;;  %v7207_v4 = vld [vmem:[%s10372_s1 + $0x328] sm:$0xff]  ;;  %s5859_s27 = ssub.f32 1.0, %s10377_s0 }
   0x2   :  { %v1312_v1 = vsel %vm1310_vm0, %v284_v0, 0  ;;  %v7106_v2 = vld [vmem:[%s10372_s1] sm:$0xff]  ;;  %v7191_v5 = vld [vmem:[%s10372_s1 + $0x2a8] sm:$0xff]  ;;  %v7208_v8 = vld [vmem:[%s10372_s1 + $0x330] sm:$0xff] }
   0x3   :  { %1321 = vmatpush.bf16.msra.mxu0 %v1312_v1  ;;  %7409 = vmatpush.bf16.msra.mxu1 %v1312_v1  ;;  %v7107_v6 = vld [vmem:[%s10372_s1 + $0x8] sm:$0xff]  ;;  %v7174_v7 = vld [vmem:[%s10372_s1 + $0x220] sm:$0xff]  ;;  %v7192_v9 = vld [vmem:[%s10372_s1 + $0x2b0] sm:$0xff] }
   0x4   :  { %7411 = vmatpush.bf16.msra.mxu3 %v1312_v1  ;;  %7410 = vmatpush.bf16.msra.mxu2 %v1312_v1  ;;  %v7108_v10 = vld [vmem:[%s10372_s1 + $0x10] sm:$0xff]  ;;  %v7175_v11 = vld [vmem:[%s10372_s1 + $0x228] sm:$0xff]  ;;  %v7209_v12 = vld [vmem:[%s10372_s1 + $0x338] sm:$0xff] }
   0x5   :  { %v7193_v13 = vld [vmem:[%s10372_s1 + $0x2b8] sm:$0xff]  ;;  %v7176_v15 = vld [vmem:[%s10372_s1 + $0x230] sm:$0xff]  ;;  %v7210_v16 = vld [vmem:[%s10372_s1 + $0x340] sm:$0xff] }
   0x6   :  { %6458 = vmatmul.msk.bf16.vlgmr.msra.gmra.mxu0 %vm925_vm1, %v7106_v2  ;;  %6525 = vmatmul.msk.bf16.vlgmr.msra.gmra.mxu1 %vm925_vm1, %v7173_v3  ;;  %v7109_v14 = vld [vmem:[%s10372_s1 + $0x18] sm:$0xff]  ;;  %v7194_v17 = vld [vmem:[%s10372_s1 + $0x2c0] sm:$0xff]  ;;  %v7211_v20 = vld [vmem:[%s10372_s1 + $0x348] sm:$0xff] }
   0x7   :  { %6559 = vmatmul.msk.bf16.vlgmr.msra.gmra.mxu3 %vm925_vm1, %v7207_v4  ;;  %6543 = vmatmul.msk.bf16.vlgmr.msra.gmra.mxu2 %vm925_vm1, %v7191_v5  ;;  %v7110_v18 = vld [vmem:[%s10372_s1 + $0x20] sm:$0xff]  ;;  %v7177_v19 = vld [vmem:[%s10372_s1 + $0x238] sm:$0xff]  ;;  %v7195_v21 = vld [vmem:[%s10372_s1 + $0x2c8] sm:$0xff] }
   0x8   :  { %v7111_v22 = vld [vmem:[%s10372_s1 + $0x28] sm:$0xff]  ;;  %v7178_v23 = vld [vmem:[%s10372_s1 + $0x240] sm:$0xff]  ;;  %v7212_v24 = vld [vmem:[%s10372_s1 + $0x350] sm:$0xff] }
   0x9   :  { %v7196_v25 = vld [vmem:[%s10372_s1 + $0x2d0] sm:$0xff]  ;;  %v7179_v27 = vld [vmem:[%s10372_s1 + $0x248] sm:$0xff]  ;;  %v7213_v28 = vld [vmem:[%s10372_s1 + $0x358] sm:$0xff] }
   0xa   :  { %v7112_v26 = vld [vmem:[%s10372_s1 + $0x30] sm:$0xff]  ;;  %v7197_v29 = vld [vmem:[%s10372_s1 + $0x2d8] sm:$0xff]  ;;  %v7214_v32 = vld [vmem:[%s10372_s1 + $0x360] sm:$0xff] }
   0xb   :  { %v7113_v30 = vld [vmem:[%s10372_s1 + $0x38] sm:$0xff]  ;;  %v7180_v31 = vld [vmem:[%s10372_s1 + $0x250] sm:$0xff]  ;;  %v7198_v33 = vld [vmem:[%s10372_s1 + $0x2e0] sm:$0xff] }
   0xc   :  { %v7114_v34 = vld [vmem:[%s10372_s1 + $0x40] sm:$0xff]  ;;  %v7181_v35 = vld [vmem:[%s10372_s1 + $0x258] sm:$0xff]  ;;  %v7215_v38 = vld [vmem:[%s10372_s1 + $0x368] sm:$0xff] }
   0xd   :  { %v7199_v39 = vld [vmem:[%s10372_s1 + $0x2e8] sm:$0xff]  ;;  %v7182_v53 = vld [vmem:[%s10372_s1 + $0x260] sm:$0xff]  ;;  %v7216_v58 = vld [vmem:[%s10372_s1 + $0x370] sm:$0xff] }
   0xe   :  { %v7115_v52 = vld [vmem:[%s10372_s1 + $0x48] sm:$0xff]  ;;  %v7200_v59 = vld [vmem:[%s10372_s1 + $0x2f0] sm:$0xff] }
  0x16   :  { %6459 = vmatmul.msk.bf16.gmra.mxu0 %vm925_vm1, %v7107_v6  ;;  %6526 = vmatmul.msk.bf16.gmra.mxu1 %vm925_vm1, %v7174_v7 }
  0x17   :  { %6560 = vmatmul.msk.bf16.gmra.mxu3 %vm925_vm1, %v7208_v8  ;;  %6544 = vmatmul.msk.bf16.gmra.mxu2 %vm925_vm1, %v7192_v9  ;;  %v7116_v9 = vld [vmem:[%s10372_s1 + $0x50] sm:$0xff] }
  0x26   :  { %6460 = vmatmul.msk.bf16.gmra.mxu0 %vm925_vm1, %v7108_v10  ;;  %6527 = vmatmul.msk.bf16.gmra.mxu1 %vm925_vm1, %v7175_v11  ;;  %v7183_v10 = vld [vmem:[%s10372_s1 + $0x268] sm:$0xff] }
  0x27   :  { %6561 = vmatmul.msk.bf16.gmra.mxu3 %vm925_vm1, %v7209_v12  ;;  %6545 = vmatmul.msk.bf16.gmra.mxu2 %vm925_vm1, %v7193_v13 }
  0x36   :  { %6461 = vmatmul.msk.bf16.gmra.mxu0 %vm925_vm1, %v7109_v14  ;;  %6528 = vmatmul.msk.bf16.gmra.mxu1 %vm925_vm1, %v7176_v15  ;;  %v7217_v15 = vld [vmem:[%s10372_s1 + $0x378] sm:$0xff] }
  0x37   :  { %6562 = vmatmul.msk.bf16.gmra.mxu3 %vm925_vm1, %v7210_v16  ;;  %6546 = vmatmul.msk.bf16.gmra.mxu2 %vm925_vm1, %v7194_v17  ;;  %v7201_v16 = vld [vmem:[%s10372_s1 + $0x2f8] sm:$0xff] }
  0x46   :  { %6462 = vmatmul.msk.bf16.gmra.mxu0 %vm925_vm1, %v7110_v18  ;;  %6529 = vmatmul.msk.bf16.gmra.mxu1 %vm925_vm1, %v7177_v19 }
  0x47   :  { %6563 = vmatmul.msk.bf16.gmra.mxu3 %vm925_vm1, %v7211_v20  ;;  %6547 = vmatmul.msk.bf16.gmra.mxu2 %vm925_vm1, %v7195_v21 }
  0x56   :  { %6463 = vmatmul.msk.bf16.gmra.mxu0 %vm925_vm1, %v7111_v22  ;;  %6530 = vmatmul.msk.bf16.gmra.mxu1 %vm925_vm1, %v7178_v23 }
  0x57   :  { %6564 = vmatmul.msk.bf16.gmra.mxu3 %vm925_vm1, %v7212_v24  ;;  %6548 = vmatmul.msk.bf16.gmra.mxu2 %vm925_vm1, %v7196_v25 }
  0x66   :  { %6464 = vmatmul.msk.bf16.gmra.mxu0 %vm925_vm1, %v7112_v26  ;;  %6531 = vmatmul.msk.bf16.gmra.mxu1 %vm925_vm1, %v7179_v27 }
  0x67   :  { %6565 = vmatmul.msk.bf16.gmra.mxu3 %vm925_vm1, %v7213_v28  ;;  %6549 = vmatmul.msk.bf16.gmra.mxu2 %vm925_vm1, %v7197_v29 }
  0x76   :  { %6465 = vmatmul.msk.bf16.gmra.mxu0 %vm925_vm1, %v7113_v30  ;;  %6532 = vmatmul.msk.bf16.gmra.mxu1 %vm925_vm1, %v7180_v31  ;;  %v7117_v30 = vld [vmem:[%s10372_s1 + $0x58] sm:$0xff]  ;;  %v7184_v31 = vld [vmem:[%s10372_s1 + $0x270] sm:$0xff] }
  0x77   :  { %6566 = vmatmul.msk.bf16.gmra.mxu3 %vm925_vm1, %v7214_v32  ;;  %6550 = vmatmul.msk.bf16.gmra.mxu2 %vm925_vm1, %v7198_v33 }
  0x83   :  { %v1323_v36 = vpop.f32.mrf.mxu0  ;;  %v7602_v37 = vpop.f32.mrf.mxu1 }
  0x84   :  { %v2219_v40 = vmul.f32 0.2, %v1323_v36  ;;  %vm1963_vm2 = vcmp.ge.f32.partialorder %v1323_v36, 0.0 }
  0x86   :  { %6466 = vmatmul.msk.bf16.gmra.mxu0 %vm925_vm1, %v7114_v34  ;;  %6533 = vmatmul.msk.bf16.gmra.mxu1 %vm925_vm1, %v7181_v35  ;;  %v2475_v45 = vsel %vm1963_vm2, %v1323_v36, %v2219_v40  ;;  %v7218_v36 = vld [vmem:[%s10372_s1 + $0x380] sm:$0xff] }
  0x87   :  { %6567 = vmatmul.msk.bf16.gmra.mxu3 %vm925_vm1, %v7215_v38  ;;  %6551 = vmatmul.msk.bf16.gmra.mxu2 %vm925_vm1, %v7199_v39  ;;  %v2731_v48 = vpack.c.bf16 %v2475_v45, %v2475_v45  ;;  %v7202_v38 = vld [vmem:[%s10372_s1 + $0x300] sm:$0xff]  ;;  %v7239_v39 = vld [vmem:[%s10373_s3 + $0x28] sm:$0xff] }
  0x89   :  { %v7632_v55 = vunpack.c.l.b16 %v2731_v48 }
  0x8a   :  { %v7614_v41 = vpop.f32.mrf.mxu3  ;;  %v7616_v42 = vpop.f32.mrf.mxu2 }
  0x8b   :  { %v1325_v43 = vpop.f32.mrf.mxu0  ;;  %v7618_v44 = vpop.f32.mrf.mxu1 }
  0x8c   :  { %vm1964_vm3 = vcmp.ge.f32.partialorder %v1325_v43, 0.0  ;;  %v2220_v46 = vmul.f32 0.2, %v1325_v43 }
  0x8e   :  { %v2476_v47 = vsel %vm1964_vm3, %v1325_v43, %v2220_v46 }
  0x8f   :  { %v2732_v49 = vpack.c.bf16 %v2476_v47, %v2476_v47 }
  0x91   :  { %v7620_v50 = vunpack.c.l.b16 %v2732_v49 }
  0x92   :  { %v7622_v51 = vpop.f32.mrf.mxu3  ;;  %v7630_v54 = vpop.f32.mrf.mxu2 }
  0x93   :  { %v1328_v56 = vpop.f32.mrf.mxu0  ;;  %v7634_v57 = vpop.f32.mrf.mxu1 }
  0x94   :  { %v2221_v61 = vmul.f32 0.2, %v1328_v56  ;;  %vm1965_vm4 = vcmp.ge.f32.partialorder %v1328_v56, 0.0 }
  0x96   :  { %6467 = vmatmul.msk.bf16.gmra.mxu0 %vm925_vm1, %v7115_v52  ;;  %6534 = vmatmul.msk.bf16.gmra.mxu1 %vm925_vm1, %v7182_v53  ;;  %v2477_v2 = vsel %vm1965_vm4, %v1328_v56, %v2221_v61 }
  0x97   :  { %6568 = vmatmul.msk.bf16.gmra.mxu3 %vm925_vm1, %v7216_v58  ;;  %6552 = vmatmul.msk.bf16.gmra.mxu2 %vm925_vm1, %v7200_v59  ;;  %v2733_v5 = vpack.c.bf16 %v2477_v2, %v2477_v2  ;;  %v7118_v2 = vld [vmem:[%s10372_s1 + $0x60] sm:$0xff] }
  0x99   :  { %v7666_v12 = vunpack.c.l.b16 %v2733_v5 }
  0x9a   :  { %v7648_v62 = vpop.f32.mrf.mxu3  ;;  %v7650_v63 = vpop.f32.mrf.mxu2 }
  0x9b   :  { %v1330_v0 = vpop.f32.mrf.mxu0  ;;  %v7652_v1 = vpop.f32.mrf.mxu1 }
  0x9c   :  { %vm1966_vm5 = vcmp.ge.f32.partialorder %v1330_v0, 0.0  ;;  %v2222_v3 = vmul.f32 0.2, %v1330_v0 }
  0x9e   :  { %v2478_v4 = vsel %vm1966_vm5, %v1330_v0, %v2222_v3 }
  0x9f   :  { %v2734_v6 = vpack.c.bf16 %v2478_v4, %v2478_v4 }
  0xa1   :  { %v7654_v7 = vunpack.c.l.b16 %v2734_v6 }
  0xa2   :  { %v7656_v8 = vpop.f32.mrf.mxu3  ;;  %v7664_v11 = vpop.f32.mrf.mxu2 }
  0xa3   :  { %v1333_v13 = vpop.f32.mrf.mxu0  ;;  %v7668_v14 = vpop.f32.mrf.mxu1 }
  0xa4   :  { %v2223_v18 = vmul.f32 0.2, %v1333_v13  ;;  %vm1967_vm6 = vcmp.ge.f32.partialorder %v1333_v13, 0.0 }
  0xa6   :  { %6468 = vmatmul.msk.bf16.gmra.mxu0 %vm925_vm1, %v7116_v9  ;;  %6535 = vmatmul.msk.bf16.gmra.mxu1 %vm925_vm1, %v7183_v10  ;;  %v2479_v23 = vsel %vm1967_vm6, %v1333_v13, %v2223_v18  ;;  %v7185_v9 = vld [vmem:[%s10372_s1 + $0x278] sm:$0xff]  ;;  %v7219_v10 = vld [vmem:[%s10372_s1 + $0x388] sm:$0xff] }
  0xa7   :  { %6569 = vmatmul.msk.bf16.gmra.mxu3 %vm925_vm1, %v7217_v15  ;;  %6553 = vmatmul.msk.bf16.gmra.mxu2 %vm925_vm1, %v7201_v16  ;;  %v2735_v26 = vpack.c.bf16 %v2479_v23, %v2479_v23  ;;  %v7203_v16 = vld [vmem:[%s10372_s1 + $0x308] sm:$0xff] }
  0xa9   :  { %v7700_v33 = vunpack.c.l.b16 %v2735_v26 }
  0xaa   :  { %v7682_v19 = vpop.f32.mrf.mxu3  ;;  %v7684_v20 = vpop.f32.mrf.mxu2 }
  0xab   :  { %10518 = vst [vmem:[#allocation3_spill] sm:$0xff] %v7684_v20  ;;  %v1335_v21 = vpop.f32.mrf.mxu0  ;;  %v7686_v22 = vpop.f32.mrf.mxu1 }
  0xac   :  { %vm1968_vm7 = vcmp.ge.f32.partialorder %v1335_v21, 0.0  ;;  %v2224_v24 = vmul.f32 0.2, %v1335_v21 }
  0xae   :  { %v2480_v25 = vsel %vm1968_vm7, %v1335_v21, %v2224_v24 }
  0xaf   :  { %v2736_v27 = vpack.c.bf16 %v2480_v25, %v2480_v25 }
  0xb1   :  { %v7688_v28 = vunpack.c.l.b16 %v2736_v27 }
  0xb2   :  { %v7690_v29 = vpop.f32.mrf.mxu3  ;;  %v7698_v32 = vpop.f32.mrf.mxu2 }
  0xb3   :  { %10519 = vst [vmem:[#allocation4_spill] sm:$0xff] %v7698_v32  ;;  %v1338_v34 = vpop.f32.mrf.mxu0  ;;  %v7702_v35 = vpop.f32.mrf.mxu1 }
  0xb4   :  { %v2225_v40 = vmul.f32 0.2, %v1338_v34  ;;  %vm1969_vm8 = vcmp.ge.f32.partialorder %v1338_v34, 0.0 }
  0xb6   :  { %6469 = vmatmul.msk.bf16.gmra.mxu0 %vm925_vm1, %v7117_v30  ;;  %6536 = vmatmul.msk.bf16.gmra.mxu1 %vm925_vm1, %v7184_v31  ;;  %v2481_v46 = vsel %vm1969_vm8, %v1338_v34, %v2225_v40 }
  0xb7   :  { %6570 = vmatmul.msk.bf16.gmra.mxu3 %vm925_vm1, %v7218_v36  ;;  %6554 = vmatmul.msk.bf16.gmra.mxu2 %vm925_vm1, %v7202_v38  ;;  %v2737_v56 = vpack.c.bf16 %v2481_v46, %v2481_v46 }
  0xb9   :  { %v7723_v4 = vunpack.c.l.b16 %v2737_v56 }
  0xba   :  { %v1843_v43 = vpop.f32.mrf.mxu3  ;;  %v1763_v45 = vpop.f32.mrf.mxu2 }
  0xbb   :  { %v2427_v47 = vmul.f32 0.2, %v1843_v43  ;;  %v1340_v48 = vpop.f32.mrf.mxu0  ;;  %v7716_v49 = vpop.f32.mrf.mxu1  ;;  %v2395_v52 = vmul.f32 0.2, %v1763_v45  ;;  %vm2171_vm9 = vcmp.ge.f32.partialorder %v1843_v43, 0.0  ;;  %vm2139_vm11 = vcmp.ge.f32.partialorder %v1763_v45, 0.0 }
  0xbc   :  { %vm1970_vm10 = vcmp.ge.f32.partialorder %v1340_v48, 0.0  ;;  %v2226_v53 = vmul.f32 0.2, %v1340_v48 }
  0xbd   :  { %v2683_v59 = vsel %vm2171_vm9, %v1843_v43, %v2427_v47  ;;  %v2651_v0 = vsel %vm2139_vm11, %v1763_v45, %v2395_v52 }
  0xbe   :  { %v2482_v58 = vsel %vm1970_vm10, %v1340_v48, %v2226_v53  ;;  %v2939_v5 = vpack.c.bf16 %v2683_v59, %v2683_v59  ;;  %v2907_v13 = vpack.c.bf16 %v2651_v0, %v2651_v0 }
  0xbf   :  { %v2738_v61 = vpack.c.bf16 %v2482_v58, %v2482_v58 }
  0xc0   :  { %v7738_v30 = vunpack.c.l.b16 %v2939_v5  ;;  %v7743_v34 = vunpack.c.l.b16 %v2907_v13 }
  0xc1   :  { %v7721_v3 = vunpack.c.l.b16 %v2738_v61 }
  0xc2   :  { %v1845_v6 = vpop.f32.mrf.mxu3  ;;  %v1765_v15 = vpop.f32.mrf.mxu2  ;;  %10520 = vst [vmem:[#allocation5_spill] sm:$0xff] %v7738_v30 }
  0xc3   :  { %vm2172_vm12 = vcmp.ge.f32.partialorder %v1845_v6, 0.0  ;;  %v2428_v18 = vmul.f32 0.2, %v1845_v6  ;;  %v1343_v21 = vpop.f32.mrf.mxu0  ;;  %v7734_v23 = vpop.f32.mrf.mxu1  ;;  %vm2140_vm13 = vcmp.ge.f32.partialorder %v1765_v15, 0.0  ;;  %v2396_v24 = vmul.f32 0.2, %v1765_v15 }
  0xc4   :  { %10521 = vst [vmem:[#allocation6_spill] sm:$0xff] %v7743_v34  ;;  %v2227_v40 = vmul.f32 0.2, %v1343_v21  ;;  %vm1971_vm14 = vcmp.ge.f32.partialorder %v1343_v21, 0.0 }
  0xc5   :  { %v2684_v25 = vsel %vm2172_vm12, %v1845_v6, %v2428_v18  ;;  %v2652_v26 = vsel %vm2140_vm13, %v1765_v15, %v2396_v24  ;;  %v7119_v6 = vld [vmem:[%s10372_s1 + $0x68] sm:$0xff]  ;;  %v7220_v18 = vld [vmem:[%s10372_s1 + $0x390] sm:$0xff] }
  0xc6   :  { %v2940_v31 = vpack.c.bf16 %v2684_v25, %v2684_v25  ;;  %6470 = vmatmul.msk.bf16.gmra.mxu0 %vm925_vm1, %v7118_v2  ;;  %6537 = vmatmul.msk.bf16.gmra.mxu1 %vm925_vm1, %v7185_v9  ;;  %v2908_v36 = vpack.c.bf16 %v2652_v26, %v2652_v26  ;;  %v2483_v56 = vsel %vm1971_vm14, %v1343_v21, %v2227_v40  ;;  %v7186_v9 = vld [vmem:[%s10372_s1 + $0x280] sm:$0xff]  ;;  %v7204_v21 = vld [vmem:[%s10372_s1 + $0x310] sm:$0xff]  ;;  %v7249_v26 = vld [vmem:[%s10373_s3 + $0x78] sm:$0xff] }
  0xc7   :  { %6571 = vmatmul.msk.bf16.gmra.mxu3 %vm925_vm1, %v7219_v10  ;;  %6555 = vmatmul.msk.bf16.gmra.mxu2 %vm925_vm1, %v7203_v16  ;;  %v2739_v61 = vpack.c.bf16 %v2483_v56, %v2483_v56  ;;  %v7248_v40 = vld [vmem:[%s10373_s3 + $0x70] sm:$0xff] }
  0xc8   :  { %v7746_v38 = vunpack.c.l.b16 %v2940_v31  ;;  %v7748_v43 = vunpack.c.l.b16 %v2908_v36  ;;  %4828 = vmatpush.bf16.msrb.mxu2 %v7249_v26 }
  0xc9   :  { %v7772_v13 = vunpack.c.l.b16 %v2739_v61 }
  0xca   :  { %10522 = vst [vmem:[#allocation7_spill] sm:$0xff] %v7746_v38  ;;  %v7752_v46 = vpop.f32.mrf.mxu3  ;;  %v7754_v47 = vpop.f32.mrf.mxu2 }
  0xcb   :  { %10523 = vst [vmem:[#allocation8_spill] sm:$0xff] %v7748_v43  ;;  %v1345_v48 = vpop.f32.mrf.mxu0  ;;  %v7756_v52 = vpop.f32.mrf.mxu1  ;;  %v7122_v43 = vld [vmem:[%s10372_s1 + $0x80] sm:$0xff] }
  0xcc   :  { %10524 = vst [vmem:[#allocation9_spill] sm:$0xff] %v7754_v47  ;;  %vm1972_vm15 = vcmp.ge.f32.partialorder %v1345_v48, 0.0  ;;  %v2228_v58 = vmul.f32 0.2, %v1345_v48  ;;  %4829 = vmatpush.bf16.msrb.mxu2 %v7248_v40 }
  0xce   :  { %v2484_v59 = vsel %vm1972_vm15, %v1345_v48, %v2228_v58 }
  0xcf   :  { %v2740_v0 = vpack.c.bf16 %v2484_v59, %v2484_v59 }
  0xd1   :  { %v7760_v2 = vunpack.c.l.b16 %v2740_v0 }
  0xd2   :  { %v7762_v5 = vpop.f32.mrf.mxu3  ;;  %v7770_v10 = vpop.f32.mrf.mxu2 }
  0xd3   :  { %10525 = vst [vmem:[#allocation10_spill] sm:$0xff] %v7770_v10  ;;  %v1348_v15 = vpop.f32.mrf.mxu0  ;;  %v1683_v16 = vpop.f32.mrf.mxu1 }
  0xd4   :  { %v2363_v24 = vmul.f32 0.2, %v1683_v16  ;;  %vm2107_vm2 = vcmp.ge.f32.partialorder %v1683_v16, 0.0  ;;  %v2229_v31 = vmul.f32 0.2, %v1348_v15  ;;  %vm1973_vm3 = vcmp.ge.f32.partialorder %v1348_v15, 0.0 }
  0xd6   :  { %6471 = vmatmul.msk.bf16.gmra.mxu0 %vm925_vm1, %v7119_v6  ;;  %6538 = vmatmul.msk.bf16.gmra.mxu1 %vm925_vm1, %v7186_v9  ;;  %v2619_v36 = vsel %vm2107_vm2, %v1683_v16, %v2363_v24  ;;  %v2485_v58 = vsel %vm1973_vm3, %v1348_v15, %v2229_v31  ;;  %v7247_v16 = vld [vmem:[%s10373_s3 + $0x68] sm:$0xff]  ;;  %v7246_v31 = vld [vmem:[%s10373_s3 + $0x60] sm:$0xff] }
  0xd7   :  { %6572 = vmatmul.msk.bf16.gmra.mxu3 %vm925_vm1, %v7220_v18  ;;  %6556 = vmatmul.msk.bf16.gmra.mxu2 %vm925_vm1, %v7204_v21  ;;  %v2875_v59 = vpack.c.bf16 %v2619_v36, %v2619_v36  ;;  %v2741_v24 = vpack.c.bf16 %v2485_v58, %v2485_v58  ;;  %v7187_v58 = vld [vmem:[%s10372_s1 + $0x288] sm:$0xff] }
  0xd8   :  { %4830 = vmatpush.bf16.msrb.mxu2 %v7247_v16  ;;  %v7205_v16 = vld [vmem:[%s10372_s1 + $0x318] sm:$0xff] }
  0xd9   :  { %v7799_v26 = vunpack.c.l.b16 %v2875_v59 }
  0xda   :  { %v7792_v48 = vpop.f32.mrf.mxu3  ;;  %v7794_v56 = vpop.f32.mrf.mxu2 }
  0xdb   :  { %10526 = vst [vmem:[#allocation11_spill] sm:$0xff] %v7794_v56  ;;  %v1350_v61 = vpop.f32.mrf.mxu0  ;;  %v1685_v0 = vpop.f32.mrf.mxu1 }
  0xdc   :  { %vm1974_vm4 = vcmp.ge.f32.partialorder %v1350_v61, 0.0  ;;  %v2230_v6 = vmul.f32 0.2, %v1350_v61  ;;  %vm2108_vm5 = vcmp.ge.f32.partialorder %v1685_v0, 0.0  ;;  %v2364_v9 = vmul.f32 0.2, %v1685_v0  ;;  %4831 = vmatpush.bf16.msrb.mxu2 %v7246_v31 }
  0xdd   :  { %10527 = vst [vmem:[#allocation12_spill] sm:$0xff] %v7799_v26 }
  0xde   :  { %v2486_v18 = vsel %vm1974_vm4, %v1350_v61, %v2230_v6  ;;  %v2620_v21 = vsel %vm2108_vm5, %v1685_v0, %v2364_v9  ;;  %v7120_v61 = vld [vmem:[%s10372_s1 + $0x70] sm:$0xff]  ;;  %v7221_v9 = vld [vmem:[%s10372_s1 + $0x398] sm:$0xff] }
  0xdf   :  { %v2742_v45 = vpack.c.bf16 %v2486_v18, %v2486_v18  ;;  %v2876_v53 = vpack.c.bf16 %v2620_v21, %v2620_v21  ;;  %v7245_v21 = vld [vmem:[%s10373_s3 + $0x58] sm:$0xff]  ;;  %v7240_v18 = vld [vmem:[%s10373_s3 + $0x30] sm:$0xff] }
  0xe0   :  { %4832 = vmatpush.bf16.msrb.mxu2 %v7245_v21 }
  0xe1   :  { %v7801_v15 = vunpack.c.l.b16 %v2876_v53  ;;  %v7806_v36 = vunpack.c.l.b16 %v2742_v45  ;;  %v7818_v53 = vunpack.c.l.b16 %v2741_v24  ;;  %v7241_v24 = vld [vmem:[%s10373_s3 + $0x38] sm:$0xff] }
  0xe2   :  { %v7808_v40 = vpop.f32.mrf.mxu3  ;;  %v7816_v59 = vpop.f32.mrf.mxu2  ;;  %4779 = vmatpush.bf16.msrb.mxu1 %v7241_v24  ;;  %v7243_v24 = vld [vmem:[%s10373_s3 + $0x48] sm:$0xff] }
  0xe3   :  { %10528 = vst [vmem:[#allocation13_spill] sm:$0xff] %v7801_v15  ;;  %v1353_v6 = vpop.f32.mrf.mxu0  ;;  %v7822_v45 = vpop.f32.mrf.mxu1 }
  0xe4   :  { %10529 = vst [vmem:[#allocation14_spill] sm:$0xff] %v7816_v59  ;;  %v2231_v31 = vmul.f32 0.2, %v1353_v6  ;;  %vm1975_vm6 = vcmp.ge.f32.partialorder %v1353_v6, 0.0 }
  0xe6   :  { %6472 = vmatmul.msk.bf16.gmra.mxu0 %vm925_vm1, %v7120_v61  ;;  %6539 = vmatmul.msk.bf16.gmra.mxu1 %vm925_vm1, %v7187_v58  ;;  %v7244_v61 = vld [vmem:[%s10373_s3 + $0x50] sm:$0xff] }
  0xe7   :  { %6573 = vmatmul.msk.bf16.gmra.mxu3 %vm925_vm1, %v7221_v9  ;;  %6557 = vmatmul.msk.bf16.gmra.mxu2 %vm925_vm1, %v7205_v16  ;;  %v2487_v16 = vsel %vm1975_vm6, %v1353_v6, %v2231_v31  ;;  %v7242_v6 = vld [vmem:[%s10373_s3 + $0x40] sm:$0xff] }
  0xe8   :  { %4833 = vmatpush.bf16.msrb.mxu2 %v7244_v61  ;;  %4780 = vmatpush.bf16.msrb.mxu1 %v7240_v18  ;;  %v2743_v17 = vpack.c.bf16 %v2487_v16, %v2487_v16  ;;  %v7188_v61 = vld [vmem:[%s10372_s1 + $0x290] sm:$0xff] }
  0xea   :  { %v7845_v58 = vpop.f32.mrf.mxu3  ;;  %v7847_v0 = vpop.f32.mrf.mxu2 }
  0xeb   :  { %10530 = vst [vmem:[#allocation15_spill] sm:$0xff] %v7847_v0  ;;  %v1355_v25 = vpop.f32.mrf.mxu0  ;;  %v7852_v9 = vpop.f32.mrf.mxu1  ;;  %v7206_v0 = vld [vmem:[%s10372_s1 + $0x320] sm:$0xff] }
  0xec   :  { %vm1976_vm7 = vcmp.ge.f32.partialorder %v1355_v25, 0.0  ;;  %v2232_v21 = vmul.f32 0.2, %v1355_v25  ;;  %4834 = vmatpush.bf16.msrb.mxu2 %v7243_v24  ;;  %4781 = vmatpush.bf16.msrb.mxu1 %v7239_v39  ;;  %v7238_v39 = vld [vmem:[%s10373_s3 + $0x20] sm:$0xff] }
  0xed   :  { %v7222_v24 = vld [vmem:[%s10372_s1 + $0x3a0] sm:$0xff] }
  0xee   :  { %v2488_v27 = vsel %vm1976_vm7, %v1355_v25, %v2232_v21  ;;  %v7121_v25 = vld [vmem:[%s10372_s1 + $0x78] sm:$0xff] }
  0xef   :  { %v2744_v60 = vpack.c.bf16 %v2488_v27, %v2488_v27  ;;  %v7878_v27 = vunpack.c.l.b16 %v2743_v17  ;;  %v7237_v17 = vld [vmem:[%s10373_s3 + $0x18] sm:$0xff] }
  0xf0   :  { %4835 = vmatpush.bf16.msrb.mxu2 %v7242_v6  ;;  %4782 = vmatpush.bf16.msrb.mxu1 %v7238_v39 }
  0xf1   :  { %v7863_v31 = vunpack.c.l.b16 %v2744_v60 }
  0xf2   :  { %v7865_v18 = vpop.f32.mrf.mxu3  ;;  %v7873_v16 = vpop.f32.mrf.mxu2 }
  0xf3   :  { %10531 = vst [vmem:[#allocation16_spill] sm:$0xff] %v7873_v16  ;;  %v1358_v60 = vpop.f32.mrf.mxu0  ;;  %v7880_v21 = vpop.f32.mrf.mxu1 }
  0xf4   :  { %v2233_v59 = vmul.f32 0.2, %v1358_v60  ;;  %4783 = vmatpush.bf16.msrb.mxu1 %v7237_v17  ;;  %vm1977_vm8 = vcmp.ge.f32.partialorder %v1358_v60, 0.0 }
  0xf6   :  { %6473 = vmatmul.msk.bf16.gmra.mxu0 %vm925_vm1, %v7121_v25  ;;  %6540 = vmatmul.msk.bf16.gmra.mxu1 %vm925_vm1, %v7188_v61  ;;  %v7236_v25 = vld [vmem:[%s10373_s3 + $0x10] sm:$0xff]  ;;  %v2489_v56 = vsel %vm1977_vm8, %v1358_v60, %v2233_v59  ;;  %v7189_v59 = vld [vmem:[%s10372_s1 + $0x298] sm:$0xff] }
  0xf7   :  { %6574 = vmatmul.msk.bf16.gmra.mxu3 %vm925_vm1, %v7222_v24  ;;  %6558 = vmatmul.msk.bf16.gmra.mxu2 %vm925_vm1, %v7206_v0  ;;  %v7235_v0 = vld [vmem:[%s10373_s3 + $0x8] sm:$0xff]  ;;  %v2745_v17 = vpack.c.bf16 %v2489_v56, %v2489_v56  ;;  %v7234_v56 = vld [vmem:[%s10373_s3] sm:$0xff] }
  0xf8   :  { %4784 = vmatpush.bf16.msrb.mxu1 %v7236_v25 }
  0xf9   :  { %v7924_v60 = vunpack.c.l.b16 %v2745_v17 }
  0xfa   :  { %v7897_v6 = vpop.f32.mrf.mxu3  ;;  %v7899_v39 = vpop.f32.mrf.mxu2 }
  0xfb   :  { %10532 = vst [vmem:[#allocation17_spill] sm:$0xff] %v7899_v39  ;;  %v1360_v61 = vpop.f32.mrf.mxu0  ;;  %v7904_v16 = vpop.f32.mrf.mxu1 }
  0xfc   :  { %10533 = vst [vmem:[#allocation18_spill] sm:$0xff] %v7904_v16  ;;  %vm1978_vm9 = vcmp.ge.f32.partialorder %v1360_v61, 0.0  ;;  %v2234_v30 = vmul.f32 0.2, %v1360_v61  ;;  %4785 = vmatpush.bf16.msrb.mxu1 %v7235_v0 }
  0xfe   :  { %v2490_v24 = vsel %vm1978_vm9, %v1360_v61, %v2234_v30  ;;  %v7223_v61 = vld [vmem:[%s10372_s1 + $0x3a8] sm:$0xff] }
  0xff   :  { %v2746_v38 = vpack.c.bf16 %v2490_v24, %v2490_v24 }
 0x100   :  { %4786 = vmatpush.bf16.msrb.mxu1 %v7234_v56 }
 0x101   :  { %v7909_v39 = vunpack.c.l.b16 %v2746_v38 }
 0x102   :  { %v7911_v34 = vpop.f32.mrf.mxu3  ;;  %v7919_v30 = vpop.f32.mrf.mxu2 }
 0x103   :  { %10534 = vst [vmem:[#allocation19_spill] sm:$0xff] %v7919_v30  ;;  %v1363_v38 = vpop.f32.mrf.mxu0  ;;  %v7926_v25 = vpop.f32.mrf.mxu1 }
 0x104   :  { %10535 = vst [vmem:[#allocation20_spill] sm:$0xff] %v7926_v25  ;;  %v2235_v0 = vmul.f32 0.2, %v1363_v38  ;;  %vm1979_vm10 = vcmp.ge.f32.partialorder %v1363_v38, 0.0 }
 0x106   :  { %6474 = vmatmul.msk.bf16.gmra.mxu0 %vm925_vm1, %v7122_v43  ;;  %6541 = vmatmul.msk.bf16.gmra.mxu1 %vm925_vm1, %v7189_v59  ;;  %v2491_v17 = vsel %vm1979_vm10, %v1363_v38, %v2235_v0  ;;  %v7123_v59 = vld [vmem:[%s10372_s1 + $0x88] sm:$0xff]  ;;  %v7190_v38 = vld [vmem:[%s10372_s1 + $0x2a0] sm:$0xff] }
 0x107   :  { %6575 = vmatmul.msk.bf16.gmra.mxu3 %vm925_vm1, %v7223_v61  ;;  %v2747_v15 = vpack.c.bf16 %v2491_v17, %v2491_v17 }
 0x109   :  { %v3051_v32 = vunpack.c.l.b16 %v2747_v15 }
 0x10a   :  { %v7936_v30 = vpop.f32.mrf.mxu3  ;;  %v7938_v10 = vpop.f32.mrf.mxu2 }
 0x10b   :  { %10536 = vst [vmem:[#allocation21_spill] sm:$0xff] %v7938_v10  ;;  %v1365_v47 = vpop.f32.mrf.mxu0  ;;  %v7940_v26 = vpop.f32.mrf.mxu1 }
 0x10c   :  { %10537 = vst [vmem:[#allocation22_spill] sm:$0xff] %v7940_v26  ;;  %vm1980_vm11 = vcmp.ge.f32.partialorder %v1365_v47, 0.0  ;;  %v2236_v56 = vmul.f32 0.2, %v1365_v47 }
 0x10e   :  { %v2492_v24 = vsel %vm1980_vm11, %v1365_v47, %v2236_v56  ;;  %v7224_v47 = vld [vmem:[%s10372_s1 + $0x3b0] sm:$0xff] }
 0x10f   :  { %v2748_v25 = vpack.c.bf16 %v2492_v24, %v2492_v24 }
 0x111   :  { %v3052_v43 = vunpack.c.l.b16 %v2748_v25 }
 0x112   :  { %v7942_v16 = vpop.f32.mrf.mxu3  ;;  %v7950_v61 = vpop.f32.mrf.mxu2 }
 0x113   :  { %10538 = vst [vmem:[#allocation23_spill] sm:$0xff] %v7942_v16  ;;  %v1368_v0 = vpop.f32.mrf.mxu0  ;;  %v7952_v10 = vpop.f32.mrf.mxu1  ;;  %v3067_v17 = vpack.c.b16 %v3052_v43, %v3051_v32 }
 0x114   :  { %10539 = vst [vmem:[#allocation24_spill] sm:$0xff] %v7950_v61  ;;  %v2237_v15 = vmul.f32 0.2, %v1368_v0  ;;  %vm1981_vm12 = vcmp.ge.f32.partialorder %v1368_v0, 0.0 }
 0x115   :  { %10540 = vst [vmem:[#allocation25_spill] sm:$0xff] %v7952_v10  ;;  %4836 = vmatmul.bf16.vlgmr.msrb.gmra.mxu2 %v3067_v17 }
 0x116   :  { %6475 = vmatmul.msk.bf16.gmra.mxu0 %vm925_vm1, %v7123_v59  ;;  %6542 = vmatmul.msk.bf16.gmra.mxu1 %vm925_vm1, %v7190_v38  ;;  %v2493_v25 = vsel %vm1981_vm12, %v1368_v0, %v2237_v15  ;;  %v7124_v38 = vld [vmem:[%s10372_s1 + $0x90] sm:$0xff] }
 0x117   :  { %6576 = vmatmul.msk.bf16.gmra.mxu3 %vm925_vm1, %v7224_v47  ;;  %v2749_v10 = vpack.c.bf16 %v2493_v25, %v2493_v25  ;;  %v7225_v25 = vld [vmem:[%s10372_s1 + $0x3b8] sm:$0xff] }
 0x119   :  { %v3053_v20 = vunpack.c.l.b16 %v2749_v10  ;;  %v10546_v10 = vpack.c.b16 %v7620_v50, %v7632_v55  ;;  %v7125_v55 = vld [vmem:[%s10372_s1 + $0x98] sm:$0xff] }
 0x11a   :  { %v7960_v24 = vpop.f32.mrf.mxu3  ;;  %v7962_v56 = vpop.f32.mrf.mxu2 }
 0x11b   :  { %10541 = vst [vmem:[#allocation26_spill] sm:$0xff] %v7962_v56  ;;  %v1370_v61 = vpop.f32.mrf.mxu0  ;;  %v7964_v32 = vpop.f32.mrf.mxu1 }
 0x11c   :  { %10542 = vst [vmem:[#allocation27_spill] sm:$0xff] %v7964_v32  ;;  %vm1982_vm13 = vcmp.ge.f32.partialorder %v1370_v61, 0.0  ;;  %v2238_v43 = vmul.f32 0.2, %v1370_v61 }
 0x11e   :  { %v2494_v17 = vsel %vm1982_vm13, %v1370_v61, %v2238_v43 }
 0x11f   :  { %v2750_v26 = vpack.c.bf16 %v2494_v17, %v2494_v17 }
 0x121   :  { %v3054_v59 = vunpack.c.l.b16 %v2750_v26 }
 0x122   :  { %v7966_v16 = vpop.f32.mrf.mxu3  ;;  %v7971_v0 = vpop.f32.mrf.mxu2 }
 0x123   :  { %10543 = vst [vmem:[#allocation28_spill] sm:$0xff] %v7966_v16  ;;  %v1373_v47 = vpop.f32.mrf.mxu0  ;;  %v7973_v15 = vpop.f32.mrf.mxu1  ;;  %v3068_v56 = vpack.c.b16 %v3054_v59, %v3053_v20 }
 0x124   :  { %10544 = vst [vmem:[#allocation29_spill] sm:$0xff] %v7971_v0  ;;  %v2239_v61 = vmul.f32 0.2, %v1373_v47  ;;  %vm1983_vm14 = vcmp.ge.f32.partialorder %v1373_v47, 0.0 }
 0x125   :  { %10545 = vst [vmem:[#allocation30_spill] sm:$0xff] %v7973_v15  ;;  %4841 = vmatmul.bf16.gmra.mxu2 %v3068_v56 }
 0x126   :  { %6476 = vmatmul.msk.bf16.gmra.mxu0 %vm925_vm1, %v7124_v38  ;;  %4787 = vmatmul.bf16.vlgmr.msrb.gmra.mxu1 %v10546_v10  ;;  %v2495_v26 = vsel %vm1983_vm14, %v1373_v47, %v2239_v61 }
 0x127   :  { %6577 = vmatmul.msk.bf16.gmra.mxu3 %vm925_vm1, %v7225_v25  ;;  %v2751_v0 = vpack.c.bf16 %v2495_v26, %v2495_v26  ;;  %v7226_v26 = vld [vmem:[%s10372_s1 + $0x3c0] sm:$0xff] }
 0x129   :  { %v3055_v32 = vunpack.c.l.b16 %v2751_v0  ;;  %v10553_v0 = vpack.c.b16 %v7654_v7, %v7666_v12 }
 0x12a   :  { %v7983_v43 = vpop.f32.mrf.mxu3  ;;  %v7985_v17 = vpop.f32.mrf.mxu2 }
 0x12b   :  { %10547 = vst [vmem:[#allocation31_spill] sm:$0xff] %v7983_v43  ;;  %v1375_v20 = vpop.f32.mrf.mxu0  ;;  %v7987_v59 = vpop.f32.mrf.mxu1 }
 0x12c   :  { %10548 = vst [vmem:[#allocation32_spill] sm:$0xff] %v7985_v17  ;;  %vm1984_vm15 = vcmp.ge.f32.partialorder %v1375_v20, 0.0  ;;  %v2240_v56 = vmul.f32 0.2, %v1375_v20 }
 0x12d   :  { %10549 = vst [vmem:[#allocation33_spill] sm:$0xff] %v7987_v59 }
 0x12e   :  { %v2496_v15 = vsel %vm1984_vm15, %v1375_v20, %v2240_v56 }
 0x12f   :  { %v2752_v38 = vpack.c.bf16 %v2496_v15, %v2496_v15 }
 0x131   :  { %v3056_v16 = vunpack.c.l.b16 %v2752_v38 }
 0x132   :  { %v7989_v50 = vpop.f32.mrf.mxu3  ;;  %v7994_v47 = vpop.f32.mrf.mxu2 }
 0x133   :  { %10550 = vst [vmem:[#allocation34_spill] sm:$0xff] %v7989_v50  ;;  %v1378_v25 = vpop.f32.mrf.mxu0  ;;  %v7996_v61 = vpop.f32.mrf.mxu1  ;;  %v3069_v10 = vpack.c.b16 %v3056_v16, %v3055_v32 }
 0x134   :  { %10551 = vst [vmem:[#allocation35_spill] sm:$0xff] %v7994_v47  ;;  %v2241_v15 = vmul.f32 0.2, %v1378_v25  ;;  %vm1985_vm2 = vcmp.ge.f32.partialorder %v1378_v25, 0.0 }
 0x135   :  { %10552 = vst [vmem:[#allocation36_spill] sm:$0xff] %v7996_v61  ;;  %4846 = vmatmul.bf16.gmra.mxu2 %v3069_v10 }
 0x136   :  { %6477 = vmatmul.msk.bf16.gmra.mxu0 %vm925_vm1, %v7125_v55  ;;  %4792 = vmatmul.bf16.gmra.mxu1 %v10553_v0  ;;  %v2497_v20 = vsel %vm1985_vm2, %v1378_v25, %v2241_v15  ;;  %v7126_v25 = vld [vmem:[%s10372_s1 + $0xa0] sm:$0xff] }
 0x137   :  { %6578 = vmatmul.msk.bf16.gmra.mxu3 %vm925_vm1, %v7226_v26  ;;  %v2753_v17 = vpack.c.bf16 %v2497_v20, %v2497_v20  ;;  %v7227_v20 = vld [vmem:[%s10372_s1 + $0x3c8] sm:$0xff] }
 0x139   :  { %v3057_v7 = vunpack.c.l.b16 %v2753_v17 }
 0x13a   :  { %v1883_v56 = vpop.f32.mrf.mxu3  ;;  %v8006_v38 = vpop.f32.mrf.mxu2 }
 0x13b   :  { %10554 = vst [vmem:[#allocation37_spill] sm:$0xff] %v8006_v38  ;;  %v2443_v16 = vmul.f32 0.2, %v1883_v56  ;;  %v1380_v32 = vpop.f32.mrf.mxu0  ;;  %v8008_v47 = vpop.f32.mrf.mxu1  ;;  %vm2187_vm3 = vcmp.ge.f32.partialorder %v1883_v56, 0.0 }
 0x13c   :  { %10555 = vst [vmem:[#allocation38_spill] sm:$0xff] %v8008_v47  ;;  %vm1986_vm4 = vcmp.ge.f32.partialorder %v1380_v32, 0.0  ;;  %v2242_v10 = vmul.f32 0.2, %v1380_v32 }
 0x13d   :  { %v2699_v61 = vsel %vm2187_vm3, %v1883_v56, %v2443_v16  ;;  %v10559_v16 = vpack.c.b16 %v7688_v28, %v7700_v33 }
 0x13e   :  { %v2498_v55 = vsel %vm1986_vm4, %v1380_v32, %v2242_v10  ;;  %v2955_v0 = vpack.c.bf16 %v2699_v61, %v2699_v61 }
 0x13f   :  { %v2754_v59 = vpack.c.bf16 %v2498_v55, %v2498_v55 }
 0x141   :  { %v3058_v12 = vunpack.c.l.b16 %v2754_v59  ;;  %v8020_v59 = vunpack.c.l.b16 %v2955_v0 }
 0x142   :  { %v1885_v50 = vpop.f32.mrf.mxu3  ;;  %v8013_v26 = vpop.f32.mrf.mxu2 }
 0x143   :  { %10556 = vst [vmem:[#allocation39_spill] sm:$0xff] %v8013_v26  ;;  %vm2188_vm5 = vcmp.ge.f32.partialorder %v1885_v50, 0.0  ;;  %v2444_v15 = vmul.f32 0.2, %v1885_v50  ;;  %v1383_v38 = vpop.f32.mrf.mxu0  ;;  %v8015_v47 = vpop.f32.mrf.mxu1  ;;  %v3070_v43 = vpack.c.b16 %v3058_v12, %v3057_v7 }
 0x144   :  { %10557 = vst [vmem:[#allocation40_spill] sm:$0xff] %v8015_v47  ;;  %v2243_v56 = vmul.f32 0.2, %v1383_v38  ;;  %vm1987_vm6 = vcmp.ge.f32.partialorder %v1383_v38, 0.0 }
 0x145   :  { %v2700_v17 = vsel %vm2188_vm5, %v1885_v50, %v2444_v15  ;;  %4851 = vmatmul.bf16.gmra.mxu2 %v3070_v43  ;;  %10558 = vst [vmem:[#allocation41_spill] sm:$0xff] %v8020_v59  ;;  %v7228_v59 = vld [vmem:[%s10372_s1 + $0x3d0] sm:$0xff] }
 0x146   :  { %v2956_v61 = vpack.c.bf16 %v2700_v17, %v2700_v17  ;;  %6478 = vmatmul.msk.bf16.gmra.mxu0 %vm925_vm1, %v7126_v25  ;;  %4797 = vmatmul.bf16.gmra.mxu1 %v10559_v16  ;;  %v2499_v50 = vsel %vm1987_vm6, %v1383_v38, %v2243_v56  ;;  %v7127_v38 = vld [vmem:[%s10372_s1 + $0xa8] sm:$0xff] }
 0x147   :  { %6579 = vmatmul.msk.bf16.gmra.mxu3 %vm925_vm1, %v7227_v20  ;;  %v2755_v28 = vpack.c.bf16 %v2499_v50, %v2499_v50 }
 0x148   :  { %v8027_v32 = vunpack.c.l.b16 %v2956_v61 }
 0x149   :  { %v3059_v15 = vunpack.c.l.b16 %v2755_v28 }
 0x14a   :  { %10560 = vst [vmem:[#allocation42_spill] sm:$0xff] %v8027_v32  ;;  %v8031_v43 = vpop.f32.mrf.mxu3  ;;  %v8033_v55 = vpop.f32.mrf.mxu2 }
 0x14b   :  { %10561 = vst [vmem:[#allocation43_spill] sm:$0xff] %v8031_v43  ;;  %v1385_v7 = vpop.f32.mrf.mxu0  ;;  %v8035_v12 = vpop.f32.mrf.mxu1 }
 0x14c   :  { %10562 = vst [vmem:[#allocation44_spill] sm:$0xff] %v8033_v55  ;;  %vm1988_vm7 = vcmp.ge.f32.partialorder %v1385_v7, 0.0  ;;  %v2244_v0 = vmul.f32 0.2, %v1385_v7 }
 0x14d   :  { %10563 = vst [vmem:[#allocation45_spill] sm:$0xff] %v8035_v12 }
 0x14e   :  { %v2500_v33 = vsel %vm1988_vm7, %v1385_v7, %v2244_v0  ;;  %v10566_v0 = vpack.c.b16 %v7721_v3, %v7723_v4 }
 0x14f   :  { %v2756_v25 = vpack.c.bf16 %v2500_v33, %v2500_v33 }
 0x151   :  { %v3060_v20 = vunpack.c.l.b16 %v2756_v25 }
 0x152   :  { %v8037_v17 = vpop.f32.mrf.mxu3  ;;  %v8042_v61 = vpop.f32.mrf.mxu2 }
 0x153   :  { %10564 = vst [vmem:[#allocation46_spill] sm:$0xff] %v8037_v17  ;;  %v1388_v56 = vpop.f32.mrf.mxu0  ;;  %v1723_v16 = vpop.f32.mrf.mxu1  ;;  %v3071_v10 = vpack.c.b16 %v3060_v20, %v3059_v15 }
 0x154   :  { %10565 = vst [vmem:[#allocation47_spill] sm:$0xff] %v8042_v61  ;;  %v2379_v50 = vmul.f32 0.2, %v1723_v16  ;;  %vm2123_vm8 = vcmp.ge.f32.partialorder %v1723_v16, 0.0  ;;  %v2245_v7 = vmul.f32 0.2, %v1388_v56 }
 0x155   :  { %4856 = vmatmul.bf16.gmra.mxu2 %v3071_v10  ;;  %vm1989_vm9 = vcmp.ge.f32.partialorder %v1388_v56, 0.0 }
 0x156   :  { %6479 = vmatmul.msk.bf16.gmra.mxu0 %vm925_vm1, %v7127_v38  ;;  %4802 = vmatmul.bf16.gmra.mxu1 %v10566_v0  ;;  %v2635_v28 = vsel %vm2123_vm8, %v1723_v16, %v2379_v50  ;;  %v2501_v33 = vsel %vm1989_vm9, %v1388_v56, %v2245_v7 }
 0x157   :  { %6580 = vmatmul.msk.bf16.gmra.mxu3 %vm925_vm1, %v7228_v59  ;;  %v2891_v15 = vpack.c.bf16 %v2635_v28, %v2635_v28  ;;  %v2757_v38 = vpack.c.bf16 %v2501_v33, %v2501_v33  ;;  %v7128_v28 = vld [vmem:[%s10372_s1 + $0xb0] sm:$0xff] }
 0x159   :  { %v8056_v4 = vunpack.c.l.b16 %v2891_v15  ;;  %v3061_v16 = vunpack.c.l.b16 %v2757_v38 }
 0x15a   :  { %v8052_v25 = vpop.f32.mrf.mxu3  ;;  %v8054_v55 = vpop.f32.mrf.mxu2 }
 0x15b   :  { %10567 = vst [vmem:[#allocation48_spill] sm:$0xff] %v8052_v25  ;;  %v1390_v20 = vpop.f32.mrf.mxu0  ;;  %v1725_v32 = vpop.f32.mrf.mxu1 }
 0x15c   :  { %vm1990_vm10 = vcmp.ge.f32.partialorder %v1390_v20, 0.0  ;;  %v2246_v61 = vmul.f32 0.2, %v1390_v20  ;;  %vm2124_vm11 = vcmp.ge.f32.partialorder %v1725_v32, 0.0  ;;  %v2380_v10 = vmul.f32 0.2, %v1725_v32 }
 0x15d   :  { %10568 = vst [vmem:[#allocation49_spill] sm:$0xff] %v8054_v55 }
 0x15e   :  { %v2502_v26 = vsel %vm1990_vm10, %v1390_v20, %v2246_v61  ;;  %v2636_v3 = vsel %vm2124_vm11, %v1725_v32, %v2380_v10  ;;  %10569 = vst [vmem:[#allocation50_spill] sm:$0xff] %v8056_v4  ;;  %v10573_v20 = vpack.c.b16 %v7760_v2, %v7772_v13 }
 0x15f   :  { %v2758_v0 = vpack.c.bf16 %v2502_v26, %v2502_v26  ;;  %v2892_v59 = vpack.c.bf16 %v2636_v3, %v2636_v3  ;;  %v7229_v26 = vld [vmem:[%s10372_s1 + $0x3d8] sm:$0xff] }
 0x161   :  { %v8058_v56 = vunpack.c.l.b16 %v2892_v59  ;;  %v3062_v50 = vunpack.c.l.b16 %v2758_v0 }
 0x162   :  { %v8060_v7 = vpop.f32.mrf.mxu3  ;;  %v8076_v10 = vpop.f32.mrf.mxu2 }
 0x163   :  { %10570 = vst [vmem:[#allocation51_spill] sm:$0xff] %v8058_v56  ;;  %v1393_v33 = vpop.f32.mrf.mxu0  ;;  %v8067_v61 = vpop.f32.mrf.mxu1  ;;  %v3072_v32 = vpack.c.b16 %v3062_v50, %v3061_v16 }
 0x164   :  { %10571 = vst [vmem:[#allocation52_spill] sm:$0xff] %v8060_v7  ;;  %v2247_v15 = vmul.f32 0.2, %v1393_v33  ;;  %vm1991_vm12 = vcmp.ge.f32.partialorder %v1393_v33, 0.0 }
 0x165   :  { %10572 = vst [vmem:[#allocation53_spill] sm:$0xff] %v8067_v61  ;;  %4861 = vmatmul.bf16.gmra.mxu2 %v3072_v32 }
 0x166   :  { %6480 = vmatmul.msk.bf16.gmra.mxu0 %vm925_vm1, %v7128_v28  ;;  %4807 = vmatmul.bf16.gmra.mxu1 %v10573_v20  ;;  %10574 = vst [vmem:[#allocation54_spill] sm:$0xff] %v8076_v10  ;;  %v2503_v38 = vsel %vm1991_vm12, %v1393_v33, %v2247_v15  ;;  %v7129_v33 = vld [vmem:[%s10372_s1 + $0xb8] sm:$0xff] }
 0x167   :  { %6581 = vmatmul.msk.bf16.gmra.mxu3 %vm925_vm1, %v7229_v26  ;;  %v2759_v50 = vpack.c.bf16 %v2503_v38, %v2503_v38  ;;  %v7230_v38 = vld [vmem:[%s10372_s1 + $0x3e0] sm:$0xff] }
 0x169   :  { %v3063_v2 = vunpack.c.l.b16 %v2759_v50  ;;  %v7257_v50 = vld [vmem:[%s10373_s3 + $0xb8] sm:$0xff] }
 0x16a   :  { %v8079_v3 = vpop.f32.mrf.mxu3  ;;  %v8083_v55 = vpop.f32.mrf.mxu2  ;;  %4877 = vmatpush.bf16.msrb.mxu3 %v7257_v50 }
 0x16b   :  { %10575 = vst [vmem:[#allocation55_spill] sm:$0xff] %v8079_v3  ;;  %v1395_v0 = vpop.f32.mrf.mxu0  ;;  %v8081_v59 = vpop.f32.mrf.mxu1 }
 0x16c   :  { %10576 = vst [vmem:[#allocation56_spill] sm:$0xff] %v8081_v59  ;;  %vm1992_vm13 = vcmp.ge.f32.partialorder %v1395_v0, 0.0  ;;  %v2248_v16 = vmul.f32 0.2, %v1395_v0 }
 0x16d   :  { %10577 = vst [vmem:[#allocation57_spill] sm:$0xff] %v8083_v55  ;;  %v7130_v55 = vld [vmem:[%s10372_s1 + $0xc0] sm:$0xff] }
 0x16e   :  { %v2504_v32 = vsel %vm1992_vm13, %v1395_v0, %v2248_v16  ;;  %v10580_v16 = vpack.c.b16 %v7806_v36, %v7818_v53  ;;  %v7256_v53 = vld [vmem:[%s10373_s3 + $0xb0] sm:$0xff] }
 0x16f   :  { %v2760_v28 = vpack.c.bf16 %v2504_v32, %v2504_v32  ;;  %4878 = vmatpush.bf16.msrb.mxu3 %v7256_v53  ;;  %v10587_v53 = vpack.c.b16 %v7863_v31, %v7878_v27  ;;  %v7251_v31 = vld [vmem:[%s10373_s3 + $0x88] sm:$0xff] }
 0x171   :  { %v3064_v13 = vunpack.c.l.b16 %v2760_v28 }
 0x172   :  { %v8085_v20 = vpop.f32.mrf.mxu3 }
 0x173   :  { %10578 = vst [vmem:[#allocation58_spill] sm:$0xff] %v8085_v20  ;;  %v1398_v26 = vpop.f32.mrf.mxu0  ;;  %v8090_v15 = vpop.f32.mrf.mxu1  ;;  %v3073_v10 = vpack.c.b16 %v3064_v13, %v3063_v2 }
 0x174   :  { %10579 = vst [vmem:[#allocation59_spill] sm:$0xff] %v8090_v15  ;;  %v2249_v0 = vmul.f32 0.2, %v1398_v26  ;;  %vm1993_vm14 = vcmp.ge.f32.partialorder %v1398_v26, 0.0  ;;  %v8105_v2 = vpop.f32.mrf.mxu2 }
 0x175   :  { %4866 = vmatmul.bf16.gmra.mxu2 %v3073_v10  ;;  %10582 = vst [vmem:[#allocation61_spill] sm:$0xff] %v8105_v2 }
 0x176   :  { %6481 = vmatmul.msk.bf16.gmra.mxu0 %vm925_vm1, %v7129_v33  ;;  %4812 = vmatmul.bf16.gmra.mxu1 %v10580_v16  ;;  %v2505_v32 = vsel %vm1993_vm14, %v1398_v26, %v2249_v0  ;;  %v7255_v26 = vld [vmem:[%s10373_s3 + $0xa8] sm:$0xff] }
 0x177   :  { %6582 = vmatmul.msk.bf16.gmra.mxu3 %vm925_vm1, %v7230_v38  ;;  %v2761_v36 = vpack.c.bf16 %v2505_v32, %v2505_v32 }
 0x178   :  { %4879 = vmatpush.bf16.msrb.mxu3 %v7255_v26 }
 0x179   :  { %v3065_v0 = vunpack.c.l.b16 %v2761_v36  ;;  %v7254_v36 = vld [vmem:[%s10373_s3 + $0xa0] sm:$0xff] }
 0x17a   :  { %v8103_v28 = vpop.f32.mrf.mxu3 }
 0x17b   :  { %10581 = vst [vmem:[#allocation60_spill] sm:$0xff] %v8103_v28  ;;  %v1400_v10 = vpop.f32.mrf.mxu0  ;;  %v8107_v13 = vpop.f32.mrf.mxu1 }
 0x17c   :  { %10583 = vst [vmem:[#allocation62_spill] sm:$0xff] %v8107_v13  ;;  %vm1994_vm15 = vcmp.ge.f32.partialorder %v1400_v10, 0.0  ;;  %v2250_v33 = vmul.f32 0.2, %v1400_v10  ;;  %4880 = vmatpush.bf16.msrb.mxu3 %v7254_v36 }
 0x17e   :  { %v2506_v38 = vsel %vm1994_vm15, %v1400_v10, %v2250_v33  ;;  %v7231_v10 = vld [vmem:[%s10372_s1 + $0x3e8] sm:$0xff]  ;;  %v8125_v33 = vpop.f32.mrf.mxu2 }
 0x17f   :  { %v2762_v16 = vpack.c.bf16 %v2506_v38, %v2506_v38  ;;  %10586 = vst [vmem:[#allocation65_spill] sm:$0xff] %v8125_v33  ;;  %v7253_v38 = vld [vmem:[%s10373_s3 + $0x98] sm:$0xff] }
 0x180   :  { %4881 = vmatpush.bf16.msrb.mxu3 %v7253_v38  ;;  %v7250_v38 = vld [vmem:[%s10373_s3 + $0x80] sm:$0xff] }
 0x181   :  { %v3066_v50 = vunpack.c.l.b16 %v2762_v16 }
 0x182   :  { %v8115_v2 = vpop.f32.mrf.mxu3 }
 0x183   :  { %10584 = vst [vmem:[#allocation63_spill] sm:$0xff] %v8115_v2  ;;  %v1403_v32 = vpop.f32.mrf.mxu0  ;;  %v8120_v13 = vpop.f32.mrf.mxu1  ;;  %v3074_v15 = vpack.c.b16 %v3066_v50, %v3065_v0  ;;  %v7131_v50 = vld [vmem:[%s10372_s1 + $0xc8] sm:$0xff] }
 0x184   :  { %10585 = vst [vmem:[#allocation64_spill] sm:$0xff] %v8120_v13  ;;  %vm1995_vm3 = vcmp.ge.f32.partialorder %v1403_v32, 0.0 }
 0x185   :  { %4871 = vmatmul.bf16.gmra.mxu2 %v3074_v15 }
 0x186   :  { %6482 = vmatmul.msk.bf16.gmra.mxu0 %vm925_vm1, %v7130_v55  ;;  %4817 = vmatmul.bf16.gmra.mxu1 %v10587_v53  ;;  %v7252_v55 = vld [vmem:[%s10373_s3 + $0x90] sm:$0xff]  ;;  %v8145_v15 = vpop.f32.mrf.mxu2 }
 0x187   :  { %6583 = vmatmul.msk.bf16.gmra.mxu3 %vm925_vm1, %v7231_v10  ;;  %10590 = vst [vmem:[#allocation68_spill] sm:$0xff] %v8145_v15  ;;  %v7232_v53 = vld [vmem:[%s10372_s1 + $0x3f0] sm:$0xff] }
 0x188   :  { %4882 = vmatpush.bf16.msrb.mxu3 %v7252_v55  ;;  %v10593_v55 = vpack.c.b16 %v7909_v39, %v7924_v60  ;;  %v7233_v60 = vld [vmem:[%s10372_s1 + $0x3f8] sm:$0xff] }
 0x18a   :  { %v8138_v16 = vpop.f32.mrf.mxu3 }
 0x18b   :  { %10588 = vst [vmem:[#allocation66_spill] sm:$0xff] %v8138_v16  ;;  %v1405_v26 = vpop.f32.mrf.mxu0  ;;  %v8140_v0 = vpop.f32.mrf.mxu1 }
 0x18c   :  { %10589 = vst [vmem:[#allocation67_spill] sm:$0xff] %v8140_v0  ;;  %4883 = vmatpush.bf16.msrb.mxu3 %v7251_v31  ;;  %vm1996_vm2 = vcmp.ge.f32.partialorder %v1405_v26, 0.0 }
 0x190   :  { %4884 = vmatpush.bf16.msrb.mxu3 %v7250_v38  ;;  %v2252_v38 = vmul.f32 0.2, %v1405_v26 }
 0x192   :  { %v8150_v27 = vpop.f32.mrf.mxu3  ;;  %v2508_v56 = vsel %vm1996_vm2, %v1405_v26, %v2252_v38 }
 0x193   :  { %10591 = vst [vmem:[#allocation69_spill] sm:$0xff] %v8150_v27  ;;  %v1408_v10 = vpop.f32.mrf.mxu0  ;;  %v8155_v36 = vpop.f32.mrf.mxu1 }
 0x194   :  { %10592 = vst [vmem:[#allocation70_spill] sm:$0xff] %v8155_v36  ;;  %vm1997_vm5 = vcmp.ge.f32.partialorder %v1408_v10, 0.0 }
 0x196   :  { %6483 = vmatmul.msk.bf16.gmra.mxu0 %vm925_vm1, %v7131_v50  ;;  %4822 = vmatmul.bf16.gmra.mxu1 %v10593_v55  ;;  %v7132_v50 = vld [vmem:[%s10372_s1 + $0xd0] sm:$0xff]  ;;  %v2251_v55 = vmul.f32 0.2, %v1403_v32 }
 0x197   :  { %6584 = vmatmul.msk.bf16.gmra.mxu3 %vm925_vm1, %v7232_v53 }
 0x198   :  { %v4837_v15 = vpop.f32.mrf.mxu2 }
 0x19a   :  { %v8168_v36 = vpop.f32.mrf.mxu3 }
 0x19b   :  { %10594 = vst [vmem:[#allocation71_spill] sm:$0xff] %v8168_v36  ;;  %v1410_v33 = vpop.f32.mrf.mxu0  ;;  %v8170_v0 = vpop.f32.mrf.mxu1  ;;  %v2764_v36 = vpack.c.bf16 %v2508_v56, %v2508_v56  ;;  %v2253_v56 = vmul.f32 0.2, %v1408_v10 }
 0x19c   :  { %10595 = vst [vmem:[#allocation72_spill] sm:$0xff] %v8170_v0  ;;  %vm1998_vm4 = vcmp.ge.f32.partialorder %v1410_v33, 0.0 }
 0x1a0   :  { %v8172_v31 = vpop.f32.mrf.mxu2 }
 0x1a1   :  { %10596 = vst [vmem:[#allocation73_spill] sm:$0xff] %v8172_v31 }
 0x1a2   :  { %v8174_v13 = vpop.f32.mrf.mxu3 }
 0x1a3   :  { %10597 = vst [vmem:[#allocation74_spill] sm:$0xff] %v8174_v13  ;;  %v8179_v4 = vpop.f32.mrf.mxu0  ;;  %v4788_v39 = vpop.f32.mrf.mxu1  ;;  %v2507_v13 = vsel %vm1995_vm3, %v1403_v32, %v2251_v55 }
 0x1a4   :  { %v8184_v53 = vadd.f32 %v4837_v15, %v4788_v39  ;;  %v2763_v27 = vpack.c.bf16 %v2507_v13, %v2507_v13  ;;  %v3100_v39 = vunpack.c.l.b16 %v2764_v36  ;;  %vm1999_vm9 = vcmp.ge.f32.partialorder %v8179_v4, 0.0 }
 0x1a6   :  { %6484 = vmatmul.msk.bf16.gmra.mxu0 %vm925_vm1, %v7132_v50  ;;  %v7133_v50 = vld [vmem:[%s10372_s1 + $0xd8] sm:$0xff] }
 0x1a7   :  { %6585 = vmatmul.msk.bf16.gmra.mxu3 %vm925_vm1, %v7233_v60  ;;  %v3099_v60 = vunpack.c.l.b16 %v2763_v27  ;;  %v2509_v27 = vsel %vm1997_vm5, %v1408_v10, %v2253_v56 }
 0x1a8   :  { %v4842_v0 = vpop.f32.mrf.mxu2 }
 0x1aa   :  { %v8188_v31 = vpop.f32.mrf.mxu3 }
 0x1ab   :  { %10598 = vst [vmem:[#allocation75_spill] sm:$0xff] %v8188_v31  ;;  %v1415_v59 = vpop.f32.mrf.mxu0  ;;  %v8190_v61 = vpop.f32.mrf.mxu1  ;;  %v3115_v31 = vpack.c.b16 %v3100_v39, %v3099_v60 }
 0x1ac   :  { %10599 = vst [vmem:[#allocation76_spill] sm:$0xff] %v8190_v61  ;;  %v2254_v61 = vmul.f32 0.2, %v1410_v33  ;;  %vm2000_vm8 = vcmp.ge.f32.partialorder %v1415_v59, 0.0 }
 0x1ae   :  { %v2510_v32 = vsel %vm1998_vm4, %v1410_v33, %v2254_v61 }
 0x1af   :  { %v2766_v28 = vpack.c.bf16 %v2510_v32, %v2510_v32 }
 0x1b0   :  { %v8192_v15 = vpop.f32.mrf.mxu2 }
 0x1b1   :  { %10600 = vst [vmem:[#allocation77_spill] sm:$0xff] %v8192_v15  ;;  %v3102_v60 = vunpack.c.l.b16 %v2766_v28 }
 0x1b2   :  { %v8194_v16 = vpop.f32.mrf.mxu3 }
 0x1b3   :  { %10601 = vst [vmem:[#allocation78_spill] sm:$0xff] %v8194_v16  ;;  %v8199_v2 = vpop.f32.mrf.mxu0  ;;  %v4793_v26 = vpop.f32.mrf.mxu1 }
 0x1b4   :  { %v8201_v38 = vadd.f32 %v4842_v0, %v4793_v26  ;;  %v2765_v0 = vpack.c.bf16 %v2509_v27, %v2509_v27  ;;  %v2255_v27 = vmul.f32 0.2, %v8179_v4  ;;  %vm2001_vm11 = vcmp.ge.f32.partialorder %v8199_v2, 0.0 }
 0x1b6   :  { %6485 = vmatmul.msk.bf16.gmra.mxu0 %vm925_vm1, %v7133_v50  ;;  %v3101_v61 = vunpack.c.l.b16 %v2765_v0 }
 0x1b7   :  { %4885 = vmatmul.bf16.vlgmr.msrb.gmra.mxu3 %v3115_v31  ;;  %v7134_v31 = vld [vmem:[%s10372_s1 + $0xe0] sm:$0xff] }
 0x1b8   :  { %v4847_v13 = vpop.f32.mrf.mxu2  ;;  %v3116_v32 = vpack.c.b16 %v3102_v60, %v3101_v61 }
 0x1ba   :  { %v1923_v36 = vpop.f32.mrf.mxu3 }
 0x1bb   :  { %v2459_v55 = vmul.f32 0.2, %v1923_v36  ;;  %v1420_v15 = vpop.f32.mrf.mxu0  ;;  %v8204_v16 = vpop.f32.mrf.mxu1  ;;  %vm2203_vm6 = vcmp.ge.f32.partialorder %v1923_v36, 0.0 }
 0x1bc   :  { %10602 = vst [vmem:[#allocation79_spill] sm:$0xff] %v8204_v16  ;;  %vm2002_vm10 = vcmp.ge.f32.partialorder %v1420_v15, 0.0 }
 0x1bd   :  { %v2715_v26 = vsel %vm2203_vm6, %v1923_v36, %v2459_v55  ;;  %v2256_v36 = vmul.f32 0.2, %v1415_v59 }
 0x1be   :  { %v2971_v50 = vpack.c.bf16 %v2715_v26, %v2715_v26 }
 0x1c0   :  { %v8206_v39 = vpop.f32.mrf.mxu2  ;;  %v8215_v55 = vunpack.c.l.b16 %v2971_v50  ;;  %v2511_v50 = vsel %vm1999_vm9, %v8179_v4, %v2255_v27  ;;  %v7265_v4 = vld [vmem:[%s10373_s3 + $0xf8] sm:$0xff] }
 0x1c1   :  { %10603 = vst [vmem:[#allocation80_spill] sm:$0xff] %v8206_v39  ;;  %v2512_v39 = vsel %vm2000_vm8, %v1415_v59, %v2256_v36  ;;  %v2767_v61 = vpack.c.bf16 %v2511_v50, %v2511_v50  ;;  %v7135_v59 = vld [vmem:[%s10372_s1 + $0xe8] sm:$0xff]  ;;  %4926 = vmatpush.bf16.msra.mxu1 %v7265_v4 }
 0x1c2   :  { %v1925_v20 = vpop.f32.mrf.mxu3  ;;  %10604 = vst [vmem:[#allocation81_spill] sm:$0xff] %v8215_v55 }
 0x1c3   :  { %vm2204_vm7 = vcmp.ge.f32.partialorder %v1925_v20, 0.0  ;;  %v2460_v33 = vmul.f32 0.2, %v1925_v20  ;;  %v8211_v3 = vpop.f32.mrf.mxu0  ;;  %v4798_v16 = vpop.f32.mrf.mxu1  ;;  %v3103_v36 = vunpack.c.l.b16 %v2767_v61 }
 0x1c4   :  { %v8213_v10 = vadd.f32 %v4847_v13, %v4798_v16  ;;  %vm2003_vm13 = vcmp.ge.f32.partialorder %v8211_v3, 0.0 }
 0x1c5   :  { %v2716_v56 = vsel %vm2204_vm7, %v1925_v20, %v2460_v33 }
 0x1c6   :  { %v2972_v28 = vpack.c.bf16 %v2716_v56, %v2716_v56  ;;  %6486 = vmatmul.msk.bf16.gmra.mxu0 %vm925_vm1, %v7134_v31  ;;  %v2768_v31 = vpack.c.bf16 %v2512_v39, %v2512_v39  ;;  %v2257_v39 = vmul.f32 0.2, %v8199_v2 }
 0x1c7   :  { %4890 = vmatmul.bf16.gmra.mxu3 %v3116_v32 }
 0x1c8   :  { %v8219_v0 = vunpack.c.l.b16 %v2972_v28  ;;  %v4852_v26 = vpop.f32.mrf.mxu2  ;;  %v3104_v56 = vunpack.c.l.b16 %v2768_v31 }
 0x1ca   :  { %10605 = vst [vmem:[#allocation82_spill] sm:$0xff] %v8219_v0  ;;  %v8224_v16 = vpop.f32.mrf.mxu3  ;;  %v3117_v0 = vpack.c.b16 %v3104_v56, %v3103_v36  ;;  %v2513_v56 = vsel %vm2001_vm11, %v8199_v2, %v2257_v39  ;;  %v7262_v2 = vld [vmem:[%s10373_s3 + $0xe0] sm:$0xff] }
 0x1cb   :  { %10606 = vst [vmem:[#allocation83_spill] sm:$0xff] %v8224_v16  ;;  %v1425_v13 = vpop.f32.mrf.mxu0  ;;  %v8226_v60 = vpop.f32.mrf.mxu1  ;;  %v2769_v36 = vpack.c.bf16 %v2513_v56, %v2513_v56 }
 0x1cc   :  { %10607 = vst [vmem:[#allocation84_spill] sm:$0xff] %v8226_v60  ;;  %v2258_v60 = vmul.f32 0.2, %v1420_v15  ;;  %vm2004_vm12 = vcmp.ge.f32.partialorder %v1425_v13, 0.0 }
 0x1cd   :  { %v3105_v39 = vunpack.c.l.b16 %v2769_v36 }
 0x1ce   :  { %v2514_v50 = vsel %vm2002_vm10, %v1420_v15, %v2258_v60 }
 0x1d0   :  { %v8229_v33 = vpop.f32.mrf.mxu2 }
 0x1d1   :  { %10608 = vst [vmem:[#allocation85_spill] sm:$0xff] %v8229_v33  ;;  %v7136_v33 = vld [vmem:[%s10372_s1 + $0xf0] sm:$0xff] }
 0x1d2   :  { %v8231_v32 = vpop.f32.mrf.mxu3 }
 0x1d3   :  { %10609 = vst [vmem:[#allocation86_spill] sm:$0xff] %v8231_v32  ;;  %v8236_v28 = vpop.f32.mrf.mxu0  ;;  %v4803_v20 = vpop.f32.mrf.mxu1 }
 0x1d4   :  { %v8238_v55 = vadd.f32 %v4852_v26, %v4803_v20  ;;  %v7264_v26 = vld [vmem:[%s10373_s3 + $0xf0] sm:$0xff]  ;;  %vm2005_vm15 = vcmp.ge.f32.partialorder %v8236_v28, 0.0 }
 0x1d5   :  { %4927 = vmatpush.bf16.msra.mxu1 %v7264_v26 }
 0x1d6   :  { %6487 = vmatmul.msk.bf16.gmra.mxu0 %vm925_vm1, %v7135_v59  ;;  %v7263_v59 = vld [vmem:[%s10373_s3 + $0xe8] sm:$0xff] }
 0x1d7   :  { %4895 = vmatmul.bf16.gmra.mxu3 %v3117_v0  ;;  %v2770_v0 = vpack.c.bf16 %v2514_v50, %v2514_v50 }
 0x1d8   :  { %v4857_v27 = vpop.f32.mrf.mxu2 }
 0x1d9   :  { %4928 = vmatpush.bf16.msra.mxu1 %v7263_v59  ;;  %v3106_v15 = vunpack.c.l.b16 %v2770_v0  ;;  %v2260_v59 = vmul.f32 0.2, %v1425_v13  ;;  %v7261_v0 = vld [vmem:[%s10373_s3 + $0xd8] sm:$0xff] }
 0x1da   :  { %v8246_v31 = vpop.f32.mrf.mxu3 }
 0x1db   :  { %10610 = vst [vmem:[#allocation87_spill] sm:$0xff] %v8246_v31  ;;  %v1430_v20 = vpop.f32.mrf.mxu0  ;;  %v8251_v61 = vpop.f32.mrf.mxu1  ;;  %v3118_v56 = vpack.c.b16 %v3106_v15, %v3105_v39  ;;  %v2516_v36 = vsel %vm2004_vm12, %v1425_v13, %v2260_v59  ;;  %v7260_v15 = vld [vmem:[%s10373_s3 + $0xd0] sm:$0xff] }
 0x1dc   :  { %10611 = vst [vmem:[#allocation88_spill] sm:$0xff] %v8251_v61  ;;  %vm2006_vm14 = vcmp.ge.f32.partialorder %v1430_v20, 0.0 }
 0x1dd   :  { %4929 = vmatpush.bf16.msra.mxu1 %v7262_v2 }
 0x1e0   :  { %v8257_v4 = vpop.f32.mrf.mxu2 }
 0x1e1   :  { %10612 = vst [vmem:[#allocation89_spill] sm:$0xff] %v8257_v4  ;;  %v2259_v4 = vmul.f32 0.2, %v8211_v3  ;;  %4930 = vmatpush.bf16.msra.mxu1 %v7261_v0 }
 0x1e2   :  { %v8259_v60 = vpop.f32.mrf.mxu3 }
 0x1e3   :  { %10613 = vst [vmem:[#allocation90_spill] sm:$0xff] %v8259_v60  ;;  %v8267_v50 = vpop.f32.mrf.mxu0  ;;  %v4808_v26 = vpop.f32.mrf.mxu1  ;;  %v2515_v39 = vsel %vm2003_vm13, %v8211_v3, %v2259_v4 }
 0x1e4   :  { %v8269_v61 = vadd.f32 %v4857_v27, %v4808_v26  ;;  %v2772_v26 = vpack.c.bf16 %v2516_v36, %v2516_v36  ;;  %v2771_v0 = vpack.c.bf16 %v2515_v39, %v2515_v39  ;;  %vm2007_vm4 = vcmp.ge.f32.partialorder %v8267_v50, 0.0 }
 0x1e5   :  { %4931 = vmatpush.bf16.msra.mxu1 %v7260_v15 }
 0x1e6   :  { %6488 = vmatmul.msk.bf16.gmra.mxu0 %vm925_vm1, %v7136_v33  ;;  %v3108_v13 = vunpack.c.l.b16 %v2772_v26  ;;  %v3107_v3 = vunpack.c.l.b16 %v2771_v0  ;;  %v2262_v26 = vmul.f32 0.2, %v1430_v20 }
 0x1e7   :  { %4900 = vmatmul.bf16.gmra.mxu3 %v3118_v56  ;;  %v7259_v56 = vld [vmem:[%s10373_s3 + $0xc8] sm:$0xff] }
 0x1e8   :  { %v4862_v60 = vpop.f32.mrf.mxu2  ;;  %v3119_v39 = vpack.c.b16 %v3108_v13, %v3107_v3 }
 0x1e9   :  { %4932 = vmatpush.bf16.msra.mxu1 %v7259_v56  ;;  %v2261_v56 = vmul.f32 0.2, %v8236_v28 }
 0x1ea   :  { %v8277_v27 = vpop.f32.mrf.mxu3 }
 0x1eb   :  { %10614 = vst [vmem:[#allocation91_spill] sm:$0xff] %v8277_v27  ;;  %v1435_v33 = vpop.f32.mrf.mxu0  ;;  %v8282_v2 = vpop.f32.mrf.mxu1  ;;  %v7137_v27 = vld [vmem:[%s10372_s1 + $0xf8] sm:$0xff] }
 0x1ec   :  { %10615 = vst [vmem:[#allocation92_spill] sm:$0xff] %v8282_v2  ;;  %v7258_v2 = vld [vmem:[%s10373_s3 + $0xc0] sm:$0xff]  ;;  %v2264_v7 = vmul.f32 0.2, %v1435_v33  ;;  %vm2008_vm2 = vcmp.ge.f32.partialorder %v1435_v33, 0.0 }
 0x1ed   :  { %4933 = vmatpush.bf16.msra.mxu1 %v7258_v2 }
 0x1f0   :  { %v8298_v15 = vpop.f32.mrf.mxu2 }
 0x1f1   :  { %10617 = vst [vmem:[#allocation94_spill] sm:$0xff] %v8298_v15 }
 0x1f2   :  { %v8288_v59 = vpop.f32.mrf.mxu3 }
 0x1f3   :  { %10616 = vst [vmem:[#allocation93_spill] sm:$0xff] %v8288_v59  ;;  %v8296_v4 = vpop.f32.mrf.mxu0  ;;  %v4813_v36 = vpop.f32.mrf.mxu1  ;;  %v2518_v59 = vsel %vm2006_vm14, %v1430_v20, %v2262_v26  ;;  %vm2165_vm14 = vcmp.ge.f32.partialorder %v7614_v41, 0.0 }
 0x1f4   :  { %v8300_v31 = vadd.f32 %v4862_v60, %v4813_v36  ;;  %v2517_v60 = vsel %vm2005_vm15, %v8236_v28, %v2261_v56  ;;  %v2774_v36 = vpack.c.bf16 %v2518_v59, %v2518_v59  ;;  %v2263_v28 = vmul.f32 0.2, %v8267_v50 }
 0x1f5   :  { %v2773_v13 = vpack.c.bf16 %v2517_v60, %v2517_v60  ;;  %v2520_v56 = vsel %vm2008_vm2, %v1435_v33, %v2264_v7  ;;  %vm2009_vm8 = vcmp.ge.f32.partialorder %v8296_v4, 0.0  ;;  %vm2166_vm15 = vcmp.ge.f32.partialorder %v7622_v51, 0.0 }
 0x1f6   :  { %6489 = vmatmul.msk.bf16.gmra.mxu0 %vm925_vm1, %v7137_v27  ;;  %v3110_v3 = vunpack.c.l.b16 %v2774_v36  ;;  %v7138_v27 = vld [vmem:[%s10372_s1 + $0x100] sm:$0xff] }
 0x1f7   :  { %4905 = vmatmul.bf16.gmra.mxu3 %v3119_v39  ;;  %v3109_v39 = vunpack.c.l.b16 %v2773_v13 }
 0x1f8   :  { %v4867_v2 = vpop.f32.mrf.mxu2 }
 0x1fa   :  { %v8305_v0 = vpop.f32.mrf.mxu3 }
 0x1fb   :  { %10618 = vst [vmem:[#allocation95_spill] sm:$0xff] %v8305_v0  ;;  %v1440_v32 = vpop.f32.mrf.mxu0  ;;  %v8307_v16 = vpop.f32.mrf.mxu1  ;;  %v3120_v0 = vpack.c.b16 %v3110_v3, %v3109_v39  ;;  %v2519_v3 = vsel %vm2007_vm4, %v8267_v50, %v2263_v28  ;;  %v2776_v39 = vpack.c.bf16 %v2520_v56, %v2520_v56  ;;  %vm2167_vm4 = vcmp.ge.f32.partialorder %v7648_v62, 0.0 }
 0x1fc   :  { %10619 = vst [vmem:[#allocation96_spill] sm:$0xff] %v8307_v16  ;;  %vm2010_vm6 = vcmp.ge.f32.partialorder %v1440_v32, 0.0 }
 0x1fd   :  { %v3112_v17 = vunpack.c.l.b16 %v2776_v39 }
 0x200   :  { %v8319_v59 = vpop.f32.mrf.mxu2 }
 0x201   :  { %10621 = vst [vmem:[#allocation98_spill] sm:$0xff] %v8319_v59 }
 0x202   :  { %v8310_v15 = vpop.f32.mrf.mxu3 }
 0x203   :  { %10620 = vst [vmem:[#allocation97_spill] sm:$0xff] %v8310_v15  ;;  %v1443_v12 = vpop.f32.mrf.mxu0  ;;  %v4818_v20 = vpop.f32.mrf.mxu1  ;;  %v2775_v15 = vpack.c.bf16 %v2519_v3, %v2519_v3 }
 0x204   :  { %v8315_v26 = vadd.f32 %v4867_v2, %v4818_v20  ;;  %v2267_v16 = vmul.f32 0.2, %v1443_v12  ;;  %vm2011_vm3 = vcmp.ge.f32.partialorder %v1443_v12, 0.0 }
 0x206   :  { %6490 = vmatmul.msk.bf16.gmra.mxu0 %vm925_vm1, %v7138_v27  ;;  %v2523_v60 = vsel %vm2011_vm3, %v1443_v12, %v2267_v16  ;;  %v7139_v12 = vld [vmem:[%s10372_s1 + $0x108] sm:$0xff]  ;;  %v3111_v16 = vunpack.c.l.b16 %v2775_v15 }
 0x207   :  { %4910 = vmatmul.bf16.gmra.mxu3 %v3120_v0  ;;  %v2779_v20 = vpack.c.bf16 %v2523_v60, %v2523_v60  ;;  %v2266_v60 = vmul.f32 0.2, %v1440_v32 }
 0x208   :  { %v4872_v43 = vpop.f32.mrf.mxu2  ;;  %v3121_v56 = vpack.c.b16 %v3112_v17, %v3111_v16 }
 0x209   :  { %v3147_v25 = vunpack.c.l.b16 %v2779_v20  ;;  %v2522_v3 = vsel %vm2010_vm6, %v1440_v32, %v2266_v60  ;;  %v7140_v32 = vld [vmem:[%s10372_s1 + $0x110] sm:$0xff]  ;;  %vm2168_vm6 = vcmp.ge.f32.partialorder %v7656_v8, 0.0 }
 0x20a   :  { %v8322_v36 = vpop.f32.mrf.mxu3 }
 0x20b   :  { %10622 = vst [vmem:[#allocation99_spill] sm:$0xff] %v8322_v36  ;;  %v1445_v2 = vpop.f32.mrf.mxu0  ;;  %v8324_v13 = vpop.f32.mrf.mxu1 }
 0x20c   :  { %10623 = vst [vmem:[#allocation100_spill] sm:$0xff] %v8324_v13  ;;  %vm2012_vm5 = vcmp.ge.f32.partialorder %v1445_v2, 0.0  ;;  %v2268_v27 = vmul.f32 0.2, %v1445_v2 }
 0x20e   :  { %v2524_v0 = vsel %vm2012_vm5, %v1445_v2, %v2268_v27  ;;  %v2778_v27 = vpack.c.bf16 %v2522_v3, %v2522_v3  ;;  %vm2097_vm5 = vcmp.ge.f32.partialorder %v7602_v37, 0.0 }
 0x20f   :  { %v2780_v47 = vpack.c.bf16 %v2524_v0, %v2524_v0 }
 0x211   :  { %v3148_v59 = vunpack.c.l.b16 %v2780_v47  ;;  %v2265_v47 = vmul.f32 0.2, %v8296_v4 }
 0x212   :  { %v8327_v7 = vpop.f32.mrf.mxu3 }
 0x213   :  { %10624 = vst [vmem:[#allocation101_spill] sm:$0xff] %v8327_v7  ;;  %v3163_v33 = vpack.c.b16 %v3148_v59, %v3147_v25  ;;  %v1448_v50 = vpop.f32.mrf.mxu0  ;;  %v4823_v28 = vpop.f32.mrf.mxu1 }
 0x214   :  { %v8332_v36 = vadd.f32 %v4872_v43, %v4823_v28  ;;  %v2269_v2 = vmul.f32 0.2, %v1448_v50  ;;  %vm2013_vm7 = vcmp.ge.f32.partialorder %v1448_v50, 0.0  ;;  %v2521_v43 = vsel %vm2009_vm8, %v8296_v4, %v2265_v47 }
 0x215   :  { %4934 = vmatmul.bf16.vlgmr.msra.gmra.mxu1 %v3163_v33  ;;  %v2777_v0 = vpack.c.bf16 %v2521_v43, %v2521_v43  ;;  %v3114_v28 = vunpack.c.l.b16 %v2778_v27 }
 0x216   :  { %6491 = vmatmul.msk.bf16.gmra.mxu0 %vm925_vm1, %v7139_v12  ;;  %v2525_v15 = vsel %vm2013_vm7, %v1448_v50, %v2269_v2  ;;  %vm2098_vm7 = vcmp.ge.f32.partialorder %v7618_v44, 0.0 }
 0x217   :  { %4915 = vmatmul.bf16.gmra.mxu3 %v3121_v56  ;;  %v2781_v39 = vpack.c.bf16 %v2525_v15, %v2525_v15  ;;  %v3113_v50 = vunpack.c.l.b16 %v2777_v0 }
 0x219   :  { %v3149_v16 = vunpack.c.l.b16 %v2781_v39  ;;  %v3122_v4 = vpack.c.b16 %v3114_v28, %v3113_v50 }
 0x21a   :  { %v8337_v25 = vpop.f32.mrf.mxu3 }
 0x21b   :  { %10625 = vst [vmem:[#allocation102_spill] sm:$0xff] %v8337_v25  ;;  %v1450_v59 = vpop.f32.mrf.mxu0 }
 0x21c   :  { %vm2014_vm9 = vcmp.ge.f32.partialorder %v1450_v59, 0.0  ;;  %v2270_v17 = vmul.f32 0.2, %v1450_v59 }
 0x21e   :  { %v2526_v20 = vsel %vm2014_vm9, %v1450_v59, %v2270_v17 }
 0x21f   :  { %v2782_v12 = vpack.c.bf16 %v2526_v20, %v2526_v20 }
 0x221   :  { %v3150_v33 = vunpack.c.l.b16 %v2782_v12 }
 0x222   :  { %v8340_v56 = vpop.f32.mrf.mxu3 }
 0x223   :  { %10626 = vst [vmem:[#allocation103_spill] sm:$0xff] %v8340_v56  ;;  %v1453_v60 = vpop.f32.mrf.mxu0  ;;  %v3164_v2 = vpack.c.b16 %v3150_v33, %v3149_v16  ;;  %v7141_v16 = vld [vmem:[%s10372_s1 + $0x118] sm:$0xff] }
 0x224   :  { %v2271_v47 = vmul.f32 0.2, %v1453_v60  ;;  %vm2015_vm10 = vcmp.ge.f32.partialorder %v1453_v60, 0.0 }
 0x225   :  { %4939 = vmatmul.bf16.gmra.mxu1 %v3164_v2 }
 0x226   :  { %6492 = vmatmul.msk.bf16.gmra.mxu0 %vm925_vm1, %v7140_v32  ;;  %v2527_v3 = vsel %vm2015_vm10, %v1453_v60, %v2271_v47  ;;  %vm2169_vm10 = vcmp.ge.f32.partialorder %v7682_v19, 0.0 }
 0x227   :  { %4920 = vmatmul.bf16.gmra.mxu3 %v3122_v4  ;;  %v2783_v17 = vpack.c.bf16 %v2527_v3, %v2527_v3 }
 0x229   :  { %v3151_v20 = vunpack.c.l.b16 %v2783_v17  ;;  %v2421_v17 = vmul.f32 0.2, %v7614_v41 }
 0x22a   :  { %v8346_v15 = vpop.f32.mrf.mxu3 }
 0x22b   :  { %10627 = vst [vmem:[#allocation104_spill] sm:$0xff] %v8346_v15  ;;  %v1455_v59 = vpop.f32.mrf.mxu0 }
 0x22c   :  { %vm2016_vm11 = vcmp.ge.f32.partialorder %v1455_v59, 0.0  ;;  %v2272_v43 = vmul.f32 0.2, %v1455_v59 }
 0x22e   :  { %v2528_v27 = vsel %vm2016_vm11, %v1455_v59, %v2272_v43  ;;  %vm2099_vm11 = vcmp.ge.f32.partialorder %v7634_v57, 0.0 }
 0x22f   :  { %v2784_v39 = vpack.c.bf16 %v2528_v27, %v2528_v27 }
 0x231   :  { %v3152_v0 = vunpack.c.l.b16 %v2784_v39 }
 0x232   :  { %v8348_v12 = vpop.f32.mrf.mxu3 }
 0x233   :  { %10628 = vst [vmem:[#allocation105_spill] sm:$0xff] %v8348_v12  ;;  %v1458_v33 = vpop.f32.mrf.mxu0  ;;  %v3165_v28 = vpack.c.b16 %v3152_v0, %v3151_v20  ;;  %v7142_v0 = vld [vmem:[%s10372_s1 + $0x120] sm:$0xff] }
 0x234   :  { %v2273_v32 = vmul.f32 0.2, %v1458_v33  ;;  %vm2017_vm12 = vcmp.ge.f32.partialorder %v1458_v33, 0.0 }
 0x235   :  { %4944 = vmatmul.bf16.gmra.mxu1 %v3165_v28  ;;  %v2677_v28 = vsel %vm2165_vm14, %v7614_v41, %v2421_v17 }
 0x236   :  { %6493 = vmatmul.msk.bf16.gmra.mxu0 %vm925_vm1, %v7141_v16  ;;  %v2529_v50 = vsel %vm2017_vm12, %v1458_v33, %v2273_v32  ;;  %vm2170_vm12 = vcmp.ge.f32.partialorder %v7690_v29, 0.0 }
 0x237   :  { %v2785_v3 = vpack.c.bf16 %v2529_v50, %v2529_v50 }
 0x239   :  { %v3153_v27 = vunpack.c.l.b16 %v2785_v3 }
 0x23a   :  { %v4886_v60 = vpop.f32.mrf.mxu3 }
 0x23b   :  { %v8355_v2 = vadd.f32 %v4886_v60, %v8184_v53  ;;  %v1460_v4 = vpop.f32.mrf.mxu0  ;;  %v2422_v53 = vmul.f32 0.2, %v7622_v51  ;;  %v2933_v60 = vpack.c.bf16 %v2677_v28, %v2677_v28 }
 0x23c   :  { %vm2018_vm13 = vcmp.ge.f32.partialorder %v1460_v4, 0.0  ;;  %v2274_v47 = vmul.f32 0.2, %v1460_v4 }
 0x23d   :  { %v2678_v50 = vsel %vm2166_vm15, %v7622_v51, %v2422_v53  ;;  %v2423_v53 = vmul.f32 0.2, %v7648_v62 }
 0x23e   :  { %v2530_v59 = vsel %vm2018_vm13, %v1460_v4, %v2274_v47  ;;  %v2934_v4 = vpack.c.bf16 %v2678_v50, %v2678_v50  ;;  %v2353_v50 = vmul.f32 0.2, %v7602_v37  ;;  %vm2100_vm13 = vcmp.ge.f32.partialorder %v7652_v1, 0.0 }
 0x23f   :  { %v2786_v43 = vpack.c.bf16 %v2530_v59, %v2530_v59 }
 0x241   :  { %v3154_v39 = vunpack.c.l.b16 %v2786_v43 }
 0x242   :  { %v8359_v20 = vpop.f32.mrf.mxu3 }
 0x243   :  { %v1463_v16 = vpop.f32.mrf.mxu0  ;;  %v3166_v33 = vpack.c.b16 %v3154_v39, %v3153_v27  ;;  %v8372_v27 = vunpack.c.l.b16 %v2933_v60  ;;  %v2424_v60 = vmul.f32 0.2, %v7656_v8 }
 0x244   :  { %v2275_v32 = vmul.f32 0.2, %v1463_v16  ;;  %vm2019_vm2 = vcmp.ge.f32.partialorder %v1463_v16, 0.0 }
 0x245   :  { %4949 = vmatmul.bf16.gmra.mxu1 %v3166_v33  ;;  %10629 = vst [vmem:[#allocation106_spill] sm:$0xff] %v8372_v27  ;;  %v8374_v33 = vunpack.c.l.b16 %v2934_v4 }
 0x246   :  { %6494 = vmatmul.msk.bf16.gmra.mxu0 %vm925_vm1, %v7142_v0  ;;  %v2531_v47 = vsel %vm2019_vm2, %v1463_v16, %v2275_v32  ;;  %v7143_v32 = vld [vmem:[%s10372_s1 + $0x128] sm:$0xff]  ;;  %vm2101_vm2 = vcmp.ge.f32.partialorder %v7668_v14, 0.0 }
 0x247   :  { %v2787_v41 = vpack.c.bf16 %v2531_v47, %v2531_v47  ;;  %10630 = vst [vmem:[#allocation107_spill] sm:$0xff] %v8374_v33 }
 0x249   :  { %v3155_v16 = vunpack.c.l.b16 %v2787_v41  ;;  %v7273_v41 = vld [vmem:[%s10373_s3 + $0x138] sm:$0xff] }
 0x24a   :  { %v4891_v3 = vpop.f32.mrf.mxu3  ;;  %4975 = vmatpush.bf16.msra.mxu2 %v7273_v41  ;;  %v2425_v41 = vmul.f32 0.2, %v7682_v19 }
 0x24b   :  { %v8370_v59 = vadd.f32 %v4891_v3, %v8201_v38  ;;  %v1465_v43 = vpop.f32.mrf.mxu0  ;;  %v2354_v3 = vmul.f32 0.2, %v7618_v44 }
 0x24c   :  { %vm2020_vm3 = vcmp.ge.f32.partialorder %v1465_v43, 0.0  ;;  %v2276_v39 = vmul.f32 0.2, %v1465_v43 }
 0x24e   :  { %v2532_v17 = vsel %vm2020_vm3, %v1465_v43, %v2276_v39  ;;  %v2679_v43 = vsel %vm2167_vm4, %v7648_v62, %v2423_v53  ;;  %vm2102_vm3 = vcmp.ge.f32.partialorder %v7686_v22, 0.0 }
 0x24f   :  { %v2788_v0 = vpack.c.bf16 %v2532_v17, %v2532_v17  ;;  %v2609_v17 = vsel %vm2097_vm5, %v7602_v37, %v2353_v50 }
 0x250   :  { %v2865_v62 = vpack.c.bf16 %v2609_v17, %v2609_v17 }
 0x251   :  { %v3156_v28 = vunpack.c.l.b16 %v2788_v0  ;;  %v2680_v0 = vsel %vm2168_vm6, %v7656_v8, %v2424_v60  ;;  %vm2173_vm6 = vcmp.ge.f32.partialorder %v7752_v46, 0.0 }
 0x252   :  { %v8380_v38 = vpop.f32.mrf.mxu3  ;;  %v2936_v53 = vpack.c.bf16 %v2680_v0, %v2680_v0 }
 0x253   :  { %v1468_v4 = vpop.f32.mrf.mxu0  ;;  %v3167_v47 = vpack.c.b16 %v3156_v28, %v3155_v16  ;;  %v2935_v16 = vpack.c.bf16 %v2679_v43, %v2679_v43  ;;  %v2610_v28 = vsel %vm2098_vm7, %v7618_v44, %v2354_v3  ;;  %v8407_v44 = vunpack.c.l.b16 %v2865_v62 }
 0x254   :  { %v2277_v39 = vmul.f32 0.2, %v1468_v4  ;;  %vm2021_vm8 = vcmp.ge.f32.partialorder %v1468_v4, 0.0  ;;  %v2866_v37 = vpack.c.bf16 %v2610_v28, %v2610_v28  ;;  %v8412_v43 = vunpack.c.l.b16 %v2936_v53  ;;  %v7270_v28 = vld [vmem:[%s10373_s3 + $0x120] sm:$0xff] }
 0x255   :  { %4954 = vmatmul.bf16.gmra.mxu1 %v3167_v47  ;;  %v8405_v50 = vunpack.c.l.b16 %v2935_v16  ;;  %v7144_v16 = vld [vmem:[%s10372_s1 + $0x130] sm:$0xff]  ;;  %v2355_v53 = vmul.f32 0.2, %v7634_v57  ;;  %vm2103_vm7 = vcmp.ge.f32.partialorder %v7702_v35, 0.0 }
 0x256   :  { %6495 = vmatmul.msk.bf16.gmra.mxu0 %vm925_vm1, %v7143_v32  ;;  %v2533_v47 = vsel %vm2021_vm8, %v1468_v4, %v2277_v39  ;;  %v7272_v32 = vld [vmem:[%s10373_s3 + $0x130] sm:$0xff]  ;;  %v7271_v4 = vld [vmem:[%s10373_s3 + $0x128] sm:$0xff]  ;;  %10632 = vst [vmem:[#allocation109_spill] sm:$0xff] %v8412_v43  ;;  %vm2174_vm8 = vcmp.ge.f32.partialorder %v7762_v5, 0.0 }
 0x257   :  { %10631 = vst [vmem:[#allocation108_spill] sm:$0xff] %v8405_v50  ;;  %4976 = vmatpush.bf16.msra.mxu2 %v7272_v32  ;;  %v2789_v60 = vpack.c.bf16 %v2533_v47, %v2533_v47  ;;  %v2426_v47 = vmul.f32 0.2, %v7690_v29 }
 0x259   :  { %v3157_v17 = vunpack.c.l.b16 %v2789_v60  ;;  %v2681_v60 = vsel %vm2169_vm10, %v7682_v19, %v2425_v41 }
 0x25a   :  { %v4896_v51 = vpop.f32.mrf.mxu3 }
 0x25b   :  { %v8403_v12 = vadd.f32 %v4896_v51, %v8213_v10  ;;  %v1470_v15 = vpop.f32.mrf.mxu0  ;;  %4977 = vmatpush.bf16.msra.mxu2 %v7271_v4  ;;  %v8414_v10 = vunpack.c.l.b16 %v2866_v37  ;;  %v7269_v4 = vld [vmem:[%s10373_s3 + $0x118] sm:$0xff] }
 0x25c   :  { %vm2022_vm9 = vcmp.ge.f32.partialorder %v1470_v15, 0.0  ;;  %v2278_v8 = vmul.f32 0.2, %v1470_v15 }
 0x25e   :  { %v2534_v3 = vsel %vm2022_vm9, %v1470_v15, %v2278_v8  ;;  %v2356_v8 = vmul.f32 0.2, %v7652_v1  ;;  %vm2104_vm9 = vcmp.ge.f32.partialorder %v7716_v49, 0.0 }
 0x25f   :  { %v2790_v39 = vpack.c.bf16 %v2534_v3, %v2534_v3  ;;  %4978 = vmatpush.bf16.msra.mxu2 %v7270_v28 }
 0x260   :  { %v2612_v28 = vsel %vm2100_vm13, %v7652_v1, %v2356_v8  ;;  %vm2105_vm13 = vcmp.ge.f32.partialorder %v7734_v23, 0.0 }
 0x261   :  { %v3158_v0 = vunpack.c.l.b16 %v2790_v39  ;;  %v2611_v39 = vsel %vm2099_vm11, %v7634_v57, %v2355_v53  ;;  %v2868_v57 = vpack.c.bf16 %v2612_v28, %v2612_v28 }
 0x262   :  { %v8420_v15 = vpop.f32.mrf.mxu3  ;;  %v2867_v19 = vpack.c.bf16 %v2611_v39, %v2611_v39 }
 0x263   :  { %v1473_v32 = vpop.f32.mrf.mxu0  ;;  %v3168_v37 = vpack.c.b16 %v3158_v0, %v3157_v17  ;;  %v2682_v17 = vsel %vm2170_vm12, %v7690_v29, %v2426_v47  ;;  %v2937_v0 = vpack.c.bf16 %v2681_v60, %v2681_v60  ;;  %4979 = vmatpush.bf16.msra.mxu2 %v7269_v4  ;;  %vm2175_vm12 = vcmp.ge.f32.partialorder %v7792_v48, 0.0 }
 0x264   :  { %v2279_v3 = vmul.f32 0.2, %v1473_v32  ;;  %vm2023_vm14 = vcmp.ge.f32.partialorder %v1473_v32, 0.0  ;;  %v2938_v41 = vpack.c.bf16 %v2682_v17, %v2682_v17  ;;  %v8452_v1 = vunpack.c.l.b16 %v2867_v19 }
 0x265   :  { %4959 = vmatmul.bf16.gmra.mxu1 %v3168_v37  ;;  %v8450_v53 = vunpack.c.l.b16 %v2937_v0  ;;  %v7266_v0 = vld [vmem:[%s10373_s3 + $0x100] sm:$0xff]  ;;  %v2357_v19 = vmul.f32 0.2, %v7668_v14 }
 0x266   :  { %6496 = vmatmul.msk.bf16.gmra.mxu0 %vm925_vm1, %v7144_v16  ;;  %v2535_v37 = vsel %vm2023_vm14, %v1473_v32, %v2279_v3  ;;  %v7268_v16 = vld [vmem:[%s10373_s3 + $0x110] sm:$0xff]  ;;  %v7267_v32 = vld [vmem:[%s10373_s3 + $0x108] sm:$0xff]  ;;  %v8457_v60 = vunpack.c.l.b16 %v2938_v41  ;;  %vm2176_vm14 = vcmp.ge.f32.partialorder %v7808_v40, 0.0 }
 0x267   :  { %10633 = vst [vmem:[#allocation110_spill] sm:$0xff] %v8450_v53  ;;  %4980 = vmatpush.bf16.msra.mxu2 %v7268_v16  ;;  %v2791_v47 = vpack.c.bf16 %v2535_v37, %v2535_v37  ;;  %v2358_v16 = vmul.f32 0.2, %v7686_v22 }
 0x268   :  { %10634 = vst [vmem:[#allocation111_spill] sm:$0xff] %v8457_v60 }
 0x269   :  { %v3159_v4 = vunpack.c.l.b16 %v2791_v47  ;;  %v2614_v47 = vsel %vm2102_vm3, %v7686_v22, %v2358_v16 }
 0x26a   :  { %v4901_v51 = vpop.f32.mrf.mxu3 }
 0x26b   :  { %v8448_v62 = vadd.f32 %v4901_v51, %v8238_v55  ;;  %v1475_v56 = vpop.f32.mrf.mxu0  ;;  %4981 = vmatpush.bf16.msra.mxu2 %v7267_v32  ;;  %v8459_v55 = vunpack.c.l.b16 %v2868_v57 }
 0x26c   :  { %vm2024_vm15 = vcmp.ge.f32.partialorder %v1475_v56, 0.0  ;;  %v2280_v29 = vmul.f32 0.2, %v1475_v56 }
 0x26e   :  { %v2536_v8 = vsel %vm2024_vm15, %v1475_v56, %v2280_v29  ;;  %v7145_v56 = vld [vmem:[%s10372_s1 + $0x138] sm:$0xff]  ;;  %v2613_v29 = vsel %vm2101_vm2, %v7668_v14, %v2357_v19  ;;  %v2429_v14 = vmul.f32 0.2, %v7752_v46  ;;  %vm2106_vm15 = vcmp.ge.f32.partialorder %v7756_v52, 0.0 }
 0x26f   :  { %v2792_v3 = vpack.c.bf16 %v2536_v8, %v2536_v8  ;;  %4982 = vmatpush.bf16.msra.mxu2 %v7266_v0  ;;  %v2869_v8 = vpack.c.bf16 %v2613_v29, %v2613_v29  ;;  %v2870_v0 = vpack.c.bf16 %v2614_v47, %v2614_v47 }
 0x271   :  { %v3160_v39 = vunpack.c.l.b16 %v2792_v3  ;;  %v8483_v28 = vunpack.c.l.b16 %v2869_v8  ;;  %v8485_v7 = vunpack.c.l.b16 %v2870_v0  ;;  %v2685_v8 = vsel %vm2173_vm6, %v7752_v46, %v2429_v14 }
 0x272   :  { %v8463_v17 = vpop.f32.mrf.mxu3  ;;  %v2941_v0 = vpack.c.bf16 %v2685_v8, %v2685_v8  ;;  %vm2133_vm6 = vcmp.ge.f32.partialorder %v7616_v42, 0.0 }
 0x273   :  { %v1478_v41 = vpop.f32.mrf.mxu0  ;;  %v3169_v37 = vpack.c.b16 %v3160_v39, %v3159_v4 }
 0x274   :  { %v2281_v57 = vmul.f32 0.2, %v1478_v41  ;;  %vm2025_vm4 = vcmp.ge.f32.partialorder %v1478_v41, 0.0 }
 0x275   :  { %4964 = vmatmul.bf16.gmra.mxu1 %v3169_v37 }
 0x276   :  { %6497 = vmatmul.msk.bf16.gmra.mxu0 %vm925_vm1, %v7145_v56  ;;  %v2537_v32 = vsel %vm2025_vm4, %v1478_v41, %v2281_v57  ;;  %v2359_v57 = vmul.f32 0.2, %v7702_v35  ;;  %vm2177_vm4 = vcmp.ge.f32.partialorder %v7845_v58, 0.0 }
 0x277   :  { %v2793_v51 = vpack.c.bf16 %v2537_v32, %v2537_v32 }
 0x279   :  { %v3161_v22 = vunpack.c.l.b16 %v2793_v51  ;;  %v2360_v51 = vmul.f32 0.2, %v7716_v49 }
 0x27a   :  { %v4906_v3 = vpop.f32.mrf.mxu3 }
 0x27b   :  { %v8481_v4 = vadd.f32 %v4906_v3, %v8269_v61  ;;  %v1480_v39 = vpop.f32.mrf.mxu0  ;;  %v7146_v61 = vld [vmem:[%s10372_s1 + $0x140] sm:$0xff]  ;;  %v2615_v3 = vsel %vm2103_vm7, %v7702_v35, %v2359_v57 }
 0x27c   :  { %vm2026_vm5 = vcmp.ge.f32.partialorder %v1480_v39, 0.0  ;;  %v2282_v37 = vmul.f32 0.2, %v1480_v39 }
 0x27e   :  { %v2538_v25 = vsel %vm2026_vm5, %v1480_v39, %v2282_v37  ;;  %v2616_v37 = vsel %vm2104_vm9, %v7716_v49, %v2360_v51  ;;  %vm2178_vm5 = vcmp.ge.f32.partialorder %v7865_v18, 0.0 }
 0x27f   :  { %v2794_v56 = vpack.c.bf16 %v2538_v25, %v2538_v25  ;;  %v2430_v25 = vmul.f32 0.2, %v7762_v5  ;;  %v2872_v53 = vpack.c.bf16 %v2616_v37, %v2616_v37  ;;  %v2361_v37 = vmul.f32 0.2, %v7734_v23 }
 0x281   :  { %v3162_v19 = vunpack.c.l.b16 %v2794_v56  ;;  %v2686_v39 = vsel %vm2174_vm8, %v7762_v5, %v2430_v25  ;;  %v2871_v56 = vpack.c.bf16 %v2615_v3, %v2615_v3  ;;  %v8518_v8 = vunpack.c.l.b16 %v2872_v53 }
 0x282   :  { %v8489_v41 = vpop.f32.mrf.mxu3  ;;  %vm2134_vm8 = vcmp.ge.f32.partialorder %v7630_v54, 0.0 }
 0x283   :  { %v1483_v29 = vpop.f32.mrf.mxu0  ;;  %v3170_v47 = vpack.c.b16 %v3162_v19, %v3161_v22  ;;  %v2942_v22 = vpack.c.bf16 %v2686_v39, %v2686_v39  ;;  %v8507_v19 = vpop.f32.mrf.mxu1  ;;  %v8514_v57 = vunpack.c.l.b16 %v2871_v56  ;;  %10639 = vst [vmem:[#allocation116_spill] sm:$0xff] %v8518_v8  ;;  %v2432_v56 = vmul.f32 0.2, %v7808_v40 }
 0x284   :  { %v2283_v32 = vmul.f32 0.2, %v1483_v29  ;;  %vm2027_vm10 = vcmp.ge.f32.partialorder %v1483_v29, 0.0  ;;  %10635 = vst [vmem:[#allocation112_spill] sm:$0xff] %v8507_v19 }
 0x285   :  { %4969 = vmatmul.bf16.gmra.mxu1 %v3170_v47  ;;  %10637 = vst [vmem:[#allocation114_spill] sm:$0xff] %v8514_v57  ;;  %v8516_v49 = vunpack.c.l.b16 %v2942_v22 }
 0x286   :  { %6498 = vmatmul.msk.bf16.gmra.mxu0 %vm925_vm1, %v7146_v61  ;;  %v2539_v16 = vsel %vm2027_vm10, %v1483_v29, %v2283_v32  ;;  %v8512_v61 = vunpack.c.l.b16 %v2941_v0  ;;  %v7147_v0 = vld [vmem:[%s10372_s1 + $0x148] sm:$0xff]  ;;  %vm2179_vm10 = vcmp.ge.f32.partialorder %v7897_v6, 0.0 }
 0x287   :  { %v2795_v5 = vpack.c.bf16 %v2539_v16, %v2539_v16  ;;  %10638 = vst [vmem:[#allocation115_spill] sm:$0xff] %v8516_v49 }
 0x288   :  { %10636 = vst [vmem:[#allocation113_spill] sm:$0xff] %v8512_v61 }
 0x289   :  { %v3195_v32 = vunpack.c.l.b16 %v2795_v5 }
 0x28a   :  { %v4911_v46 = vpop.f32.mrf.mxu3 }
 0x28b   :  { %v8510_v14 = vadd.f32 %v4911_v46, %v8300_v31  ;;  %v1485_v47 = vpop.f32.mrf.mxu0  ;;  %v2431_v31 = vmul.f32 0.2, %v7792_v48 }
 0x28c   :  { %vm2028_vm11 = vcmp.ge.f32.partialorder %v1485_v47, 0.0  ;;  %v2284_v35 = vmul.f32 0.2, %v1485_v47 }
 0x28d   :  { %v2687_v5 = vsel %vm2175_vm12, %v7792_v48, %v2431_v31  ;;  %vm2180_vm12 = vcmp.ge.f32.partialorder %v7911_v34, 0.0 }
 0x28e   :  { %v2540_v25 = vsel %vm2028_vm11, %v1485_v47, %v2284_v35  ;;  %v2362_v35 = vmul.f32 0.2, %v7756_v52  ;;  %vm2109_vm11 = vcmp.ge.f32.partialorder %v7822_v45, 0.0 }
 0x28f   :  { %v2796_v51 = vpack.c.bf16 %v2540_v25, %v2540_v25 }
 0x291   :  { %v3196_v3 = vunpack.c.l.b16 %v2796_v51  ;;  %v2617_v51 = vsel %vm2105_vm13, %v7734_v23, %v2361_v37  ;;  %vm2135_vm13 = vcmp.ge.f32.partialorder %v7650_v63, 0.0 }
 0x292   :  { %v8524_v39 = vpop.f32.mrf.mxu3  ;;  %v4935_v16 = vpop.f32.mrf.mxu1 }
 0x293   :  { %10640 = vst [vmem:[#allocation117_spill] sm:$0xff] %v8524_v39  ;;  %v3211_v22 = vpack.c.b16 %v3196_v3, %v3195_v32  ;;  %v8534_v46 = vadd.f32 %v4935_v16, %v8355_v2  ;;  %v1488_v47 = vpop.f32.mrf.mxu0  ;;  %v2688_v2 = vsel %vm2176_vm14, %v7808_v40, %v2432_v56  ;;  %v2943_v32 = vpack.c.bf16 %v2687_v5, %v2687_v5 }
 0x294   :  { %v2285_v25 = vmul.f32 0.2, %v1488_v47  ;;  %vm2029_vm2 = vcmp.ge.f32.partialorder %v1488_v47, 0.0  ;;  %v2618_v3 = vsel %vm2106_vm15, %v7756_v52, %v2362_v35  ;;  %v2873_v16 = vpack.c.bf16 %v2617_v51, %v2617_v51 }
 0x295   :  { %4983 = vmatmul.bf16.vlgmr.msra.gmra.mxu2 %v3211_v22  ;;  %v2944_v29 = vpack.c.bf16 %v2688_v2, %v2688_v2  ;;  %v2874_v22 = vpack.c.bf16 %v2618_v3, %v2618_v3  ;;  %vm2110_vm14 = vcmp.ge.f32.partialorder %v7852_v9, 0.0 }
 0x296   :  { %6499 = vmatmul.msk.bf16.gmra.mxu0 %vm925_vm1, %v7147_v0  ;;  %v2541_v53 = vsel %vm2029_vm2, %v1488_v47, %v2285_v25  ;;  %v8550_v0 = vunpack.c.l.b16 %v2943_v32  ;;  %v8552_v37 = vunpack.c.l.b16 %v2873_v16  ;;  %v2434_v32 = vmul.f32 0.2, %v7865_v18 }
 0x297   :  { %v2797_v40 = vpack.c.bf16 %v2541_v53, %v2541_v53  ;;  %v8554_v52 = vunpack.c.l.b16 %v2944_v29  ;;  %v8556_v47 = vunpack.c.l.b16 %v2874_v22  ;;  %v7148_v29 = vld [vmem:[%s10372_s1 + $0x150] sm:$0xff]  ;;  %v2389_v22 = vmul.f32 0.2, %v7616_v42 }
 0x298   :  { %10641 = vst [vmem:[#allocation118_spill] sm:$0xff] %v8550_v0  ;;  %vm2136_vm2 = vcmp.ge.f32.partialorder %v7664_v11, 0.0 }
 0x299   :  { %10642 = vst [vmem:[#allocation119_spill] sm:$0xff] %v8552_v37 }
 0x29a   :  { %v4916_v61 = vpop.f32.mrf.mxu3  ;;  %v8545_v49 = vpop.f32.mrf.mxu1  ;;  %10643 = vst [vmem:[#allocation120_spill] sm:$0xff] %v8554_v52 }
 0x29b   :  { %v8548_v48 = vadd.f32 %v4916_v61, %v8315_v26  ;;  %v1490_v31 = vpop.f32.mrf.mxu0  ;;  %10644 = vst [vmem:[#allocation121_spill] sm:$0xff] %v8556_v47  ;;  %v2433_v26 = vmul.f32 0.2, %v7845_v58  ;;  %v3197_v61 = vunpack.c.l.b16 %v2797_v40 }
 0x29c   :  { %vm2030_vm3 = vcmp.ge.f32.partialorder %v1490_v31, 0.0  ;;  %v2286_v23 = vmul.f32 0.2, %v1490_v31 }
 0x29e   :  { %v2542_v56 = vsel %vm2030_vm3, %v1490_v31, %v2286_v23  ;;  %v2689_v23 = vsel %vm2177_vm4, %v7845_v58, %v2433_v26  ;;  %vm2181_vm4 = vcmp.ge.f32.partialorder %v7936_v30, 0.0 }
 0x29f   :  { %v2798_v35 = vpack.c.bf16 %v2542_v56, %v2542_v56  ;;  %v2390_v56 = vmul.f32 0.2, %v7630_v54 }
 0x2a1   :  { %v3198_v25 = vunpack.c.l.b16 %v2798_v35  ;;  %v2690_v35 = vsel %vm2178_vm5, %v7865_v18, %v2434_v32  ;;  %v2646_v26 = vsel %vm2134_vm8, %v7630_v54, %v2390_v56  ;;  %vm2111_vm5 = vcmp.ge.f32.partialorder %v7880_v21, 0.0 }
 0x2a2   :  { %v8562_v51 = vpop.f32.mrf.mxu3  ;;  %v4940_v53 = vpop.f32.mrf.mxu1 }
 0x2a3   :  { %10645 = vst [vmem:[#allocation122_spill] sm:$0xff] %v8562_v51  ;;  %v8571_v3 = vadd.f32 %v4940_v53, %v8370_v59  ;;  %v1493_v16 = vpop.f32.mrf.mxu0  ;;  %v3212_v31 = vpack.c.b16 %v3198_v25, %v3197_v61  ;;  %v2945_v59 = vpack.c.bf16 %v2689_v23, %v2689_v23  ;;  %v2645_v61 = vsel %vm2133_vm6, %v7616_v42, %v2389_v22 }
 0x2a4   :  { %v2287_v40 = vmul.f32 0.2, %v1493_v16  ;;  %vm2031_vm7 = vcmp.ge.f32.partialorder %v1493_v16, 0.0  ;;  %v2946_v25 = vpack.c.bf16 %v2690_v35, %v2690_v35  ;;  %v2901_v2 = vpack.c.bf16 %v2645_v61, %v2645_v61  ;;  %v7149_v35 = vld [vmem:[%s10372_s1 + $0x158] sm:$0xff] }
 0x2a5   :  { %4988 = vmatmul.bf16.gmra.mxu2 %v3212_v31  ;;  %v8588_v0 = vunpack.c.l.b16 %v2945_v59  ;;  %v2902_v23 = vpack.c.bf16 %v2646_v26, %v2646_v26  ;;  %v2391_v26 = vmul.f32 0.2, %v7650_v63 }
 0x2a6   :  { %6500 = vmatmul.msk.bf16.gmra.mxu0 %vm925_vm1, %v7148_v29  ;;  %v2543_v53 = vsel %vm2031_vm7, %v1493_v16, %v2287_v40  ;;  %v8590_v42 = vunpack.c.l.b16 %v2946_v25  ;;  %v8592_v22 = vunpack.c.l.b16 %v2901_v2  ;;  %v2436_v2 = vmul.f32 0.2, %v7911_v34 }
 0x2a7   :  { %10646 = vst [vmem:[#allocation123_spill] sm:$0xff] %v8588_v0  ;;  %v2799_v32 = vpack.c.bf16 %v2543_v53, %v2543_v53  ;;  %v8601_v59 = vunpack.c.l.b16 %v2902_v23  ;;  %v2392_v23 = vmul.f32 0.2, %v7664_v11 }
 0x2a8   :  { %10647 = vst [vmem:[#allocation124_spill] sm:$0xff] %v8590_v42 }
 0x2a9   :  { %10648 = vst [vmem:[#allocation125_spill] sm:$0xff] %v8592_v22  ;;  %v2648_v0 = vsel %vm2136_vm2, %v7664_v11, %v2392_v23  ;;  %v2437_v23 = vmul.f32 0.2, %v7936_v30 }
 0x2aa   :  { %v4921_v5 = vpop.f32.mrf.mxu3  ;;  %v8582_v58 = vpop.f32.mrf.mxu1  ;;  %10649 = vst [vmem:[#allocation126_spill] sm:$0xff] %v8601_v59 }
 0x2ab   :  { %v8586_v31 = vadd.f32 %v4921_v5, %v8332_v36  ;;  %v1495_v29 = vpop.f32.mrf.mxu0  ;;  %v2435_v36 = vmul.f32 0.2, %v7897_v6  ;;  %v3199_v5 = vunpack.c.l.b16 %v2799_v32 }
 0x2ac   :  { %vm2032_vm9 = vcmp.ge.f32.partialorder %v1495_v29, 0.0  ;;  %v2288_v18 = vmul.f32 0.2, %v1495_v29 }
 0x2ad   :  { %v2691_v32 = vsel %vm2179_vm10, %v7897_v6, %v2435_v36 }
 0x2ae   :  { %v2544_v52 = vsel %vm2032_vm9, %v1495_v29, %v2288_v18  ;;  %v2366_v18 = vmul.f32 0.2, %v7852_v9 }
 0x2af   :  { %v2800_v16 = vpack.c.bf16 %v2544_v52, %v2544_v52  ;;  %v2365_v52 = vmul.f32 0.2, %v7822_v45 }
 0x2b0   :  { %v2622_v6 = vsel %vm2110_vm14, %v7852_v9, %v2366_v18 }
 0x2b1   :  { %v3200_v40 = vunpack.c.l.b16 %v2800_v16  ;;  %v2621_v16 = vsel %vm2109_vm11, %v7822_v45, %v2365_v52  ;;  %v2878_v45 = vpack.c.bf16 %v2622_v6, %v2622_v6  ;;  %v10654_v6 = vld [vmem:[#allocation23_spill] sm:$0xff] }
 0x2b2   :  { %v4945_v56 = vpop.f32.mrf.mxu1  ;;  %v2877_v36 = vpack.c.bf16 %v2621_v16, %v2621_v16  ;;  %vm2182_vm6 = vcmp.ge.f32.partialorder %v10654_v6, 0.0  ;;  %v9024_v33 = vpop.f32.mrf.mxu3 }
 0x2b3   :  { %v8606_v61 = vadd.f32 %v4945_v56, %v8403_v12  ;;  %v1498_v25 = vpop.f32.mrf.mxu0  ;;  %v3213_v53 = vpack.c.b16 %v3200_v40, %v3199_v5  ;;  %v2692_v5 = vsel %vm2180_vm12, %v7911_v34, %v2436_v2  ;;  %v2647_v40 = vsel %vm2135_vm13, %v7650_v63, %v2391_v26 }
 0x2b4   :  { %v2289_v12 = vmul.f32 0.2, %v1498_v25  ;;  %vm2033_vm15 = vcmp.ge.f32.partialorder %v1498_v25, 0.0  ;;  %v2947_v56 = vpack.c.bf16 %v2691_v32, %v2691_v32  ;;  %v2904_v2 = vpack.c.bf16 %v2648_v0, %v2648_v0 }
 0x2b5   :  { %4993 = vmatmul.bf16.gmra.mxu2 %v3213_v53  ;;  %v2948_v53 = vpack.c.bf16 %v2692_v5, %v2692_v5  ;;  %v8629_v26 = vunpack.c.l.b16 %v2877_v36  ;;  %v2438_v36 = vmul.f32 0.2, %v10654_v6  ;;  %vm2183_vm12 = vcmp.ge.f32.partialorder %v7960_v24, 0.0 }
 0x2b6   :  { %6501 = vmatmul.msk.bf16.gmra.mxu0 %vm925_vm1, %v7149_v35  ;;  %v2545_v54 = vsel %vm2033_vm15, %v1498_v25, %v2289_v12  ;;  %v2903_v35 = vpack.c.bf16 %v2647_v40, %v2647_v40  ;;  %v8627_v52 = vunpack.c.l.b16 %v2947_v56  ;;  %v8635_v12 = vunpack.c.l.b16 %v2878_v45 }
 0x2b7   :  { %v2801_v63 = vpack.c.bf16 %v2545_v54, %v2545_v54  ;;  %v8631_v9 = vunpack.c.l.b16 %v2948_v53  ;;  %v8646_v40 = vunpack.c.l.b16 %v2904_v2  ;;  %v2367_v56 = vmul.f32 0.2, %v7880_v21  ;;  %v10656_v2 = vld [vmem:[#allocation18_spill] sm:$0xff] }
 0x2b8   :  { %10650 = vst [vmem:[#allocation127_spill] sm:$0xff] %v8627_v52  ;;  %v8633_v25 = vunpack.c.l.b16 %v2903_v35  ;;  %vm2112_vm8 = vcmp.ge.f32.partialorder %v10656_v2, 0.0 }
 0x2b9   :  { %10651 = vst [vmem:[#allocation128_spill] sm:$0xff] %v8631_v9  ;;  %v3201_v16 = vunpack.c.l.b16 %v2801_v63  ;;  %v2623_v11 = vsel %vm2111_vm5, %v7880_v21, %v2367_v56 }
 0x2ba   :  { %v8624_v29 = vpop.f32.mrf.mxu1  ;;  %10652 = vst [vmem:[#allocation129_spill] sm:$0xff] %v8633_v25 }
 0x2bb   :  { %v1500_v42 = vpop.f32.mrf.mxu0  ;;  %10653 = vst [vmem:[#allocation130_spill] sm:$0xff] %v8646_v40 }
 0x2bc   :  { %vm2034_vm3 = vcmp.ge.f32.partialorder %v1500_v42, 0.0  ;;  %v2290_v34 = vmul.f32 0.2, %v1500_v42 }
 0x2be   :  { %v2546_v32 = vsel %vm2034_vm3, %v1500_v42, %v2290_v34  ;;  %v7150_v42 = vld [vmem:[%s10372_s1 + $0x160] sm:$0xff] }
 0x2bf   :  { %v2802_v18 = vpack.c.bf16 %v2546_v32, %v2546_v32  ;;  %v10655_v34 = vld [vmem:[#allocation3_spill] sm:$0xff]  ;;  %v2694_v32 = vsel %vm2182_vm6, %v10654_v6, %v2438_v36 }
 0x2c0   :  { %v2393_v63 = vmul.f32 0.2, %v10655_v34  ;;  %vm2137_vm7 = vcmp.ge.f32.partialorder %v10655_v34, 0.0 }
 0x2c1   :  { %v3202_v5 = vunpack.c.l.b16 %v2802_v18  ;;  %v2368_v18 = vmul.f32 0.2, %v10656_v2 }
 0x2c2   :  { %v4950_v0 = vpop.f32.mrf.mxu1  ;;  %v2649_v54 = vsel %vm2137_vm7, %v10655_v34, %v2393_v63 }
 0x2c3   :  { %v8651_v53 = vadd.f32 %v4950_v0, %v8448_v62  ;;  %v1503_v35 = vpop.f32.mrf.mxu0  ;;  %v3214_v45 = vpack.c.b16 %v3202_v5, %v3201_v16  ;;  %v2693_v62 = vsel %vm2181_vm4, %v7936_v30, %v2437_v23  ;;  %v10657_v5 = vld [vmem:[#allocation4_spill] sm:$0xff]  ;;  %v2624_v30 = vsel %vm2112_vm8, %v10656_v2, %v2368_v18 }
 0x2c4   :  { %v2291_v16 = vmul.f32 0.2, %v1503_v35  ;;  %v2394_v0 = vmul.f32 0.2, %v10657_v5  ;;  %vm2035_vm9 = vcmp.ge.f32.partialorder %v1503_v35, 0.0  ;;  %vm2138_vm10 = vcmp.ge.f32.partialorder %v10657_v5, 0.0 }
 0x2c5   :  { %4998 = vmatmul.bf16.gmra.mxu2 %v3214_v45  ;;  %v2949_v52 = vpack.c.bf16 %v2693_v62, %v2693_v62  ;;  %v2879_v23 = vpack.c.bf16 %v2623_v11, %v2623_v11  ;;  %v2950_v45 = vpack.c.bf16 %v2694_v32, %v2694_v32  ;;  %v2880_v21 = vpack.c.bf16 %v2624_v30, %v2624_v30 }
 0x2c6   :  { %6502 = vmatmul.msk.bf16.gmra.mxu0 %vm925_vm1, %v7150_v42  ;;  %v2547_v9 = vsel %vm2035_vm9, %v1503_v35, %v2291_v16  ;;  %v2905_v42 = vpack.c.bf16 %v2649_v54, %v2649_v54  ;;  %v2650_v37 = vsel %vm2138_vm10, %v10657_v5, %v2394_v0  ;;  %v10662_v0 = vld [vmem:[#allocation20_spill] sm:$0xff] }
 0x2c7   :  { %v8674_v56 = vunpack.c.l.b16 %v2949_v52  ;;  %v2803_v36 = vpack.c.bf16 %v2547_v9, %v2547_v9  ;;  %v2906_v34 = vpack.c.bf16 %v2650_v37, %v2650_v37  ;;  %v8676_v63 = vunpack.c.l.b16 %v2879_v23  ;;  %v10663_v23 = vld [vmem:[#allocation28_spill] sm:$0xff] }
 0x2c8   :  { %v8678_v2 = vunpack.c.l.b16 %v2950_v45  ;;  %v8680_v35 = vunpack.c.l.b16 %v2905_v42  ;;  %v8682_v32 = vunpack.c.l.b16 %v2880_v21  ;;  %v2439_v52 = vmul.f32 0.2, %v7960_v24 }
 0x2c9   :  { %10658 = vst [vmem:[#allocation23_spill] sm:$0xff] %v8674_v56  ;;  %v3203_v18 = vunpack.c.l.b16 %v2803_v36  ;;  %v8693_v5 = vunpack.c.l.b16 %v2906_v34  ;;  %v2369_v30 = vmul.f32 0.2, %v10662_v0  ;;  %v2440_v45 = vmul.f32 0.2, %v10663_v23 }
 0x2ca   :  { %v8671_v60 = vpop.f32.mrf.mxu1  ;;  %10659 = vst [vmem:[#allocation3_spill] sm:$0xff] %v8678_v2  ;;  %vm2113_vm13 = vcmp.ge.f32.partialorder %v10662_v0, 0.0  ;;  %vm2184_vm14 = vcmp.ge.f32.partialorder %v10663_v23, 0.0  ;;  %v2695_v34 = vsel %vm2183_vm12, %v7960_v24, %v2439_v52 }
 0x2cb   :  { %v1505_v47 = vpop.f32.mrf.mxu0  ;;  %10660 = vst [vmem:[#allocation18_spill] sm:$0xff] %v8680_v35 }
 0x2cc   :  { %vm2036_vm11 = vcmp.ge.f32.partialorder %v1505_v47, 0.0  ;;  %v2292_v6 = vmul.f32 0.2, %v1505_v47  ;;  %10661 = vst [vmem:[#allocation4_spill] sm:$0xff] %v8693_v5 }
 0x2ce   :  { %v2548_v62 = vsel %vm2036_vm11, %v1505_v47, %v2292_v6  ;;  %v7151_v47 = vld [vmem:[%s10372_s1 + $0x168] sm:$0xff] }
 0x2cf   :  { %v2804_v11 = vpack.c.bf16 %v2548_v62, %v2548_v62  ;;  %v10664_v62 = vld [vmem:[#allocation22_spill] sm:$0xff] }
 0x2d0   :  { %vm2114_vm15 = vcmp.ge.f32.partialorder %v10664_v62, 0.0 }
 0x2d1   :  { %v3204_v16 = vunpack.c.l.b16 %v2804_v11  ;;  %v2370_v11 = vmul.f32 0.2, %v10664_v62 }
 0x2d2   :  { %v4955_v37 = vpop.f32.mrf.mxu1 }
 0x2d3   :  { %v8698_v42 = vadd.f32 %v4955_v37, %v8481_v4  ;;  %v1508_v21 = vpop.f32.mrf.mxu0  ;;  %v3215_v6 = vpack.c.b16 %v3204_v16, %v3203_v18  ;;  %v7281_v4 = vld [vmem:[%s10373_s3 + $0x178] sm:$0xff]  ;;  %v2625_v18 = vsel %vm2113_vm13, %v10662_v0, %v2369_v30  ;;  %v2696_v16 = vsel %vm2184_vm14, %v10663_v23, %v2440_v45 }
 0x2d4   :  { %v2293_v54 = vmul.f32 0.2, %v1508_v21  ;;  %vm2037_vm2 = vcmp.ge.f32.partialorder %v1508_v21, 0.0  ;;  %v2951_v37 = vpack.c.bf16 %v2695_v34, %v2695_v34  ;;  %5024 = vmatpush.bf16.msra.mxu3 %v7281_v4  ;;  %v2626_v36 = vsel %vm2114_vm15, %v10664_v62, %v2370_v11  ;;  %v10667_v34 = vld [vmem:[#allocation31_spill] sm:$0xff] }
 0x2d5   :  { %5003 = vmatmul.bf16.gmra.mxu2 %v3215_v6  ;;  %v2881_v24 = vpack.c.bf16 %v2625_v18, %v2625_v18  ;;  %v2952_v52 = vpack.c.bf16 %v2696_v16, %v2696_v16  ;;  %v2882_v2 = vpack.c.bf16 %v2626_v36, %v2626_v36  ;;  %v2441_v4 = vmul.f32 0.2, %v10667_v34 }
 0x2d6   :  { %6503 = vmatmul.msk.bf16.gmra.mxu0 %vm925_vm1, %v7151_v47  ;;  %v2549_v6 = vsel %vm2037_vm2, %v1508_v21, %v2293_v54  ;;  %v7280_v47 = vld [vmem:[%s10373_s3 + $0x170] sm:$0xff]  ;;  %v8719_v35 = vunpack.c.l.b16 %v2951_v37  ;;  %v7279_v54 = vld [vmem:[%s10373_s3 + $0x168] sm:$0xff]  ;;  %vm2185_vm4 = vcmp.ge.f32.partialorder %v10667_v34, 0.0 }
 0x2d7   :  { %v2805_v30 = vpack.c.bf16 %v2549_v6, %v2549_v6  ;;  %v8721_v23 = vunpack.c.l.b16 %v2881_v24  ;;  %v8726_v21 = vunpack.c.l.b16 %v2952_v52  ;;  %v8728_v11 = vunpack.c.l.b16 %v2882_v2  ;;  %v7152_v37 = vld [vmem:[%s10372_s1 + $0x170] sm:$0xff]  ;;  %v7278_v24 = vld [vmem:[%s10373_s3 + $0x160] sm:$0xff] }
 0x2d8   :  { %10665 = vst [vmem:[#allocation20_spill] sm:$0xff] %v8719_v35  ;;  %5025 = vmatpush.bf16.msra.mxu3 %v7280_v47  ;;  %v10668_v52 = vld [vmem:[#allocation25_spill] sm:$0xff]  ;;  %v10669_v47 = vld [vmem:[#allocation34_spill] sm:$0xff]  ;;  %v2697_v35 = vsel %vm2185_vm4, %v10667_v34, %v2441_v4 }
 0x2d9   :  { %10666 = vst [vmem:[#allocation28_spill] sm:$0xff] %v8726_v21  ;;  %v3205_v18 = vunpack.c.l.b16 %v2805_v30  ;;  %v2371_v6 = vmul.f32 0.2, %v10668_v52  ;;  %vm2115_vm5 = vcmp.ge.f32.partialorder %v10668_v52, 0.0  ;;  %vm2186_vm6 = vcmp.ge.f32.partialorder %v10669_v47, 0.0 }
 0x2da   :  { %v8714_v9 = vpop.f32.mrf.mxu1 }
 0x2db   :  { %v1510_v56 = vpop.f32.mrf.mxu0 }
 0x2dc   :  { %vm2038_vm3 = vcmp.ge.f32.partialorder %v1510_v56, 0.0  ;;  %v2294_v0 = vmul.f32 0.2, %v1510_v56  ;;  %5026 = vmatpush.bf16.msra.mxu3 %v7279_v54 }
 0x2de   :  { %v2550_v45 = vsel %vm2038_vm3, %v1510_v56, %v2294_v0  ;;  %v2442_v0 = vmul.f32 0.2, %v10669_v47 }
 0x2df   :  { %v2806_v62 = vpack.c.bf16 %v2550_v45, %v2550_v45 }
 0x2e0   :  { %5027 = vmatpush.bf16.msra.mxu3 %v7278_v24 }
 0x2e1   :  { %v3206_v16 = vunpack.c.l.b16 %v2806_v62  ;;  %v10670_v62 = vld [vmem:[#allocation27_spill] sm:$0xff] }
 0x2e2   :  { %v4960_v56 = vpop.f32.mrf.mxu1  ;;  %v2372_v36 = vmul.f32 0.2, %v10670_v62  ;;  %vm2116_vm7 = vcmp.ge.f32.partialorder %v10670_v62, 0.0 }
 0x2e3   :  { %v8745_v30 = vadd.f32 %v4960_v56, %v8510_v14  ;;  %v1513_v45 = vpop.f32.mrf.mxu0  ;;  %v3216_v54 = vpack.c.b16 %v3206_v16, %v3205_v18  ;;  %v7277_v14 = vld [vmem:[%s10373_s3 + $0x158] sm:$0xff]  ;;  %v2627_v18 = vsel %vm2115_vm5, %v10668_v52, %v2371_v6  ;;  %v2698_v16 = vsel %vm2186_vm6, %v10669_v47, %v2442_v0 }
 0x2e4   :  { %v2295_v2 = vmul.f32 0.2, %v1513_v45  ;;  %vm2039_vm8 = vcmp.ge.f32.partialorder %v1513_v45, 0.0  ;;  %v2953_v56 = vpack.c.bf16 %v2697_v35, %v2697_v35  ;;  %5028 = vmatpush.bf16.msra.mxu3 %v7277_v14  ;;  %v2628_v24 = vsel %vm2116_vm7, %v10670_v62, %v2372_v36 }
 0x2e5   :  { %5008 = vmatmul.bf16.gmra.mxu2 %v3216_v54  ;;  %v2883_v34 = vpack.c.bf16 %v2627_v18, %v2627_v18  ;;  %v2954_v4 = vpack.c.bf16 %v2698_v16, %v2698_v16  ;;  %v2884_v19 = vpack.c.bf16 %v2628_v24, %v2628_v24 }
 0x2e6   :  { %6504 = vmatmul.msk.bf16.gmra.mxu0 %vm925_vm1, %v7152_v37  ;;  %v2551_v54 = vsel %vm2039_vm8, %v1513_v45, %v2295_v2  ;;  %v7276_v37 = vld [vmem:[%s10373_s3 + $0x150] sm:$0xff]  ;;  %v8764_v51 = vunpack.c.l.b16 %v2953_v56  ;;  %v7275_v2 = vld [vmem:[%s10373_s3 + $0x148] sm:$0xff]  ;;  %v7274_v56 = vld [vmem:[%s10373_s3 + $0x140] sm:$0xff] }
 0x2e7   :  { %v2807_v35 = vpack.c.bf16 %v2551_v54, %v2551_v54  ;;  %v8766_v6 = vunpack.c.l.b16 %v2883_v34  ;;  %v8771_v47 = vunpack.c.l.b16 %v2954_v4  ;;  %v8773_v45 = vunpack.c.l.b16 %v2884_v19  ;;  %v10674_v34 = vld [vmem:[#allocation30_spill] sm:$0xff] }
 0x2e8   :  { %10672 = vst [vmem:[#allocation31_spill] sm:$0xff] %v8764_v51  ;;  %5029 = vmatpush.bf16.msra.mxu3 %v7276_v37  ;;  %v2373_v19 = vmul.f32 0.2, %v10674_v34  ;;  %vm2117_vm10 = vcmp.ge.f32.partialorder %v10674_v34, 0.0 }
 0x2e9   :  { %10673 = vst [vmem:[#allocation25_spill] sm:$0xff] %v8771_v47  ;;  %v3207_v14 = vunpack.c.l.b16 %v2807_v35 }
 0x2ea   :  { %v8759_v21 = vpop.f32.mrf.mxu1 }
 0x2eb   :  { %10671 = vst [vmem:[#allocation22_spill] sm:$0xff] %v8759_v21  ;;  %v1515_v5 = vpop.f32.mrf.mxu0 }
 0x2ec   :  { %vm2040_vm9 = vcmp.ge.f32.partialorder %v1515_v5, 0.0  ;;  %v2296_v52 = vmul.f32 0.2, %v1515_v5  ;;  %5030 = vmatpush.bf16.msra.mxu3 %v7275_v2  ;;  %v2629_v2 = vsel %vm2117_vm10, %v10674_v34, %v2373_v19 }
 0x2ee   :  { %v2552_v36 = vsel %vm2040_vm9, %v1515_v5, %v2296_v52  ;;  %v7153_v5 = vld [vmem:[%s10372_s1 + $0x178] sm:$0xff]  ;;  %v10675_v52 = vld [vmem:[#allocation33_spill] sm:$0xff] }
 0x2ef   :  { %v2808_v0 = vpack.c.bf16 %v2552_v36, %v2552_v36  ;;  %v2374_v35 = vmul.f32 0.2, %v10675_v52  ;;  %vm2118_vm11 = vcmp.ge.f32.partialorder %v10675_v52, 0.0 }
 0x2f0   :  { %5031 = vmatpush.bf16.msra.mxu3 %v7274_v56 }
 0x2f1   :  { %v3208_v18 = vunpack.c.l.b16 %v2808_v0  ;;  %v2630_v0 = vsel %vm2118_vm11, %v10675_v52, %v2374_v35  ;;  %v7154_v52 = vld [vmem:[%s10372_s1 + $0x180] sm:$0xff] }
 0x2f2   :  { %v4965_v16 = vpop.f32.mrf.mxu1 }
 0x2f3   :  { %v8787_v4 = vadd.f32 %v4965_v16, %v8548_v48  ;;  %v1518_v54 = vpop.f32.mrf.mxu0  ;;  %v3217_v37 = vpack.c.b16 %v3208_v18, %v3207_v14  ;;  %v2885_v48 = vpack.c.bf16 %v2629_v2, %v2629_v2  ;;  %v2886_v18 = vpack.c.bf16 %v2630_v0, %v2630_v0  ;;  %v10679_v0 = vld [vmem:[#allocation46_spill] sm:$0xff] }
 0x2f4   :  { %v2297_v36 = vmul.f32 0.2, %v1518_v54  ;;  %vm2041_vm12 = vcmp.ge.f32.partialorder %v1518_v54, 0.0  ;;  %vm2190_vm2 = vcmp.ge.f32.partialorder %v10679_v0, 0.0 }
 0x2f5   :  { %5013 = vmatmul.bf16.gmra.mxu2 %v3217_v37  ;;  %v8797_v37 = vunpack.c.l.b16 %v2885_v48  ;;  %v8799_v50 = vunpack.c.l.b16 %v2886_v18 }
 0x2f6   :  { %6505 = vmatmul.msk.bf16.gmra.mxu0 %vm925_vm1, %v7153_v5  ;;  %v2553_v16 = vsel %vm2041_vm12, %v1518_v54, %v2297_v36  ;;  %v10677_v5 = vld [vmem:[#allocation43_spill] sm:$0xff]  ;;  %v10678_v36 = vld [vmem:[#allocation36_spill] sm:$0xff] }
 0x2f7   :  { %v2809_v24 = vpack.c.bf16 %v2553_v16, %v2553_v16  ;;  %v2445_v34 = vmul.f32 0.2, %v10677_v5  ;;  %vm2189_vm14 = vcmp.ge.f32.partialorder %v10677_v5, 0.0  ;;  %v2375_v2 = vmul.f32 0.2, %v10678_v36 }
 0x2f8   :  { %vm2119_vm15 = vcmp.ge.f32.partialorder %v10678_v36, 0.0 }
 0x2f9   :  { %v3209_v19 = vunpack.c.l.b16 %v2809_v24  ;;  %v2701_v18 = vsel %vm2189_vm14, %v10677_v5, %v2445_v34  ;;  %v2631_v35 = vsel %vm2119_vm15, %v10678_v36, %v2375_v2 }
 0x2fa   :  { %v8795_v62 = vpop.f32.mrf.mxu1 }
 0x2fb   :  { %10676 = vst [vmem:[#allocation34_spill] sm:$0xff] %v8795_v62  ;;  %v1520_v14 = vpop.f32.mrf.mxu0 }
 0x2fc   :  { %vm2042_vm13 = vcmp.ge.f32.partialorder %v1520_v14, 0.0  ;;  %v2298_v56 = vmul.f32 0.2, %v1520_v14 }
 0x2fe   :  { %v2554_v51 = vsel %vm2042_vm13, %v1520_v14, %v2298_v56 }
 0x2ff   :  { %v2810_v47 = vpack.c.bf16 %v2554_v51, %v2554_v51  ;;  %v2446_v51 = vmul.f32 0.2, %v10679_v0 }
 0x301   :  { %v3210_v43 = vunpack.c.l.b16 %v2810_v47  ;;  %v10680_v47 = vld [vmem:[#allocation38_spill] sm:$0xff] }
 0x302   :  { %v4970_v54 = vpop.f32.mrf.mxu1  ;;  %v2376_v14 = vmul.f32 0.2, %v10680_v47  ;;  %vm2120_vm3 = vcmp.ge.f32.partialorder %v10680_v47, 0.0 }
 0x303   :  { %v8811_v48 = vadd.f32 %v4970_v54, %v8586_v31  ;;  %v1523_v16 = vpop.f32.mrf.mxu0  ;;  %v3218_v24 = vpack.c.b16 %v3210_v43, %v3209_v19  ;;  %v2702_v31 = vsel %vm2190_vm2, %v10679_v0, %v2446_v51  ;;  %v2957_v43 = vpack.c.bf16 %v2701_v18, %v2701_v18  ;;  %v8828_v0 = vpop.f32.mrf.mxu2 }
 0x304   :  { %v2299_v56 = vmul.f32 0.2, %v1523_v16  ;;  %vm2043_vm4 = vcmp.ge.f32.partialorder %v1523_v16, 0.0  ;;  %v2632_v19 = vsel %vm2120_vm3, %v10680_v47, %v2376_v14  ;;  %v2887_v54 = vpack.c.bf16 %v2631_v35, %v2631_v35  ;;  %10683 = vst [vmem:[#allocation33_spill] sm:$0xff] %v8828_v0 }
 0x305   :  { %5018 = vmatmul.bf16.gmra.mxu2 %v3218_v24  ;;  %v2958_v62 = vpack.c.bf16 %v2702_v31, %v2702_v31  ;;  %v2888_v57 = vpack.c.bf16 %v2632_v19, %v2632_v19  ;;  %v8822_v5 = vunpack.c.l.b16 %v2957_v43 }
 0x306   :  { %6506 = vmatmul.msk.bf16.gmra.mxu0 %vm925_vm1, %v7154_v52  ;;  %v2555_v25 = vsel %vm2043_vm4, %v1523_v16, %v2299_v56  ;;  %v8824_v8 = vunpack.c.l.b16 %v2887_v54  ;;  %v10684_v16 = vld [vmem:[#allocation48_spill] sm:$0xff]  ;;  %v10687_v54 = vld [vmem:[#allocation45_spill] sm:$0xff] }
 0x307   :  { %10681 = vst [vmem:[#allocation27_spill] sm:$0xff] %v8822_v5  ;;  %v2811_v24 = vpack.c.bf16 %v2555_v25, %v2555_v25  ;;  %v8826_v36 = vunpack.c.l.b16 %v2958_v62  ;;  %v8830_v51 = vunpack.c.l.b16 %v2888_v57  ;;  %v2447_v47 = vmul.f32 0.2, %v10684_v16  ;;  %v7155_v25 = vld [vmem:[%s10372_s1 + $0x188] sm:$0xff] }
 0x308   :  { %vm2191_vm6 = vcmp.ge.f32.partialorder %v10684_v16, 0.0  ;;  %v10685_v62 = vld [vmem:[#allocation40_spill] sm:$0xff]  ;;  %vm2122_vm9 = vcmp.ge.f32.partialorder %v10687_v54, 0.0 }
 0x309   :  { %10682 = vst [vmem:[#allocation30_spill] sm:$0xff] %v8826_v36  ;;  %v3243_v14 = vunpack.c.l.b16 %v2811_v24  ;;  %v2377_v56 = vmul.f32 0.2, %v10685_v62  ;;  %v10686_v57 = vld [vmem:[#allocation52_spill] sm:$0xff]  ;;  %vm2121_vm7 = vcmp.ge.f32.partialorder %v10685_v62, 0.0  ;;  %v2703_v24 = vsel %vm2191_vm6, %v10684_v16, %v2447_v47 }
 0x30a   :  { %v2448_v31 = vmul.f32 0.2, %v10686_v57  ;;  %vm2192_vm8 = vcmp.ge.f32.partialorder %v10686_v57, 0.0 }
 0x30b   :  { %v1525_v40 = vpop.f32.mrf.mxu0 }
 0x30c   :  { %vm2044_vm5 = vcmp.ge.f32.partialorder %v1525_v40, 0.0  ;;  %v2300_v34 = vmul.f32 0.2, %v1525_v40  ;;  %v2704_v35 = vsel %vm2192_vm8, %v10686_v57, %v2448_v31 }
 0x30d   :  { %v2960_v16 = vpack.c.bf16 %v2704_v35, %v2704_v35 }
 0x30e   :  { %v2556_v52 = vsel %vm2044_vm5, %v1525_v40, %v2300_v34  ;;  %v2378_v34 = vmul.f32 0.2, %v10687_v54 }
 0x30f   :  { %v2812_v2 = vpack.c.bf16 %v2556_v52, %v2556_v52  ;;  %v8859_v31 = vunpack.c.l.b16 %v2960_v16 }
 0x310   :  { %v2634_v40 = vsel %vm2122_vm9, %v10687_v54, %v2378_v34 }
 0x311   :  { %v3244_v18 = vunpack.c.l.b16 %v2812_v2  ;;  %v2633_v2 = vsel %vm2121_vm7, %v10685_v62, %v2377_v56  ;;  %v2890_v0 = vpack.c.bf16 %v2634_v40, %v2634_v40  ;;  %10689 = vst [vmem:[#allocation36_spill] sm:$0xff] %v8859_v31 }
 0x312   :  { %v2889_v36 = vpack.c.bf16 %v2633_v2, %v2633_v2 }
 0x313   :  { %v3259_v43 = vpack.c.b16 %v3244_v18, %v3243_v14  ;;  %v1528_v19 = vpop.f32.mrf.mxu0  ;;  %v2959_v14 = vpack.c.bf16 %v2703_v24, %v2703_v24 }
 0x314   :  { %v2301_v52 = vmul.f32 0.2, %v1528_v19  ;;  %vm2045_vm10 = vcmp.ge.f32.partialorder %v1528_v19, 0.0  ;;  %v8857_v56 = vunpack.c.l.b16 %v2889_v36  ;;  %v7156_v36 = vld [vmem:[%s10372_s1 + $0x190] sm:$0xff] }
 0x315   :  { %5032 = vmatmul.bf16.vlgmr.msra.gmra.mxu3 %v3259_v43  ;;  %v8855_v13 = vunpack.c.l.b16 %v2959_v14  ;;  %v10691_v14 = vld [vmem:[#allocation58_spill] sm:$0xff] }
 0x316   :  { %6507 = vmatmul.msk.bf16.gmra.mxu0 %vm925_vm1, %v7155_v25  ;;  %v2557_v47 = vsel %vm2045_vm10, %v1528_v19, %v2301_v52  ;;  %v10690_v19 = vld [vmem:[#allocation55_spill] sm:$0xff]  ;;  %vm2194_vm13 = vcmp.ge.f32.partialorder %v10691_v14, 0.0 }
 0x317   :  { %10688 = vst [vmem:[#allocation43_spill] sm:$0xff] %v8855_v13  ;;  %v2813_v62 = vpack.c.bf16 %v2557_v47, %v2557_v47  ;;  %v2449_v40 = vmul.f32 0.2, %v10690_v19  ;;  %vm2193_vm12 = vcmp.ge.f32.partialorder %v10690_v19, 0.0 }
 0x318   :  { %v4984_v18 = vpop.f32.mrf.mxu2 }
 0x319   :  { %v8853_v5 = vadd.f32 %v4984_v18, %v8534_v46  ;;  %v8863_v46 = vunpack.c.l.b16 %v2890_v0  ;;  %v3245_v34 = vunpack.c.l.b16 %v2813_v62  ;;  %v2450_v18 = vmul.f32 0.2, %v10691_v14 }
 0x31a   :  { %v2705_v47 = vsel %vm2193_vm12, %v10690_v19, %v2449_v40 }
 0x31b   :  { %v1530_v43 = vpop.f32.mrf.mxu0  ;;  %v2961_v62 = vpack.c.bf16 %v2705_v47, %v2705_v47 }
 0x31c   :  { %vm2046_vm11 = vcmp.ge.f32.partialorder %v1530_v43, 0.0  ;;  %v2302_v25 = vmul.f32 0.2, %v1530_v43 }
 0x31e   :  { %v2558_v57 = vsel %vm2046_vm11, %v1530_v43, %v2302_v25  ;;  %v2706_v25 = vsel %vm2194_vm13, %v10691_v14, %v2450_v18  ;;  %v10694_v18 = vld [vmem:[#allocation60_spill] sm:$0xff] }
 0x31f   :  { %v2814_v24 = vpack.c.bf16 %v2558_v57, %v2558_v57  ;;  %v2962_v35 = vpack.c.bf16 %v2706_v25, %v2706_v25  ;;  %vm2195_vm2 = vcmp.ge.f32.partialorder %v10694_v18, 0.0 }
 0x320   :  { %v8861_v54 = vpop.f32.mrf.mxu2 }
 0x321   :  { %v3246_v52 = vunpack.c.l.b16 %v2814_v24 }
 0x323   :  { %v1533_v0 = vpop.f32.mrf.mxu0  ;;  %v3260_v16 = vpack.c.b16 %v3246_v52, %v3245_v34  ;;  %v8882_v34 = vunpack.c.l.b16 %v2961_v62 }
 0x324   :  { %v2303_v43 = vmul.f32 0.2, %v1533_v0  ;;  %vm2047_vm14 = vcmp.ge.f32.partialorder %v1533_v0, 0.0 }
 0x325   :  { %5037 = vmatmul.bf16.gmra.mxu3 %v3260_v16  ;;  %10692 = vst [vmem:[#allocation46_spill] sm:$0xff] %v8882_v34  ;;  %v8884_v16 = vunpack.c.l.b16 %v2962_v35 }
 0x326   :  { %6508 = vmatmul.msk.bf16.gmra.mxu0 %vm925_vm1, %v7156_v36  ;;  %v2559_v2 = vsel %vm2047_vm14, %v1533_v0, %v2303_v43  ;;  %v7157_v0 = vld [vmem:[%s10372_s1 + $0x198] sm:$0xff] }
 0x327   :  { %v2815_v19 = vpack.c.bf16 %v2559_v2, %v2559_v2  ;;  %10693 = vst [vmem:[#allocation38_spill] sm:$0xff] %v8884_v16  ;;  %v10695_v2 = vld [vmem:[#allocation63_spill] sm:$0xff] }
 0x328   :  { %v4989_v57 = vpop.f32.mrf.mxu2  ;;  %vm2196_vm3 = vcmp.ge.f32.partialorder %v10695_v2, 0.0 }
 0x329   :  { %v8880_v24 = vadd.f32 %v4989_v57, %v8571_v3  ;;  %v2451_v3 = vmul.f32 0.2, %v10694_v18  ;;  %v3247_v47 = vunpack.c.l.b16 %v2815_v19 }
 0x32b   :  { %v1535_v13 = vpop.f32.mrf.mxu0  ;;  %v2707_v62 = vsel %vm2195_vm2, %v10694_v18, %v2451_v3 }
 0x32c   :  { %vm2048_vm15 = vcmp.ge.f32.partialorder %v1535_v13, 0.0  ;;  %v2304_v52 = vmul.f32 0.2, %v1535_v13  ;;  %v2963_v19 = vpack.c.bf16 %v2707_v62, %v2707_v62 }
 0x32e   :  { %v2560_v40 = vsel %vm2048_vm15, %v1535_v13, %v2304_v52  ;;  %v2452_v13 = vmul.f32 0.2, %v10695_v2 }
 0x32f   :  { %v2816_v36 = vpack.c.bf16 %v2560_v40, %v2560_v40 }
 0x330   :  { %v8886_v31 = vpop.f32.mrf.mxu2  ;;  %v2708_v52 = vsel %vm2196_vm3, %v10695_v2, %v2452_v13  ;;  %v10698_v13 = vld [vmem:[#allocation66_spill] sm:$0xff] }
 0x331   :  { %v3248_v25 = vunpack.c.l.b16 %v2816_v36  ;;  %v2964_v14 = vpack.c.bf16 %v2708_v52, %v2708_v52  ;;  %vm2197_vm6 = vcmp.ge.f32.partialorder %v10698_v13, 0.0 }
 0x333   :  { %v1538_v35 = vpop.f32.mrf.mxu0  ;;  %v3261_v43 = vpack.c.b16 %v3248_v25, %v3247_v47  ;;  %v8903_v47 = vunpack.c.l.b16 %v2963_v19 }
 0x334   :  { %v2305_v57 = vmul.f32 0.2, %v1538_v35  ;;  %vm2049_vm4 = vcmp.ge.f32.partialorder %v1538_v35, 0.0 }
 0x335   :  { %5042 = vmatmul.bf16.gmra.mxu3 %v3261_v43  ;;  %10696 = vst [vmem:[#allocation48_spill] sm:$0xff] %v8903_v47  ;;  %v8905_v43 = vunpack.c.l.b16 %v2964_v14 }
 0x336   :  { %6509 = vmatmul.msk.bf16.gmra.mxu0 %vm925_vm1, %v7157_v0  ;;  %v2561_v34 = vsel %vm2049_vm4, %v1538_v35, %v2305_v57  ;;  %v7158_v35 = vld [vmem:[%s10372_s1 + $0x1a0] sm:$0xff] }
 0x337   :  { %v2817_v18 = vpack.c.bf16 %v2561_v34, %v2561_v34  ;;  %10697 = vst [vmem:[#allocation40_spill] sm:$0xff] %v8905_v43  ;;  %v10699_v34 = vld [vmem:[#allocation69_spill] sm:$0xff] }
 0x338   :  { %v4994_v40 = vpop.f32.mrf.mxu2  ;;  %vm2198_vm7 = vcmp.ge.f32.partialorder %v10699_v34, 0.0 }
 0x339   :  { %v8901_v36 = vadd.f32 %v4994_v40, %v8606_v61  ;;  %v2453_v61 = vmul.f32 0.2, %v10698_v13  ;;  %v3249_v62 = vunpack.c.l.b16 %v2817_v18 }
 0x33b   :  { %v1540_v16 = vpop.f32.mrf.mxu0  ;;  %v2709_v19 = vsel %vm2197_vm6, %v10698_v13, %v2453_v61 }
 0x33c   :  { %vm2050_vm5 = vcmp.ge.f32.partialorder %v1540_v16, 0.0  ;;  %v2306_v25 = vmul.f32 0.2, %v1540_v16  ;;  %v2965_v18 = vpack.c.bf16 %v2709_v19, %v2709_v19 }
 0x33e   :  { %v2562_v3 = vsel %vm2050_vm5, %v1540_v16, %v2306_v25  ;;  %v2454_v16 = vmul.f32 0.2, %v10699_v34 }
 0x33f   :  { %v2818_v0 = vpack.c.bf16 %v2562_v3, %v2562_v3 }
 0x340   :  { %v8907_v21 = vpop.f32.mrf.mxu2  ;;  %v2710_v25 = vsel %vm2198_vm7, %v10699_v34, %v2454_v16  ;;  %v10702_v16 = vld [vmem:[#allocation71_spill] sm:$0xff] }
 0x341   :  { %v3250_v52 = vunpack.c.l.b16 %v2818_v0  ;;  %v2966_v2 = vpack.c.bf16 %v2710_v25, %v2710_v25  ;;  %vm2199_vm10 = vcmp.ge.f32.partialorder %v10702_v16, 0.0 }
 0x343   :  { %v1543_v14 = vpop.f32.mrf.mxu0  ;;  %v3262_v57 = vpack.c.b16 %v3250_v52, %v3249_v62  ;;  %v8924_v62 = vunpack.c.l.b16 %v2965_v18 }
 0x344   :  { %v2307_v40 = vmul.f32 0.2, %v1543_v14  ;;  %vm2051_vm8 = vcmp.ge.f32.partialorder %v1543_v14, 0.0 }
 0x345   :  { %5047 = vmatmul.bf16.gmra.mxu3 %v3262_v57  ;;  %10700 = vst [vmem:[#allocation52_spill] sm:$0xff] %v8924_v62  ;;  %v8926_v57 = vunpack.c.l.b16 %v2966_v2 }
 0x346   :  { %6510 = vmatmul.msk.bf16.gmra.mxu0 %vm925_vm1, %v7158_v35  ;;  %v2563_v47 = vsel %vm2051_vm8, %v1543_v14, %v2307_v40  ;;  %v7159_v14 = vld [vmem:[%s10372_s1 + $0x1a8] sm:$0xff] }
 0x347   :  { %v2819_v13 = vpack.c.bf16 %v2563_v47, %v2563_v47  ;;  %10701 = vst [vmem:[#allocation45_spill] sm:$0xff] %v8926_v57  ;;  %v10703_v47 = vld [vmem:[#allocation74_spill] sm:$0xff] }
 0x348   :  { %v4999_v3 = vpop.f32.mrf.mxu2  ;;  %vm2200_vm11 = vcmp.ge.f32.partialorder %v10703_v47, 0.0 }
 0x349   :  { %v8922_v0 = vadd.f32 %v4999_v3, %v8651_v53  ;;  %v2455_v53 = vmul.f32 0.2, %v10702_v16  ;;  %v3251_v19 = vunpack.c.l.b16 %v2819_v13 }
 0x34b   :  { %v1545_v43 = vpop.f32.mrf.mxu0  ;;  %v2711_v18 = vsel %vm2199_vm10, %v10702_v16, %v2455_v53  ;;  %v7288_v16 = vld [vmem:[%s10373_s3 + $0x1b0] sm:$0xff] }
 0x34c   :  { %vm2052_vm9 = vcmp.ge.f32.partialorder %v1545_v43, 0.0  ;;  %v2308_v52 = vmul.f32 0.2, %v1545_v43 }
 0x34e   :  { %v2564_v61 = vsel %vm2052_vm9, %v1545_v43, %v2308_v52  ;;  %v2456_v43 = vmul.f32 0.2, %v10703_v47  ;;  %v7289_v52 = vld [vmem:[%s10373_s3 + $0x1b8] sm:$0xff] }
 0x34f   :  { %v2820_v35 = vpack.c.bf16 %v2564_v61, %v2564_v61  ;;  %v2967_v61 = vpack.c.bf16 %v2711_v18, %v2711_v18  ;;  %5073 = vmatpush.bf16.msrb.mxu1 %v7289_v52  ;;  %v7287_v18 = vld [vmem:[%s10373_s3 + $0x1a8] sm:$0xff] }
 0x350   :  { %v8928_v39 = vpop.f32.mrf.mxu2  ;;  %v2712_v13 = vsel %vm2200_vm11, %v10703_v47, %v2456_v43 }
 0x351   :  { %v3252_v25 = vunpack.c.l.b16 %v2820_v35  ;;  %v2968_v53 = vpack.c.bf16 %v2712_v13, %v2712_v13 }
 0x353   :  { %v1548_v2 = vpop.f32.mrf.mxu0  ;;  %v3263_v40 = vpack.c.b16 %v3252_v25, %v3251_v19  ;;  %5074 = vmatpush.bf16.msrb.mxu1 %v7288_v16  ;;  %v7160_v16 = vld [vmem:[%s10372_s1 + $0x1b0] sm:$0xff] }
 0x354   :  { %v2309_v3 = vmul.f32 0.2, %v1548_v2  ;;  %vm2053_vm12 = vcmp.ge.f32.partialorder %v1548_v2, 0.0 }
 0x355   :  { %5052 = vmatmul.bf16.gmra.mxu3 %v3263_v40  ;;  %v8951_v40 = vunpack.c.l.b16 %v2967_v61 }
 0x356   :  { %6511 = vmatmul.msk.bf16.gmra.mxu0 %vm925_vm1, %v7159_v14  ;;  %v2565_v25 = vsel %vm2053_vm12, %v1548_v2, %v2309_v3  ;;  %v10706_v3 = vld [vmem:[#allocation75_spill] sm:$0xff] }
 0x357   :  { %10704 = vst [vmem:[#allocation55_spill] sm:$0xff] %v8951_v40  ;;  %v2821_v47 = vpack.c.bf16 %v2565_v25, %v2565_v25  ;;  %5075 = vmatpush.bf16.msrb.mxu1 %v7287_v18  ;;  %v2457_v13 = vmul.f32 0.2, %v10706_v3  ;;  %vm2201_vm14 = vcmp.ge.f32.partialorder %v10706_v3, 0.0 }
 0x358   :  { %v5004_v35 = vpop.f32.mrf.mxu2  ;;  %10716 = vst [vmem:[#allocation75_spill] sm:$0xff] %v9024_v33 }
 0x359   :  { %v8946_v19 = vadd.f32 %v5004_v35, %v8698_v42  ;;  %v8956_v42 = vunpack.c.l.b16 %v2968_v53  ;;  %v3253_v61 = vunpack.c.l.b16 %v2821_v47  ;;  %v10707_v53 = vld [vmem:[#allocation78_spill] sm:$0xff]  ;;  %v2713_v47 = vsel %vm2201_vm14, %v10706_v3, %v2457_v13  ;;  %v7284_v3 = vld [vmem:[%s10373_s3 + $0x190] sm:$0xff] }
 0x35a   :  { %v2458_v25 = vmul.f32 0.2, %v10707_v53  ;;  %vm2202_vm15 = vcmp.ge.f32.partialorder %v10707_v53, 0.0  ;;  %v2969_v40 = vpack.c.bf16 %v2713_v47, %v2713_v47  ;;  %v7283_v47 = vld [vmem:[%s10373_s3 + $0x188] sm:$0xff] }
 0x35b   :  { %v1550_v14 = vpop.f32.mrf.mxu0  ;;  %10705 = vst [vmem:[#allocation58_spill] sm:$0xff] %v8956_v42 }
 0x35c   :  { %vm2054_vm13 = vcmp.ge.f32.partialorder %v1550_v14, 0.0  ;;  %v2310_v34 = vmul.f32 0.2, %v1550_v14  ;;  %v2714_v2 = vsel %vm2202_vm15, %v10707_v53, %v2458_v25 }
 0x35d   :  { %v2970_v13 = vpack.c.bf16 %v2714_v2, %v2714_v2 }
 0x35e   :  { %v2566_v43 = vsel %vm2054_vm13, %v1550_v14, %v2310_v34  ;;  %v7286_v34 = vld [vmem:[%s10373_s3 + $0x1a0] sm:$0xff] }
 0x35f   :  { %v2822_v52 = vpack.c.bf16 %v2566_v43, %v2566_v43  ;;  %5076 = vmatpush.bf16.msrb.mxu1 %v7286_v34 }
 0x360   :  { %v8958_v35 = vpop.f32.mrf.mxu2 }
 0x361   :  { %v3254_v62 = vunpack.c.l.b16 %v2822_v52  ;;  %v7285_v52 = vld [vmem:[%s10373_s3 + $0x198] sm:$0xff] }
 0x363   :  { %v1553_v14 = vpop.f32.mrf.mxu0  ;;  %v3264_v43 = vpack.c.b16 %v3254_v62, %v3253_v61  ;;  %5077 = vmatpush.bf16.msrb.mxu1 %v7285_v52 }
 0x364   :  { %v2311_v18 = vmul.f32 0.2, %v1553_v14  ;;  %vm2055_vm2 = vcmp.ge.f32.partialorder %v1553_v14, 0.0 }
 0x365   :  { %5057 = vmatmul.bf16.gmra.mxu3 %v3264_v43 }
 0x366   :  { %6512 = vmatmul.msk.bf16.gmra.mxu0 %vm925_vm1, %v7160_v16  ;;  %v2567_v61 = vsel %vm2055_vm2, %v1553_v14, %v2311_v18  ;;  %v8984_v16 = vunpack.c.l.b16 %v2969_v40  ;;  %v7161_v18 = vld [vmem:[%s10372_s1 + $0x1b8] sm:$0xff] }
 0x367   :  { %5078 = vmatpush.bf16.msrb.mxu1 %v7284_v3  ;;  %v2823_v53 = vpack.c.bf16 %v2567_v61, %v2567_v61  ;;  %v7282_v3 = vld [vmem:[%s10373_s3 + $0x180] sm:$0xff] }
 0x368   :  { %v5009_v42 = vpop.f32.mrf.mxu2  ;;  %10708 = vst [vmem:[#allocation60_spill] sm:$0xff] %v8984_v16 }
 0x369   :  { %v8979_v62 = vadd.f32 %v5009_v42, %v8745_v30  ;;  %v8989_v30 = vunpack.c.l.b16 %v2970_v13  ;;  %v3255_v40 = vunpack.c.l.b16 %v2823_v53 }
 0x36b   :  { %v1555_v34 = vpop.f32.mrf.mxu0  ;;  %10709 = vst [vmem:[#allocation63_spill] sm:$0xff] %v8989_v30  ;;  %5079 = vmatpush.bf16.msrb.mxu1 %v7283_v47 }
 0x36c   :  { %vm2056_vm3 = vcmp.ge.f32.partialorder %v1555_v34, 0.0  ;;  %v2312_v43 = vmul.f32 0.2, %v1555_v34 }
 0x36e   :  { %v2568_v25 = vsel %vm2056_vm3, %v1555_v34, %v2312_v43 }
 0x36f   :  { %v2824_v42 = vpack.c.bf16 %v2568_v25, %v2568_v25  ;;  %5080 = vmatpush.bf16.msrb.mxu1 %v7282_v3 }
 0x370   :  { %v8991_v52 = vpop.f32.mrf.mxu2 }
 0x371   :  { %10710 = vst [vmem:[#allocation66_spill] sm:$0xff] %v8991_v52  ;;  %v3256_v14 = vunpack.c.l.b16 %v2824_v42 }
 0x373   :  { %v1558_v61 = vpop.f32.mrf.mxu0  ;;  %v3265_v13 = vpack.c.b16 %v3256_v14, %v3255_v40  ;;  %v10712_v40 = vld [vmem:[#allocation83_spill] sm:$0xff] }
 0x374   :  { %v2313_v34 = vmul.f32 0.2, %v1558_v61  ;;  %vm2057_vm4 = vcmp.ge.f32.partialorder %v1558_v61, 0.0  ;;  %v2461_v14 = vmul.f32 0.2, %v10712_v40  ;;  %vm2205_vm6 = vcmp.ge.f32.partialorder %v10712_v40, 0.0 }
 0x375   :  { %5062 = vmatmul.bf16.gmra.mxu3 %v3265_v13 }
 0x376   :  { %6513 = vmatmul.msk.bf16.gmra.mxu0 %vm925_vm1, %v7161_v18  ;;  %v2569_v25 = vsel %vm2057_vm4, %v1558_v61, %v2313_v34  ;;  %v10713_v18 = vld [vmem:[#allocation86_spill] sm:$0xff] }
 0x377   :  { %v2825_v2 = vpack.c.bf16 %v2569_v25, %v2569_v25  ;;  %v2462_v61 = vmul.f32 0.2, %v10713_v18  ;;  %vm2206_vm7 = vcmp.ge.f32.partialorder %v10713_v18, 0.0 }
 0x378   :  { %v5014_v43 = vpop.f32.mrf.mxu2 }
 0x379   :  { %v9003_v53 = vadd.f32 %v5014_v43, %v8787_v4  ;;  %v3257_v3 = vunpack.c.l.b16 %v2825_v2  ;;  %v7162_v4 = vld [vmem:[%s10372_s1 + $0x1c0] sm:$0xff] }
 0x37b   :  { %v1560_v47 = vpop.f32.mrf.mxu0 }
 0x37c   :  { %vm2058_vm5 = vcmp.ge.f32.partialorder %v1560_v47, 0.0  ;;  %v2314_v42 = vmul.f32 0.2, %v1560_v47 }
 0x37e   :  { %v2570_v16 = vsel %vm2058_vm5, %v1560_v47, %v2314_v42 }
 0x37f   :  { %v2826_v30 = vpack.c.bf16 %v2570_v16, %v2570_v16  ;;  %v2717_v16 = vsel %vm2205_vm6, %v10712_v40, %v2461_v14 }
 0x380   :  { %v9005_v57 = vpop.f32.mrf.mxu2  ;;  %v2973_v2 = vpack.c.bf16 %v2717_v16, %v2717_v16 }
 0x381   :  { %10711 = vst [vmem:[#allocation69_spill] sm:$0xff] %v9005_v57  ;;  %v3258_v13 = vunpack.c.l.b16 %v2826_v30  ;;  %v2718_v30 = vsel %vm2206_vm7, %v10713_v18, %v2462_v61  ;;  %v10717_v61 = vld [vmem:[#allocation87_spill] sm:$0xff] }
 0x382   :  { %v2974_v57 = vpack.c.bf16 %v2718_v30, %v2718_v30  ;;  %vm2207_vm10 = vcmp.ge.f32.partialorder %v10717_v61, 0.0 }
 0x383   :  { %v1563_v34 = vpop.f32.mrf.mxu0  ;;  %v3266_v43 = vpack.c.b16 %v3258_v13, %v3257_v3  ;;  %v9020_v3 = vunpack.c.l.b16 %v2973_v2 }
 0x384   :  { %v2315_v25 = vmul.f32 0.2, %v1563_v34  ;;  %vm2059_vm8 = vcmp.ge.f32.partialorder %v1563_v34, 0.0 }
 0x385   :  { %5067 = vmatmul.bf16.gmra.mxu3 %v3266_v43  ;;  %10714 = vst [vmem:[#allocation71_spill] sm:$0xff] %v9020_v3  ;;  %v9022_v43 = vunpack.c.l.b16 %v2974_v57 }
 0x386   :  { %6514 = vmatmul.msk.bf16.gmra.mxu0 %vm925_vm1, %v7162_v4  ;;  %v2571_v52 = vsel %vm2059_vm8, %v1563_v34, %v2315_v25  ;;  %v7163_v34 = vld [vmem:[%s10372_s1 + $0x1c8] sm:$0xff] }
 0x387   :  { %v2827_v40 = vpack.c.bf16 %v2571_v52, %v2571_v52  ;;  %10715 = vst [vmem:[#allocation74_spill] sm:$0xff] %v9022_v43  ;;  %v10718_v52 = vld [vmem:[#allocation90_spill] sm:$0xff] }
 0x388   :  { %v5019_v47 = vpop.f32.mrf.mxu2  ;;  %vm2208_vm11 = vcmp.ge.f32.partialorder %v10718_v52, 0.0 }
 0x389   :  { %v9018_v42 = vadd.f32 %v5019_v47, %v8811_v48  ;;  %v2463_v48 = vmul.f32 0.2, %v10717_v61  ;;  %v3291_v16 = vunpack.c.l.b16 %v2827_v40 }
 0x38b   :  { %v1565_v27 = vpop.f32.mrf.mxu0  ;;  %v2719_v2 = vsel %vm2207_vm10, %v10717_v61, %v2463_v48 }
 0x38c   :  { %vm2060_vm9 = vcmp.ge.f32.partialorder %v1565_v27, 0.0  ;;  %v2316_v13 = vmul.f32 0.2, %v1565_v27  ;;  %v2975_v40 = vpack.c.bf16 %v2719_v2, %v2719_v2 }
 0x38e   :  { %v2572_v14 = vsel %vm2060_vm9, %v1565_v27, %v2316_v13  ;;  %v2464_v27 = vmul.f32 0.2, %v10718_v52 }
 0x38f   :  { %v2828_v4 = vpack.c.bf16 %v2572_v14, %v2572_v14 }
 0x390   :  { %v2720_v13 = vsel %vm2208_vm11, %v10718_v52, %v2464_v27  ;;  %v10721_v27 = vld [vmem:[#allocation91_spill] sm:$0xff] }
 0x391   :  { %v3292_v30 = vunpack.c.l.b16 %v2828_v4  ;;  %v2976_v18 = vpack.c.bf16 %v2720_v13, %v2720_v13  ;;  %vm2209_vm14 = vcmp.ge.f32.partialorder %v10721_v27, 0.0 }
 0x393   :  { %v3307_v57 = vpack.c.b16 %v3292_v30, %v3291_v16  ;;  %v1568_v25 = vpop.f32.mrf.mxu0  ;;  %v9041_v30 = vunpack.c.l.b16 %v2975_v40 }
 0x394   :  { %v2317_v47 = vmul.f32 0.2, %v1568_v25  ;;  %vm2061_vm12 = vcmp.ge.f32.partialorder %v1568_v25, 0.0 }
 0x395   :  { %5081 = vmatmul.bf16.vlgmr.msrb.gmra.mxu1 %v3307_v57  ;;  %10719 = vst [vmem:[#allocation78_spill] sm:$0xff] %v9041_v30  ;;  %v9043_v57 = vunpack.c.l.b16 %v2976_v18 }
 0x396   :  { %6515 = vmatmul.msk.bf16.gmra.mxu0 %vm925_vm1, %v7163_v34  ;;  %v2573_v3 = vsel %vm2061_vm12, %v1568_v25, %v2317_v47  ;;  %v7164_v25 = vld [vmem:[%s10372_s1 + $0x1d0] sm:$0xff] }
 0x397   :  { %v2829_v61 = vpack.c.bf16 %v2573_v3, %v2573_v3  ;;  %10720 = vst [vmem:[#allocation83_spill] sm:$0xff] %v9043_v57  ;;  %v10722_v3 = vld [vmem:[#allocation93_spill] sm:$0xff] }
 0x398   :  { %v5033_v14 = vpop.f32.mrf.mxu3  ;;  %vm2210_vm15 = vcmp.ge.f32.partialorder %v10722_v3, 0.0 }
 0x399   :  { %v9039_v4 = vadd.f32 %v5033_v14, %v8853_v5  ;;  %v2465_v5 = vmul.f32 0.2, %v10721_v27  ;;  %v3293_v2 = vunpack.c.l.b16 %v2829_v61 }
 0x39b   :  { %v1570_v16 = vpop.f32.mrf.mxu0  ;;  %v2721_v40 = vsel %vm2209_vm14, %v10721_v27, %v2465_v5 }
 0x39c   :  { %vm2062_vm13 = vcmp.ge.f32.partialorder %v1570_v16, 0.0  ;;  %v2318_v43 = vmul.f32 0.2, %v1570_v16  ;;  %v2977_v61 = vpack.c.bf16 %v2721_v40, %v2721_v40 }
 0x39e   :  { %v2574_v48 = vsel %vm2062_vm13, %v1570_v16, %v2318_v43  ;;  %v2466_v43 = vmul.f32 0.2, %v10722_v3  ;;  %v9065_v27 = vunpack.c.l.b16 %v2977_v61 }
 0x39f   :  { %v2830_v34 = vpack.c.bf16 %v2574_v48, %v2574_v48 }
 0x3a0   :  { %v9045_v33 = vpop.f32.mrf.mxu3  ;;  %v2722_v16 = vsel %vm2210_vm15, %v10722_v3, %v2466_v43  ;;  %10723 = vst [vmem:[#allocation86_spill] sm:$0xff] %v9065_v27 }
 0x3a1   :  { %v3294_v13 = vunpack.c.l.b16 %v2830_v34 }
 0x3a3   :  { %v1573_v18 = vpop.f32.mrf.mxu0  ;;  %v3308_v47 = vpack.c.b16 %v3294_v13, %v3293_v2  ;;  %v7297_v2 = vld [vmem:[%s10373_s3 + $0x1f8] sm:$0xff]  ;;  %v2978_v13 = vpack.c.bf16 %v2722_v16, %v2722_v16 }
 0x3a4   :  { %v2319_v14 = vmul.f32 0.2, %v1573_v18  ;;  %vm2063_vm2 = vcmp.ge.f32.partialorder %v1573_v18, 0.0  ;;  %5122 = vmatpush.bf16.msrb.mxu2 %v7297_v2  ;;  %v7296_v2 = vld [vmem:[%s10373_s3 + $0x1f0] sm:$0xff] }
 0x3a5   :  { %5086 = vmatmul.bf16.gmra.mxu1 %v3308_v47  ;;  %v9067_v43 = vunpack.c.l.b16 %v2978_v13 }
 0x3a6   :  { %6516 = vmatmul.msk.bf16.gmra.mxu0 %vm925_vm1, %v7164_v25  ;;  %v2575_v52 = vsel %vm2063_vm2, %v1573_v18, %v2319_v14  ;;  %v7165_v18 = vld [vmem:[%s10372_s1 + $0x1d8] sm:$0xff] }
 0x3a7   :  { %v2831_v25 = vpack.c.bf16 %v2575_v52, %v2575_v52  ;;  %10724 = vst [vmem:[#allocation87_spill] sm:$0xff] %v9067_v43 }
 0x3a8   :  { %v5038_v48 = vpop.f32.mrf.mxu3  ;;  %5123 = vmatpush.bf16.msrb.mxu2 %v7296_v2  ;;  %v7295_v2 = vld [vmem:[%s10373_s3 + $0x1e8] sm:$0xff] }
 0x3a9   :  { %v9060_v34 = vadd.f32 %v5038_v48, %v8880_v24  ;;  %v3295_v48 = vunpack.c.l.b16 %v2831_v25 }
 0x3ab   :  { %v1575_v30 = vpop.f32.mrf.mxu0 }
 0x3ac   :  { %vm2064_vm3 = vcmp.ge.f32.partialorder %v1575_v30, 0.0  ;;  %v2320_v5 = vmul.f32 0.2, %v1575_v30  ;;  %5124 = vmatpush.bf16.msrb.mxu2 %v7295_v2 }
 0x3ae   :  { %v2576_v3 = vsel %vm2064_vm3, %v1575_v30, %v2320_v5 }
 0x3af   :  { %v2832_v47 = vpack.c.bf16 %v2576_v3, %v2576_v3 }
 0x3b0   :  { %v9069_v40 = vpop.f32.mrf.mxu3 }
 0x3b1   :  { %v3296_v57 = vunpack.c.l.b16 %v2832_v47 }
 0x3b3   :  { %v1578_v14 = vpop.f32.mrf.mxu0  ;;  %v3309_v16 = vpack.c.b16 %v3296_v57, %v3295_v48 }
 0x3b4   :  { %v2321_v61 = vmul.f32 0.2, %v1578_v14  ;;  %vm2065_vm4 = vcmp.ge.f32.partialorder %v1578_v14, 0.0 }
 0x3b5   :  { %5091 = vmatmul.bf16.gmra.mxu1 %v3309_v16 }
 0x3b6   :  { %6517 = vmatmul.msk.bf16.gmra.mxu0 %vm925_vm1, %v7165_v18  ;;  %v2577_v13 = vsel %vm2065_vm4, %v1578_v14, %v2321_v61 }
 0x3b7   :  { %v2833_v3 = vpack.c.bf16 %v2577_v13, %v2577_v13 }
 0x3b8   :  { %v5043_v30 = vpop.f32.mrf.mxu3 }
 0x3b9   :  { %v9078_v52 = vadd.f32 %v5043_v30, %v8901_v36  ;;  %v3297_v18 = vunpack.c.l.b16 %v2833_v3  ;;  %v7166_v36 = vld [vmem:[%s10372_s1 + $0x1e0] sm:$0xff] }
 0x3bb   :  { %v1580_v5 = vpop.f32.mrf.mxu0 }
 0x3bc   :  { %vm2066_vm5 = vcmp.ge.f32.partialorder %v1580_v5, 0.0  ;;  %v2322_v25 = vmul.f32 0.2, %v1580_v5 }
 0x3be   :  { %v2578_v57 = vsel %vm2066_vm5, %v1580_v5, %v2322_v25 }
 0x3bf   :  { %v2834_v47 = vpack.c.bf16 %v2578_v57, %v2578_v57 }
 0x3c0   :  { %v9083_v48 = vpop.f32.mrf.mxu3 }
 0x3c1   :  { %v3298_v16 = vunpack.c.l.b16 %v2834_v47 }
 0x3c3   :  { %v1583_v30 = vpop.f32.mrf.mxu0  ;;  %v3310_v24 = vpack.c.b16 %v3298_v16, %v3297_v18 }
 0x3c4   :  { %v2323_v27 = vmul.f32 0.2, %v1583_v30  ;;  %vm2067_vm6 = vcmp.ge.f32.partialorder %v1583_v30, 0.0 }
 0x3c5   :  { %5096 = vmatmul.bf16.gmra.mxu1 %v3310_v24 }
 0x3c6   :  { %6518 = vmatmul.msk.bf16.gmra.mxu0 %vm925_vm1, %v7166_v36  ;;  %v2579_v13 = vsel %vm2067_vm6, %v1583_v30, %v2323_v27  ;;  %v7313_v27 = vld [vmem:[%s10373_s3 + $0x278] sm:$0xff] }
 0x3c7   :  { %v2835_v3 = vpack.c.bf16 %v2579_v13, %v2579_v13  ;;  %5220 = vmatpush.bf16.msra.mxu1 %v7313_v27  ;;  %v7294_v13 = vld [vmem:[%s10373_s3 + $0x1e0] sm:$0xff] }
 0x3c8   :  { %v5048_v14 = vpop.f32.mrf.mxu3  ;;  %5125 = vmatpush.bf16.msrb.mxu2 %v7294_v13 }
 0x3c9   :  { %v9090_v61 = vadd.f32 %v5048_v14, %v8922_v0  ;;  %v3299_v18 = vunpack.c.l.b16 %v2835_v3  ;;  %v7167_v0 = vld [vmem:[%s10372_s1 + $0x1e8] sm:$0xff] }
 0x3cb   :  { %v1585_v5 = vpop.f32.mrf.mxu0 }
 0x3cc   :  { %vm2068_vm7 = vcmp.ge.f32.partialorder %v1585_v5, 0.0  ;;  %v2324_v25 = vmul.f32 0.2, %v1585_v5 }
 0x3ce   :  { %v2580_v57 = vsel %vm2068_vm7, %v1585_v5, %v2324_v25  ;;  %v7312_v5 = vld [vmem:[%s10373_s3 + $0x270] sm:$0xff] }
 0x3cf   :  { %v2836_v24 = vpack.c.bf16 %v2580_v57, %v2580_v57  ;;  %5221 = vmatpush.bf16.msra.mxu1 %v7312_v5 }
 0x3d0   :  { %v9095_v47 = vpop.f32.mrf.mxu3 }
 0x3d1   :  { %v3300_v16 = vunpack.c.l.b16 %v2836_v24 }
 0x3d3   :  { %v1588_v36 = vpop.f32.mrf.mxu0  ;;  %v3311_v14 = vpack.c.b16 %v3300_v16, %v3299_v18 }
 0x3d4   :  { %v2325_v43 = vmul.f32 0.2, %v1588_v36  ;;  %vm2069_vm8 = vcmp.ge.f32.partialorder %v1588_v36, 0.0 }
 0x3d5   :  { %5101 = vmatmul.bf16.gmra.mxu1 %v3311_v14 }
 0x3d6   :  { %6519 = vmatmul.msk.bf16.gmra.mxu0 %vm925_vm1, %v7167_v0  ;;  %v2581_v25 = vsel %vm2069_vm8, %v1588_v36, %v2325_v43  ;;  %v7310_v43 = vld [vmem:[%s10373_s3 + $0x260] sm:$0xff]  ;;  %v7168_v36 = vld [vmem:[%s10372_s1 + $0x1f0] sm:$0xff] }
 0x3d7   :  { %v2837_v24 = vpack.c.bf16 %v2581_v25, %v2581_v25  ;;  %v7293_v25 = vld [vmem:[%s10373_s3 + $0x1d8] sm:$0xff] }
 0x3d8   :  { %v5053_v30 = vpop.f32.mrf.mxu3  ;;  %5126 = vmatpush.bf16.msrb.mxu2 %v7293_v25 }
 0x3d9   :  { %v9105_v2 = vadd.f32 %v5053_v30, %v8946_v19  ;;  %v7311_v19 = vld [vmem:[%s10373_s3 + $0x268] sm:$0xff]  ;;  %v3301_v14 = vunpack.c.l.b16 %v2837_v24 }
 0x3da   :  { %5222 = vmatpush.bf16.msra.mxu1 %v7311_v19  ;;  %v7308_v19 = vld [vmem:[%s10373_s3 + $0x250] sm:$0xff] }
 0x3db   :  { %v1590_v3 = vpop.f32.mrf.mxu0 }
 0x3dc   :  { %vm2070_vm9 = vcmp.ge.f32.partialorder %v1590_v3, 0.0  ;;  %v2326_v57 = vmul.f32 0.2, %v1590_v3 }
 0x3de   :  { %v2582_v18 = vsel %vm2070_vm9, %v1590_v3, %v2326_v57  ;;  %5223 = vmatpush.bf16.msra.mxu1 %v7310_v43  ;;  %v7309_v3 = vld [vmem:[%s10373_s3 + $0x258] sm:$0xff] }
 0x3df   :  { %v2838_v16 = vpack.c.bf16 %v2582_v18, %v2582_v18  ;;  %v7292_v18 = vld [vmem:[%s10373_s3 + $0x1d0] sm:$0xff] }
 0x3e0   :  { %v9116_v0 = vpop.f32.mrf.mxu3  ;;  %5127 = vmatpush.bf16.msrb.mxu2 %v7292_v18  ;;  %v7290_v18 = vld [vmem:[%s10373_s3 + $0x1c0] sm:$0xff] }
 0x3e1   :  { %v3302_v27 = vunpack.c.l.b16 %v2838_v16 }
 0x3e2   :  { %5224 = vmatpush.bf16.msra.mxu1 %v7309_v3 }
 0x3e3   :  { %v1593_v30 = vpop.f32.mrf.mxu0  ;;  %v3312_v13 = vpack.c.b16 %v3302_v27, %v3301_v14 }
 0x3e4   :  { %v2327_v5 = vmul.f32 0.2, %v1593_v30  ;;  %vm2071_vm10 = vcmp.ge.f32.partialorder %v1593_v30, 0.0 }
 0x3e5   :  { %5106 = vmatmul.bf16.gmra.mxu1 %v3312_v13  ;;  %v7307_v13 = vld [vmem:[%s10373_s3 + $0x248] sm:$0xff] }
 0x3e6   :  { %6520 = vmatmul.msk.bf16.gmra.mxu0 %vm925_vm1, %v7168_v36  ;;  %v2583_v16 = vsel %vm2071_vm10, %v1593_v30, %v2327_v5  ;;  %5225 = vmatpush.bf16.msra.mxu1 %v7308_v19  ;;  %v7306_v19 = vld [vmem:[%s10373_s3 + $0x240] sm:$0xff] }
 0x3e7   :  { %v2839_v43 = vpack.c.bf16 %v2583_v16, %v2583_v16 }
 0x3e8   :  { %v5058_v57 = vpop.f32.mrf.mxu3 }
 0x3e9   :  { %v9132_v24 = vadd.f32 %v5058_v57, %v8979_v62  ;;  %v7291_v62 = vld [vmem:[%s10373_s3 + $0x1c8] sm:$0xff]  ;;  %v3303_v30 = vunpack.c.l.b16 %v2839_v43  ;;  %v7169_v57 = vld [vmem:[%s10372_s1 + $0x1f8] sm:$0xff] }
 0x3ea   :  { %5128 = vmatpush.bf16.msrb.mxu2 %v7291_v62  ;;  %5226 = vmatpush.bf16.msra.mxu1 %v7307_v13  ;;  %v7305_v62 = vld [vmem:[%s10373_s3 + $0x238] sm:$0xff] }
 0x3eb   :  { %v1595_v14 = vpop.f32.mrf.mxu0  ;;  %5171 = vmatpush.bf16.msrb.mxu3 %v7305_v62  ;;  %v7304_v62 = vld [vmem:[%s10373_s3 + $0x230] sm:$0xff] }
 0x3ec   :  { %vm2072_vm11 = vcmp.ge.f32.partialorder %v1595_v14, 0.0  ;;  %v2328_v27 = vmul.f32 0.2, %v1595_v14 }
 0x3ee   :  { %v2584_v36 = vsel %vm2072_vm11, %v1595_v14, %v2328_v27  ;;  %5129 = vmatpush.bf16.msrb.mxu2 %v7290_v18  ;;  %5227 = vmatpush.bf16.msra.mxu1 %v7306_v19 }
 0x3ef   :  { %v2840_v25 = vpack.c.bf16 %v2584_v36, %v2584_v36  ;;  %5172 = vmatpush.bf16.msrb.mxu3 %v7304_v62 }
 0x3f0   :  { %v9146_v3 = vpop.f32.mrf.mxu3 }
 0x3f1   :  { %10725 = vst [vmem:[#allocation90_spill] sm:$0xff] %v9146_v3  ;;  %v3304_v5 = vunpack.c.l.b16 %v2840_v25 }
 0x3f3   :  { %v1598_v16 = vpop.f32.mrf.mxu0  ;;  %v3313_v14 = vpack.c.b16 %v3304_v5, %v3303_v30 }
 0x3f4   :  { %v2329_v27 = vmul.f32 0.2, %v1598_v16  ;;  %vm2073_vm12 = vcmp.ge.f32.partialorder %v1598_v16, 0.0 }
 0x3f5   :  { %5111 = vmatmul.bf16.gmra.mxu1 %v3313_v14 }
 0x3f6   :  { %6521 = vmatmul.msk.bf16.gmra.mxu0 %vm925_vm1, %v7169_v57  ;;  %v2585_v13 = vsel %vm2073_vm12, %v1598_v16, %v2329_v27 }
 0x3f7   :  { %v2841_v5 = vpack.c.bf16 %v2585_v13, %v2585_v13  ;;  %v9176_v13 = vpop.f32.mrf.mxu1 }
 0x3f8   :  { %v5063_v43 = vpop.f32.mrf.mxu3  ;;  %10727 = vst [vmem:[#allocation93_spill] sm:$0xff] %v9176_v13 }
 0x3f9   :  { %v9159_v36 = vadd.f32 %v5063_v43, %v9003_v53  ;;  %v3305_v57 = vunpack.c.l.b16 %v2841_v5  ;;  %v7170_v53 = vld [vmem:[%s10372_s1 + $0x200] sm:$0xff] }
 0x3fb   :  { %v1600_v25 = vpop.f32.mrf.mxu0 }
 0x3fc   :  { %vm2074_vm13 = vcmp.ge.f32.partialorder %v1600_v25, 0.0  ;;  %v2330_v30 = vmul.f32 0.2, %v1600_v25 }
 0x3fe   :  { %v2586_v18 = vsel %vm2074_vm13, %v1600_v25, %v2330_v30 }
 0x3ff   :  { %v2842_v19 = vpack.c.bf16 %v2586_v18, %v2586_v18 }
 0x400   :  { %v9164_v14 = vpop.f32.mrf.mxu3 }
 0x401   :  { %10726 = vst [vmem:[#allocation91_spill] sm:$0xff] %v9164_v14  ;;  %v3306_v3 = vunpack.c.l.b16 %v2842_v19 }
 0x403   :  { %v1603_v43 = vpop.f32.mrf.mxu0  ;;  %v3314_v22 = vpack.c.b16 %v3306_v3, %v3305_v57 }
 0x404   :  { %v2331_v59 = vmul.f32 0.2, %v1603_v43  ;;  %vm2075_vm14 = vcmp.ge.f32.partialorder %v1603_v43, 0.0 }
 0x405   :  { %5116 = vmatmul.bf16.gmra.mxu1 %v3314_v22 }
 0x406   :  { %6522 = vmatmul.msk.bf16.gmra.mxu0 %vm925_vm1, %v7170_v53  ;;  %v2587_v25 = vsel %vm2075_vm14, %v1603_v43, %v2331_v59  ;;  %v10728_v59 = vld [vmem:[#allocation13_spill] sm:$0xff]  ;;  %v10729_v43 = vld [vmem:[#allocation12_spill] sm:$0xff] }
 0x407   :  { %v2843_v22 = vpack.c.bf16 %v2587_v25, %v2587_v25  ;;  %v10730_v62 = vpack.c.b16 %v10728_v59, %v10729_v43 }
 0x408   :  { %v5068_v16 = vpop.f32.mrf.mxu3 }
 0x409   :  { %v9171_v27 = vadd.f32 %v5068_v16, %v9018_v42  ;;  %v3339_v19 = vunpack.c.l.b16 %v2843_v22  ;;  %v7171_v42 = vld [vmem:[%s10372_s1 + $0x208] sm:$0xff] }
 0x40b   :  { %v1605_v30 = vpop.f32.mrf.mxu0 }
 0x40c   :  { %vm2076_vm15 = vcmp.ge.f32.partialorder %v1605_v30, 0.0  ;;  %v2332_v3 = vmul.f32 0.2, %v1605_v30 }
 0x40e   :  { %v2588_v5 = vsel %vm2076_vm15, %v1605_v30, %v2332_v3  ;;  %v7303_v30 = vld [vmem:[%s10373_s3 + $0x228] sm:$0xff] }
 0x40f   :  { %v2844_v18 = vpack.c.bf16 %v2588_v5, %v2588_v5  ;;  %5173 = vmatpush.bf16.msrb.mxu3 %v7303_v30 }
 0x411   :  { %v3340_v57 = vunpack.c.l.b16 %v2844_v18 }
 0x412   :  { %v5082_v53 = vpop.f32.mrf.mxu1 }
 0x413   :  { %v3355_v16 = vpack.c.b16 %v3340_v57, %v3339_v19  ;;  %v9182_v14 = vadd.f32 %v5082_v53, %v9039_v4  ;;  %v1608_v13 = vpop.f32.mrf.mxu0 }
 0x414   :  { %v2333_v25 = vmul.f32 0.2, %v1608_v13  ;;  %vm2077_vm2 = vcmp.ge.f32.partialorder %v1608_v13, 0.0 }
 0x415   :  { %5130 = vmatmul.bf16.vlgmr.msrb.gmra.mxu2 %v3355_v16  ;;  %5228 = vmatmul.bf16.vlgmr.msra.gmra.mxu1 %v10730_v62 }
 0x416   :  { %6523 = vmatmul.msk.bf16.gmra.mxu0 %vm925_vm1, %v7171_v42  ;;  %v2589_v3 = vsel %vm2077_vm2, %v1608_v13, %v2333_v25  ;;  %v7172_v42 = vld [vmem:[%s10372_s1 + $0x210] sm:$0xff]  ;;  %v10731_v25 = vpack.c.b16 %v8635_v12, %v8629_v26 }
 0x417   :  { %v2845_v18 = vpack.c.bf16 %v2589_v3, %v2589_v3  ;;  %v7302_v3 = vld [vmem:[%s10373_s3 + $0x220] sm:$0xff] }
 0x418   :  { %5174 = vmatpush.bf16.msrb.mxu3 %v7302_v3  ;;  %v7301_v3 = vld [vmem:[%s10373_s3 + $0x218] sm:$0xff] }
 0x419   :  { %v3341_v53 = vunpack.c.l.b16 %v2845_v18 }
 0x41a   :  { %v9191_v22 = vpop.f32.mrf.mxu1 }
 0x41b   :  { %v1610_v5 = vpop.f32.mrf.mxu0 }
 0x41c   :  { %vm2078_vm3 = vcmp.ge.f32.partialorder %v1610_v5, 0.0  ;;  %v2334_v4 = vmul.f32 0.2, %v1610_v5  ;;  %5175 = vmatpush.bf16.msrb.mxu3 %v7301_v3  ;;  %v7319_v3 = vld [vmem:[%s10373_s3 + $0x2a8] sm:$0xff] }
 0x41e   :  { %v2590_v19 = vsel %vm2078_vm3, %v1610_v5, %v2334_v4 }
 0x41f   :  { %v2846_v57 = vpack.c.bf16 %v2590_v19, %v2590_v19 }
 0x421   :  { %v3342_v16 = vunpack.c.l.b16 %v2846_v57 }
 0x422   :  { %v5087_v59 = vpop.f32.mrf.mxu1 }
 0x423   :  { %v9197_v43 = vadd.f32 %v5087_v59, %v9060_v34  ;;  %v1613_v13 = vpop.f32.mrf.mxu0  ;;  %v3356_v62 = vpack.c.b16 %v3342_v16, %v3341_v53  ;;  %v7321_v34 = vld [vmem:[%s10373_s3 + $0x2b8] sm:$0xff] }
 0x424   :  { %v2335_v30 = vmul.f32 0.2, %v1613_v13  ;;  %vm2079_vm4 = vcmp.ge.f32.partialorder %v1613_v13, 0.0  ;;  %5269 = vmatpush.bf16.msra.mxu2 %v7321_v34  ;;  %v7320_v34 = vld [vmem:[%s10373_s3 + $0x2b0] sm:$0xff] }
 0x425   :  { %5135 = vmatmul.bf16.gmra.mxu2 %v3356_v62  ;;  %5233 = vmatmul.bf16.gmra.mxu1 %v10731_v25 }
 0x426   :  { %6524 = vmatmul.msk.bf16.gmra.mxu0 %vm925_vm1, %v7172_v42  ;;  %v2591_v5 = vsel %vm2079_vm4, %v1613_v13, %v2335_v30  ;;  %v10732_v13 = vpack.c.b16 %v8682_v32, %v8676_v63 }
 0x427   :  { %v2847_v12 = vpack.c.bf16 %v2591_v5, %v2591_v5 }
 0x428   :  { %5270 = vmatpush.bf16.msra.mxu2 %v7320_v34 }
 0x429   :  { %v3343_v53 = vunpack.c.l.b16 %v2847_v12 }
 0x42a   :  { %v9209_v4 = vpop.f32.mrf.mxu1 }
 0x42b   :  { %v1615_v18 = vpop.f32.mrf.mxu0 }
 0x42c   :  { %vm2080_vm5 = vcmp.ge.f32.partialorder %v1615_v18, 0.0  ;;  %v2336_v26 = vmul.f32 0.2, %v1615_v18  ;;  %5271 = vmatpush.bf16.msra.mxu2 %v7319_v3 }
 0x42e   :  { %v2592_v19 = vsel %vm2080_vm5, %v1615_v18, %v2336_v26 }
 0x42f   :  { %v2848_v57 = vpack.c.bf16 %v2592_v19, %v2592_v19 }
 0x431   :  { %v3344_v16 = vunpack.c.l.b16 %v2848_v57 }
 0x432   :  { %v5092_v59 = vpop.f32.mrf.mxu1 }
 0x433   :  { %v9212_v42 = vadd.f32 %v5092_v59, %v9078_v52  ;;  %v1618_v62 = vpop.f32.mrf.mxu0  ;;  %v3357_v25 = vpack.c.b16 %v3344_v16, %v3343_v53 }
 0x434   :  { %v2337_v30 = vmul.f32 0.2, %v1618_v62  ;;  %vm2081_vm6 = vcmp.ge.f32.partialorder %v1618_v62, 0.0 }
 0x435   :  { %5140 = vmatmul.bf16.gmra.mxu2 %v3357_v25  ;;  %5238 = vmatmul.bf16.gmra.mxu1 %v10732_v13 }
 0x436   :  { %v2593_v5 = vsel %vm2081_vm6, %v1618_v62, %v2337_v30  ;;  %v10733_v62 = vpack.c.b16 %v8728_v11, %v8721_v23  ;;  %v7300_v30 = vld [vmem:[%s10373_s3 + $0x210] sm:$0xff] }
 0x437   :  { %v2849_v63 = vpack.c.bf16 %v2593_v5, %v2593_v5  ;;  %5176 = vmatpush.bf16.msrb.mxu3 %v7300_v30 }
 0x439   :  { %v3345_v19 = vunpack.c.l.b16 %v2849_v63 }
 0x43a   :  { %v9223_v52 = vpop.f32.mrf.mxu1 }
 0x43b   :  { %v1620_v18 = vpop.f32.mrf.mxu0 }
 0x43c   :  { %vm2082_vm7 = vcmp.ge.f32.partialorder %v1620_v18, 0.0  ;;  %v2338_v26 = vmul.f32 0.2, %v1620_v18 }
 0x43e   :  { %v2594_v32 = vsel %vm2082_vm7, %v1620_v18, %v2338_v26 }
 0x43f   :  { %v2850_v12 = vpack.c.bf16 %v2594_v32, %v2594_v32 }
 0x441   :  { %v3346_v57 = vunpack.c.l.b16 %v2850_v12 }
 0x442   :  { %v5097_v53 = vpop.f32.mrf.mxu1 }
 0x443   :  { %v9226_v16 = vadd.f32 %v5097_v53, %v9090_v61  ;;  %v1623_v59 = vpop.f32.mrf.mxu0  ;;  %v3358_v25 = vpack.c.b16 %v3346_v57, %v3345_v19 }
 0x444   :  { %v2339_v13 = vmul.f32 0.2, %v1623_v59  ;;  %vm2083_vm8 = vcmp.ge.f32.partialorder %v1623_v59, 0.0 }
 0x445   :  { %5145 = vmatmul.bf16.gmra.mxu2 %v3358_v25  ;;  %5243 = vmatmul.bf16.gmra.mxu1 %v10733_v62  ;;  %v7337_v62 = vld [vmem:[%s10373_s3 + $0x338] sm:$0xff] }
 0x446   :  { %v2595_v34 = vsel %vm2083_vm8, %v1623_v59, %v2339_v13  ;;  %v10734_v59 = vpack.c.b16 %v8773_v45, %v8766_v6  ;;  %5367 = vmatpush.bf16.msrb.mxu1 %v7337_v62  ;;  %v7299_v13 = vld [vmem:[%s10373_s3 + $0x208] sm:$0xff]  ;;  %v7336_v6 = vld [vmem:[%s10373_s3 + $0x330] sm:$0xff] }
 0x447   :  { %v2851_v23 = vpack.c.bf16 %v2595_v34, %v2595_v34  ;;  %5177 = vmatpush.bf16.msrb.mxu3 %v7299_v13  ;;  %v7317_v13 = vld [vmem:[%s10373_s3 + $0x298] sm:$0xff] }
 0x449   :  { %v3347_v63 = vunpack.c.l.b16 %v2851_v23  ;;  %v7335_v23 = vld [vmem:[%s10373_s3 + $0x328] sm:$0xff] }
 0x44a   :  { %v9237_v61 = vpop.f32.mrf.mxu1  ;;  %5368 = vmatpush.bf16.msrb.mxu1 %v7336_v6 }
 0x44b   :  { %v1625_v5 = vpop.f32.mrf.mxu0 }
 0x44c   :  { %vm2084_vm9 = vcmp.ge.f32.partialorder %v1625_v5, 0.0  ;;  %v2340_v18 = vmul.f32 0.2, %v1625_v5 }
 0x44e   :  { %v2596_v11 = vsel %vm2084_vm9, %v1625_v5, %v2340_v18  ;;  %5369 = vmatpush.bf16.msrb.mxu1 %v7335_v23  ;;  %v7315_v23 = vld [vmem:[%s10373_s3 + $0x288] sm:$0xff] }
 0x44f   :  { %v2852_v26 = vpack.c.bf16 %v2596_v11, %v2596_v11 }
 0x451   :  { %v3348_v32 = vunpack.c.l.b16 %v2852_v26 }
 0x452   :  { %v5102_v12 = vpop.f32.mrf.mxu1 }
 0x453   :  { %v9240_v19 = vadd.f32 %v5102_v12, %v9105_v2  ;;  %v1628_v57 = vpop.f32.mrf.mxu0  ;;  %v3359_v53 = vpack.c.b16 %v3348_v32, %v3347_v63  ;;  %v7318_v2 = vld [vmem:[%s10373_s3 + $0x2a0] sm:$0xff] }
 0x454   :  { %v2341_v25 = vmul.f32 0.2, %v1628_v57  ;;  %vm2085_vm10 = vcmp.ge.f32.partialorder %v1628_v57, 0.0  ;;  %5272 = vmatpush.bf16.msra.mxu2 %v7318_v2  ;;  %v7334_v12 = vld [vmem:[%s10373_s3 + $0x320] sm:$0xff]  ;;  %v7333_v2 = vld [vmem:[%s10373_s3 + $0x318] sm:$0xff] }
 0x455   :  { %5150 = vmatmul.bf16.gmra.mxu2 %v3359_v53  ;;  %5248 = vmatmul.bf16.gmra.mxu1 %v10734_v59 }
 0x456   :  { %v2597_v30 = vsel %vm2085_vm10, %v1628_v57, %v2341_v25  ;;  %5370 = vmatpush.bf16.msrb.mxu1 %v7334_v12  ;;  %v10735_v25 = vpack.c.b16 %v8799_v50, %v8797_v37  ;;  %v7316_v50 = vld [vmem:[%s10373_s3 + $0x290] sm:$0xff] }
 0x457   :  { %v2853_v5 = vpack.c.bf16 %v2597_v30, %v2597_v30  ;;  %v7332_v37 = vld [vmem:[%s10373_s3 + $0x310] sm:$0xff] }
 0x458   :  { %5273 = vmatpush.bf16.msra.mxu2 %v7317_v13 }
 0x459   :  { %v3349_v26 = vunpack.c.l.b16 %v2853_v5 }
 0x45a   :  { %v9254_v3 = vpop.f32.mrf.mxu1  ;;  %5371 = vmatpush.bf16.msrb.mxu1 %v7333_v2  ;;  %v10736_v2 = vpack.c.b16 %v8830_v51, %v8824_v8 }
 0x45b   :  { %v1630_v45 = vpop.f32.mrf.mxu0 }
 0x45c   :  { %vm2086_vm11 = vcmp.ge.f32.partialorder %v1630_v45, 0.0  ;;  %v2342_v34 = vmul.f32 0.2, %v1630_v45  ;;  %5274 = vmatpush.bf16.msra.mxu2 %v7316_v50 }
 0x45e   :  { %v2598_v18 = vsel %vm2086_vm11, %v1630_v45, %v2342_v34  ;;  %5372 = vmatpush.bf16.msrb.mxu1 %v7332_v37 }
 0x45f   :  { %v2854_v11 = vpack.c.bf16 %v2598_v18, %v2598_v18 }
 0x460   :  { %5275 = vmatpush.bf16.msra.mxu2 %v7315_v23 }
 0x461   :  { %v3350_v63 = vunpack.c.l.b16 %v2854_v11  ;;  %v7331_v11 = vld [vmem:[%s10373_s3 + $0x308] sm:$0xff] }
 0x462   :  { %v5107_v32 = vpop.f32.mrf.mxu1  ;;  %5373 = vmatpush.bf16.msrb.mxu1 %v7331_v11 }
 0x463   :  { %v9266_v57 = vadd.f32 %v5107_v32, %v9132_v24  ;;  %v1633_v53 = vpop.f32.mrf.mxu0  ;;  %v3360_v59 = vpack.c.b16 %v3350_v63, %v3349_v26  ;;  %v7298_v24 = vld [vmem:[%s10373_s3 + $0x200] sm:$0xff] }
 0x464   :  { %v2343_v62 = vmul.f32 0.2, %v1633_v53  ;;  %vm2087_vm12 = vcmp.ge.f32.partialorder %v1633_v53, 0.0  ;;  %5178 = vmatpush.bf16.msrb.mxu3 %v7298_v24 }
 0x465   :  { %5155 = vmatmul.bf16.gmra.mxu2 %v3360_v59  ;;  %5253 = vmatmul.bf16.gmra.mxu1 %v10735_v25  ;;  %v7330_v59 = vld [vmem:[%s10373_s3 + $0x300] sm:$0xff] }
 0x466   :  { %v2599_v30 = vsel %vm2087_vm12, %v1633_v53, %v2343_v62  ;;  %v7314_v53 = vld [vmem:[%s10373_s3 + $0x280] sm:$0xff]  ;;  %5374 = vmatpush.bf16.msrb.mxu1 %v7330_v59 }
 0x467   :  { %v2855_v5 = vpack.c.bf16 %v2599_v30, %v2599_v30  ;;  %5276 = vmatpush.bf16.msra.mxu2 %v7314_v53  ;;  %v7329_v30 = vld [vmem:[%s10373_s3 + $0x2f8] sm:$0xff]  ;;  %v10739_v53 = vld [vmem:[#allocation39_spill] sm:$0xff] }
 0x468   :  { %5318 = vmatpush.bf16.msra.mxu3 %v7329_v30  ;;  %v2412_v59 = vmul.f32 0.2, %v10739_v53  ;;  %vm2156_vm3 = vcmp.ge.f32.partialorder %v10739_v53, 0.0 }
 0x469   :  { %v3351_v63 = vunpack.c.l.b16 %v2855_v5 }
 0x46a   :  { %v9280_v6 = vpop.f32.mrf.mxu1 }
 0x46b   :  { %v1635_v45 = vpop.f32.mrf.mxu0 }
 0x46c   :  { %vm2088_vm13 = vcmp.ge.f32.partialorder %v1635_v45, 0.0  ;;  %v2344_v34 = vmul.f32 0.2, %v1635_v45 }
 0x46e   :  { %v2600_v18 = vsel %vm2088_vm13, %v1635_v45, %v2344_v34 }
 0x46f   :  { %v2856_v26 = vpack.c.bf16 %v2600_v18, %v2600_v18 }
 0x471   :  { %v3352_v32 = vunpack.c.l.b16 %v2856_v26 }
 0x472   :  { %v5112_v12 = vpop.f32.mrf.mxu1 }
 0x473   :  { %v9301_v25 = vadd.f32 %v5112_v12, %v9159_v36  ;;  %v1638_v62 = vpop.f32.mrf.mxu0  ;;  %v3361_v13 = vpack.c.b16 %v3352_v32, %v3351_v63  ;;  %v10738_v32 = vld [vmem:[#allocation37_spill] sm:$0xff] }
 0x474   :  { %v2345_v24 = vmul.f32 0.2, %v1638_v62  ;;  %vm2089_vm14 = vcmp.ge.f32.partialorder %v1638_v62, 0.0  ;;  %v2411_v12 = vmul.f32 0.2, %v10738_v32  ;;  %vm2155_vm2 = vcmp.ge.f32.partialorder %v10738_v32, 0.0 }
 0x475   :  { %5160 = vmatmul.bf16.gmra.mxu2 %v3361_v13  ;;  %5258 = vmatmul.bf16.gmra.mxu1 %v10736_v2  ;;  %v2668_v2 = vsel %vm2156_vm3, %v10739_v53, %v2412_v59  ;;  %v10741_v59 = vld [vmem:[#allocation44_spill] sm:$0xff] }
 0x476   :  { %v2601_v50 = vsel %vm2089_vm14, %v1638_v62, %v2345_v24  ;;  %v10740_v62 = vpack.c.b16 %v8863_v46, %v8857_v56  ;;  %v7328_v24 = vld [vmem:[%s10373_s3 + $0x2f0] sm:$0xff]  ;;  %v2924_v56 = vpack.c.bf16 %v2668_v2, %v2668_v2  ;;  %vm2157_vm8 = vcmp.ge.f32.partialorder %v10741_v59, 0.0 }
 0x477   :  { %v2857_v34 = vpack.c.bf16 %v2601_v50, %v2601_v50  ;;  %5319 = vmatpush.bf16.msra.mxu3 %v7328_v24  ;;  %v10744_v24 = vld [vmem:[#allocation47_spill] sm:$0xff] }
 0x478   :  { %vm2158_vm9 = vcmp.ge.f32.partialorder %v10744_v24, 0.0 }
 0x479   :  { %v3353_v23 = vunpack.c.l.b16 %v2857_v34 }
 0x47a   :  { %v9309_v37 = vpop.f32.mrf.mxu1 }
 0x47b   :  { %v1640_v36 = vpop.f32.mrf.mxu0 }
 0x47c   :  { %vm2090_vm15 = vcmp.ge.f32.partialorder %v1640_v36, 0.0  ;;  %v2346_v45 = vmul.f32 0.2, %v1640_v36 }
 0x47e   :  { %v2602_v5 = vsel %vm2090_vm15, %v1640_v36, %v2346_v45 }
 0x47f   :  { %v2858_v18 = vpack.c.bf16 %v2602_v5, %v2602_v5 }
 0x481   :  { %v3354_v11 = vunpack.c.l.b16 %v2858_v18 }
 0x482   :  { %v5117_v8 = vpop.f32.mrf.mxu1 }
 0x483   :  { %v9312_v51 = vadd.f32 %v5117_v8, %v9171_v27  ;;  %v1643_v26 = vpop.f32.mrf.mxu0  ;;  %v3362_v63 = vpack.c.b16 %v3354_v11, %v3353_v23  ;;  %v2667_v27 = vsel %vm2155_vm2, %v10738_v32, %v2411_v12  ;;  %v3580_v23 = vunpack.c.l.b16 %v2924_v56  ;;  %v9326_v11 = vpop.f32.mrf.mxu2 }
 0x484   :  { %v2347_v13 = vmul.f32 0.2, %v1643_v26  ;;  %vm2091_vm4 = vcmp.ge.f32.partialorder %v1643_v26, 0.0  ;;  %v2923_v36 = vpack.c.bf16 %v2667_v27, %v2667_v27  ;;  %v10743_v27 = vld [vmem:[#allocation56_spill] sm:$0xff] }
 0x485   :  { %10737 = vst [vmem:[#allocation13_spill] sm:$0xff] %v9312_v51  ;;  %5165 = vmatmul.bf16.gmra.mxu2 %v3362_v63  ;;  %5263 = vmatmul.bf16.gmra.mxu1 %v10740_v62  ;;  %v10742_v62 = vld [vmem:[#allocation53_spill] sm:$0xff]  ;;  %v2382_v2 = vmul.f32 0.2, %v10743_v27  ;;  %v2414_v51 = vmul.f32 0.2, %v10744_v24 }
 0x486   :  { %v2603_v30 = vsel %vm2091_vm4, %v1643_v26, %v2347_v13  ;;  %v3579_v18 = vunpack.c.l.b16 %v2923_v36  ;;  %v2413_v26 = vmul.f32 0.2, %v10741_v59  ;;  %v2381_v13 = vmul.f32 0.2, %v10742_v62 }
 0x487   :  { %v2859_v45 = vpack.c.bf16 %v2603_v30, %v2603_v30  ;;  %vm2125_vm6 = vcmp.ge.f32.partialorder %v10742_v62, 0.0  ;;  %vm2126_vm7 = vcmp.ge.f32.partialorder %v10743_v27, 0.0  ;;  %v10745_v30 = vld [vmem:[#allocation76_spill] sm:$0xff] }
 0x488   :  { %v3595_v53 = vpack.c.b16 %v3580_v23, %v3579_v18 }
 0x489   :  { %v3387_v8 = vunpack.c.l.b16 %v2859_v45  ;;  %v10749_v45 = vld [vmem:[#allocation50_spill] sm:$0xff] }
 0x48a   :  { %v9336_v56 = vpop.f32.mrf.mxu1 }
 0x48b   :  { %v1645_v50 = vpop.f32.mrf.mxu0  ;;  %10747 = vst [vmem:[#allocation12_spill] sm:$0xff] %v9336_v56 }
 0x48c   :  { %vm2092_vm5 = vcmp.ge.f32.partialorder %v1645_v50, 0.0  ;;  %v2348_v46 = vmul.f32 0.2, %v1645_v50 }
 0x48e   :  { %v2604_v34 = vsel %vm2092_vm5, %v1645_v50, %v2348_v46  ;;  %v10746_v50 = vld [vmem:[#allocation73_spill] sm:$0xff]  ;;  %v10748_v46 = vld [vmem:[#allocation51_spill] sm:$0xff] }
 0x48f   :  { %v2860_v5 = vpack.c.bf16 %v2604_v34, %v2604_v34  ;;  %v4840_v36 = vadd.f32 %v10746_v50, %v10745_v30  ;;  %v10750_v34 = vpack.c.b16 %v10748_v46, %v10749_v45  ;;  %v2669_v30 = vsel %vm2157_vm8, %v10741_v59, %v2413_v26 }
 0x490   :  { %v2670_v50 = vsel %vm2158_vm9, %v10744_v24, %v2414_v51 }
 0x491   :  { %v3388_v63 = vunpack.c.l.b16 %v2860_v5  ;;  %v7327_v5 = vld [vmem:[%s10373_s3 + $0x2e8] sm:$0xff]  ;;  %v4889_v23 = vadd.f32 %v8359_v20, %v4840_v36 }
 0x492   :  { %5320 = vmatpush.bf16.msra.mxu3 %v7327_v5  ;;  %v2925_v5 = vpack.c.bf16 %v2669_v30, %v2669_v30 }
 0x493   :  { %v3403_v32 = vpack.c.b16 %v3388_v63, %v3387_v8  ;;  %v1648_v12 = vpop.f32.mrf.mxu0  ;;  %v2637_v8 = vsel %vm2125_vm6, %v10742_v62, %v2381_v13  ;;  %v2638_v63 = vsel %vm2126_vm7, %v10743_v27, %v2382_v2  ;;  %v4938_v46 = vadd.f32 %v8545_v49, %v4889_v23  ;;  %v9358_v2 = vpop.f32.mrf.mxu1 }
 0x494   :  { %v2349_v18 = vmul.f32 0.2, %v1648_v12  ;;  %vm2093_vm10 = vcmp.ge.f32.partialorder %v1648_v12, 0.0  ;;  %v2894_v56 = vpack.c.bf16 %v2638_v63, %v2638_v63  ;;  %v2926_v62 = vpack.c.bf16 %v2670_v50, %v2670_v50 }
 0x495   :  { %5179 = vmatmul.bf16.vlgmr.msrb.gmra.mxu3 %v3403_v32  ;;  %5277 = vmatmul.bf16.vlgmr.msra.gmra.mxu2 %v10750_v34  ;;  %v4987_v20 = vadd.f32 %v8861_v54, %v4938_v46  ;;  %v3581_v24 = vunpack.c.l.b16 %v2925_v5  ;;  %v10756_v5 = vld [vmem:[#allocation77_spill] sm:$0xff] }
 0x496   :  { %5375 = vmatmul.bf16.vlgmr.msrb.gmra.mxu1 %v3595_v53  ;;  %v2605_v34 = vsel %vm2093_vm10, %v1648_v12, %v2349_v18  ;;  %v2893_v53 = vpack.c.bf16 %v2637_v8, %v2637_v8  ;;  %v3486_v12 = vunpack.c.l.b16 %v2894_v56  ;;  %v3582_v23 = vunpack.c.l.b16 %v2926_v62  ;;  %v10755_v56 = vld [vmem:[#allocation79_spill] sm:$0xff] }
 0x497   :  { %v5036_v27 = vadd.f32 %v9045_v33, %v4987_v20  ;;  %v2861_v59 = vpack.c.bf16 %v2605_v34, %v2605_v34  ;;  %v10751_v33 = vld [vmem:[#allocation49_spill] sm:$0xff]  ;;  %v10752_v34 = vld [vmem:[#allocation59_spill] sm:$0xff]  ;;  %v10753_v20 = vld [vmem:[#allocation62_spill] sm:$0xff]  ;;  %v4845_v62 = vadd.f32 %v10756_v5, %v10755_v56 }
 0x498   :  { %v5131_v32 = vpop.f32.mrf.mxu2  ;;  %v3485_v51 = vunpack.c.l.b16 %v2893_v53  ;;  %v2415_v46 = vmul.f32 0.2, %v10751_v33  ;;  %v2383_v53 = vmul.f32 0.2, %v10752_v34  ;;  %vm2127_vm12 = vcmp.ge.f32.partialorder %v10752_v34, 0.0 }
 0x499   :  { %v9353_v45 = vadd.f32 %v5131_v32, %v9182_v14  ;;  %v5085_v49 = vadd.f32 %v9191_v22, %v5036_v27  ;;  %v3389_v54 = vunpack.c.l.b16 %v2861_v59  ;;  %v2384_v22 = vmul.f32 0.2, %v10753_v20  ;;  %v7326_v59 = vld [vmem:[%s10373_s3 + $0x2e0] sm:$0xff] }
 0x49a   :  { %v3500_v50 = vpack.c.b16 %v3486_v12, %v3485_v51  ;;  %vm2128_vm13 = vcmp.ge.f32.partialorder %v10753_v20, 0.0  ;;  %vm2159_vm14 = vcmp.ge.f32.partialorder %v10751_v33, 0.0  ;;  %v4894_v51 = vadd.f32 %v8380_v38, %v4845_v62  ;;  %5321 = vmatpush.bf16.msra.mxu3 %v7326_v59  ;;  %v7345_v38 = vld [vmem:[%s10373_s3 + $0x378] sm:$0xff] }
 0x49b   :  { %v1650_v36 = vpop.f32.mrf.mxu0  ;;  %5416 = vmatpush.bf16.msrb.mxu2 %v7345_v38  ;;  %v10759_v38 = vld [vmem:[#allocation67_spill] sm:$0xff] }
 0x49c   :  { %vm2094_vm11 = vcmp.ge.f32.partialorder %v1650_v36, 0.0  ;;  %v2350_v13 = vmul.f32 0.2, %v1650_v36  ;;  %vm2130_vm5 = vcmp.ge.f32.partialorder %v10759_v38, 0.0 }
 0x49e   :  { %v2606_v26 = vsel %vm2094_vm11, %v1650_v36, %v2350_v13  ;;  %v3596_v36 = vpack.c.b16 %v3582_v23, %v3581_v24  ;;  %v10754_v13 = vld [vmem:[#allocation54_spill] sm:$0xff]  ;;  %v2671_v24 = vsel %vm2159_vm14, %v10751_v33, %v2415_v46  ;;  %v4943_v23 = vadd.f32 %v8582_v58, %v4894_v51 }
 0x49f   :  { %v2862_v14 = vpack.c.bf16 %v2606_v26, %v2606_v26  ;;  %v2416_v27 = vmul.f32 0.2, %v10754_v13  ;;  %vm2160_vm15 = vcmp.ge.f32.partialorder %v10754_v13, 0.0  ;;  %v2927_v33 = vpack.c.bf16 %v2671_v24, %v2671_v24  ;;  %v10757_v24 = vld [vmem:[#allocation57_spill] sm:$0xff] }
 0x4a0   :  { %v5133_v18 = vpop.f32.mrf.mxu2  ;;  %vm2161_vm6 = vcmp.ge.f32.partialorder %v10757_v24, 0.0 }
 0x4a1   :  { %v3390_v8 = vunpack.c.l.b16 %v2862_v14  ;;  %v9360_v63 = vadd.f32 %v5133_v18, %v5085_v49  ;;  %v2639_v49 = vsel %vm2127_vm12, %v10752_v34, %v2383_v53  ;;  %v2640_v14 = vsel %vm2128_vm13, %v10753_v20, %v2384_v22 }
 0x4a2   :  { %v2672_v18 = vsel %vm2160_vm15, %v10754_v13, %v2416_v27  ;;  %v2896_v34 = vpack.c.bf16 %v2640_v14, %v2640_v14  ;;  %v4992_v53 = vadd.f32 %v8886_v31, %v4943_v23 }
 0x4a3   :  { %v1653_v32 = vpop.f32.mrf.mxu0  ;;  %v3404_v30 = vpack.c.b16 %v3390_v8, %v3389_v54  ;;  %v9381_v54 = vpop.f32.mrf.mxu1  ;;  %v2928_v46 = vpack.c.bf16 %v2672_v18, %v2672_v18  ;;  %v10758_v18 = vld [vmem:[#allocation64_spill] sm:$0xff] }
 0x4a4   :  { %v2351_v26 = vmul.f32 0.2, %v1653_v32  ;;  %vm2095_vm2 = vcmp.ge.f32.partialorder %v1653_v32, 0.0  ;;  %v5041_v22 = vadd.f32 %v9069_v40, %v4992_v53  ;;  %v3488_v5 = vunpack.c.l.b16 %v2896_v34  ;;  %v10761_v53 = vld [vmem:[#allocation84_spill] sm:$0xff] }
 0x4a5   :  { %5184 = vmatmul.bf16.gmra.mxu3 %v3404_v30  ;;  %5282 = vmatmul.bf16.gmra.mxu2 %v3500_v50  ;;  %v2895_v50 = vpack.c.bf16 %v2639_v49, %v2639_v49  ;;  %v3584_v59 = vunpack.c.l.b16 %v2928_v46  ;;  %v2417_v40 = vmul.f32 0.2, %v10757_v24  ;;  %v2385_v23 = vmul.f32 0.2, %v10758_v18  ;;  %v7325_v46 = vld [vmem:[%s10373_s3 + $0x2d8] sm:$0xff] }
 0x4a6   :  { %5380 = vmatmul.bf16.gmra.mxu1 %v3596_v36  ;;  %v2607_v30 = vsel %vm2095_vm2, %v1653_v32, %v2351_v26  ;;  %v5090_v27 = vadd.f32 %v9209_v4, %v5041_v22  ;;  %v3583_v32 = vunpack.c.l.b16 %v2927_v33  ;;  %vm2129_vm4 = vcmp.ge.f32.partialorder %v10758_v18, 0.0  ;;  %5322 = vmatpush.bf16.msra.mxu3 %v7325_v46 }
 0x4a7   :  { %v2863_v36 = vpack.c.bf16 %v2607_v30, %v2607_v30  ;;  %v3487_v13 = vunpack.c.l.b16 %v2895_v50  ;;  %v2386_v30 = vmul.f32 0.2, %v10759_v38  ;;  %v10760_v50 = vld [vmem:[#allocation61_spill] sm:$0xff]  ;;  %v2641_v22 = vsel %vm2129_vm4, %v10758_v18, %v2385_v23 }
 0x4a8   :  { %v5136_v12 = vpop.f32.mrf.mxu2  ;;  %v3597_v4 = vpack.c.b16 %v3584_v59, %v3583_v32  ;;  %v2418_v34 = vmul.f32 0.2, %v10760_v50  ;;  %vm2162_vm7 = vcmp.ge.f32.partialorder %v10760_v50, 0.0  ;;  %v7344_v32 = vld [vmem:[%s10373_s3 + $0x370] sm:$0xff] }
 0x4a9   :  { %v9384_v8 = vadd.f32 %v5136_v12, %v9197_v43  ;;  %v3391_v26 = vunpack.c.l.b16 %v2863_v36  ;;  %v3501_v12 = vpack.c.b16 %v3488_v5, %v3487_v13  ;;  %v2642_v36 = vsel %vm2130_vm5, %v10759_v38, %v2386_v30  ;;  %5417 = vmatpush.bf16.msrb.mxu2 %v7344_v32 }
 0x4aa   :  { %v2673_v13 = vsel %vm2161_vm6, %v10757_v24, %v2417_v40 }
 0x4ab   :  { %v1655_v20 = vpop.f32.mrf.mxu0  ;;  %v9394_v49 = vpop.f32.mrf.mxu1 }
 0x4ac   :  { %vm2096_vm3 = vcmp.ge.f32.partialorder %v1655_v20, 0.0  ;;  %v2352_v58 = vmul.f32 0.2, %v1655_v20 }
 0x4ae   :  { %v2608_v43 = vsel %vm2096_vm3, %v1655_v20, %v2352_v58  ;;  %v10762_v20 = vld [vmem:[#allocation80_spill] sm:$0xff] }
 0x4af   :  { %v2864_v56 = vpack.c.bf16 %v2608_v43, %v2608_v43  ;;  %v4850_v33 = vadd.f32 %v10762_v20, %v10761_v53  ;;  %v10765_v53 = vld [vmem:[#allocation72_spill] sm:$0xff] }
 0x4b0   :  { %v5138_v62 = vpop.f32.mrf.mxu2  ;;  %v2388_v20 = vmul.f32 0.2, %v10765_v53  ;;  %vm2132_vm9 = vcmp.ge.f32.partialorder %v10765_v53, 0.0 }
 0x4b1   :  { %v3392_v31 = vunpack.c.l.b16 %v2864_v56  ;;  %v9392_v51 = vadd.f32 %v5138_v62, %v5090_v27  ;;  %v4899_v58 = vadd.f32 %v8420_v15, %v4850_v33  ;;  %v2674_v27 = vsel %vm2162_vm7, %v10760_v50, %v2418_v34 }
 0x4b2   :  { %v2897_v15 = vpack.c.bf16 %v2641_v22, %v2641_v22  ;;  %v2898_v62 = vpack.c.bf16 %v2642_v36, %v2642_v36  ;;  %v10769_v36 = vpack.c.b16 %v8414_v10, %v8407_v44  ;;  %v2644_v44 = vsel %vm2132_vm9, %v10765_v53, %v2388_v20  ;;  %v10770_v53 = vld [vmem:[#allocation92_spill] sm:$0xff] }
 0x4b3   :  { %v3405_v14 = vpack.c.b16 %v3392_v31, %v3391_v26  ;;  %v4948_v56 = vadd.f32 %v8624_v29, %v4899_v58  ;;  %v2929_v26 = vpack.c.bf16 %v2673_v13, %v2673_v13  ;;  %v2930_v31 = vpack.c.bf16 %v2674_v27, %v2674_v27  ;;  %v10768_v58 = vld [vmem:[#allocation85_spill] sm:$0xff] }
 0x4b4   :  { %v3489_v24 = vunpack.c.l.b16 %v2897_v15 }
 0x4b5   :  { %5189 = vmatmul.bf16.gmra.mxu3 %v3405_v14  ;;  %5287 = vmatmul.bf16.gmra.mxu2 %v3501_v12  ;;  %v4997_v59 = vadd.f32 %v8907_v21, %v4948_v56  ;;  %v9423_v12 = vpop.f32.mrf.mxu1  ;;  %v3585_v40 = vunpack.c.l.b16 %v2929_v26  ;;  %v3586_v23 = vunpack.c.l.b16 %v2930_v31  ;;  %v10764_v21 = vld [vmem:[#allocation70_spill] sm:$0xff]  ;;  %v2900_v31 = vpack.c.bf16 %v2644_v44, %v2644_v44 }
 0x4b6   :  { %5385 = vmatmul.bf16.gmra.mxu1 %v3597_v4  ;;  %v10763_v4 = vld [vmem:[#allocation65_spill] sm:$0xff]  ;;  %v2387_v34 = vmul.f32 0.2, %v10764_v21  ;;  %vm2131_vm8 = vcmp.ge.f32.partialorder %v10764_v21, 0.0  ;;  %v10774_v44 = vld [vmem:[#allocation94_spill] sm:$0xff] }
 0x4b7   :  { %v5046_v14 = vadd.f32 %v9083_v48, %v4997_v59  ;;  %v2419_v50 = vmul.f32 0.2, %v10763_v4  ;;  %v3598_v33 = vpack.c.b16 %v3586_v23, %v3585_v40  ;;  %v10766_v48 = vld [vmem:[#allocation68_spill] sm:$0xff]  ;;  %vm2163_vm10 = vcmp.ge.f32.partialorder %v10763_v4, 0.0 }
 0x4b8   :  { %v5141_v43 = vpop.f32.mrf.mxu2  ;;  %v2420_v46 = vmul.f32 0.2, %v10766_v48  ;;  %vm2164_vm11 = vcmp.ge.f32.partialorder %v10766_v48, 0.0  ;;  %v2643_v56 = vsel %vm2131_vm8, %v10764_v21, %v2387_v34 }
 0x4b9   :  { %v9416_v5 = vadd.f32 %v5141_v43, %v9212_v42  ;;  %v5095_v29 = vadd.f32 %v9223_v52, %v5046_v14  ;;  %v3490_v42 = vunpack.c.l.b16 %v2898_v62  ;;  %v10767_v52 = vld [vmem:[#allocation88_spill] sm:$0xff]  ;;  %v7324_v43 = vld [vmem:[%s10373_s3 + $0x2d0] sm:$0xff]  ;;  %v2675_v32 = vsel %vm2163_vm10, %v10763_v4, %v2419_v50 }
 0x4ba   :  { %v4855_v22 = vadd.f32 %v10768_v58, %v10767_v52  ;;  %5323 = vmatpush.bf16.msra.mxu3 %v7324_v43  ;;  %v2676_v15 = vsel %vm2164_vm11, %v10766_v48, %v2420_v46  ;;  %v2899_v26 = vpack.c.bf16 %v2643_v56, %v2643_v56  ;;  %v7360_v58 = vld [vmem:[%s10373_s3 + $0x3f0] sm:$0xff]  ;;  %v10773_v56 = vld [vmem:[#allocation96_spill] sm:$0xff] }
 0x4bb   :  { %v3502_v30 = vpack.c.b16 %v3490_v42, %v3489_v24  ;;  %v2931_v24 = vpack.c.bf16 %v2675_v32, %v2675_v32 }
 0x4bc   :  { %v4904_v13 = vadd.f32 %v8463_v17, %v4855_v22  ;;  %v7343_v17 = vld [vmem:[%s10373_s3 + $0x368] sm:$0xff]  ;;  %v3491_v40 = vunpack.c.l.b16 %v2899_v26  ;;  %v10779_v26 = vld [vmem:[#allocation107_spill] sm:$0xff] }
 0x4bd   :  { %v9445_v27 = vpop.f32.mrf.mxu1  ;;  %5418 = vmatpush.bf16.msrb.mxu2 %v7343_v17  ;;  %v3587_v23 = vunpack.c.l.b16 %v2931_v24  ;;  %v7322_v17 = vld [vmem:[%s10373_s3 + $0x2c0] sm:$0xff]  ;;  %v7341_v24 = vld [vmem:[%s10373_s3 + $0x358] sm:$0xff] }
 0x4be   :  { %v4953_v62 = vadd.f32 %v8671_v60, %v4904_v13  ;;  %v3492_v60 = vunpack.c.l.b16 %v2900_v31  ;;  %v10780_v31 = vld [vmem:[#allocation106_spill] sm:$0xff] }
 0x4c0   :  { %v5143_v18 = vpop.f32.mrf.mxu2  ;;  %v5002_v14 = vadd.f32 %v8928_v39, %v4953_v62  ;;  %v3503_v21 = vpack.c.b16 %v3492_v60, %v3491_v40  ;;  %v10771_v39 = vld [vmem:[#allocation89_spill] sm:$0xff]  ;;  %v10783_v40 = vld [vmem:[#allocation22_spill] sm:$0xff] }
 0x4c1   :  { %v9426_v38 = vadd.f32 %v5143_v18, %v5095_v29  ;;  %v2932_v29 = vpack.c.bf16 %v2676_v15, %v2676_v15  ;;  %v4860_v20 = vadd.f32 %v10771_v39, %v10770_v53  ;;  %v10775_v15 = vpack.c.b16 %v8485_v7, %v8483_v28  ;;  %v7357_v7 = vld [vmem:[%s10373_s3 + $0x3d8] sm:$0xff]  ;;  %v10782_v28 = vld [vmem:[#allocation117_spill] sm:$0xff] }
 0x4c2   :  { %v5051_v42 = vadd.f32 %v9095_v47, %v5002_v14  ;;  %v7323_v47 = vld [vmem:[%s10373_s3 + $0x2c8] sm:$0xff]  ;;  %v10781_v14 = vpack.c.b16 %v10779_v26, %v10780_v31  ;;  %v10785_v53 = vld [vmem:[#allocation90_spill] sm:$0xff] }
 0x4c3   :  { %v4909_v48 = vadd.f32 %v8489_v41, %v4860_v20  ;;  %5324 = vmatpush.bf16.msra.mxu3 %v7323_v47  ;;  %v7359_v41 = vld [vmem:[%s10373_s3 + $0x3e8] sm:$0xff] }
 0x4c4   :  { %v5100_v18 = vadd.f32 %v9237_v61, %v5051_v42  ;;  %v7361_v61 = vld [vmem:[%s10373_s3 + $0x3f8] sm:$0xff] }
 0x4c5   :  { %5194 = vmatmul.bf16.gmra.mxu3 %v10769_v36  ;;  %5292 = vmatmul.bf16.gmra.mxu2 %v3502_v30  ;;  %v3588_v30 = vunpack.c.l.b16 %v2932_v29  ;;  %v9461_v4 = vpop.f32.mrf.mxu1  ;;  %v4958_v52 = vadd.f32 %v8714_v9, %v4909_v48  ;;  %v7338_v48 = vld [vmem:[%s10373_s3 + $0x340] sm:$0xff] }
 0x4c6   :  { %5390 = vmatmul.bf16.gmra.mxu1 %v3598_v33  ;;  %v10772_v33 = vpack.c.b16 %v8459_v55, %v8452_v1  ;;  %v7342_v55 = vld [vmem:[%s10373_s3 + $0x360] sm:$0xff] }
 0x4c7   :  { %v3599_v34 = vpack.c.b16 %v3588_v30, %v3587_v23  ;;  %5514 = vmatpush.bf16.msra.mxu1 %v7361_v61  ;;  %v5007_v22 = vadd.f32 %v8958_v35, %v4958_v52  ;;  %5419 = vmatpush.bf16.msrb.mxu2 %v7342_v55  ;;  %v7358_v35 = vld [vmem:[%s10373_s3 + $0x3e0] sm:$0xff]  ;;  %v7340_v23 = vld [vmem:[%s10373_s3 + $0x350] sm:$0xff]  ;;  %v10784_v30 = vld [vmem:[#allocation66_spill] sm:$0xff] }
 0x4c8   :  { %v5146_v10 = vpop.f32.mrf.mxu2  ;;  %5325 = vmatpush.bf16.msra.mxu3 %v7322_v17  ;;  %v10786_v52 = vld [vmem:[#allocation100_spill] sm:$0xff]  ;;  %v10787_v55 = vld [vmem:[#allocation98_spill] sm:$0xff] }
 0x4c9   :  { %v9453_v59 = vadd.f32 %v5146_v10, %v9226_v16  ;;  %v5056_v9 = vadd.f32 %v9116_v0, %v5007_v22  ;;  %v4865_v10 = vadd.f32 %v10774_v44, %v10773_v56  ;;  %v10776_v0 = vld [vmem:[#allocation126_spill] sm:$0xff]  ;;  %v10794_v56 = vld [vmem:[#allocation109_spill] sm:$0xff]  ;;  %v10795_v44 = vld [vmem:[#allocation108_spill] sm:$0xff] }
 0x4ca   :  { %v10789_v22 = vld [vmem:[#allocation114_spill] sm:$0xff] }
 0x4cb   :  { %5515 = vmatpush.bf16.msra.mxu1 %v7360_v58  ;;  %v4914_v29 = vadd.f32 %v10782_v28, %v4865_v10  ;;  %5420 = vmatpush.bf16.msrb.mxu2 %v7341_v24  ;;  %v10788_v58 = vld [vmem:[#allocation116_spill] sm:$0xff]  ;;  %v10796_v10 = vpack.c.b16 %v10794_v56, %v10795_v44 }
 0x4cc   :  { %v10815_v56 = vld [vmem:[#allocation12_spill] sm:$0xff] }
 0x4cd   :  { %v9488_v36 = vpop.f32.mrf.mxu1 }
 0x4cf   :  { %5516 = vmatpush.bf16.msra.mxu1 %v7359_v41  ;;  %5421 = vmatpush.bf16.msrb.mxu2 %v7340_v23  ;;  %v10790_v41 = vpack.c.b16 %v10788_v58, %v10789_v22  ;;  %v10801_v23 = vld [vmem:[#allocation112_spill] sm:$0xff]  ;;  %v10814_v22 = vld [vmem:[#allocation13_spill] sm:$0xff] }
 0x4d0   :  { %v5148_v16 = vpop.f32.mrf.mxu2 }
 0x4d1   :  { %v9463_v50 = vadd.f32 %v5148_v16, %v5100_v18  ;;  %v4963_v18 = vadd.f32 %v10783_v40, %v4914_v29  ;;  %v7356_v16 = vld [vmem:[%s10373_s3 + $0x3d0] sm:$0xff] }
 0x4d3   :  { %5517 = vmatpush.bf16.msra.mxu1 %v7358_v35  ;;  %v7353_v35 = vld [vmem:[%s10373_s3 + $0x3b8] sm:$0xff] }
 0x4d4   :  { %5465 = vmatpush.bf16.msrb.mxu3 %v7353_v35 }
 0x4d5   :  { %5199 = vmatmul.bf16.gmra.mxu3 %v10772_v33  ;;  %5297 = vmatmul.bf16.gmra.mxu2 %v3503_v21  ;;  %v9502_v32 = vpop.f32.mrf.mxu1  ;;  %v5012_v21 = vadd.f32 %v10784_v30, %v4963_v18 }
 0x4d6   :  { %5395 = vmatmul.bf16.gmra.mxu1 %v3599_v34  ;;  %v7339_v34 = vld [vmem:[%s10373_s3 + $0x348] sm:$0xff] }
 0x4d7   :  { %5518 = vmatpush.bf16.msra.mxu1 %v7357_v7  ;;  %v5061_v39 = vadd.f32 %v10785_v53, %v5012_v21  ;;  %5422 = vmatpush.bf16.msrb.mxu2 %v7339_v34  ;;  %v10800_v7 = vld [vmem:[#allocation91_spill] sm:$0xff]  ;;  %v10803_v21 = vld [vmem:[#allocation121_spill] sm:$0xff]  ;;  %v10807_v53 = vld [vmem:[#allocation18_spill] sm:$0xff] }
 0x4d8   :  { %v5151_v46 = vpop.f32.mrf.mxu2  ;;  %v10804_v34 = vld [vmem:[#allocation119_spill] sm:$0xff] }
 0x4d9   :  { %v9479_v1 = vadd.f32 %v5151_v46, %v9240_v19  ;;  %v5105_v19 = vadd.f32 %v9254_v3, %v5056_v9  ;;  %v10777_v3 = vld [vmem:[#allocation125_spill] sm:$0xff]  ;;  %v5110_v20 = vadd.f32 %v9280_v6, %v5061_v39  ;;  %v7354_v46 = vld [vmem:[%s10373_s3 + $0x3c0] sm:$0xff]  ;;  %v4870_v6 = vadd.f32 %v10787_v55, %v10786_v52  ;;  %v10791_v9 = vld [vmem:[#allocation130_spill] sm:$0xff] }
 0x4da   :  { %v10778_v62 = vpack.c.b16 %v10776_v0, %v10777_v3 }
 0x4db   :  { %5519 = vmatpush.bf16.msra.mxu1 %v7356_v16  ;;  %5423 = vmatpush.bf16.msrb.mxu2 %v7338_v48  ;;  %v10802_v16 = vld [vmem:[#allocation33_spill] sm:$0xff] }
 0x4dc   :  { %v4875_v30 = vadd.f32 %v10802_v16, %v10801_v23  ;;  %v10824_v23 = vld [vmem:[#allocation82_spill] sm:$0xff]  ;;  %v10825_v16 = vld [vmem:[#allocation81_spill] sm:$0xff] }
 0x4dd   :  { %v9542_v33 = vpop.f32.mrf.mxu1 }
 0x4e0   :  { %v5153_v43 = vpop.f32.mrf.mxu2 }
 0x4e1   :  { %v9495_v13 = vadd.f32 %v5153_v43, %v5105_v19  ;;  %v10792_v19 = vld [vmem:[#allocation129_spill] sm:$0xff] }
 0x4e2   :  { %v10793_v43 = vpack.c.b16 %v10791_v9, %v10792_v19  ;;  %v5070_v9 = vpop.f32.mrf.mxu3 }
 0x4e5   :  { %5204 = vmatmul.bf16.gmra.mxu3 %v10775_v15  ;;  %5302 = vmatmul.bf16.gmra.mxu2 %v10778_v62  ;;  %v10797_v15 = vld [vmem:[#allocation122_spill] sm:$0xff]  ;;  %v9568_v26 = vpop.f32.mrf.mxu1 }
 0x4e6   :  { %5400 = vmatmul.bf16.gmra.mxu1 %v10781_v14  ;;  %v4919_v0 = vadd.f32 %v10797_v15, %v4870_v6  ;;  %v10798_v62 = vld [vmem:[#allocation34_spill] sm:$0xff]  ;;  %v10799_v14 = vld [vmem:[#allocation69_spill] sm:$0xff] }
 0x4e7   :  { %v10813_v6 = vld [vmem:[#allocation93_spill] sm:$0xff] }
 0x4e8   :  { %v5156_v42 = vpop.f32.mrf.mxu2  ;;  %v4968_v17 = vadd.f32 %v10798_v62, %v4919_v0  ;;  %v10816_v0 = vld [vmem:[#allocation9_spill] sm:$0xff]  ;;  %v10817_v62 = vld [vmem:[#allocation10_spill] sm:$0xff] }
 0x4e9   :  { %v9525_v60 = vadd.f32 %v5156_v42, %v9266_v57  ;;  %v7355_v57 = vld [vmem:[%s10373_s3 + $0x3c8] sm:$0xff]  ;;  %vm2141_vm12 = vcmp.ge.f32.partialorder %v10816_v0, 0.0  ;;  %vm2142_vm13 = vcmp.ge.f32.partialorder %v10817_v62, 0.0 }
 0x4ea   :  { %5520 = vmatpush.bf16.msra.mxu1 %v7355_v57  ;;  %v5017_v24 = vadd.f32 %v10799_v14, %v4968_v17  ;;  %v10805_v57 = vpack.c.b16 %v10803_v21, %v10804_v34  ;;  %v2398_v17 = vmul.f32 0.2, %v10817_v62  ;;  %v10818_v14 = vld [vmem:[#allocation8_spill] sm:$0xff] }
 0x4ec   :  { %v5066_v28 = vadd.f32 %v10800_v7, %v5017_v24  ;;  %v10819_v24 = vld [vmem:[#allocation6_spill] sm:$0xff] }
 0x4ed   :  { %v9578_v18 = vpop.f32.mrf.mxu1  ;;  %v10820_v7 = vpack.c.b16 %v10818_v14, %v10819_v24 }
 0x4ee   :  { %5521 = vmatpush.bf16.msra.mxu1 %v7354_v46  ;;  %v5115_v29 = vadd.f32 %v9309_v37, %v5066_v28  ;;  %v7352_v37 = vld [vmem:[%s10373_s3 + $0x3b0] sm:$0xff]  ;;  %v10812_v46 = vld [vmem:[#allocation75_spill] sm:$0xff] }
 0x4ef   :  { %v4924_v52 = vadd.f32 %v10812_v46, %v4875_v30  ;;  %5466 = vmatpush.bf16.msrb.mxu3 %v7352_v37  ;;  %v10822_v28 = vld [vmem:[#allocation5_spill] sm:$0xff]  ;;  %v10826_v30 = vpack.c.b16 %v10824_v23, %v10825_v16 }
 0x4f0   :  { %v5158_v47 = vpop.f32.mrf.mxu2 }
 0x4f1   :  { %v9544_v61 = vadd.f32 %v5158_v47, %v5110_v20  ;;  %v10809_v20 = vld [vmem:[#allocation111_spill] sm:$0xff]  ;;  %v10810_v47 = vld [vmem:[#allocation110_spill] sm:$0xff]  ;;  %v4973_v58 = vadd.f32 %v10813_v6, %v4924_v52 }
 0x4f2   :  { %v10811_v48 = vpack.c.b16 %v10809_v20, %v10810_v47 }
 0x4f3   :  { %v5022_v19 = vadd.f32 %v9326_v11, %v4973_v58  ;;  %v10821_v11 = vld [vmem:[#allocation7_spill] sm:$0xff] }
 0x4f5   :  { %5209 = vmatmul.bf16.gmra.mxu3 %v10790_v41  ;;  %5307 = vmatmul.bf16.gmra.mxu2 %v10793_v43  ;;  %v5071_v43 = vadd.f32 %v5070_v9, %v5022_v19  ;;  %v9600_v35 = vpop.f32.mrf.mxu1 }
 0x4f6   :  { %5405 = vmatmul.bf16.gmra.mxu1 %v10796_v10 }
 0x4f7   :  { %v5120_v44 = vadd.f32 %v10815_v56, %v5071_v43  ;;  %v10827_v43 = vld [vmem:[#allocation11_spill] sm:$0xff] }
 0x4f8   :  { %v5161_v3 = vpop.f32.mrf.mxu2  ;;  %v2399_v56 = vmul.f32 0.2, %v10827_v43  ;;  %vm2143_vm14 = vcmp.ge.f32.partialorder %v10827_v43, 0.0 }
 0x4f9   :  { %v9571_v31 = vadd.f32 %v5161_v3, %v9301_v25  ;;  %v10806_v25 = vld [vmem:[#allocation4_spill] sm:$0xff]  ;;  %v2397_v3 = vmul.f32 0.2, %v10816_v0 }
 0x4fa   :  { %v10808_v39 = vpack.c.b16 %v10806_v25, %v10807_v53  ;;  %v2655_v14 = vsel %vm2143_vm14, %v10827_v43, %v2399_v56  ;;  %v10841_v56 = vld [vmem:[#allocation78_spill] sm:$0xff] }
 0x4fb   :  { %v2653_v34 = vsel %vm2141_vm12, %v10816_v0, %v2397_v3  ;;  %v10830_v0 = vld [vmem:[#allocation113_spill] sm:$0xff] }
 0x4fc   :  { %v2909_v37 = vpack.c.bf16 %v2653_v34, %v2653_v34  ;;  %v5757_v34 = vld [vmem:[%s10374_s4] sm:$0xf] }
 0x4fd   :  { %v9621_v21 = vpop.f32.mrf.mxu1 }
 0x4fe   :  { %v3533_v46 = vunpack.c.l.b16 %v2909_v37 }
 0x500   :  { %v5163_v42 = vpop.f32.mrf.mxu2 }
 0x501   :  { %v9576_v40 = vadd.f32 %v5163_v42, %v5115_v29  ;;  %v10823_v29 = vpack.c.b16 %v10821_v11, %v10822_v28  ;;  %v7351_v42 = vld [vmem:[%s10373_s3 + $0x3a8] sm:$0xff] }
 0x502   :  { %5467 = vmatpush.bf16.msrb.mxu3 %v7351_v42 }
 0x505   :  { %5214 = vmatmul.bf16.gmra.mxu3 %v10805_v57  ;;  %5312 = vmatmul.bf16.gmra.mxu2 %v10808_v39  ;;  %v2654_v57 = vsel %vm2142_vm13, %v10817_v62, %v2398_v17  ;;  %v9629_v58 = vpop.f32.mrf.mxu1  ;;  %v10833_v62 = vld [vmem:[#allocation71_spill] sm:$0xff] }
 0x506   :  { %5410 = vmatmul.bf16.gmra.mxu1 %v10811_v48  ;;  %v2910_v20 = vpack.c.bf16 %v2654_v57, %v2654_v57  ;;  %v5759_v57 = vsel %vm1310_vm0, %v5757_v34, 0 }
 0x507   :  { %5768 = vmatpush.bf16.msra.mxu2 %v5759_v57  ;;  %v10843_v57 = vld [vmem:[#allocation17_spill] sm:$0xff] }
 0x508   :  { %v5166_v55 = vpop.f32.mrf.mxu2  ;;  %v3534_v52 = vunpack.c.l.b16 %v2910_v20  ;;  %vm2147_vm0 = vcmp.ge.f32.partialorder %v10843_v57, 0.0 }
 0x509   :  { %v9597_v41 = vadd.f32 %v5166_v55, %v10814_v22 }
 0x50a   :  { %v3548_v19 = vpack.c.b16 %v3534_v52, %v3533_v46  ;;  %v10835_v46 = vld [vmem:[#allocation15_spill] sm:$0xff]  ;;  %v10836_v52 = vld [vmem:[#allocation16_spill] sm:$0xff] }
 0x50b   :  { %vm2145_vm2 = vcmp.ge.f32.partialorder %v10835_v46, 0.0  ;;  %vm2146_vm3 = vcmp.ge.f32.partialorder %v10836_v52, 0.0 }
 0x50d   :  { %v9651_v23 = vpop.f32.mrf.mxu1 }
 0x510   :  { %v5168_v10 = vpop.f32.mrf.mxu2 }
 0x511   :  { %v9603_v15 = vadd.f32 %v5168_v10, %v5120_v44  ;;  %v10829_v10 = vld [vmem:[#allocation115_spill] sm:$0xff] }
 0x512   :  { %v10831_v3 = vpack.c.b16 %v10829_v10, %v10830_v0 }
 0x515   :  { %5326 = vmatmul.bf16.vlgmr.msra.gmra.mxu3 %v10820_v7  ;;  %5424 = vmatmul.bf16.vlgmr.msrb.gmra.mxu2 %v10823_v29  ;;  %v2911_v29 = vpack.c.bf16 %v2655_v14, %v2655_v14 }
 0x516   :  { %5522 = vmatmul.bf16.vlgmr.msra.gmra.mxu1 %v10826_v30 }
 0x518   :  { %v5180_v25 = vpop.f32.mrf.mxu3  ;;  %v5278_v53 = vpop.f32.mrf.mxu2 }
 0x519   :  { %v5181_v39 = vadd.f32 %v5180_v25, %v9353_v45  ;;  %v10828_v45 = vld [vmem:[#allocation14_spill] sm:$0xff]  ;;  %v3535_v25 = vunpack.c.l.b16 %v2911_v29 }
 0x51a   :  { %v2400_v44 = vmul.f32 0.2, %v10828_v45  ;;  %vm2144_vm15 = vcmp.ge.f32.partialorder %v10828_v45, 0.0 }
 0x51b   :  { %v5230_v47 = vadd.f32 %v9358_v2, %v5181_v39 }
 0x51c   :  { %v2656_v24 = vsel %vm2144_vm15, %v10828_v45, %v2400_v44 }
 0x51d   :  { %v9627_v48 = vadd.f32 %v5278_v53, %v5230_v47  ;;  %v2912_v42 = vpack.c.bf16 %v2656_v24, %v2656_v24 }
 0x51f   :  { %v3536_v53 = vunpack.c.l.b16 %v2912_v42 }
 0x520   :  { %v5182_v55 = vpop.f32.mrf.mxu3  ;;  %v5280_v6 = vpop.f32.mrf.mxu2 }
 0x521   :  { %v5183_v22 = vadd.f32 %v5182_v55, %v9360_v63  ;;  %v7350_v63 = vld [vmem:[%s10373_s3 + $0x3a0] sm:$0xff]  ;;  %v3549_v47 = vpack.c.b16 %v3536_v53, %v3535_v25  ;;  %v2402_v55 = vmul.f32 0.2, %v10836_v52 }
 0x522   :  { %5468 = vmatpush.bf16.msrb.mxu3 %v7350_v63  ;;  %v10844_v25 = vld [vmem:[#allocation19_spill] sm:$0xff] }
 0x523   :  { %v5232_v9 = vadd.f32 %v9381_v54, %v5183_v22  ;;  %v10832_v54 = vld [vmem:[#allocation74_spill] sm:$0xff]  ;;  %v2658_v10 = vsel %vm2146_vm3, %v10836_v52, %v2402_v55  ;;  %v2404_v53 = vmul.f32 0.2, %v10844_v25  ;;  %vm2148_vm4 = vcmp.ge.f32.partialorder %v10844_v25, 0.0 }
 0x524   :  { %v10834_v17 = vpack.c.b16 %v10832_v54, %v10833_v62  ;;  %v2914_v62 = vpack.c.bf16 %v2658_v10, %v2658_v10  ;;  %v10851_v52 = vld [vmem:[#allocation86_spill] sm:$0xff] }
 0x525   :  { %v9637_v2 = vadd.f32 %v5280_v6, %v5232_v9  ;;  %5331 = vmatmul.bf16.gmra.mxu3 %v3548_v19  ;;  %5429 = vmatmul.bf16.gmra.mxu2 %v10831_v3  ;;  %v9666_v6 = vpop.f32.mrf.mxu1  ;;  %v10837_v9 = vld [vmem:[#allocation120_spill] sm:$0xff]  ;;  %v10838_v19 = vld [vmem:[#allocation118_spill] sm:$0xff] }
 0x526   :  { %5527 = vmatmul.bf16.gmra.mxu1 %v10834_v17  ;;  %v10839_v43 = vpack.c.b16 %v10837_v9, %v10838_v19  ;;  %v2660_v19 = vsel %vm2148_vm4, %v10844_v25, %v2404_v53  ;;  %v10854_v25 = vld [vmem:[#allocation24_spill] sm:$0xff] }
 0x527   :  { %v2406_v53 = vmul.f32 0.2, %v10854_v25  ;;  %vm2150_vm8 = vcmp.ge.f32.partialorder %v10854_v25, 0.0 }
 0x528   :  { %v5185_v7 = vpop.f32.mrf.mxu3  ;;  %v5283_v11 = vpop.f32.mrf.mxu2 }
 0x529   :  { %v5186_v28 = vadd.f32 %v5185_v7, %v9384_v8 }
 0x52b   :  { %v5235_v16 = vadd.f32 %v9394_v49, %v5186_v28  ;;  %v2401_v49 = vmul.f32 0.2, %v10835_v46 }
 0x52d   :  { %v9654_v30 = vadd.f32 %v5283_v11, %v5235_v16  ;;  %v2657_v44 = vsel %vm2145_vm2, %v10835_v46, %v2401_v49  ;;  %v9685_v7 = vpop.f32.mrf.mxu1  ;;  %v3538_v11 = vunpack.c.l.b16 %v2914_v62  ;;  %v10850_v49 = vld [vmem:[#allocation87_spill] sm:$0xff] }
 0x52e   :  { %v2913_v54 = vpack.c.bf16 %v2657_v44, %v2657_v44  ;;  %v10852_v55 = vpack.c.b16 %v10850_v49, %v10851_v52  ;;  %v2662_v52 = vsel %vm2150_vm8, %v10854_v25, %v2406_v53  ;;  %v10862_v25 = vld [vmem:[#allocation102_spill] sm:$0xff] }
 0x52f   :  { %v2471_v53 = vmul.f32 0.2, %v10862_v25  ;;  %vm2215_vm13 = vcmp.ge.f32.partialorder %v10862_v25, 0.0 }
 0x530   :  { %v5187_v39 = vpop.f32.mrf.mxu3  ;;  %v5285_v37 = vpop.f32.mrf.mxu2  ;;  %v3537_v24 = vunpack.c.l.b16 %v2913_v54 }
 0x531   :  { %v5188_v8 = vadd.f32 %v5187_v39, %v9392_v51  ;;  %v7349_v51 = vld [vmem:[%s10373_s3 + $0x398] sm:$0xff] }
 0x532   :  { %5469 = vmatpush.bf16.msrb.mxu3 %v7349_v51  ;;  %v3550_v34 = vpack.c.b16 %v3538_v11, %v3537_v24 }
 0x533   :  { %v5237_v20 = vadd.f32 %v9423_v12, %v5188_v8  ;;  %v10840_v12 = vld [vmem:[#allocation83_spill] sm:$0xff] }
 0x534   :  { %v10842_v45 = vpack.c.b16 %v10840_v12, %v10841_v56 }
 0x535   :  { %v9668_v22 = vadd.f32 %v5285_v37, %v5237_v20  ;;  %5336 = vmatmul.bf16.gmra.mxu3 %v3549_v47  ;;  %5434 = vmatmul.bf16.gmra.mxu2 %v10839_v43  ;;  %v10846_v37 = vld [vmem:[#allocation97_spill] sm:$0xff]  ;;  %v10847_v47 = vld [vmem:[#allocation124_spill] sm:$0xff] }
 0x536   :  { %5532 = vmatmul.bf16.gmra.mxu1 %v10842_v45  ;;  %v2468_v8 = vmul.f32 0.2, %v10846_v37  ;;  %vm2212_vm6 = vcmp.ge.f32.partialorder %v10846_v37, 0.0  ;;  %v9712_v45 = vpop.f32.mrf.mxu1 }
 0x538   :  { %v5190_v0 = vpop.f32.mrf.mxu3  ;;  %v5288_v3 = vpop.f32.mrf.mxu2  ;;  %v2724_v56 = vsel %vm2212_vm6, %v10846_v37, %v2468_v8  ;;  %v10856_v8 = vld [vmem:[#allocation101_spill] sm:$0xff] }
 0x539   :  { %v5191_v63 = vadd.f32 %v5190_v0, %v9416_v5  ;;  %v2403_v5 = vmul.f32 0.2, %v10843_v57  ;;  %v2916_v0 = vpack.c.bf16 %v2660_v19, %v2660_v19  ;;  %v2980_v54 = vpack.c.bf16 %v2724_v56, %v2724_v56 }
 0x53a   :  { %vm2214_vm10 = vcmp.ge.f32.partialorder %v10856_v8, 0.0  ;;  %v2918_v56 = vpack.c.bf16 %v2662_v52, %v2662_v52  ;;  %v2727_v52 = vsel %vm2215_vm13, %v10862_v25, %v2471_v53 }
 0x53b   :  { %v5240_v17 = vadd.f32 %v9445_v27, %v5191_v63  ;;  %v10845_v27 = vld [vmem:[#allocation95_spill] sm:$0xff]  ;;  %v2659_v9 = vsel %vm2147_vm0, %v10843_v57, %v2403_v5  ;;  %v3540_v24 = vunpack.c.l.b16 %v2916_v0  ;;  %v10853_v5 = vld [vmem:[#allocation21_spill] sm:$0xff] }
 0x53c   :  { %v2467_v39 = vmul.f32 0.2, %v10845_v27  ;;  %vm2211_vm5 = vcmp.ge.f32.partialorder %v10845_v27, 0.0  ;;  %v2915_v10 = vpack.c.bf16 %v2659_v9, %v2659_v9  ;;  %vm2149_vm7 = vcmp.ge.f32.partialorder %v10853_v5, 0.0 }
 0x53d   :  { %v9683_v14 = vadd.f32 %v5288_v3, %v5240_v17 }
 0x53e   :  { %v2723_v12 = vsel %vm2211_vm5, %v10845_v27, %v2467_v39  ;;  %v3539_v17 = vunpack.c.l.b16 %v2915_v10  ;;  %v10855_v39 = vld [vmem:[#allocation99_spill] sm:$0xff] }
 0x53f   :  { %v2979_v63 = vpack.c.bf16 %v2723_v12, %v2723_v12  ;;  %v2469_v37 = vmul.f32 0.2, %v10855_v39  ;;  %vm2213_vm9 = vcmp.ge.f32.partialorder %v10855_v39, 0.0 }
 0x540   :  { %v5192_v28 = vpop.f32.mrf.mxu3  ;;  %v5290_v29 = vpop.f32.mrf.mxu2  ;;  %v3551_v57 = vpack.c.b16 %v3540_v24, %v3539_v17  ;;  %v3542_v17 = vunpack.c.l.b16 %v2918_v56 }
 0x541   :  { %v5193_v42 = vadd.f32 %v5192_v28, %v9426_v38  ;;  %v10848_v38 = vld [vmem:[#allocation123_spill] sm:$0xff]  ;;  %v3731_v11 = vunpack.c.l.b16 %v2979_v63  ;;  %v2725_v19 = vsel %vm2213_vm9, %v10855_v39, %v2469_v37 }
 0x542   :  { %v10849_v46 = vpack.c.b16 %v10847_v47, %v10848_v38  ;;  %v2470_v47 = vmul.f32 0.2, %v10856_v8  ;;  %v2981_v10 = vpack.c.bf16 %v2725_v19, %v2725_v19 }
 0x543   :  { %v5242_v16 = vadd.f32 %v9461_v4, %v5193_v42  ;;  %v7348_v4 = vld [vmem:[%s10373_s3 + $0x390] sm:$0xff]  ;;  %v3732_v42 = vunpack.c.l.b16 %v2980_v54 }
 0x544   :  { %5470 = vmatpush.bf16.msrb.mxu3 %v7348_v4  ;;  %v7347_v4 = vld [vmem:[%s10373_s3 + $0x388] sm:$0xff]  ;;  %v3733_v24 = vunpack.c.l.b16 %v2981_v10 }
 0x545   :  { %v9695_v20 = vadd.f32 %v5290_v29, %v5242_v16  ;;  %5341 = vmatmul.bf16.gmra.mxu3 %v3550_v34  ;;  %5439 = vmatmul.bf16.gmra.mxu2 %v10849_v46  ;;  %v9719_v34 = vpop.f32.mrf.mxu1  ;;  %v3743_v27 = vpack.c.b16 %v3732_v42, %v3731_v11  ;;  %v10858_v46 = vld [vmem:[#allocation127_spill] sm:$0xff] }
 0x546   :  { %5537 = vmatmul.bf16.gmra.mxu1 %v10852_v55 }
 0x548   :  { %v5195_v43 = vpop.f32.mrf.mxu3  ;;  %v5293_v51 = vpop.f32.mrf.mxu2  ;;  %5471 = vmatpush.bf16.msrb.mxu3 %v7347_v4 }
 0x549   :  { %v5196_v44 = vadd.f32 %v5195_v43, %v9453_v59  ;;  %v2726_v43 = vsel %vm2214_vm10, %v10856_v8, %v2470_v47  ;;  %v10865_v8 = vld [vmem:[#allocation23_spill] sm:$0xff] }
 0x54a   :  { %v2982_v0 = vpack.c.bf16 %v2726_v43, %v2726_v43  ;;  %v7346_v47 = vld [vmem:[%s10373_s3 + $0x380] sm:$0xff] }
 0x54b   :  { %v5245_v3 = vadd.f32 %v9488_v36, %v5196_v44  ;;  %v2405_v36 = vmul.f32 0.2, %v10853_v5 }
 0x54c   :  { %5472 = vmatpush.bf16.msrb.mxu3 %v7346_v47 }
 0x54d   :  { %v9716_v62 = vadd.f32 %v5293_v51, %v5245_v3  ;;  %v2661_v49 = vsel %vm2149_vm7, %v10853_v5, %v2405_v36  ;;  %v9744_v3 = vpop.f32.mrf.mxu1 }
 0x54e   :  { %v2917_v12 = vpack.c.bf16 %v2661_v49, %v2661_v49 }
 0x550   :  { %v5197_v28 = vpop.f32.mrf.mxu3  ;;  %v5295_v29 = vpop.f32.mrf.mxu2  ;;  %v3541_v54 = vunpack.c.l.b16 %v2917_v12  ;;  %v2983_v12 = vpack.c.bf16 %v2727_v52, %v2727_v52 }
 0x551   :  { %v5198_v16 = vadd.f32 %v5197_v28, %v9463_v50  ;;  %v10857_v50 = vld [vmem:[#allocation128_spill] sm:$0xff] }
 0x553   :  { %v5247_v59 = vadd.f32 %v9502_v32, %v5198_v16  ;;  %v10859_v32 = vpack.c.b16 %v10857_v50, %v10858_v46  ;;  %v3552_v16 = vpack.c.b16 %v3542_v17, %v3541_v54  ;;  %v3735_v54 = vunpack.c.l.b16 %v2983_v12 }
 0x555   :  { %v9728_v38 = vadd.f32 %v5295_v29, %v5247_v59  ;;  %5346 = vmatmul.bf16.gmra.mxu3 %v3551_v57  ;;  %5444 = vmatmul.bf16.gmra.mxu2 %v10859_v32  ;;  %v3734_v29 = vunpack.c.l.b16 %v2982_v0  ;;  %v10860_v59 = vld [vmem:[#allocation26_spill] sm:$0xff]  ;;  %v10861_v57 = vld [vmem:[#allocation29_spill] sm:$0xff]  ;;  %v9766_v50 = vpop.f32.mrf.mxu1 }
 0x556   :  { %5542 = vmatmul.bf16.gmra.mxu1 %v3743_v27  ;;  %vm2151_vm11 = vcmp.ge.f32.partialorder %v10860_v59, 0.0  ;;  %v2408_v5 = vmul.f32 0.2, %v10861_v57  ;;  %vm2152_vm12 = vcmp.ge.f32.partialorder %v10861_v57, 0.0  ;;  %v10863_v27 = vld [vmem:[#allocation103_spill] sm:$0xff] }
 0x557   :  { %v3744_v36 = vpack.c.b16 %v3734_v29, %v3733_v24  ;;  %v2472_v39 = vmul.f32 0.2, %v10863_v27  ;;  %vm2216_vm14 = vcmp.ge.f32.partialorder %v10863_v27, 0.0 }
 0x558   :  { %v5200_v55 = vpop.f32.mrf.mxu3  ;;  %v5298_v9 = vpop.f32.mrf.mxu2  ;;  %v2664_v32 = vsel %vm2152_vm12, %v10861_v57, %v2408_v5  ;;  %v10869_v57 = vld [vmem:[#allocation104_spill] sm:$0xff] }
 0x559   :  { %v5201_v51 = vadd.f32 %v5200_v55, %v9479_v1  ;;  %v2728_v55 = vsel %vm2216_vm14, %v10863_v27, %v2472_v39  ;;  %v2920_v43 = vpack.c.bf16 %v2664_v32, %v2664_v32  ;;  %v2473_v5 = vmul.f32 0.2, %v10869_v57  ;;  %v10872_v27 = vld [vmem:[#allocation20_spill] sm:$0xff] }
 0x55a   :  { %v2984_v56 = vpack.c.bf16 %v2728_v55, %v2728_v55  ;;  %vm2217_vm3 = vcmp.ge.f32.partialorder %v10869_v57, 0.0 }
 0x55b   :  { %v5250_v44 = vadd.f32 %v9542_v33, %v5201_v51  ;;  %v2407_v33 = vmul.f32 0.2, %v10860_v59  ;;  %v3544_v0 = vunpack.c.l.b16 %v2920_v43  ;;  %v2729_v47 = vsel %vm2217_vm3, %v10869_v57, %v2473_v5 }
 0x55c   :  { %v2985_v55 = vpack.c.bf16 %v2729_v47, %v2729_v47 }
 0x55d   :  { %v9746_v63 = vadd.f32 %v5298_v9, %v5250_v44  ;;  %v2663_v46 = vsel %vm2151_vm11, %v10860_v59, %v2407_v33  ;;  %v9779_v29 = vpop.f32.mrf.mxu1 }
 0x55e   :  { %v2919_v19 = vpack.c.bf16 %v2663_v46, %v2663_v46 }
 0x560   :  { %v5202_v11 = vpop.f32.mrf.mxu3  ;;  %v5300_v28 = vpop.f32.mrf.mxu2  ;;  %v3543_v10 = vunpack.c.l.b16 %v2919_v19 }
 0x561   :  { %v5203_v42 = vadd.f32 %v5202_v11, %v9495_v13  ;;  %v10864_v13 = vld [vmem:[#allocation3_spill] sm:$0xff]  ;;  %v3736_v11 = vunpack.c.l.b16 %v2984_v56  ;;  %v3737_v56 = vunpack.c.l.b16 %v2985_v55 }
 0x563   :  { %v5252_v1 = vadd.f32 %v9568_v26, %v5203_v42  ;;  %v10866_v26 = vpack.c.b16 %v10864_v13, %v10865_v8  ;;  %v3553_v42 = vpack.c.b16 %v3544_v0, %v3543_v10  ;;  %v3745_v33 = vpack.c.b16 %v3736_v11, %v3735_v54 }
 0x565   :  { %v9756_v37 = vadd.f32 %v5300_v28, %v5252_v1  ;;  %5351 = vmatmul.bf16.gmra.mxu3 %v3552_v16  ;;  %5449 = vmatmul.bf16.gmra.mxu2 %v10866_v26  ;;  %v10867_v1 = vld [vmem:[#allocation32_spill] sm:$0xff]  ;;  %v10868_v16 = vld [vmem:[#allocation35_spill] sm:$0xff]  ;;  %v9801_v19 = vpop.f32.mrf.mxu1 }
 0x566   :  { %5547 = vmatmul.bf16.gmra.mxu1 %v3744_v36  ;;  %vm2153_vm15 = vcmp.ge.f32.partialorder %v10867_v1, 0.0  ;;  %v2410_v59 = vmul.f32 0.2, %v10868_v16  ;;  %vm2154_vm2 = vcmp.ge.f32.partialorder %v10868_v16, 0.0  ;;  %v10870_v36 = vld [vmem:[#allocation105_spill] sm:$0xff] }
 0x567   :  { %v2474_v25 = vmul.f32 0.2, %v10870_v36  ;;  %vm2218_vm0 = vcmp.ge.f32.partialorder %v10870_v36, 0.0 }
 0x568   :  { %v5205_v4 = vpop.f32.mrf.mxu3  ;;  %v5303_v49 = vpop.f32.mrf.mxu2  ;;  %v2666_v13 = vsel %vm2154_vm2, %v10868_v16, %v2410_v59 }
 0x569   :  { %v5206_v9 = vadd.f32 %v5205_v4, %v9525_v60  ;;  %v2730_v46 = vsel %vm2218_vm0, %v10870_v36, %v2474_v25 }
 0x56b   :  { %v5255_v51 = vadd.f32 %v9578_v18, %v5206_v9  ;;  %v2409_v18 = vmul.f32 0.2, %v10867_v1  ;;  %v2986_v9 = vpack.c.bf16 %v2730_v46, %v2730_v46 }
 0x56d   :  { %v9776_v44 = vadd.f32 %v5303_v49, %v5255_v51  ;;  %v2665_v39 = vsel %vm2153_vm15, %v10867_v1, %v2409_v18  ;;  %v2922_v49 = vpack.c.bf16 %v2666_v13, %v2666_v13  ;;  %v3738_v54 = vunpack.c.l.b16 %v2986_v9  ;;  %v9812_v1 = vpop.f32.mrf.mxu1 }
 0x56e   :  { %v2921_v4 = vpack.c.bf16 %v2665_v39, %v2665_v39 }
 0x56f   :  { %v3546_v12 = vunpack.c.l.b16 %v2922_v49  ;;  %v3746_v11 = vpack.c.b16 %v3738_v54, %v3737_v56  ;;  %v10881_v49 = vld [vmem:[#allocation27_spill] sm:$0xff] }
 0x570   :  { %v5207_v17 = vpop.f32.mrf.mxu3  ;;  %v5305_v24 = vpop.f32.mrf.mxu2  ;;  %v3545_v51 = vunpack.c.l.b16 %v2921_v4  ;;  %v10880_v4 = vld [vmem:[#allocation30_spill] sm:$0xff] }
 0x571   :  { %v5208_v28 = vadd.f32 %v5207_v17, %v9544_v61  ;;  %v10871_v61 = vld [vmem:[#allocation28_spill] sm:$0xff] }
 0x573   :  { %v5257_v60 = vadd.f32 %v9600_v35, %v5208_v28  ;;  %v10873_v35 = vpack.c.b16 %v10871_v61, %v10872_v27  ;;  %v10877_v61 = vld [vmem:[#allocation42_spill] sm:$0xff]  ;;  %v10878_v27 = vld [vmem:[#allocation41_spill] sm:$0xff] }
 0x575   :  { %v9788_v53 = vadd.f32 %v5305_v24, %v5257_v60  ;;  %5356 = vmatmul.bf16.gmra.mxu3 %v3553_v42  ;;  %5454 = vmatmul.bf16.gmra.mxu2 %v10873_v35  ;;  %v3554_v24 = vpack.c.b16 %v3546_v12, %v3545_v51  ;;  %v10875_v60 = vld [vmem:[#allocation31_spill] sm:$0xff]  ;;  %v10879_v35 = vpack.c.b16 %v10877_v61, %v10878_v27  ;;  %v5396_v51 = vpop.f32.mrf.mxu1 }
 0x576   :  { %5552 = vmatmul.bf16.gmra.mxu1 %v3745_v33 }
 0x578   :  { %v5210_v8 = vpop.f32.mrf.mxu3  ;;  %v5308_v26 = vpop.f32.mrf.mxu2 }
 0x579   :  { %v5211_v32 = vadd.f32 %v5210_v8, %v9571_v31 }
 0x57b   :  { %v5260_v52 = vadd.f32 %v9621_v21, %v5211_v32  ;;  %v10874_v21 = vld [vmem:[#allocation25_spill] sm:$0xff] }
 0x57c   :  { %v10876_v42 = vpack.c.b16 %v10874_v21, %v10875_v60 }
 0x57d   :  { %v9803_v43 = vadd.f32 %v5308_v26, %v5260_v52  ;;  %v10882_v52 = vpack.c.b16 %v10880_v4, %v10881_v49  ;;  %v5398_v54 = vpop.f32.mrf.mxu1 }
 0x580   :  { %v5212_v10 = vpop.f32.mrf.mxu3  ;;  %v5310_v0 = vpop.f32.mrf.mxu2 }
 0x581   :  { %v5213_v17 = vadd.f32 %v5212_v10, %v9576_v40 }
 0x583   :  { %v5262_v31 = vadd.f32 %v9629_v58, %v5213_v17 }
 0x585   :  { %v9807_v28 = vadd.f32 %v5310_v0, %v5262_v31  ;;  %5361 = vmatmul.bf16.gmra.mxu3 %v3554_v24  ;;  %5459 = vmatmul.bf16.gmra.mxu2 %v10876_v42  ;;  %v10883_v31 = vld [vmem:[#allocation36_spill] sm:$0xff]  ;;  %v10884_v24 = vld [vmem:[#allocation43_spill] sm:$0xff]  ;;  %v5401_v42 = vpop.f32.mrf.mxu1 }
 0x586   :  { %5557 = vmatmul.bf16.gmra.mxu1 %v3746_v11  ;;  %v10885_v11 = vpack.c.b16 %v10883_v31, %v10884_v24 }
 0x588   :  { %v5215_v18 = vpop.f32.mrf.mxu3  ;;  %v5313_v16 = vpop.f32.mrf.mxu2 }
 0x589   :  { %v5216_v59 = vadd.f32 %v5215_v18, %v9597_v41  ;;  %v7416_v41 = vld [vmem:[%s10372_s1 + $0x140] sm:$0xff] }
 0x58b   :  { %v5265_v40 = vadd.f32 %v9651_v23, %v5216_v59 }
 0x58d   :  { %v9816_v33 = vadd.f32 %v5313_v16, %v5265_v40  ;;  %v5403_v27 = vpop.f32.mrf.mxu1 }
 0x590   :  { %v5217_v58 = vpop.f32.mrf.mxu3  ;;  %v5315_v57 = vpop.f32.mrf.mxu2 }
 0x591   :  { %v5218_v5 = vadd.f32 %v5217_v58, %v9603_v15 }
 0x593   :  { %v5267_v36 = vadd.f32 %v9666_v6, %v5218_v5  ;;  %v10887_v5 = vld [vmem:[#allocation46_spill] sm:$0xff] }
 0x595   :  { %v9820_v25 = vadd.f32 %v5315_v57, %v5267_v36  ;;  %5473 = vmatmul.bf16.vlgmr.msrb.gmra.mxu3 %v10879_v35  ;;  %7098 = vmatmul.msk.bf16.vlgmr.msra.gmra.mxu2 %vm925_vm1, %v7416_v41  ;;  %v10886_v57 = vld [vmem:[#allocation38_spill] sm:$0xff] }
 0x596   :  { %v10888_v36 = vpack.c.b16 %v10886_v57, %v10887_v5 }
 0x598   :  { %v5327_v23 = vpop.f32.mrf.mxu3  ;;  %v5425_v39 = vpop.f32.mrf.mxu2 }
 0x599   :  { %v5328_v13 = vadd.f32 %v5327_v23, %v9627_v48  ;;  %v7417_v48 = vld [vmem:[%s10372_s1 + $0x148] sm:$0xff] }
 0x59b   :  { %v5377_v15 = vadd.f32 %v9685_v7, %v5328_v13  ;;  %v5406_v13 = vpop.f32.mrf.mxu1 }
 0x59d   :  { %v9831_v8 = vadd.f32 %v5425_v39, %v5377_v15 }
 0x5a0   :  { %v5329_v6 = vpop.f32.mrf.mxu3  ;;  %v5427_v26 = vpop.f32.mrf.mxu2 }
 0x5a1   :  { %v5330_v47 = vadd.f32 %v5329_v6, %v9637_v2 }
 0x5a3   :  { %v5379_v46 = vadd.f32 %v9712_v45, %v5330_v47  ;;  %v10890_v47 = vld [vmem:[#allocation48_spill] sm:$0xff] }
 0x5a5   :  { %v9835_v32 = vadd.f32 %v5427_v26, %v5379_v46  ;;  %5478 = vmatmul.bf16.gmra.mxu3 %v10882_v52  ;;  %7099 = vmatmul.msk.bf16.gmra.mxu2 %vm925_vm1, %v7417_v48  ;;  %v10889_v26 = vld [vmem:[#allocation40_spill] sm:$0xff]  ;;  %v5408_v52 = vpop.f32.mrf.mxu1 }
 0x5a6   :  { %v10891_v46 = vpack.c.b16 %v10889_v26, %v10890_v47 }
 0x5a8   :  { %v5332_v7 = vpop.f32.mrf.mxu3  ;;  %v5430_v55 = vpop.f32.mrf.mxu2 }
 0x5a9   :  { %v5333_v9 = vadd.f32 %v5332_v7, %v9654_v30  ;;  %v7418_v30 = vld [vmem:[%s10372_s1 + $0x150] sm:$0xff] }
 0x5ab   :  { %v5382_v2 = vadd.f32 %v9719_v34, %v5333_v9 }
 0x5ad   :  { %v9846_v45 = vadd.f32 %v5430_v55, %v5382_v2 }
 0x5b0   :  { %v5334_v12 = vpop.f32.mrf.mxu3  ;;  %v5432_v56 = vpop.f32.mrf.mxu2 }
 0x5b1   :  { %v5335_v10 = vadd.f32 %v5334_v12, %v9668_v22  ;;  %v10892_v12 = vld [vmem:[#allocation45_spill] sm:$0xff] }
 0x5b3   :  { %v5384_v0 = vadd.f32 %v9744_v3, %v5335_v10 }
 0x5b5   :  { %v9850_v17 = vadd.f32 %v5432_v56, %v5384_v0  ;;  %5483 = vmatmul.bf16.gmra.mxu3 %v10885_v11  ;;  %7100 = vmatmul.msk.bf16.gmra.mxu2 %vm925_vm1, %v7418_v30  ;;  %v10893_v56 = vld [vmem:[#allocation52_spill] sm:$0xff] }
 0x5b6   :  { %v10894_v10 = vpack.c.b16 %v10892_v12, %v10893_v56  ;;  %v7421_v0 = vld [vmem:[%s10372_s1 + $0x168] sm:$0xff] }
 0x5b8   :  { %v5337_v34 = vpop.f32.mrf.mxu3  ;;  %v5435_v21 = vpop.f32.mrf.mxu2 }
 0x5b9   :  { %v5338_v60 = vadd.f32 %v5337_v34, %v9683_v14  ;;  %v7419_v14 = vld [vmem:[%s10372_s1 + $0x158] sm:$0xff] }
 0x5bb   :  { %v5387_v22 = vadd.f32 %v9766_v50, %v5338_v60 }
 0x5bd   :  { %v9861_v3 = vadd.f32 %v5435_v21, %v5387_v22 }
 0x5c0   :  { %v5339_v18 = vpop.f32.mrf.mxu3  ;;  %v5437_v16 = vpop.f32.mrf.mxu2 }
 0x5c1   :  { %v5340_v59 = vadd.f32 %v5339_v18, %v9695_v20  ;;  %v10895_v18 = vld [vmem:[#allocation58_spill] sm:$0xff] }
 0x5c3   :  { %v5389_v40 = vadd.f32 %v9779_v29, %v5340_v59 }
 0x5c5   :  { %v9865_v58 = vadd.f32 %v5437_v16, %v5389_v40  ;;  %5488 = vmatmul.bf16.gmra.mxu3 %v10888_v36  ;;  %7101 = vmatmul.msk.bf16.gmra.mxu2 %vm925_vm1, %v7419_v14  ;;  %v10896_v16 = vld [vmem:[#allocation55_spill] sm:$0xff] }
 0x5c6   :  { %v10897_v59 = vpack.c.b16 %v10895_v18, %v10896_v16 }
 0x5c8   :  { %v5342_v50 = vpop.f32.mrf.mxu3  ;;  %v5440_v61 = vpop.f32.mrf.mxu2 }
 0x5c9   :  { %v5343_v35 = vadd.f32 %v5342_v50, %v9716_v62  ;;  %v7420_v62 = vld [vmem:[%s10372_s1 + $0x160] sm:$0xff] }
 0x5cb   :  { %v5392_v20 = vadd.f32 %v9801_v19, %v5343_v35 }
 0x5cd   :  { %v9876_v29 = vadd.f32 %v5440_v61, %v5392_v20  ;;  %v10898_v20 = vld [vmem:[#allocation63_spill] sm:$0xff] }
 0x5d0   :  { %v5344_v41 = vpop.f32.mrf.mxu3  ;;  %v5442_v23 = vpop.f32.mrf.mxu2 }
 0x5d1   :  { %v5345_v39 = vadd.f32 %v5344_v41, %v9728_v38  ;;  %v10899_v41 = vld [vmem:[#allocation60_spill] sm:$0xff] }
 0x5d3   :  { %v5394_v15 = vadd.f32 %v9812_v1, %v5345_v39  ;;  %v7423_v39 = vld [vmem:[%s10372_s1 + $0x178] sm:$0xff] }
 0x5d5   :  { %v9880_v6 = vadd.f32 %v5442_v23, %v5394_v15  ;;  %5493 = vmatmul.bf16.gmra.mxu3 %v10891_v46  ;;  %7102 = vmatmul.msk.bf16.gmra.mxu2 %vm925_vm1, %v7420_v62  ;;  %v10900_v23 = vpack.c.b16 %v10898_v20, %v10899_v41 }
 0x5d8   :  { %v5347_v19 = vpop.f32.mrf.mxu3  ;;  %v5445_v4 = vpop.f32.mrf.mxu2 }
 0x5d9   :  { %v5348_v49 = vadd.f32 %v5347_v19, %v9746_v63  ;;  %v5411_v63 = vpop.f32.mrf.mxu1 }
 0x5db   :  { %v5397_v38 = vadd.f32 %v5396_v51, %v5348_v49 }
 0x5dd   :  { %v9890_v48 = vadd.f32 %v5445_v4, %v5397_v38 }
 0x5e0   :  { %v5349_v1 = vpop.f32.mrf.mxu3  ;;  %v5447_v7 = vpop.f32.mrf.mxu2 }
 0x5e1   :  { %v5350_v55 = vadd.f32 %v5349_v1, %v9756_v37  ;;  %v9906_v21 = vpop.f32.mrf.mxu1 }
 0x5e3   :  { %v5399_v9 = vadd.f32 %v5398_v54, %v5350_v55 }
 0x5e5   :  { %v9893_v2 = vadd.f32 %v5447_v7, %v5399_v9  ;;  %5498 = vmatmul.bf16.gmra.mxu3 %v10894_v10  ;;  %7103 = vmatmul.msk.bf16.gmra.mxu2 %vm925_vm1, %v7421_v0 }
 0x5e8   :  { %v5352_v51 = vpop.f32.mrf.mxu3  ;;  %v5450_v31 = vpop.f32.mrf.mxu2 }
 0x5e9   :  { %v5353_v24 = vadd.f32 %v5352_v51, %v9776_v44  ;;  %v7422_v44 = vld [vmem:[%s10372_s1 + $0x170] sm:$0xff]  ;;  %v5523_v5 = vpop.f32.mrf.mxu1 }
 0x5eb   :  { %v5402_v11 = vadd.f32 %v5401_v42, %v5353_v24 }
 0x5ed   :  { %v9903_v37 = vadd.f32 %v5450_v31, %v5402_v11 }
 0x5f0   :  { %v5354_v54 = vpop.f32.mrf.mxu3  ;;  %v5452_v30 = vpop.f32.mrf.mxu2 }
 0x5f1   :  { %v5355_v34 = vadd.f32 %v5354_v54, %v9788_v53 }
 0x5f3   :  { %v5404_v60 = vadd.f32 %v5403_v27, %v5355_v34 }
 0x5f5   :  { %v9908_v22 = vadd.f32 %v5452_v30, %v5404_v60  ;;  %5503 = vmatmul.bf16.gmra.mxu3 %v10897_v59  ;;  %7104 = vmatmul.msk.bf16.gmra.mxu2 %vm925_vm1, %v7422_v44 }
 0x5f8   :  { %v5357_v42 = vpop.f32.mrf.mxu3  ;;  %v5455_v40 = vpop.f32.mrf.mxu2 }
 0x5f9   :  { %v5358_v57 = vadd.f32 %v5357_v42, %v9803_v43  ;;  %v5525_v43 = vpop.f32.mrf.mxu1 }
 0x5fb   :  { %v5407_v53 = vadd.f32 %v5406_v13, %v5358_v57 }
 0x5fd   :  { %v9918_v36 = vadd.f32 %v5455_v40, %v5407_v53 }
 0x600   :  { %v5359_v14 = vpop.f32.mrf.mxu3  ;;  %v5457_v61 = vpop.f32.mrf.mxu2 }
 0x601   :  { %v5360_v50 = vadd.f32 %v5359_v14, %v9807_v28  ;;  %v5528_v46 = vpop.f32.mrf.mxu1 }
 0x603   :  { %v5409_v27 = vadd.f32 %v5408_v52, %v5360_v50 }
 0x605   :  { %v9921_v35 = vadd.f32 %v5457_v61, %v5409_v27  ;;  %5508 = vmatmul.bf16.gmra.mxu3 %v10900_v23  ;;  %7105 = vmatmul.msk.bf16.gmra.mxu2 %vm925_vm1, %v7423_v39 }
 0x608   :  { %v5362_v13 = vpop.f32.mrf.mxu3  ;;  %v5460_v28 = vpop.f32.mrf.mxu2 }
 0x609   :  { %v5363_v15 = vadd.f32 %v5362_v13, %v9816_v33  ;;  %v5530_v38 = vpop.f32.mrf.mxu1 }
 0x60b   :  { %v5412_v26 = vadd.f32 %v5411_v63, %v5363_v15 }
 0x60d   :  { %v9931_v47 = vadd.f32 %v5460_v28, %v5412_v26 }
 0x610   :  { %v5364_v62 = vpop.f32.mrf.mxu3  ;;  %v9942_v63 = vpop.f32.mrf.mxu2 }
 0x611   :  { %v9934_v19 = vadd.f32 %v5364_v62, %v9820_v25  ;;  %v5533_v7 = vpop.f32.mrf.mxu1 }
 0x618   :  { %v5474_v4 = vpop.f32.mrf.mxu3  ;;  %v9968_v42 = vpop.f32.mrf.mxu2 }
 0x619   :  { %v5475_v49 = vadd.f32 %v5474_v4, %v9831_v8  ;;  %v5535_v9 = vpop.f32.mrf.mxu1  ;;  %vm5810_vm1 = vcmp.ge.f32.partialorder %v9968_v42, 0.0 }
 0x61b   :  { %v9944_v51 = vadd.f32 %v5523_v5, %v5475_v49 }
 0x620   :  { %v5476_v52 = vpop.f32.mrf.mxu3 }
 0x621   :  { %v5477_v1 = vadd.f32 %v5476_v52, %v9835_v32  ;;  %v5538_v0 = vpop.f32.mrf.mxu1 }
 0x623   :  { %v9940_v10 = vadd.f32 %v5525_v43, %v5477_v1 }
 0x625   :  { %v5588_v31 = vmul.f32 %v9940_v10, %v9940_v10  ;;  %v5565_v11 = vadd.f32 %v9940_v10, %v9944_v51 }
 0x628   :  { %v5479_v55 = vpop.f32.mrf.mxu3 }
 0x629   :  { %v5480_v33 = vadd.f32 %v5479_v55, %v9846_v45  ;;  %v5540_v40 = vpop.f32.mrf.mxu1 }
 0x62b   :  { %v9946_v8 = vadd.f32 %v5528_v46, %v5480_v33 }
 0x62d   :  { %v5589_v54 = vmul.f32 %v9946_v8, %v9946_v8  ;;  %v5566_v34 = vadd.f32 %v5565_v11, %v9946_v8 }
 0x630   :  { %v5481_v12 = vpop.f32.mrf.mxu3 }
 0x631   :  { %v5482_v56 = vadd.f32 %v5481_v12, %v9850_v17  ;;  %v5587_v17 = vmul.f32 %v9944_v51, %v9944_v51  ;;  %v5543_v39 = vpop.f32.mrf.mxu1 }
 0x633   :  { %v9951_v45 = vadd.f32 %v5530_v38, %v5482_v56  ;;  %v5603_v30 = vadd.f32 %v5588_v31, %v5587_v17 }
 0x635   :  { %v5604_v18 = vadd.f32 %v5603_v30, %v5589_v54  ;;  %v5567_v16 = vadd.f32 %v5566_v34, %v9951_v45 }
 0x638   :  { %v5484_v25 = vpop.f32.mrf.mxu3 }
 0x639   :  { %v5485_v32 = vadd.f32 %v5484_v25, %v9861_v3  ;;  %v5590_v3 = vmul.f32 %v9951_v45, %v9951_v45  ;;  %v5545_v49 = vpop.f32.mrf.mxu1 }
 0x63b   :  { %v9953_v24 = vadd.f32 %v5533_v7, %v5485_v32  ;;  %v5605_v57 = vadd.f32 %v5604_v18, %v5590_v3 }
 0x63d   :  { %v5591_v59 = vmul.f32 %v9953_v24, %v9953_v24  ;;  %v5568_v53 = vadd.f32 %v5567_v16, %v9953_v24 }
 0x63f   :  { %v5606_v14 = vadd.f32 %v5605_v57, %v5591_v59 }
 0x640   :  { %v5486_v60 = vpop.f32.mrf.mxu3 }
 0x641   :  { %v5487_v44 = vadd.f32 %v5486_v60, %v9865_v58  ;;  %v9979_v58 = vpop.f32.mrf.mxu2  ;;  %v5548_v12 = vpop.f32.mrf.mxu1 }
 0x642   :  { %vm5811_vm4 = vcmp.ge.f32.partialorder %v9979_v58, 0.0 }
 0x643   :  { %v9971_v5 = vadd.f32 %v5535_v9, %v5487_v44 }
 0x645   :  { %v5569_v50 = vadd.f32 %v5568_v53, %v9971_v5  ;;  %v5592_v61 = vmul.f32 %v9971_v5, %v9971_v5 }
 0x647   :  { %v5607_v27 = vadd.f32 %v5606_v14, %v5592_v61 }
 0x648   :  { %v5489_v20 = vpop.f32.mrf.mxu3 }
 0x649   :  { %v5490_v41 = vadd.f32 %v5489_v20, %v9876_v29  ;;  %v9990_v4 = vpop.f32.mrf.mxu2  ;;  %v5550_v30 = vpop.f32.mrf.mxu1 }
 0x64a   :  { %vm5812_vm5 = vcmp.ge.f32.partialorder %v9990_v4, 0.0 }
 0x64b   :  { %v9977_v23 = vadd.f32 %v5538_v0, %v5490_v41 }
 0x64d   :  { %v5570_v43 = vadd.f32 %v5569_v50, %v9977_v23  ;;  %v5593_v13 = vmul.f32 %v9977_v23, %v9977_v23 }
 0x64f   :  { %v5608_v15 = vadd.f32 %v5607_v27, %v5593_v13 }
 0x650   :  { %v5491_v26 = vpop.f32.mrf.mxu3 }
 0x651   :  { %v5492_v28 = vadd.f32 %v5491_v26, %v9880_v6  ;;  %v9998_v9 = vpop.f32.mrf.mxu2 }
 0x652   :  { %vm5813_vm6 = vcmp.ge.f32.partialorder %v9998_v9, 0.0 }
 0x653   :  { %v9985_v46 = vadd.f32 %v5540_v40, %v5492_v28  ;;  %v5553_v40 = vpop.f32.mrf.mxu1 }
 0x655   :  { %v5571_v62 = vadd.f32 %v5570_v43, %v9985_v46  ;;  %v5594_v29 = vmul.f32 %v9985_v46, %v9985_v46 }
 0x657   :  { %v5609_v38 = vadd.f32 %v5608_v15, %v5594_v29 }
 0x658   :  { %v5494_v52 = vpop.f32.mrf.mxu3 }
 0x659   :  { %v5495_v1 = vadd.f32 %v5494_v52, %v9890_v48  ;;  %v10006_v11 = vpop.f32.mrf.mxu2  ;;  %v5414_v52 = vadd.f32 %v9906_v21, %v9934_v19 }
 0x65a   :  { %vm5814_vm7 = vcmp.ge.f32.partialorder %v10006_v11, 0.0 }
 0x65b   :  { %v9993_v7 = vadd.f32 %v5543_v39, %v5495_v1  ;;  %v5555_v41 = vpop.f32.mrf.mxu1 }
 0x65d   :  { %v5572_v55 = vadd.f32 %v5571_v62, %v9993_v7  ;;  %v5595_v6 = vmul.f32 %v9993_v7, %v9993_v7 }
 0x65f   :  { %v5610_v33 = vadd.f32 %v5609_v38, %v5595_v6  ;;  %v5463_v6 = vadd.f32 %v9942_v63, %v5414_v52 }
 0x660   :  { %v5496_v56 = vpop.f32.mrf.mxu3 }
 0x661   :  { %v5497_v0 = vadd.f32 %v5496_v56, %v9893_v2  ;;  %v10015_v59 = vpop.f32.mrf.mxu2 }
 0x662   :  { %vm5815_vm8 = vcmp.ge.f32.partialorder %v10015_v59, 0.0 }
 0x663   :  { %v10001_v25 = vadd.f32 %v5545_v49, %v5497_v0  ;;  %v5558_v29 = vpop.f32.mrf.mxu1 }
 0x665   :  { %v5573_v32 = vadd.f32 %v5572_v55, %v10001_v25  ;;  %v5596_v48 = vmul.f32 %v10001_v25, %v10001_v25 }
 0x667   :  { %v5611_v31 = vadd.f32 %v5610_v33, %v5596_v48 }
 0x668   :  { %v5499_v17 = vpop.f32.mrf.mxu3 }
 0x669   :  { %v5500_v54 = vadd.f32 %v5499_v17, %v9903_v37  ;;  %v10025_v27 = vpop.f32.mrf.mxu2 }
 0x66a   :  { %vm5816_vm9 = vcmp.ge.f32.partialorder %v10025_v27, 0.0 }
 0x66b   :  { %v10009_v34 = vadd.f32 %v5548_v12, %v5500_v54 }
 0x66d   :  { %v5574_v3 = vadd.f32 %v5573_v32, %v10009_v34  ;;  %v5597_v2 = vmul.f32 %v10009_v34, %v10009_v34  ;;  %v5560_v32 = vpop.f32.mrf.mxu1 }
 0x66f   :  { %v5612_v60 = vadd.f32 %v5611_v31, %v5597_v2 }
 0x670   :  { %v5501_v18 = vpop.f32.mrf.mxu3 }
 0x671   :  { %v5502_v16 = vadd.f32 %v5501_v18, %v9908_v22  ;;  %v10036_v28 = vpop.f32.mrf.mxu2 }
 0x672   :  { %vm5817_vm10 = vcmp.ge.f32.partialorder %v10036_v28, 0.0 }
 0x673   :  { %v10017_v44 = vadd.f32 %v5550_v30, %v5502_v16 }
 0x675   :  { %v5575_v57 = vadd.f32 %v5574_v3, %v10017_v44  ;;  %v5598_v37 = vmul.f32 %v10017_v44, %v10017_v44 }
 0x677   :  { %v5613_v53 = vadd.f32 %v5612_v60, %v5598_v37 }
 0x678   :  { %v5504_v14 = vpop.f32.mrf.mxu3 }
 0x679   :  { %v5505_v50 = vadd.f32 %v5504_v14, %v9918_v36  ;;  %v10047_v56 = vpop.f32.mrf.mxu2 }
 0x67a   :  { %vm5818_vm11 = vcmp.ge.f32.partialorder %v10047_v56, 0.0 }
 0x67b   :  { %v10023_v61 = vadd.f32 %v5553_v40, %v5505_v50 }
 0x67d   :  { %v5576_v22 = vadd.f32 %v5575_v57, %v10023_v61  ;;  %v5599_v20 = vmul.f32 %v10023_v61, %v10023_v61 }
 0x67f   :  { %v5614_v39 = vadd.f32 %v5613_v53, %v5599_v20 }
 0x680   :  { %v5506_v43 = vpop.f32.mrf.mxu3 }
 0x681   :  { %v5507_v13 = vadd.f32 %v5506_v43, %v9921_v35  ;;  %v10054_v30 = vpop.f32.mrf.mxu2 }
 0x682   :  { %vm5819_vm12 = vcmp.ge.f32.partialorder %v10054_v30, 0.0 }
 0x683   :  { %v10031_v15 = vadd.f32 %v5555_v41, %v5507_v13 }
 0x685   :  { %v5577_v26 = vadd.f32 %v5576_v22, %v10031_v15  ;;  %v5600_v36 = vmul.f32 %v10031_v15, %v10031_v15 }
 0x687   :  { %v5615_v62 = vadd.f32 %v5614_v39, %v5600_v36 }
 0x688   :  { %v5509_v49 = vpop.f32.mrf.mxu3 }
 0x689   :  { %v5510_v38 = vadd.f32 %v5509_v49, %v9931_v47  ;;  %v10064_v41 = vpop.f32.mrf.mxu2 }
 0x68a   :  { %vm5820_vm13 = vcmp.ge.f32.partialorder %v10064_v41, 0.0 }
 0x68b   :  { %v10041_v1 = vadd.f32 %v5558_v29, %v5510_v38 }
 0x68d   :  { %v5578_v35 = vadd.f32 %v5577_v26, %v10041_v1  ;;  %v5601_v55 = vmul.f32 %v10041_v1, %v10041_v1 }
 0x68f   :  { %v5616_v33 = vadd.f32 %v5615_v62, %v5601_v55 }
 0x690   :  { %v5511_v12 = vpop.f32.mrf.mxu3 }
 0x691   :  { %v5512_v0 = vadd.f32 %v5511_v12, %v5463_v6  ;;  %v5826_v6 = vmul.f32 0.2, %v9968_v42  ;;  %v10091_v12 = vstv %s5859_s27 }
 0x693   :  { %v10049_v48 = vadd.f32 %v5560_v32, %v5512_v0  ;;  %v5827_v0 = vmul.f32 0.2, %v9979_v58  ;;  %v5828_v32 = vmul.f32 0.2, %v9990_v4 }
 0x695   :  { %v5579_v47 = vadd.f32 %v5578_v35, %v10049_v48  ;;  %v5602_v21 = vmul.f32 %v10049_v48, %v10049_v48 }
 0x697   :  { %v5580_v19 = vrot.slane %v5579_v47, 4  ;;  %v5617_v31 = vadd.f32 %v5616_v33, %v5602_v21  ;;  %v5842_v21 = vsel %vm5810_vm1, %v9968_v42, %v5826_v6 }
 0x699   :  { %v5581_v17 = vadd.f32 %v5580_v19, %v5579_v47  ;;  %v5618_v54 = vrot.slane %v5617_v31, 4  ;;  %v5829_v47 = vmul.f32 0.2, %v9998_v9  ;;  %v5797_v19 = vpop.f32.mrf.mxu2 }
 0x69a   :  { %vm5821_vm14 = vcmp.ge.f32.partialorder %v5797_v19, 0.0 }
 0x69b   :  { %v5582_v63 = vrot.slane %v5581_v17, 2  ;;  %v5619_v3 = vadd.f32 %v5618_v54, %v5617_v31  ;;  %v10103_v31 = vstv %s10377_s0  ;;  %v5843_v54 = vsel %vm5811_vm4, %v9979_v58, %v5827_v0 }
 0x69c   :  { %v5845_v42 = vsel %vm5813_vm6, %v9998_v9, %v5829_v47  ;;  %v5835_v9 = vmul.f32 0.2, %v10054_v30 }
 0x69d   :  { %v5583_v2 = vadd.f32 %v5582_v63, %v5581_v17  ;;  %v5620_v60 = vrot.slane %v5619_v3, 2  ;;  %v10106_v17 = vmul.f32 %v10091_v12, %v5842_v21  ;;  %v5844_v63 = vsel %vm5812_vm5, %v9990_v4, %v5828_v32 }
 0x69e   :  { %v5834_v4 = vmul.f32 0.2, %v10047_v56  ;;  %v10139_v32 = vmul.f32 %v10091_v12, %v5844_v63  ;;  %v10142_v47 = vmul.f32 %v10091_v12, %v5845_v42  ;;  %v5851_v21 = vsel %vm5819_vm12, %v10054_v30, %v5835_v9 }
 0x69f   :  { %v5584_v18 = vrot.slane %v5583_v2, 1  ;;  %v5621_v16 = vadd.f32 %v5620_v60, %v5619_v3  ;;  %v5831_v60 = vmul.f32 0.2, %v10015_v59 }
 0x6a1   :  { %v5585_v40 = vadd.f32 %v5584_v18, %v5583_v2  ;;  %v5622_v57 = vrot.slane %v5621_v16, 1  ;;  %v5830_v2 = vmul.f32 0.2, %v10006_v11  ;;  %v5832_v18 = vmul.f32 0.2, %v10025_v27 }
 0x6a3   :  { %v10056_v37 = vmul.f32 0.0078125, %v5585_v40  ;;  %v5623_v53 = vadd.f32 %v5622_v57, %v5621_v16  ;;  %v5833_v16 = vmul.f32 0.2, %v10036_v28  ;;  %v5836_v57 = vmul.f32 0.2, %v10064_v41 }
 0x6a5   :  { %v5624_v14 = vmul.f32 0.0078125, %v5623_v53  ;;  %v5625_v50 = vmul.f32 %v10056_v37, %v10056_v37  ;;  %v5643_v22 = vsub.f32 %v10049_v48, %v10056_v37  ;;  %v5638_v20 = vsub.f32 %v10009_v34, %v10056_v37 }
 0x6a6   :  { %v5632_v43 = vsub.f32 %v9953_v24, %v10056_v37  ;;  %v5633_v13 = vsub.f32 %v9971_v5, %v10056_v37  ;;  %v5634_v26 = vsub.f32 %v9977_v23, %v10056_v37  ;;  %v5635_v36 = vsub.f32 %v9985_v46, %v10056_v37 }
 0x6a7   :  { %v5626_v39 = vsub.f32 %v5624_v14, %v5625_v50  ;;  %v5636_v62 = vsub.f32 %v9993_v7, %v10056_v37  ;;  %v5637_v29 = vsub.f32 %v10001_v25, %v10056_v37  ;;  %v5639_v49 = vsub.f32 %v10017_v44, %v10056_v37 }
 0x6a8   :  { %v5640_v52 = vsub.f32 %v10023_v61, %v10056_v37  ;;  %v5641_v35 = vsub.f32 %v10031_v15, %v10056_v37  ;;  %v5642_v55 = vsub.f32 %v10041_v1, %v10056_v37  ;;  %v5837_v53 = vmul.f32 0.2, %v5797_v19 }
 0x6a9   :  { %v5627_v38 = vmax.f32 %v5626_v39, 0.0  ;;  %v10125_v14 = vmul.f32 %v10091_v12, %v5843_v54  ;;  %v5846_v50 = vsel %vm5814_vm7, %v10006_v11, %v5830_v2  ;;  %v5847_v39 = vsel %vm5815_vm8, %v10015_v59, %v5831_v60  ;;  %v10148_v59 = vpop.f32.mrf.mxu2 }
 0x6aa   :  { %v5849_v6 = vsel %vm5817_vm10, %v10036_v28, %v5833_v16  ;;  %v5850_v11 = vsel %vm5818_vm11, %v10047_v56, %v5834_v4  ;;  %v5853_v28 = vsel %vm5821_vm14, %v5797_v19, %v5837_v53  ;;  %v10152_v2 = vmul.f32 %v10091_v12, %v5846_v50  ;;  %v10172_v19 = vld [vmem:[%s10375_s5] ss:$0 sm:$0xff] }
 0x6ab   :  { %v5644_v33 = vadd.f32 1e-05, %v5627_v38  ;;  %v5848_v38 = vsel %vm5816_vm9, %v10025_v27, %v5832_v18  ;;  %v5852_v27 = vsel %vm5820_vm13, %v10064_v41, %v5836_v57  ;;  %v10155_v63 = vmul.f32 %v10091_v12, %v5847_v39 }
 0x6ac   :  { %v10158_v42 = vmul.f32 %v10091_v12, %v5848_v38  ;;  %v10161_v56 = vmul.f32 %v10091_v12, %v5849_v6  ;;  %v10164_v30 = vmul.f32 %v10091_v12, %v5850_v11  ;;  %v10167_v60 = vmul.f32 %v10091_v12, %v5851_v21 }
 0x6ad   :  { %7414 = vrsqrt.f32 %v5644_v33  ;;  %vm5651_vm2 = vweird.f32 %v5644_v33  ;;  %v5871_v18 = vmul.f32 %v10091_v12, %v5852_v27  ;;  %v5628_v16 = vsub.f32 %v9944_v51, %v10056_v37 }
 0x6ae   :  { %v10180_v4 = vmul.f32 %v10091_v12, %v5853_v28  ;;  %v10189_v57 = vmul.f32 0.2, %v10148_v59  ;;  %vm5822_vm14 = vcmp.ge.f32.partialorder %v10148_v59, 0.0 }
 0x6b3   :  { %v7415_v3 = vpop.eup %7414 }
 0x6b4   :  { %v5646_v58 = vmul.f32 %v7415_v3, %v5644_v33  ;;  %vm5652_vm15 = vweird.f32 %v7415_v3  ;;  %v5630_v33 = vsub.f32 %v9946_v8, %v10056_v37  ;;  %v10202_v8 = vld [vmem:[%s10376_s6] ss:$0 sm:$0xff] }
 0x6b5   :  { %vm5653_vm3 = vmor %vm5651_vm2, %vm5652_vm15 }
 0x6b6   :  { %v5647_v40 = vmul.f32 %v7415_v3, %v5646_v58  ;;  %v5629_v58 = vsub.f32 %v9940_v10, %v10056_v37 }
 0x6b8   :  { %v5648_v0 = vmul.f32 0.5, %v5647_v40  ;;  %v5631_v40 = vsub.f32 %v9951_v45, %v10056_v37 }
 0x6ba   :  { %v5649_v54 = vsub.f32 1.5, %v5648_v0 }
 0x6bc   :  { %v5650_v41 = vmul.f32 %v7415_v3, %v5649_v54 }
 0x6be   :  { %v10182_v9 = vsel %vm5653_vm3, %v7415_v3, %v5650_v41 }
 0x6bf   :  { %v5670_v51 = vmul.f32 %v10182_v9, %v5643_v22  ;;  %v5665_v10 = vmul.f32 %v10182_v9, %v5638_v20  ;;  %v5655_v45 = vmul.f32 %v10182_v9, %v5628_v16  ;;  %v5656_v3 = vmul.f32 %v10182_v9, %v5629_v58 }
 0x6c0   :  { %v5657_v53 = vmul.f32 %v10182_v9, %v5630_v33  ;;  %v5658_v48 = vmul.f32 %v10182_v9, %v5631_v40  ;;  %v5659_v34 = vmul.f32 %v10182_v9, %v5632_v43  ;;  %v5660_v22 = vmul.f32 %v10182_v9, %v5633_v13 }
 0x6c1   :  { %v10217_v20 = vmul.f32 %v10172_v19, %v5670_v51  ;;  %v5684_v50 = vmul.f32 %v10172_v19, %v5665_v10  ;;  %v5661_v39 = vmul.f32 %v10182_v9, %v5634_v26  ;;  %v5662_v24 = vmul.f32 %v10182_v9, %v5635_v36 }
 0x6c2   :  { %v5663_v5 = vmul.f32 %v10182_v9, %v5636_v62  ;;  %v5664_v43 = vmul.f32 %v10182_v9, %v5637_v29  ;;  %v5666_v23 = vmul.f32 %v10182_v9, %v5639_v49  ;;  %v5674_v13 = vmul.f32 %v10172_v19, %v5655_v45  ;;  %v10245_v62 = vpop.f32.mrf.mxu2 }
 0x6c3   :  { %v5703_v46 = vadd.f32 %v10202_v8, %v5684_v50  ;;  %v5675_v26 = vmul.f32 %v10172_v19, %v5656_v3  ;;  %v5676_v7 = vmul.f32 %v10172_v19, %v5657_v53  ;;  %v5677_v36 = vmul.f32 %v10172_v19, %v5658_v48 }
 0x6c4   :  { %v5678_v25 = vmul.f32 %v10172_v19, %v5659_v34  ;;  %v5679_v29 = vmul.f32 %v10172_v19, %v5660_v22  ;;  %v5680_v44 = vmul.f32 %v10172_v19, %v5661_v39  ;;  %v5681_v49 = vmul.f32 %v10172_v19, %v5662_v24 }
 0x6c5   :  { %vm5719_vm0 = vcmp.ge.f32.partialorder %v5703_v46, 0.0  ;;  %v5735_v38 = vmul.f32 0.2, %v5703_v46  ;;  %v5682_v6 = vmul.f32 %v10172_v19, %v5663_v5  ;;  %v5683_v0 = vmul.f32 %v10172_v19, %v5664_v43 }
 0x6c6   :  { %v5685_v11 = vmul.f32 %v10172_v19, %v5666_v23  ;;  %v5693_v21 = vadd.f32 %v10202_v8, %v5674_v13  ;;  %v5694_v54 = vadd.f32 %v10202_v8, %v5675_v26  ;;  %v5695_v27 = vadd.f32 %v10202_v8, %v5676_v7 }
 0x6c7   :  { %v5751_v28 = vsel %vm5719_vm0, %v5703_v46, %v5735_v38  ;;  %v5696_v41 = vadd.f32 %v10202_v8, %v5677_v36  ;;  %v5697_v16 = vadd.f32 %v10202_v8, %v5678_v25  ;;  %v5698_v58 = vadd.f32 %v10202_v8, %v5679_v29 }
 0x6c8   :  { %v5888_v33 = vmul.f32 %v10103_v31, %v5751_v28  ;;  %v5699_v40 = vadd.f32 %v10202_v8, %v5680_v44  ;;  %v5700_v51 = vadd.f32 %v10202_v8, %v5681_v49  ;;  %v5701_v10 = vadd.f32 %v10202_v8, %v5682_v6 }
 0x6c9   :  { %v5702_v45 = vadd.f32 %v10202_v8, %v5683_v0  ;;  %v5704_v3 = vadd.f32 %v10202_v8, %v5685_v11  ;;  %vm5709_vm1 = vcmp.ge.f32.partialorder %v5693_v21, 0.0  ;;  %vm5710_vm4 = vcmp.ge.f32.partialorder %v5694_v54, 0.0 }
 0x6ca   :  { %v10266_v53 = vadd.f32 %v5888_v33, %v5871_v18  ;;  %vm5711_vm5 = vcmp.ge.f32.partialorder %v5695_v27, 0.0  ;;  %vm5712_vm6 = vcmp.ge.f32.partialorder %v5696_v41, 0.0  ;;  %vm5713_vm7 = vcmp.ge.f32.partialorder %v5697_v16, 0.0  ;;  %v10272_v24 = vpop.f32.mrf.mxu2 }
 0x6cb   :  { %vm5714_vm8 = vcmp.ge.f32.partialorder %v5698_v58, 0.0  ;;  %vm5715_vm9 = vcmp.ge.f32.partialorder %v5699_v40, 0.0  ;;  %vm5716_vm10 = vcmp.ge.f32.partialorder %v5700_v51, 0.0  ;;  %vm5717_vm11 = vcmp.ge.f32.partialorder %v5701_v10, 0.0 }
 0x6cc   :  { %vm5718_vm12 = vcmp.ge.f32.partialorder %v5702_v45, 0.0  ;;  %vm5720_vm13 = vcmp.ge.f32.partialorder %v5704_v3, 0.0  ;;  %v5725_v48 = vmul.f32 0.2, %v5693_v21  ;;  %v5726_v34 = vmul.f32 0.2, %v5694_v54 }
 0x6cd   :  { %v5727_v22 = vmul.f32 0.2, %v5695_v27  ;;  %v5728_v50 = vmul.f32 0.2, %v5696_v41  ;;  %v5729_v39 = vmul.f32 0.2, %v5697_v16  ;;  %v5667_v18 = vmul.f32 %v10182_v9, %v5640_v52 }
 0x6ce   :  { %v5730_v5 = vmul.f32 0.2, %v5698_v58  ;;  %v5731_v43 = vmul.f32 0.2, %v5699_v40  ;;  %v5732_v23 = vmul.f32 0.2, %v5700_v51  ;;  %v5741_v13 = vsel %vm5709_vm1, %v5693_v21, %v5725_v48 }
 0x6cf   :  { %v5733_v46 = vmul.f32 0.2, %v5701_v10  ;;  %v5734_v26 = vmul.f32 0.2, %v5702_v45  ;;  %v5736_v7 = vmul.f32 0.2, %v5704_v3  ;;  %v5742_v36 = vsel %vm5710_vm4, %v5694_v54, %v5726_v34 }
 0x6d0   :  { %v5743_v25 = vsel %vm5711_vm5, %v5695_v27, %v5727_v22  ;;  %v5744_v29 = vsel %vm5712_vm6, %v5696_v41, %v5728_v50  ;;  %v5745_v61 = vsel %vm5713_vm7, %v5697_v16, %v5729_v39  ;;  %v5746_v52 = vsel %vm5714_vm8, %v5698_v58, %v5730_v5 }
 0x6d1   :  { %v5747_v44 = vsel %vm5715_vm9, %v5699_v40, %v5731_v43  ;;  %v5748_v49 = vsel %vm5716_vm10, %v5700_v51, %v5732_v23  ;;  %v5749_v38 = vsel %vm5717_vm11, %v5701_v10, %v5733_v46  ;;  %v5750_v6 = vsel %vm5718_vm12, %v5702_v45, %v5734_v26 }
 0x6d2   :  { %v5752_v0 = vsel %vm5720_vm13, %v5704_v3, %v5736_v7  ;;  %v5878_v11 = vmul.f32 %v10103_v31, %v5741_v13  ;;  %v5879_v21 = vmul.f32 %v10103_v31, %v5742_v36  ;;  %v5880_v54 = vmul.f32 %v10103_v31, %v5743_v25 }
 0x6d3   :  { %v5881_v27 = vmul.f32 %v10103_v31, %v5744_v29  ;;  %v5882_v28 = vmul.f32 %v10103_v31, %v5745_v61  ;;  %v5883_v41 = vmul.f32 %v10103_v31, %v5746_v52  ;;  %v5884_v16 = vmul.f32 %v10103_v31, %v5747_v44 }
 0x6d4   :  { %vm5823_vm15 = vcmp.ge.f32.partialorder %v10245_v62, 0.0  ;;  %v5885_v58 = vmul.f32 %v10103_v31, %v5748_v49  ;;  %v5886_v33 = vmul.f32 %v10103_v31, %v5749_v38  ;;  %v5887_v40 = vmul.f32 %v10103_v31, %v5750_v6 }
 0x6d5   :  { %v5889_v51 = vmul.f32 %v10103_v31, %v5752_v0  ;;  %v5894_v10 = vadd.f32 %v5878_v11, %v10106_v17  ;;  %v5895_v45 = vadd.f32 %v5879_v21, %v10125_v14  ;;  %v5896_v3 = vadd.f32 %v5880_v54, %v10139_v32  ;;  %v5807_v14 = vpop.f32.mrf.mxu2 }
 0x6d6   :  { %v5897_v48 = vadd.f32 %v5881_v27, %v10142_v47  ;;  %v5898_v34 = vadd.f32 %v5882_v28, %v10152_v2  ;;  %v5899_v22 = vadd.f32 %v5883_v41, %v10155_v63  ;;  %v5900_v50 = vadd.f32 %v5884_v16, %v10158_v42 }
 0x6d7   :  { %v5901_v39 = vadd.f32 %v5885_v58, %v10161_v56  ;;  %v5902_v5 = vadd.f32 %v5886_v33, %v10164_v30  ;;  %v5903_v43 = vadd.f32 %v5887_v40, %v10167_v60  ;;  %v5905_v17 = vadd.f32 %v5889_v51, %v10180_v4 }
 0x6d8   :  { %v7365_v23 = vpack.c.bf16 %v5895_v45, %v5894_v10  ;;  %v7370_v13 = vpack.c.bf16 %v5897_v48, %v5896_v3  ;;  %v7375_v32 = vpack.c.bf16 %v5899_v22, %v5898_v34  ;;  %v5686_v47 = vmul.f32 %v10172_v19, %v5667_v18 }
 0x6d9   :  { %v7380_v46 = vpack.c.bf16 %v5901_v39, %v5900_v50  ;;  %v7385_v2 = vpack.c.bf16 %v5903_v43, %v5902_v5  ;;  %v7390_v63 = vpack.c.bf16 %v5905_v17, %v10266_v53  ;;  %v5668_v42 = vmul.f32 %v10182_v9, %v5641_v35 }
 0x6da   :  { %7366 = vst [vmem:[%s10378_s7] sm:$0xff] %v7365_v23   ;;  %v5669_v56 = vmul.f32 %v10182_v9, %v5642_v55  ;;  %v5705_v30 = vadd.f32 %v10202_v8, %v5686_v47  ;;  %v5839_v60 = vmul.f32 0.2, %v10245_v62  ;;  %v5708_v4 = vadd.f32 %v10202_v8, %v10217_v20 }
 0x6db   :  { %7402 = vst [vmem:[%s10378_s7 + $0x8] sm:$0xff] %v7370_v13   ;;  %v5841_v53 = vmul.f32 0.2, %v5807_v14  ;;  %v5687_v15 = vmul.f32 %v10172_v19, %v5668_v42  ;;  %v5840_v37 = vmul.f32 0.2, %v10272_v24  ;;  %vm5825_vm2 = vcmp.ge.f32.partialorder %v5807_v14, 0.0 }
 0x6dc   :  { %7403 = vst [vmem:[%s10378_s7 + $0x10] sm:$0xff] %v7375_v32   ;;  %v5688_v1 = vmul.f32 %v10172_v19, %v5669_v56  ;;  %vm5721_vm3 = vcmp.ge.f32.partialorder %v5705_v30, 0.0  ;;  %v5737_v35 = vmul.f32 0.2, %v5705_v30  ;;  %v5854_v55 = vsel %vm5822_vm14, %v10148_v59, %v10189_v57 }
 0x6dd   :  { %7404 = vst [vmem:[%s10378_s7 + $0x18] sm:$0xff] %v7380_v46   ;;  %vm5824_vm0 = vcmp.ge.f32.partialorder %v10272_v24, 0.0  ;;  %v5706_v19 = vadd.f32 %v10202_v8, %v5687_v15  ;;  %vm5724_vm1 = vcmp.ge.f32.partialorder %v5708_v4, 0.0  ;;  %v5740_v20 = vmul.f32 0.2, %v5708_v4 }
 0x6de   :  { %7405 = vst [vmem:[%s10378_s7 + $0x20] sm:$0xff] %v7385_v2   ;;  %v5707_v9 = vadd.f32 %v10202_v8, %v5688_v1  ;;  %v5753_v18 = vsel %vm5721_vm3, %v5705_v30, %v5737_v35  ;;  %v5855_v59 = vsel %vm5823_vm15, %v10245_v62, %v5839_v60  ;;  %v5857_v57 = vsel %vm5825_vm2, %v5807_v14, %v5841_v53 }
 0x6df   :  { %7406 = vst [vmem:[%s10378_s7 + $0x28] sm:$0xff] %v7390_v63   ;;  %v5890_v26 = vmul.f32 %v10103_v31, %v5753_v18  ;;  %vm5722_vm4 = vcmp.ge.f32.partialorder %v5706_v19, 0.0  ;;  %v5738_v7 = vmul.f32 0.2, %v5706_v19  ;;  %v5873_v36 = vmul.f32 %v10091_v12, %v5854_v55 }
 0x6e0   :  { %vm5723_vm5 = vcmp.ge.f32.partialorder %v5707_v9, 0.0  ;;  %v5739_v8 = vmul.f32 0.2, %v5707_v9  ;;  %v5856_v25 = vsel %vm5824_vm0, %v10272_v24, %v5840_v37  ;;  %v5756_v29 = vsel %vm5724_vm1, %v5708_v4, %v5740_v20 }
 0x6e1   :  { %v5754_v61 = vsel %vm5722_vm4, %v5706_v19, %v5738_v7  ;;  %v5876_v52 = vmul.f32 %v10091_v12, %v5857_v57  ;;  %v5893_v44 = vmul.f32 %v10103_v31, %v5756_v29  ;;  %v5906_v62 = vadd.f32 %v5890_v26, %v5873_v36 }
 0x6e2   :  { %v5874_v49 = vmul.f32 %v10091_v12, %v5855_v59  ;;  %v5891_v38 = vmul.f32 %v10103_v31, %v5754_v61  ;;  %v5755_v6 = vsel %vm5723_vm5, %v5707_v9, %v5739_v8  ;;  %v5875_v0 = vmul.f32 %v10091_v12, %v5856_v25 }
 0x6e3   :  { %v5892_v11 = vmul.f32 %v10103_v31, %v5755_v6  ;;  %v5909_v21 = vadd.f32 %v5893_v44, %v5876_v52 }
 0x6e4   :  { %v5907_v54 = vadd.f32 %v5891_v38, %v5874_v49 }
 0x6e5   :  { %v5908_v27 = vadd.f32 %v5892_v11, %v5875_v0 }
 0x6e6   :  { %v7395_v24 = vpack.c.bf16 %v5907_v54, %v5906_v62 }
 0x6e7   :  { %v7400_v28 = vpack.c.bf16 %v5909_v21, %v5908_v27 }
 0x6e8   :  { %7407 = vst [vmem:[%s10378_s7 + $0x30] sm:$0xff] %v7395_v24  }
 0x6e9   :  { %7408 = vst [vmem:[%s10378_s7 + $0x38] sm:$0xff] %v7400_v28  }

</bundles_post_ra>
